<compile_context>
chip_gen: v5e
topology: v5e:2x2
jax: 0.10.0
libtpu: 0.0.40
codegen_flags: <defaults>
</compile_context>

<pallas_src>
import math
from functools import partial

import jax
import jax.numpy as jnp
from jax import lax
from jax.experimental import pallas as pl
from jax.experimental.pallas import tpu as pltpu

LANE = 128

_VMEM_LIMIT = None


def _vmem_limit():
    """Generation-aware scoped-VMEM budget (~75% of physical VMEM)."""
    global _VMEM_LIMIT
    if _VMEM_LIMIT is None:
        try:
            cap = int(pltpu.get_tpu_info().vmem_capacity_bytes)
        except Exception:
            cap = 64 * 1024 * 1024          # conservative fallback (safe on v7x)
        _VMEM_LIMIT = (cap * 3) // 4
    return _VMEM_LIMIT


def _cdiv(a, b):
    return -(-a // b)


def _round_up(x, m):
    return _cdiv(x, m) * m


def _cp(c):
    """Round a channel count up to a lane-dense multiple of 128."""
    return _round_up(c, LANE)


def _row_tile(H, Wp):
    """Pick TH so M_tile=TH*Wp ~ 1-2k rows, but force >=2 row tiles whenever H >= 2
    (feeds both v7x TensorCores even at batch=1; costs ~0.35us/step elsewhere)."""
    target = 2048 if _vmem_limit() >= 80 * 1024 * 1024 else 1024
    TH = max(1, min(_cdiv(H, 2), target // Wp))
    return TH, _cdiv(H, TH)


# --------------------------- in-kernel math helpers ---------------------------

_SQRT_HALF = 0.7071067811865476


def _erf(x):
    # Abramowitz & Stegun 7.1.26, max abs error ~1.5e-7 (f32; exp rides the EUP slot).
    a1, a2, a3, a4, a5 = 0.254829592, -0.284496736, 1.421413741, -1.453152027, 1.061405429
    p = 0.3275911
    ax = jnp.abs(x)
    t = 1.0 / (1.0 + p * ax)
    poly = ((((a5 * t + a4) * t + a3) * t + a2) * t + a1) * t
    y = 1.0 - poly * jnp.exp(-ax * ax)
    return jnp.where(x < 0.0, -y, y)


def _gelu_exact(x):
    # nn.GELU() default (exact erf variant), evaluated in f32 inside the kernel.
    return 0.5 * x * (1.0 + _erf(x * _SQRT_HALF))


# ------------------------------- Pallas kernels --------------------------------

def _make_flat_conv_kernel(wp, m, lc, cin_p, apply_gelu, has_shortcut):
    """Fused 3x3 stride-1 conv on a flat row-tile:
       kj-fused operand build (VMEM scratch) + 3 MXU matmuls (K=3*Cin_p, f32 acc)
       + bias + exact GELU + residual add."""

    def kernel(*refs):
        if has_shortcut:
            x_ref, w_ref, b_ref, s_ref, o_ref, xc_ref = refs
        else:
            x_ref, w_ref, b_ref, o_ref, xc_ref = refs

        # Pack the three kj taps once: xc[p, kj*C:(kj+1)*C] = x[p + kj, :].
        # kj=0 is sublane-aligned; kj=1,2 are the only misaligned copies (vs 6 before).
        for kj in range(3):
            xc_ref[:, kj * cin_p:(kj + 1) * cin_p] = x_ref[0, kj:kj + lc, :]

        # 3 matmuls, one per kernel row; ki*wp is 8-aligned because wp % 8 == 0.
        acc = jnp.dot(xc_ref[0:m, :], w_ref[0],
                      preferred_element_type=jnp.float32) + b_ref[...]
        for ki in range(1, 3):
            off = ki * wp
            acc = acc + jnp.dot(xc_ref[off:off + m, :], w_ref[ki],
                                preferred_element_type=jnp.float32)

        if apply_gelu:
            acc = _gelu_exact(acc)
        if has_shortcut:
            # shortcut = residual-block input in the same flat-tiled layout;
            # output flat row p maps to shortcut flat row p + wp + 1.
            acc = acc + s_ref[0, wp + 1:wp + 1 + m, :].astype(jnp.float32)
        o_ref[0] = acc.astype(o_ref.dtype)

    return kernel


def _mm_bias_kernel(a_ref, w_ref, b_ref, o_ref):
    acc = jnp.dot(a_ref[...], w_ref[...], preferred_element_type=jnp.float32)
    o_ref[...] = (acc + b_ref[...]).astype(o_ref.dtype)


def _avgpool_kernel(x_ref, o_ref):
    # (1, H*W, Cp) -> (1, 1, Cp): AdaptiveAvgPool2d(1) == spatial mean, per image.
    o_ref[0] = jnp.mean(x_ref[0].astype(jnp.float32), axis=0, keepdims=True)


# ------------------------------ Pallas wrappers ---------------------------------

def _flat_pad_tiled(x, Wp, TH, n_tiles):
    """NHWC -> per-row-tile flat blocks (N*n_tiles, (TH+3)*Wp, C).

    Each tile holds padded rows [t*TH, t*TH + TH + 3): TH output rows, the 2 conv halo
    rows, plus one spare row so the in-kernel kj shifts never run off the end.
    Wp is a multiple of 8 (conv pad 1 on the left, zero-fill on the right)."""
    N, H, W, C = x.shape
    Hp = n_tiles * TH + 3
    xp = jnp.pad(x, ((0, 0), (1, Hp - 1 - H), (1, Wp - 1 - W), (0, 0)))
    ridx = jnp.arange(n_tiles)[:, None] * TH + jnp.arange(TH + 3)[None, :]
    xt = xp[:, ridx, :, :]                                   # (N, nt, TH+3, Wp, C)
    return xt.reshape(N * n_tiles, (TH + 3) * Wp, C)


def _unflat(y, N, H, W, Wp, TH, n_tiles):
    """(N*n_tiles, TH*Wp, C) flat conv output -> valid NHWC (drops halo/pad cols+rows)."""
    C = y.shape[-1]
    return y.reshape(N, n_tiles * TH, Wp, C)[:, :H, :W, :]


def _flat_conv(xf, Wp, TH, n_tiles, wb, apply_gelu, shortcut_flat=None):
    """3x3 / stride 1 / pad 1 conv on flat row-tiles (no HBM im2col)."""
    w_rows, bias = wb                    # (3, 3*Cin_p, Cout_p) bf16, (1, Cout_p) f32
    NT, Lt, Cin_p = xf.shape
    _, K3, Cout_p = w_rows.shape
    M = TH * Wp                          # output rows per tile (incl. halo garbage cols)
    Lc = (TH + 2) * Wp                   # kj-fused operand length
    TN = 256 if Cout_p % 256 == 0 else LANE
    nj = Cout_p // TN

    kernel = _make_flat_conv_kernel(Wp, M, Lc, Cin_p, apply_gelu,
                                    shortcut_flat is not None)
    in_specs = [
        pl.BlockSpec((1, Lt, Cin_p), lambda i, j: (i, 0, 0)),
        pl.BlockSpec((3, K3, TN), lambda i, j: (0, 0, j)),
        pl.BlockSpec((1, TN), lambda i, j: (0, j)),
    ]
    args = [xf, w_rows, bias]
    if shortcut_flat is not None:
        in_specs.append(pl.BlockSpec((1, Lt, TN), lambda i, j: (i, 0, j)))
        args.append(shortcut_flat)

    return pl.pallas_call(
        kernel,
        out_shape=jax.ShapeDtypeStruct((NT, M, Cout_p), jnp.bfloat16),
        grid=(NT, nj),
        in_specs=in_specs,
        out_specs=pl.BlockSpec((1, M, TN), lambda i, j: (i, 0, j)),
        scratch_shapes=[pltpu.VMEM((Lc, 3 * Cin_p), jnp.bfloat16)],
        compiler_params=pltpu.CompilerParams(
            dimension_semantics=("parallel", "parallel"),
            vmem_limit_bytes=_vmem_limit()),
    )(*args)


def conv3x3_s1(x, wb, apply_gelu):
    N, H, W, _ = x.shape
    Wp = _round_up(W + 2, 8)
    TH, nt = _row_tile(H, Wp)
    y = _flat_conv(_flat_pad_tiled(x, Wp, TH, nt), Wp, TH, nt, wb, apply_gelu)
    return _unflat(y, N, H, W, Wp, TH, nt)


def _matmul_bias(a, w, b):
    """(M, K) @ (K, Cout_p) + bias on the MXU; M row-tiled for >=2 parallel steps."""
    M, K = a.shape
    Cout_p = w.shape[1]
    TN = 512 if Cout_p % 512 == 0 else 256 if Cout_p % 256 == 0 else LANE
    if M % 8 == 0 and M > 8:
        TM = min(512, max(8, _round_up(_cdiv(M, 2), 8)))
    else:
        TM = M                                  # tiny / non-8-multiple M: single full block
    grid = (_cdiv(M, TM), Cout_p // TN)
    return pl.pallas_call(
        _mm_bias_kernel,
        out_shape=jax.ShapeDtypeStruct((M, Cout_p), jnp.bfloat16),
        grid=grid,
        in_specs=[pl.BlockSpec((TM, K), lambda i, j: (i, 0)),
                  pl.BlockSpec((K, TN), lambda i, j: (0, j)),
                  pl.BlockSpec((1, TN), lambda i, j: (0, j))],
        out_specs=pl.BlockSpec((TM, TN), lambda i, j: (i, j)),
        compiler_params=pltpu.CompilerParams(
            dimension_semantics=("parallel", "parallel"),
            vmem_limit_bytes=_vmem_limit()),
    )(a, w, b)


def conv_strided(x, wb, k, stride, pad):
    """k x k strided downsample conv -> fused Pallas matmul+bias.
    stride==k, pad==0 (downsample_first) uses a space-to-depth reshape (no im2col)."""
    w_mat, bias = wb
    N, H, W, Cp = x.shape
    Cout_p = w_mat.shape[1]
    Ho = (H + 2 * pad - k) // stride + 1
    Wo = (W + 2 * pad - k) // stride + 1
    if stride == k and pad == 0:
        a = x[:, :Ho * k, :Wo * k, :].reshape(N, Ho, k, Wo, k, Cp)
        a = jnp.transpose(a, (0, 1, 3, 2, 4, 5)).reshape(N * Ho * Wo, k * k * Cp)
    else:
        # TODO(synk): small XLA im2col (<=2.25x read amp for 3x3/s2); an in-kernel
        # strided pl.ds-load variant would remove it.
        xp = jnp.pad(x, ((0, 0), (pad, pad), (pad, pad), (0, 0)))
        cols = [xp[:, i:i + stride * Ho:stride, j:j + stride * Wo:stride, :]
                for i in range(k) for j in range(k)]
        a = jnp.concatenate(cols, axis=-1).reshape(N * Ho * Wo, k * k * Cp)
    out = _matmul_bias(a, w_mat, bias)
    return out.reshape(N, Ho, Wo, Cout_p)


def adaptive_avgpool_1x1(x):
    """AdaptiveAvgPool2d(1) on NHWC via a per-image Pallas reduction (grid over N)."""
    N, H, W, Cp = x.shape
    out = pl.pallas_call(
        _avgpool_kernel,
        out_shape=jax.ShapeDtypeStruct((N, 1, Cp), jnp.float32),
        grid=(N,),
        in_specs=[pl.BlockSpec((1, H * W, Cp), lambda n: (n, 0, 0))],
        out_specs=pl.BlockSpec((1, 1, Cp), lambda n: (n, 0, 0)),
        compiler_params=pltpu.CompilerParams(
            dimension_semantics=("parallel",),
            vmem_limit_bytes=_vmem_limit()),
    )(x.reshape(N, H * W, Cp))
    return out.reshape(N, Cp)


# ------------------------------- Model forward ----------------------------------

def residual_block(x, pp, pref):
    N, H, W, _ = x.shape
    Wp = _round_up(W + 2, 8)
    TH, nt = _row_tile(H, Wp)
    xf0 = _flat_pad_tiled(x, Wp, TH, nt)        # reused as the fused shortcut of conv3
    y = _unflat(_flat_conv(xf0, Wp, TH, nt, pp[f"{pref}_c1"], True),
                N, H, W, Wp, TH, nt)
    y = _unflat(_flat_conv(_flat_pad_tiled(y, Wp, TH, nt), Wp, TH, nt,
                           pp[f"{pref}_c2"], True), N, H, W, Wp, TH, nt)
    y = _unflat(_flat_conv(_flat_pad_tiled(y, Wp, TH, nt), Wp, TH, nt,
                           pp[f"{pref}_c3"], True, shortcut_flat=xf0),
                N, H, W, Wp, TH, nt)
    return y


def conv_layer_forward(x_nchw, pp, out_channels):
    x = jnp.transpose(x_nchw, (0, 2, 3, 1))                        # NCHW -> NHWC
    cin = x.shape[-1]
    x = jnp.pad(x, ((0, 0), (0, 0), (0, 0), (0, _cp(cin) - cin))).astype(jnp.bfloat16)
    x = conv3x3_s1(x, pp["shallow"], apply_gelu=False)
    x = conv_strided(x, pp["ds0"], k=4, stride=4, pad=0)           # downsample_first
    x = residual_block(x, pp, "rb1")
    x = conv_strided(x, pp["ds1"], k=3, stride=2, pad=1)
    x = residual_block(x, pp, "rb2")
    x = conv_strided(x, pp["ds2"], k=3, stride=2, pad=1)
    x = residual_block(x, pp, "rb3")
    x = conv_strided(x, pp["ds3"], k=3, stride=2, pad=1)
    pooled = adaptive_avgpool_1x1(x)                               # (N, Cout_p) f32
    return pooled[:, :out_channels][:, :, None, None]              # NCHW (N, C, 1, 1)


# ------------------------------ Parameter setup ---------------------------------

def _init_conv(key, cout, cin, k):
    kw_key, kb_key = jax.random.split(key)
    bound = 1.0 / math.sqrt(cin * k * k)
    w = jax.random.uniform(kw_key, (cout, cin, k, k), jnp.float32, -bound, bound)
    b = jax.random.uniform(kb_key, (cout,), jnp.float32, -bound, bound)
    return w, b


def init_params(key, input_dim, embed_dim):
    names = [
        ("shallow", embed_dim, input_dim, 3),
        ("ds0", embed_dim, embed_dim, 4),
        ("rb1_c1", embed_dim, embed_dim, 3),
        ("rb1_c2", embed_dim, embed_dim, 3),
        ("rb1_c3", embed_dim, embed_dim, 3),
        ("ds1", embed_dim * 2, embed_dim, 3),
        ("rb2_c1", embed_dim * 2, embed_dim * 2, 3),
        ("rb2_c2", embed_dim * 2, embed_dim * 2, 3),
        ("rb2_c3", embed_dim * 2, embed_dim * 2, 3),
        ("ds2", embed_dim * 4, embed_dim * 2, 3),
        ("rb3_c1", embed_dim * 4, embed_dim * 4, 3),
        ("rb3_c2", embed_dim * 4, embed_dim * 4, 3),
        ("rb3_c3", embed_dim * 4, embed_dim * 4, 3),
        ("ds3", embed_dim * 8, embed_dim * 4, 3),
    ]
    keys = jax.random.split(key, len(names))
    p = {}
    for k_, (name, co, ci, ksz) in zip(keys, names):
        w, b = _init_conv(k_, co, ci, ksz)
        p[f"{name}_w"], p[f"{name}_b"] = w, b
    return p


def _pad_whw(w):
    cout, cin, kh, kw = w.shape
    cin_p, cout_p = _cp(cin), _cp(cout)
    wt = jnp.transpose(w, (2, 3, 1, 0))                            # (kh, kw, Cin, Cout)
    return jnp.pad(wt, ((0, 0), (0, 0), (0, cin_p - cin), (0, cout_p - cout))), cin_p, cout_p


def _prep_taps(w, b):
    """OIHW f32 -> kj-K-fused rows (3, 3*Cin_p, Cout_p) bf16 + (1, Cout_p) f32 bias."""
    wt, cin_p, cout_p = _pad_whw(w)
    kh, kw = w.shape[2], w.shape[3]
    wt = wt.reshape(kh, kw * cin_p, cout_p).astype(jnp.bfloat16)
    bp = jnp.pad(b, (0, cout_p - b.shape[0])).reshape(1, cout_p).astype(jnp.float32)
    return wt, bp


def _prep_mat(w, b):
    """OIHW f32 -> (kh*kw*Cin_p, Cout_p) bf16 im2col/space-to-depth matrix + bias."""
    wt, cin_p, cout_p = _pad_whw(w)
    kh, kw = w.shape[2], w.shape[3]
    wt = wt.reshape(kh * kw * cin_p, cout_p).astype(jnp.bfloat16)
    bp = jnp.pad(b, (0, cout_p - b.shape[0])).reshape(1, cout_p).astype(jnp.float32)
    return wt, bp


def prepare_params(p):
    pp = {"shallow": _prep_taps(p["shallow_w"], p["shallow_b"]),
          "ds0": _prep_mat(p["ds0_w"], p["ds0_b"])}
    for rb in ("rb1", "rb2", "rb3"):
        for c in ("c1", "c2", "c3"):
            pp[f"{rb}_{c}"] = _prep_taps(p[f"{rb}_{c}_w"], p[f"{rb}_{c}_b"])
    for d in ("ds1", "ds2", "ds3"):
        pp[d] = _prep_mat(p[f"{d}_w"], p[f"{d}_b"])
    return pp


# ----------------------------- Pure-JAX reference -------------------------------

def _conv_ref(x, w_oihw, b, stride, pad):
    y = lax.conv_general_dilated(
        x, jnp.transpose(w_oihw, (2, 3, 1, 0)),
        window_strides=(stride, stride), padding=[(pad, pad), (pad, pad)],
        dimension_numbers=("NHWC", "HWIO", "NHWC"),
        precision=lax.Precision.HIGHEST)
    return y + b


def _rb_ref(x, p, pref):
    sc = x
    g = partial(jax.nn.gelu, approximate=False)
    x = g(_conv_ref(x, p[f"{pref}_c1_w"], p[f"{pref}_c1_b"], 1, 1))
    x = g(_conv_ref(x, p[f"{pref}_c2_w"], p[f"{pref}_c2_b"], 1, 1))
    x = g(_conv_ref(x, p[f"{pref}_c3_w"], p[f"{pref}_c3_b"], 1, 1))
    return x + sc


def conv_layer_ref(x_nchw, p):
    x = jnp.transpose(x_nchw, (0, 2, 3, 1))
    x = _conv_ref(x, p["shallow_w"], p["shallow_b"], 1, 1)
    x = _conv_ref(x, p["ds0_w"], p["ds0_b"], 4, 0)
    x = _rb_ref(x, p, "rb1")
    x = _conv_ref(x, p["ds1_w"], p["ds1_b"], 2, 1)
    x = _rb_ref(x, p, "rb2")
    x = _conv_ref(x, p["ds2_w"], p["ds2_b"], 2, 1)
    x = _rb_ref(x, p, "rb3")
    x = _conv_ref(x, p["ds3_w"], p["ds3_b"], 2, 1)
    pooled = jnp.mean(x, axis=(1, 2))
    return pooled[:, :, None, None]


# ----------------------------------- main ----------------------------------------

if __name__ == "__main__":
    key = jax.random.PRNGKey(0)
    kx, kp = jax.random.split(key)

    batch, input_dim, embed_dim, spatial = 2, 4, 8, 16
    x = jax.random.normal(kx, (batch, input_dim, spatial, spatial), jnp.float32)  # NCHW
    params = init_params(kp, input_dim, embed_dim)
    pp = prepare_params(params)
    out_channels = embed_dim * 8

    fwd = jax.jit(partial(conv_layer_forward, out_channels=out_channels))
    out = jax.block_until_ready(fwd(x, pp))

    expected_shape = (batch, out_channels, 1, 1)
    assert out.shape == expected_shape, (out.shape, expected_shape)

    ref = jax.block_until_ready(jax.jit(conv_layer_ref)(x, params))
    max_err = float(jnp.max(jnp.abs(out - ref)))
    # bf16 operands / f32 accumulation vs. an f32 HIGHEST-precision reference.
    assert jnp.allclose(out, ref, atol=1e-2, rtol=5e-2), max_err

    print("KERNEL_OK")
</pallas_src>

<mosaic_0001>
module attributes {stable_mosaic.version = 11 : i64} {
  func.func @kernel(%arg0: i32, %arg1: i32, %arg2: memref<1x264x128xbf16, #tpu.memory_space<vmem>>, %arg3: memref<3x384x128xbf16, #tpu.memory_space<vmem>>, %arg4: memref<1x128xf32, #tpu.memory_space<vmem>>, %arg5: memref<1x192x128xbf16, #tpu.memory_space<vmem>>, %arg6: memref<240x384xbf16, #tpu.memory_space<vmem>>) attributes {dimension_semantics = [#tpu.dimension_semantics<parallel>, #tpu.dimension_semantics<parallel>], iteration_bounds = array<i64: 4, 1>, scalar_prefetch = 0 : i64, scratch_operands = 1 : i64, tpu.core_type = #tpu.core_type<tc>, window_params = [{transform_indices = @transform_0, window_bounds = array<i64: 1, 264, 128>}, {transform_indices = @transform_1, window_bounds = array<i64: 3, 384, 128>}, {transform_indices = @transform_2, window_bounds = array<i64: 1, 128>}, {transform_indices = @transform_3, window_bounds = array<i64: 1, 192, 128>}]} {
    %c0 = arith.constant 0 : index
    %c0_0 = arith.constant 0 : index
    %c0_1 = arith.constant 0 : index
    %0 = vector.load %arg2[%c0, %c0_0, %c0_1] : memref<1x264x128xbf16, #tpu.memory_space<vmem>>, vector<1x240x128xbf16>
    %1 = vector.shape_cast %0 : vector<1x240x128xbf16> to vector<240x128xbf16>
    %c0_2 = arith.constant 0 : index
    %c0_3 = arith.constant 0 : index
    %2 = vector.load %arg6[%c0_2, %c0_3] : memref<240x384xbf16, #tpu.memory_space<vmem>>, vector<240x128xbf16>
    tpu.vector_store %arg6[%c0_2, %c0_3], %1 {strides = array<i32>} : memref<240x384xbf16, #tpu.memory_space<vmem>>, vector<240x128xbf16>,
    %c0_4 = arith.constant 0 : index
    %c1 = arith.constant 1 : index
    %c0_5 = arith.constant 0 : index
    %3 = vector.load %arg2[%c0_4, %c1, %c0_5] : memref<1x264x128xbf16, #tpu.memory_space<vmem>>, vector<1x240x128xbf16>
    %4 = vector.shape_cast %3 : vector<1x240x128xbf16> to vector<240x128xbf16>
    %c0_6 = arith.constant 0 : index
    %c128 = arith.constant 128 : index
    %5 = vector.load %arg6[%c0_6, %c128] : memref<240x384xbf16, #tpu.memory_space<vmem>>, vector<240x128xbf16>
    tpu.vector_store %arg6[%c0_6, %c128], %4 {strides = array<i32>} : memref<240x384xbf16, #tpu.memory_space<vmem>>, vector<240x128xbf16>,
    %c0_7 = arith.constant 0 : index
    %c2 = arith.constant 2 : index
    %c0_8 = arith.constant 0 : index
    %6 = vector.load %arg2[%c0_7, %c2, %c0_8] : memref<1x264x128xbf16, #tpu.memory_space<vmem>>, vector<1x240x128xbf16>
    %7 = vector.shape_cast %6 : vector<1x240x128xbf16> to vector<240x128xbf16>
    %c0_9 = arith.constant 0 : index
    %c256 = arith.constant 256 : index
    %8 = vector.load %arg6[%c0_9, %c256] : memref<240x384xbf16, #tpu.memory_space<vmem>>, vector<240x128xbf16>
    tpu.vector_store %arg6[%c0_9, %c256], %7 {strides = array<i32>} : memref<240x384xbf16, #tpu.memory_space<vmem>>, vector<240x128xbf16>,
    %c0_10 = arith.constant 0 : index
    %c0_11 = arith.constant 0 : index
    %9 = vector.load %arg6[%c0_10, %c0_11] : memref<240x384xbf16, #tpu.memory_space<vmem>>, vector<192x384xbf16>
    %c0_12 = arith.constant 0 : index
    %c0_13 = arith.constant 0 : index
    %c0_14 = arith.constant 0 : index
    %10 = vector.load %arg3[%c0_12, %c0_13, %c0_14] : memref<3x384x128xbf16, #tpu.memory_space<vmem>>, vector<1x384x128xbf16>
    %11 = vector.shape_cast %10 : vector<1x384x128xbf16> to vector<384x128xbf16>
    %cst = arith.constant dense<0.000000e+00> : vector<192x128xf32>
    %12 = tpu.matmul %9, %11, %cst {dimension_numbers = #tpu.dot_dimension_numbers<[1], [0], [0], [1], [0, 0, 1, 1], [], []>} : vector<192x384xbf16>, vector<384x128xbf16>, vector<192x128xf32> -> vector<192x128xf32>
    %c0_15 = arith.constant 0 : index
    %c0_16 = arith.constant 0 : index
    %13 = vector.load %arg4[%c0_15, %c0_16] : memref<1x128xf32, #tpu.memory_space<vmem>>, vector<1x128xf32>
    %14 = vector.broadcast %13 : vector<1x128xf32> to vector<192x128xf32>
    %15 = arith.addf %12, %14 : vector<192x128xf32>
    %c24 = arith.constant 24 : index
    %c0_17 = arith.constant 0 : index
    %16 = vector.load %arg6[%c24, %c0_17] : memref<240x384xbf16, #tpu.memory_space<vmem>>, vector<192x384xbf16>
    %c1_18 = arith.constant 1 : index
    %c0_19 = arith.constant 0 : index
    %c0_20 = arith.constant 0 : index
    %17 = vector.load %arg3[%c1_18, %c0_19, %c0_20] : memref<3x384x128xbf16, #tpu.memory_space<vmem>>, vector<1x384x128xbf16>
    %18 = vector.shape_cast %17 : vector<1x384x128xbf16> to vector<384x128xbf16>
    %cst_21 = arith.constant dense<0.000000e+00> : vector<192x128xf32>
    %19 = tpu.matmul %16, %18, %cst_21 {dimension_numbers = #tpu.dot_dimension_numbers<[1], [0], [0], [1], [0, 0, 1, 1], [], []>} : vector<192x384xbf16>, vector<384x128xbf16>, vector<192x128xf32> -> vector<192x128xf32>
    %20 = arith.addf %15, %19 : vector<192x128xf32>
    %c48 = arith.constant 48 : index
    %c0_22 = arith.constant 0 : index
    %21 = vector.load %arg6[%c48, %c0_22] : memref<240x384xbf16, #tpu.memory_space<vmem>>, vector<192x384xbf16>
    %c2_23 = arith.constant 2 : index
    %c0_24 = arith.constant 0 : index
    %c0_25 = arith.constant 0 : index
    %22 = vector.load %arg3[%c2_23, %c0_24, %c0_25] : memref<3x384x128xbf16, #tpu.memory_space<vmem>>, vector<1x384x128xbf16>
    %23 = vector.shape_cast %22 : vector<1x384x128xbf16> to vector<384x128xbf16>
    %cst_26 = arith.constant dense<0.000000e+00> : vector<192x128xf32>
    %24 = tpu.matmul %21, %23, %cst_26 {dimension_numbers = #tpu.dot_dimension_numbers<[1], [0], [0], [1], [0, 0, 1, 1], [], []>} : vector<192x384xbf16>, vector<384x128xbf16>, vector<192x128xf32> -> vector<192x128xf32>
    %25 = arith.addf %20, %24 : vector<192x128xf32>
    %26 = arith.truncf %25 : vector<192x128xf32> to vector<192x128xbf16>
    %c0_27 = arith.constant 0 : index
    %c0_28 = arith.constant 0 : index
    %c0_29 = arith.constant 0 : index
    %27 = vector.load %arg5[%c0_27, %c0_28, %c0_29] : memref<1x192x128xbf16, #tpu.memory_space<vmem>>, vector<1x192x128xbf16>
    %28 = vector.shape_cast %27 : vector<1x192x128xbf16> to vector<192x128xbf16>
    %29 = vector.shape_cast %26 : vector<192x128xbf16> to vector<1x192x128xbf16>
    tpu.vector_store %arg5[%c0_27, %c0_28, %c0_29], %29 {strides = array<i32>} : memref<1x192x128xbf16, #tpu.memory_space<vmem>>, vector<1x192x128xbf16>,
    return
  }
  func.func @transform_0(%arg0: i32, %arg1: i32) -> (i32, i32, i32) {
    %c0_i32 = arith.constant 0 : i32
    %c0_i32_0 = arith.constant 0 : i32
    %c0_i32_1 = arith.constant 0 : i32
    return %arg0, %c0_i32, %c0_i32_0 : i32, i32, i32
  }
  func.func @transform_1(%arg0: i32, %arg1: i32) -> (i32, i32, i32) {
    %c0_i32 = arith.constant 0 : i32
    %c0_i32_0 = arith.constant 0 : i32
    %c0_i32_1 = arith.constant 0 : i32
    return %c0_i32, %c0_i32_0, %arg1 : i32, i32, i32
  }
  func.func @transform_2(%arg0: i32, %arg1: i32) -> (i32, i32) {
    %c0_i32 = arith.constant 0 : i32
    %c0_i32_0 = arith.constant 0 : i32
    return %c0_i32, %arg1 : i32, i32
  }
  func.func @transform_3(%arg0: i32, %arg1: i32) -> (i32, i32, i32) {
    %c0_i32 = arith.constant 0 : i32
    %c0_i32_0 = arith.constant 0 : i32
    return %arg0, %c0_i32, %arg1 : i32, i32, i32
  }
}

module attributes {stable_mosaic.version = 11 : i64} {
  func.func @_mm_bias_kernel(%arg0: i32, %arg1: i32, %arg2: memref<16x2048xbf16, #tpu.memory_space<vmem>>, %arg3: memref<2048x128xbf16, #tpu.memory_space<vmem>>, %arg4: memref<1x128xf32, #tpu.memory_space<vmem>>, %arg5: memref<16x128xbf16, #tpu.memory_space<vmem>>) attributes {dimension_semantics = [#tpu.dimension_semantics<parallel>, #tpu.dimension_semantics<parallel>], iteration_bounds = array<i64: 2, 1>, scalar_prefetch = 0 : i64, scratch_operands = 0 : i64, tpu.core_type = #tpu.core_type<tc>, window_params = [{transform_indices = @transform_0, window_bounds = array<i64: 16, 2048>}, {transform_indices = @transform_1, window_bounds = array<i64: 2048, 128>}, {transform_indices = @transform_2, window_bounds = array<i64: 1, 128>}, {transform_indices = @transform_3, window_bounds = array<i64: 16, 128>}]} {
    %c0 = arith.constant 0 : index
    %c0_0 = arith.constant 0 : index
    %0 = vector.load %arg2[%c0, %c0_0] : memref<16x2048xbf16, #tpu.memory_space<vmem>>, vector<16x2048xbf16>
    %c0_1 = arith.constant 0 : index
    %c0_2 = arith.constant 0 : index
    %1 = vector.load %arg3[%c0_1, %c0_2] : memref<2048x128xbf16, #tpu.memory_space<vmem>>, vector<2048x128xbf16>
    %cst = arith.constant dense<0.000000e+00> : vector<16x128xf32>
    %2 = tpu.matmul %0, %1, %cst {dimension_numbers = #tpu.dot_dimension_numbers<[1], [0], [0], [1], [0, 0, 1, 1], [], []>} : vector<16x2048xbf16>, vector<2048x128xbf16>, vector<16x128xf32> -> vector<16x128xf32>
    %c0_3 = arith.constant 0 : index
    %c0_4 = arith.constant 0 : index
    %3 = vector.load %arg4[%c0_3, %c0_4] : memref<1x128xf32, #tpu.memory_space<vmem>>, vector<1x128xf32>
    %4 = vector.broadcast %3 : vector<1x128xf32> to vector<16x128xf32>
    %5 = arith.addf %2, %4 : vector<16x128xf32>
    %6 = arith.truncf %5 : vector<16x128xf32> to vector<16x128xbf16>
    %c0_5 = arith.constant 0 : index
    %c0_6 = arith.constant 0 : index
    %7 = vector.load %arg5[%c0_5, %c0_6] : memref<16x128xbf16, #tpu.memory_space<vmem>>, vector<16x128xbf16>
    tpu.vector_store %arg5[%c0_5, %c0_6], %6 {strides = array<i32>} : memref<16x128xbf16, #tpu.memory_space<vmem>>, vector<16x128xbf16>,
    return
  }
  func.func @transform_0(%arg0: i32, %arg1: i32) -> (i32, i32) {
    %c0_i32 = arith.constant 0 : i32
    %c0_i32_0 = arith.constant 0 : i32
    return %arg0, %c0_i32 : i32, i32
  }
  func.func @transform_1(%arg0: i32, %arg1: i32) -> (i32, i32) {
    %c0_i32 = arith.constant 0 : i32
    %c0_i32_0 = arith.constant 0 : i32
    return %c0_i32, %arg1 : i32, i32
  }
  func.func @transform_2(%arg0: i32, %arg1: i32) -> (i32, i32) {
    %c0_i32 = arith.constant 0 : i32
    %c0_i32_0 = arith.constant 0 : i32
    return %c0_i32, %arg1 : i32, i32
  }
  func.func @transform_3(%arg0: i32, %arg1: i32) -> (i32, i32) {
    %c0_i32 = arith.constant 0 : i32
    return %arg0, %arg1 : i32, i32
  }
}

module attributes {stable_mosaic.version = 11 : i64} {
  func.func @kernel(%arg0: i32, %arg1: i32, %arg2: memref<1x40x128xbf16, #tpu.memory_space<vmem>>, %arg3: memref<3x384x128xbf16, #tpu.memory_space<vmem>>, %arg4: memref<1x128xf32, #tpu.memory_space<vmem>>, %arg5: memref<1x16x128xbf16, #tpu.memory_space<vmem>>, %arg6: memref<32x384xbf16, #tpu.memory_space<vmem>>) attributes {dimension_semantics = [#tpu.dimension_semantics<parallel>, #tpu.dimension_semantics<parallel>], iteration_bounds = array<i64: 4, 1>, scalar_prefetch = 0 : i64, scratch_operands = 1 : i64, tpu.core_type = #tpu.core_type<tc>, window_params = [{transform_indices = @transform_0, window_bounds = array<i64: 1, 40, 128>}, {transform_indices = @transform_1, window_bounds = array<i64: 3, 384, 128>}, {transform_indices = @transform_2, window_bounds = array<i64: 1, 128>}, {transform_indices = @transform_3, window_bounds = array<i64: 1, 16, 128>}]} {
    %c0 = arith.constant 0 : index
    %c0_0 = arith.constant 0 : index
    %c0_1 = arith.constant 0 : index
    %0 = vector.load %arg2[%c0, %c0_0, %c0_1] : memref<1x40x128xbf16, #tpu.memory_space<vmem>>, vector<1x32x128xbf16>
    %1 = vector.shape_cast %0 : vector<1x32x128xbf16> to vector<32x128xbf16>
    %c0_2 = arith.constant 0 : index
    %c0_3 = arith.constant 0 : index
    %2 = vector.load %arg6[%c0_2, %c0_3] : memref<32x384xbf16, #tpu.memory_space<vmem>>, vector<32x128xbf16>
    tpu.vector_store %arg6[%c0_2, %c0_3], %1 {strides = array<i32>} : memref<32x384xbf16, #tpu.memory_space<vmem>>, vector<32x128xbf16>,
    %c0_4 = arith.constant 0 : index
    %c1 = arith.constant 1 : index
    %c0_5 = arith.constant 0 : index
    %3 = vector.load %arg2[%c0_4, %c1, %c0_5] : memref<1x40x128xbf16, #tpu.memory_space<vmem>>, vector<1x32x128xbf16>
    %4 = vector.shape_cast %3 : vector<1x32x128xbf16> to vector<32x128xbf16>
    %c0_6 = arith.constant 0 : index
    %c128 = arith.constant 128 : index
    %5 = vector.load %arg6[%c0_6, %c128] : memref<32x384xbf16, #tpu.memory_space<vmem>>, vector<32x128xbf16>
    tpu.vector_store %arg6[%c0_6, %c128], %4 {strides = array<i32>} : memref<32x384xbf16, #tpu.memory_space<vmem>>, vector<32x128xbf16>,
    %c0_7 = arith.constant 0 : index
    %c2 = arith.constant 2 : index
    %c0_8 = arith.constant 0 : index
    %6 = vector.load %arg2[%c0_7, %c2, %c0_8] : memref<1x40x128xbf16, #tpu.memory_space<vmem>>, vector<1x32x128xbf16>
    %7 = vector.shape_cast %6 : vector<1x32x128xbf16> to vector<32x128xbf16>
    %c0_9 = arith.constant 0 : index
    %c256 = arith.constant 256 : index
    %8 = vector.load %arg6[%c0_9, %c256] : memref<32x384xbf16, #tpu.memory_space<vmem>>, vector<32x128xbf16>
    tpu.vector_store %arg6[%c0_9, %c256], %7 {strides = array<i32>} : memref<32x384xbf16, #tpu.memory_space<vmem>>, vector<32x128xbf16>,
    %c0_10 = arith.constant 0 : index
    %c0_11 = arith.constant 0 : index
    %9 = vector.load %arg6[%c0_10, %c0_11] : memref<32x384xbf16, #tpu.memory_space<vmem>>, vector<16x384xbf16>
    %c0_12 = arith.constant 0 : index
    %c0_13 = arith.constant 0 : index
    %c0_14 = arith.constant 0 : index
    %10 = vector.load %arg3[%c0_12, %c0_13, %c0_14] : memref<3x384x128xbf16, #tpu.memory_space<vmem>>, vector<1x384x128xbf16>
    %11 = vector.shape_cast %10 : vector<1x384x128xbf16> to vector<384x128xbf16>
    %cst = arith.constant dense<0.000000e+00> : vector<16x128xf32>
    %12 = tpu.matmul %9, %11, %cst {dimension_numbers = #tpu.dot_dimension_numbers<[1], [0], [0], [1], [0, 0, 1, 1], [], []>} : vector<16x384xbf16>, vector<384x128xbf16>, vector<16x128xf32> -> vector<16x128xf32>
    %c0_15 = arith.constant 0 : index
    %c0_16 = arith.constant 0 : index
    %13 = vector.load %arg4[%c0_15, %c0_16] : memref<1x128xf32, #tpu.memory_space<vmem>>, vector<1x128xf32>
    %14 = vector.broadcast %13 : vector<1x128xf32> to vector<16x128xf32>
    %15 = arith.addf %12, %14 : vector<16x128xf32>
    %c8 = arith.constant 8 : index
    %c0_17 = arith.constant 0 : index
    %16 = vector.load %arg6[%c8, %c0_17] : memref<32x384xbf16, #tpu.memory_space<vmem>>, vector<16x384xbf16>
    %c1_18 = arith.constant 1 : index
    %c0_19 = arith.constant 0 : index
    %c0_20 = arith.constant 0 : index
    %17 = vector.load %arg3[%c1_18, %c0_19, %c0_20] : memref<3x384x128xbf16, #tpu.memory_space<vmem>>, vector<1x384x128xbf16>
    %18 = vector.shape_cast %17 : vector<1x384x128xbf16> to vector<384x128xbf16>
    %cst_21 = arith.constant dense<0.000000e+00> : vector<16x128xf32>
    %19 = tpu.matmul %16, %18, %cst_21 {dimension_numbers = #tpu.dot_dimension_numbers<[1], [0], [0], [1], [0, 0, 1, 1], [], []>} : vector<16x384xbf16>, vector<384x128xbf16>, vector<16x128xf32> -> vector<16x128xf32>
    %20 = arith.addf %15, %19 : vector<16x128xf32>
    %c16 = arith.constant 16 : index
    %c0_22 = arith.constant 0 : index
    %21 = vector.load %arg6[%c16, %c0_22] : memref<32x384xbf16, #tpu.memory_space<vmem>>, vector<16x384xbf16>
    %c2_23 = arith.constant 2 : index
    %c0_24 = arith.constant 0 : index
    %c0_25 = arith.constant 0 : index
    %22 = vector.load %arg3[%c2_23, %c0_24, %c0_25] : memref<3x384x128xbf16, #tpu.memory_space<vmem>>, vector<1x384x128xbf16>
    %23 = vector.shape_cast %22 : vector<1x384x128xbf16> to vector<384x128xbf16>
    %cst_26 = arith.constant dense<0.000000e+00> : vector<16x128xf32>
    %24 = tpu.matmul %21, %23, %cst_26 {dimension_numbers = #tpu.dot_dimension_numbers<[1], [0], [0], [1], [0, 0, 1, 1], [], []>} : vector<16x384xbf16>, vector<384x128xbf16>, vector<16x128xf32> -> vector<16x128xf32>
    %25 = arith.addf %20, %24 : vector<16x128xf32>
    %cst_27 = arith.constant 5.000000e-01 : f32
    %26 = vector.broadcast %cst_27 : f32 to vector<16x128xf32>
    %27 = arith.mulf %26, %25 : vector<16x128xf32>
    %cst_28 = arith.constant 0.707106769 : f32
    %28 = vector.broadcast %cst_28 : f32 to vector<16x128xf32>
    %29 = arith.mulf %25, %28 : vector<16x128xf32>
    %30 = math.absf %29 : vector<16x128xf32>
    %cst_29 = arith.constant 0.327591091 : f32
    %31 = vector.broadcast %cst_29 : f32 to vector<16x128xf32>
    %32 = arith.mulf %31, %30 : vector<16x128xf32>
    %cst_30 = arith.constant 1.000000e+00 : f32
    %33 = vector.broadcast %cst_30 : f32 to vector<16x128xf32>
    %34 = arith.addf %33, %32 : vector<16x128xf32>
    %cst_31 = arith.constant 1.000000e+00 : f32
    %35 = vector.broadcast %cst_31 : f32 to vector<16x128xf32>
    %36 = arith.divf %35, %34 : vector<16x128xf32>
    %cst_32 = arith.constant 1.06140542 : f32
    %37 = vector.broadcast %cst_32 : f32 to vector<16x128xf32>
    %38 = arith.mulf %37, %36 : vector<16x128xf32>
    %cst_33 = arith.constant -1.45315206 : f32
    %39 = vector.broadcast %cst_33 : f32 to vector<16x128xf32>
    %40 = arith.addf %38, %39 : vector<16x128xf32>
    %41 = arith.mulf %40, %36 : vector<16x128xf32>
    %cst_34 = arith.constant 1.42141378 : f32
    %42 = vector.broadcast %cst_34 : f32 to vector<16x128xf32>
    %43 = arith.addf %41, %42 : vector<16x128xf32>
    %44 = arith.mulf %43, %36 : vector<16x128xf32>
    %cst_35 = arith.constant -0.284496725 : f32
    %45 = vector.broadcast %cst_35 : f32 to vector<16x128xf32>
    %46 = arith.addf %44, %45 : vector<16x128xf32>
    %47 = arith.mulf %46, %36 : vector<16x128xf32>
    %cst_36 = arith.constant 0.254829586 : f32
    %48 = vector.broadcast %cst_36 : f32 to vector<16x128xf32>
    %49 = arith.addf %47, %48 : vector<16x128xf32>
    %50 = arith.mulf %49, %36 : vector<16x128xf32>
    %cst_37 = arith.constant 0.000000e+00 : f32
    %51 = vector.broadcast %cst_37 : f32 to vector<16x128xf32>
    %52 = arith.subf %51, %30 : vector<16x128xf32>
    %53 = arith.mulf %52, %30 : vector<16x128xf32>
    %54 = math.exp %53 : vector<16x128xf32>
    %55 = arith.mulf %50, %54 : vector<16x128xf32>
    %cst_38 = arith.constant 1.000000e+00 : f32
    %56 = vector.broadcast %cst_38 : f32 to vector<16x128xf32>
    %57 = arith.subf %56, %55 : vector<16x128xf32>
    %cst_39 = arith.constant 0.000000e+00 : f32
    %58 = vector.broadcast %cst_39 : f32 to vector<16x128xf32>
    %59 = arith.cmpf olt, %29, %58 : vector<16x128xf32>
    %cst_40 = arith.constant 0.000000e+00 : f32
    %60 = vector.broadcast %cst_40 : f32 to vector<16x128xf32>
    %61 = arith.subf %60, %57 : vector<16x128xf32>
    %62 = arith.select %59, %61, %57 : vector<16x128xi1>, vector<16x128xf32>
    %cst_41 = arith.constant 1.000000e+00 : f32
    %63 = vector.broadcast %cst_41 : f32 to vector<16x128xf32>
    %64 = arith.addf %63, %62 : vector<16x128xf32>
    %65 = arith.mulf %27, %64 : vector<16x128xf32>
    %66 = arith.truncf %65 : vector<16x128xf32> to vector<16x128xbf16>
    %c0_42 = arith.constant 0 : index
    %c0_43 = arith.constant 0 : index
    %c0_44 = arith.constant 0 : index
    %67 = vector.load %arg5[%c0_42, %c0_43, %c0_44] : memref<1x16x128xbf16, #tpu.memory_space<vmem>>, vector<1x16x128xbf16>
    %68 = vector.shape_cast %67 : vector<1x16x128xbf16> to vector<16x128xbf16>
    %69 = vector.shape_cast %66 : vector<16x128xbf16> to vector<1x16x128xbf16>
    tpu.vector_store %arg5[%c0_42, %c0_43, %c0_44], %69 {strides = array<i32>} : memref<1x16x128xbf16, #tpu.memory_space<vmem>>, vector<1x16x128xbf16>,
    return
  }
  func.func @transform_0(%arg0: i32, %arg1: i32) -> (i32, i32, i32) {
    %c0_i32 = arith.constant 0 : i32
    %c0_i32_0 = arith.constant 0 : i32
    %c0_i32_1 = arith.constant 0 : i32
    return %arg0, %c0_i32, %c0_i32_0 : i32, i32, i32
  }
  func.func @transform_1(%arg0: i32, %arg1: i32) -> (i32, i32, i32) {
    %c0_i32 = arith.constant 0 : i32
    %c0_i32_0 = arith.constant 0 : i32
    %c0_i32_1 = arith.constant 0 : i32
    return %c0_i32, %c0_i32_0, %arg1 : i32, i32, i32
  }
  func.func @transform_2(%arg0: i32, %arg1: i32) -> (i32, i32) {
    %c0_i32 = arith.constant 0 : i32
    %c0_i32_0 = arith.constant 0 : i32
    return %c0_i32, %arg1 : i32, i32
  }
  func.func @transform_3(%arg0: i32, %arg1: i32) -> (i32, i32, i32) {
    %c0_i32 = arith.constant 0 : i32
    %c0_i32_0 = arith.constant 0 : i32
    return %arg0, %c0_i32, %arg1 : i32, i32, i32
  }
}

module attributes {stable_mosaic.version = 11 : i64} {
  func.func @kernel(%arg0: i32, %arg1: i32, %arg2: memref<1x40x128xbf16, #tpu.memory_space<vmem>>, %arg3: memref<3x384x128xbf16, #tpu.memory_space<vmem>>, %arg4: memref<1x128xf32, #tpu.memory_space<vmem>>, %arg5: memref<1x40x128xbf16, #tpu.memory_space<vmem>>, %arg6: memref<1x16x128xbf16, #tpu.memory_space<vmem>>, %arg7: memref<32x384xbf16, #tpu.memory_space<vmem>>) attributes {dimension_semantics = [#tpu.dimension_semantics<parallel>, #tpu.dimension_semantics<parallel>], iteration_bounds = array<i64: 4, 1>, scalar_prefetch = 0 : i64, scratch_operands = 1 : i64, tpu.core_type = #tpu.core_type<tc>, window_params = [{transform_indices = @transform_0, window_bounds = array<i64: 1, 40, 128>}, {transform_indices = @transform_1, window_bounds = array<i64: 3, 384, 128>}, {transform_indices = @transform_2, window_bounds = array<i64: 1, 128>}, {transform_indices = @transform_3, window_bounds = array<i64: 1, 40, 128>}, {transform_indices = @transform_4, window_bounds = array<i64: 1, 16, 128>}]} {
    %c0 = arith.constant 0 : index
    %c0_0 = arith.constant 0 : index
    %c0_1 = arith.constant 0 : index
    %0 = vector.load %arg2[%c0, %c0_0, %c0_1] : memref<1x40x128xbf16, #tpu.memory_space<vmem>>, vector<1x32x128xbf16>
    %1 = vector.shape_cast %0 : vector<1x32x128xbf16> to vector<32x128xbf16>
    %c0_2 = arith.constant 0 : index
    %c0_3 = arith.constant 0 : index
    %2 = vector.load %arg7[%c0_2, %c0_3] : memref<32x384xbf16, #tpu.memory_space<vmem>>, vector<32x128xbf16>
    tpu.vector_store %arg7[%c0_2, %c0_3], %1 {strides = array<i32>} : memref<32x384xbf16, #tpu.memory_space<vmem>>, vector<32x128xbf16>,
    %c0_4 = arith.constant 0 : index
    %c1 = arith.constant 1 : index
    %c0_5 = arith.constant 0 : index
    %3 = vector.load %arg2[%c0_4, %c1, %c0_5] : memref<1x40x128xbf16, #tpu.memory_space<vmem>>, vector<1x32x128xbf16>
    %4 = vector.shape_cast %3 : vector<1x32x128xbf16> to vector<32x128xbf16>
    %c0_6 = arith.constant 0 : index
    %c128 = arith.constant 128 : index
    %5 = vector.load %arg7[%c0_6, %c128] : memref<32x384xbf16, #tpu.memory_space<vmem>>, vector<32x128xbf16>
    tpu.vector_store %arg7[%c0_6, %c128], %4 {strides = array<i32>} : memref<32x384xbf16, #tpu.memory_space<vmem>>, vector<32x128xbf16>,
    %c0_7 = arith.constant 0 : index
    %c2 = arith.constant 2 : index
    %c0_8 = arith.constant 0 : index
    %6 = vector.load %arg2[%c0_7, %c2, %c0_8] : memref<1x40x128xbf16, #tpu.memory_space<vmem>>, vector<1x32x128xbf16>
    %7 = vector.shape_cast %6 : vector<1x32x128xbf16> to vector<32x128xbf16>
    %c0_9 = arith.constant 0 : index
    %c256 = arith.constant 256 : index
    %8 = vector.load %arg7[%c0_9, %c256] : memref<32x384xbf16, #tpu.memory_space<vmem>>, vector<32x128xbf16>
    tpu.vector_store %arg7[%c0_9, %c256], %7 {strides = array<i32>} : memref<32x384xbf16, #tpu.memory_space<vmem>>, vector<32x128xbf16>,
    %c0_10 = arith.constant 0 : index
    %c0_11 = arith.constant 0 : index
    %9 = vector.load %arg7[%c0_10, %c0_11] : memref<32x384xbf16, #tpu.memory_space<vmem>>, vector<16x384xbf16>
    %c0_12 = arith.constant 0 : index
    %c0_13 = arith.constant 0 : index
    %c0_14 = arith.constant 0 : index
    %10 = vector.load %arg3[%c0_12, %c0_13, %c0_14] : memref<3x384x128xbf16, #tpu.memory_space<vmem>>, vector<1x384x128xbf16>
    %11 = vector.shape_cast %10 : vector<1x384x128xbf16> to vector<384x128xbf16>
    %cst = arith.constant dense<0.000000e+00> : vector<16x128xf32>
    %12 = tpu.matmul %9, %11, %cst {dimension_numbers = #tpu.dot_dimension_numbers<[1], [0], [0], [1], [0, 0, 1, 1], [], []>} : vector<16x384xbf16>, vector<384x128xbf16>, vector<16x128xf32> -> vector<16x128xf32>
    %c0_15 = arith.constant 0 : index
    %c0_16 = arith.constant 0 : index
    %13 = vector.load %arg4[%c0_15, %c0_16] : memref<1x128xf32, #tpu.memory_space<vmem>>, vector<1x128xf32>
    %14 = vector.broadcast %13 : vector<1x128xf32> to vector<16x128xf32>
    %15 = arith.addf %12, %14 : vector<16x128xf32>
    %c8 = arith.constant 8 : index
    %c0_17 = arith.constant 0 : index
    %16 = vector.load %arg7[%c8, %c0_17] : memref<32x384xbf16, #tpu.memory_space<vmem>>, vector<16x384xbf16>
    %c1_18 = arith.constant 1 : index
    %c0_19 = arith.constant 0 : index
    %c0_20 = arith.constant 0 : index
    %17 = vector.load %arg3[%c1_18, %c0_19, %c0_20] : memref<3x384x128xbf16, #tpu.memory_space<vmem>>, vector<1x384x128xbf16>
    %18 = vector.shape_cast %17 : vector<1x384x128xbf16> to vector<384x128xbf16>
    %cst_21 = arith.constant dense<0.000000e+00> : vector<16x128xf32>
    %19 = tpu.matmul %16, %18, %cst_21 {dimension_numbers = #tpu.dot_dimension_numbers<[1], [0], [0], [1], [0, 0, 1, 1], [], []>} : vector<16x384xbf16>, vector<384x128xbf16>, vector<16x128xf32> -> vector<16x128xf32>
    %20 = arith.addf %15, %19 : vector<16x128xf32>
    %c16 = arith.constant 16 : index
    %c0_22 = arith.constant 0 : index
    %21 = vector.load %arg7[%c16, %c0_22] : memref<32x384xbf16, #tpu.memory_space<vmem>>, vector<16x384xbf16>
    %c2_23 = arith.constant 2 : index
    %c0_24 = arith.constant 0 : index
    %c0_25 = arith.constant 0 : index
    %22 = vector.load %arg3[%c2_23, %c0_24, %c0_25] : memref<3x384x128xbf16, #tpu.memory_space<vmem>>, vector<1x384x128xbf16>
    %23 = vector.shape_cast %22 : vector<1x384x128xbf16> to vector<384x128xbf16>
    %cst_26 = arith.constant dense<0.000000e+00> : vector<16x128xf32>
    %24 = tpu.matmul %21, %23, %cst_26 {dimension_numbers = #tpu.dot_dimension_numbers<[1], [0], [0], [1], [0, 0, 1, 1], [], []>} : vector<16x384xbf16>, vector<384x128xbf16>, vector<16x128xf32> -> vector<16x128xf32>
    %25 = arith.addf %20, %24 : vector<16x128xf32>
    %cst_27 = arith.constant 5.000000e-01 : f32
    %26 = vector.broadcast %cst_27 : f32 to vector<16x128xf32>
    %27 = arith.mulf %26, %25 : vector<16x128xf32>
    %cst_28 = arith.constant 0.707106769 : f32
    %28 = vector.broadcast %cst_28 : f32 to vector<16x128xf32>
    %29 = arith.mulf %25, %28 : vector<16x128xf32>
    %30 = math.absf %29 : vector<16x128xf32>
    %cst_29 = arith.constant 0.327591091 : f32
    %31 = vector.broadcast %cst_29 : f32 to vector<16x128xf32>
    %32 = arith.mulf %31, %30 : vector<16x128xf32>
    %cst_30 = arith.constant 1.000000e+00 : f32
    %33 = vector.broadcast %cst_30 : f32 to vector<16x128xf32>
    %34 = arith.addf %33, %32 : vector<16x128xf32>
    %cst_31 = arith.constant 1.000000e+00 : f32
    %35 = vector.broadcast %cst_31 : f32 to vector<16x128xf32>
    %36 = arith.divf %35, %34 : vector<16x128xf32>
    %cst_32 = arith.constant 1.06140542 : f32
    %37 = vector.broadcast %cst_32 : f32 to vector<16x128xf32>
    %38 = arith.mulf %37, %36 : vector<16x128xf32>
    %cst_33 = arith.constant -1.45315206 : f32
    %39 = vector.broadcast %cst_33 : f32 to vector<16x128xf32>
    %40 = arith.addf %38, %39 : vector<16x128xf32>
    %41 = arith.mulf %40, %36 : vector<16x128xf32>
    %cst_34 = arith.constant 1.42141378 : f32
    %42 = vector.broadcast %cst_34 : f32 to vector<16x128xf32>
    %43 = arith.addf %41, %42 : vector<16x128xf32>
    %44 = arith.mulf %43, %36 : vector<16x128xf32>
    %cst_35 = arith.constant -0.284496725 : f32
    %45 = vector.broadcast %cst_35 : f32 to vector<16x128xf32>
    %46 = arith.addf %44, %45 : vector<16x128xf32>
    %47 = arith.mulf %46, %36 : vector<16x128xf32>
    %cst_36 = arith.constant 0.254829586 : f32
    %48 = vector.broadcast %cst_36 : f32 to vector<16x128xf32>
    %49 = arith.addf %47, %48 : vector<16x128xf32>
    %50 = arith.mulf %49, %36 : vector<16x128xf32>
    %cst_37 = arith.constant 0.000000e+00 : f32
    %51 = vector.broadcast %cst_37 : f32 to vector<16x128xf32>
    %52 = arith.subf %51, %30 : vector<16x128xf32>
    %53 = arith.mulf %52, %30 : vector<16x128xf32>
    %54 = math.exp %53 : vector<16x128xf32>
    %55 = arith.mulf %50, %54 : vector<16x128xf32>
    %cst_38 = arith.constant 1.000000e+00 : f32
    %56 = vector.broadcast %cst_38 : f32 to vector<16x128xf32>
    %57 = arith.subf %56, %55 : vector<16x128xf32>
    %cst_39 = arith.constant 0.000000e+00 : f32
    %58 = vector.broadcast %cst_39 : f32 to vector<16x128xf32>
    %59 = arith.cmpf olt, %29, %58 : vector<16x128xf32>
    %cst_40 = arith.constant 0.000000e+00 : f32
    %60 = vector.broadcast %cst_40 : f32 to vector<16x128xf32>
    %61 = arith.subf %60, %57 : vector<16x128xf32>
    %62 = arith.select %59, %61, %57 : vector<16x128xi1>, vector<16x128xf32>
    %cst_41 = arith.constant 1.000000e+00 : f32
    %63 = vector.broadcast %cst_41 : f32 to vector<16x128xf32>
    %64 = arith.addf %63, %62 : vector<16x128xf32>
    %65 = arith.mulf %27, %64 : vector<16x128xf32>
    %c0_42 = arith.constant 0 : index
    %c9 = arith.constant 9 : index
    %c0_43 = arith.constant 0 : index
    %66 = vector.load %arg5[%c0_42, %c9, %c0_43] : memref<1x40x128xbf16, #tpu.memory_space<vmem>>, vector<1x16x128xbf16>
    %67 = vector.shape_cast %66 : vector<1x16x128xbf16> to vector<16x128xbf16>
    %68 = arith.extf %67 : vector<16x128xbf16> to vector<16x128xf32>
    %69 = arith.addf %65, %68 : vector<16x128xf32>
    %70 = arith.truncf %69 : vector<16x128xf32> to vector<16x128xbf16>
    %c0_44 = arith.constant 0 : index
    %c0_45 = arith.constant 0 : index
    %c0_46 = arith.constant 0 : index
    %71 = vector.load %arg6[%c0_44, %c0_45, %c0_46] : memref<1x16x128xbf16, #tpu.memory_space<vmem>>, vector<1x16x128xbf16>
    %72 = vector.shape_cast %71 : vector<1x16x128xbf16> to vector<16x128xbf16>
    %73 = vector.shape_cast %70 : vector<16x128xbf16> to vector<1x16x128xbf16>
    tpu.vector_store %arg6[%c0_44, %c0_45, %c0_46], %73 {strides = array<i32>} : memref<1x16x128xbf16, #tpu.memory_space<vmem>>, vector<1x16x128xbf16>,
    return
  }
  func.func @transform_0(%arg0: i32, %arg1: i32) -> (i32, i32, i32) {
    %c0_i32 = arith.constant 0 : i32
    %c0_i32_0 = arith.constant 0 : i32
    %c0_i32_1 = arith.constant 0 : i32
    return %arg0, %c0_i32, %c0_i32_0 : i32, i32, i32
  }
  func.func @transform_1(%arg0: i32, %arg1: i32) -> (i32, i32, i32) {
    %c0_i32 = arith.constant 0 : i32
    %c0_i32_0 = arith.constant 0 : i32
    %c0_i32_1 = arith.constant 0 : i32
    return %c0_i32, %c0_i32_0, %arg1 : i32, i32, i32
  }
  func.func @transform_2(%arg0: i32, %arg1: i32) -> (i32, i32) {
    %c0_i32 = arith.constant 0 : i32
    %c0_i32_0 = arith.constant 0 : i32
    return %c0_i32, %arg1 : i32, i32
  }
  func.func @transform_3(%arg0: i32, %arg1: i32) -> (i32, i32, i32) {
    %c0_i32 = arith.constant 0 : i32
    %c0_i32_0 = arith.constant 0 : i32
    return %arg0, %c0_i32, %arg1 : i32, i32, i32
  }
  func.func @transform_4(%arg0: i32, %arg1: i32) -> (i32, i32, i32) {
    %c0_i32 = arith.constant 0 : i32
    %c0_i32_0 = arith.constant 0 : i32
    return %arg0, %c0_i32, %arg1 : i32, i32, i32
  }
}

module attributes {stable_mosaic.version = 11 : i64} {
  func.func @_mm_bias_kernel(%arg0: i32, %arg1: i32, %arg2: memref<8x1152xbf16, #tpu.memory_space<vmem>>, %arg3: memref<1152x128xbf16, #tpu.memory_space<vmem>>, %arg4: memref<1x128xf32, #tpu.memory_space<vmem>>, %arg5: memref<8x128xbf16, #tpu.memory_space<vmem>>) attributes {dimension_semantics = [#tpu.dimension_semantics<parallel>, #tpu.dimension_semantics<parallel>], iteration_bounds = array<i64: 1, 1>, scalar_prefetch = 0 : i64, scratch_operands = 0 : i64, tpu.core_type = #tpu.core_type<tc>, window_params = [{transform_indices = @transform_0, window_bounds = array<i64: 8, 1152>}, {transform_indices = @transform_1, window_bounds = array<i64: 1152, 128>}, {transform_indices = @transform_2, window_bounds = array<i64: 1, 128>}, {transform_indices = @transform_3, window_bounds = array<i64: 8, 128>}]} {
    %c0 = arith.constant 0 : index
    %c0_0 = arith.constant 0 : index
    %0 = vector.load %arg2[%c0, %c0_0] : memref<8x1152xbf16, #tpu.memory_space<vmem>>, vector<8x1152xbf16>
    %c0_1 = arith.constant 0 : index
    %c0_2 = arith.constant 0 : index
    %1 = vector.load %arg3[%c0_1, %c0_2] : memref<1152x128xbf16, #tpu.memory_space<vmem>>, vector<1152x128xbf16>
    %cst = arith.constant dense<0.000000e+00> : vector<8x128xf32>
    %2 = tpu.matmul %0, %1, %cst {dimension_numbers = #tpu.dot_dimension_numbers<[1], [0], [0], [1], [0, 0, 1, 1], [], []>} : vector<8x1152xbf16>, vector<1152x128xbf16>, vector<8x128xf32> -> vector<8x128xf32>
    %c0_3 = arith.constant 0 : index
    %c0_4 = arith.constant 0 : index
    %3 = vector.load %arg4[%c0_3, %c0_4] : memref<1x128xf32, #tpu.memory_space<vmem>>, vector<1x128xf32>
    %4 = vector.broadcast %3 : vector<1x128xf32> to vector<8x128xf32>
    %5 = arith.addf %2, %4 : vector<8x128xf32>
    %6 = arith.truncf %5 : vector<8x128xf32> to vector<8x128xbf16>
    %c0_5 = arith.constant 0 : index
    %c0_6 = arith.constant 0 : index
    %7 = vector.load %arg5[%c0_5, %c0_6] : memref<8x128xbf16, #tpu.memory_space<vmem>>, vector<8x128xbf16>
    tpu.vector_store %arg5[%c0_5, %c0_6], %6 {strides = array<i32>} : memref<8x128xbf16, #tpu.memory_space<vmem>>, vector<8x128xbf16>,
    return
  }
  func.func @transform_0(%arg0: i32, %arg1: i32) -> (i32, i32) {
    %c0_i32 = arith.constant 0 : i32
    %c0_i32_0 = arith.constant 0 : i32
    return %arg0, %c0_i32 : i32, i32
  }
  func.func @transform_1(%arg0: i32, %arg1: i32) -> (i32, i32) {
    %c0_i32 = arith.constant 0 : i32
    %c0_i32_0 = arith.constant 0 : i32
    return %c0_i32, %arg1 : i32, i32
  }
  func.func @transform_2(%arg0: i32, %arg1: i32) -> (i32, i32) {
    %c0_i32 = arith.constant 0 : i32
    %c0_i32_0 = arith.constant 0 : i32
    return %c0_i32, %arg1 : i32, i32
  }
  func.func @transform_3(%arg0: i32, %arg1: i32) -> (i32, i32) {
    %c0_i32 = arith.constant 0 : i32
    return %arg0, %arg1 : i32, i32
  }
}

module attributes {stable_mosaic.version = 11 : i64} {
  func.func @kernel(%arg0: i32, %arg1: i32, %arg2: memref<1x32x128xbf16, #tpu.memory_space<vmem>>, %arg3: memref<3x384x128xbf16, #tpu.memory_space<vmem>>, %arg4: memref<1x128xf32, #tpu.memory_space<vmem>>, %arg5: memref<1x8x128xbf16, #tpu.memory_space<vmem>>, %arg6: memref<24x384xbf16, #tpu.memory_space<vmem>>) attributes {dimension_semantics = [#tpu.dimension_semantics<parallel>, #tpu.dimension_semantics<parallel>], iteration_bounds = array<i64: 4, 1>, scalar_prefetch = 0 : i64, scratch_operands = 1 : i64, tpu.core_type = #tpu.core_type<tc>, window_params = [{transform_indices = @transform_0, window_bounds = array<i64: 1, 32, 128>}, {transform_indices = @transform_1, window_bounds = array<i64: 3, 384, 128>}, {transform_indices = @transform_2, window_bounds = array<i64: 1, 128>}, {transform_indices = @transform_3, window_bounds = array<i64: 1, 8, 128>}]} {
    %c0 = arith.constant 0 : index
    %c0_0 = arith.constant 0 : index
    %c0_1 = arith.constant 0 : index
    %0 = vector.load %arg2[%c0, %c0_0, %c0_1] : memref<1x32x128xbf16, #tpu.memory_space<vmem>>, vector<1x24x128xbf16>
    %1 = vector.shape_cast %0 : vector<1x24x128xbf16> to vector<24x128xbf16>
    %c0_2 = arith.constant 0 : index
    %c0_3 = arith.constant 0 : index
    %2 = vector.load %arg6[%c0_2, %c0_3] : memref<24x384xbf16, #tpu.memory_space<vmem>>, vector<24x128xbf16>
    tpu.vector_store %arg6[%c0_2, %c0_3], %1 {strides = array<i32>} : memref<24x384xbf16, #tpu.memory_space<vmem>>, vector<24x128xbf16>,
    %c0_4 = arith.constant 0 : index
    %c1 = arith.constant 1 : index
    %c0_5 = arith.constant 0 : index
    %3 = vector.load %arg2[%c0_4, %c1, %c0_5] : memref<1x32x128xbf16, #tpu.memory_space<vmem>>, vector<1x24x128xbf16>
    %4 = vector.shape_cast %3 : vector<1x24x128xbf16> to vector<24x128xbf16>
    %c0_6 = arith.constant 0 : index
    %c128 = arith.constant 128 : index
    %5 = vector.load %arg6[%c0_6, %c128] : memref<24x384xbf16, #tpu.memory_space<vmem>>, vector<24x128xbf16>
    tpu.vector_store %arg6[%c0_6, %c128], %4 {strides = array<i32>} : memref<24x384xbf16, #tpu.memory_space<vmem>>, vector<24x128xbf16>,
    %c0_7 = arith.constant 0 : index
    %c2 = arith.constant 2 : index
    %c0_8 = arith.constant 0 : index
    %6 = vector.load %arg2[%c0_7, %c2, %c0_8] : memref<1x32x128xbf16, #tpu.memory_space<vmem>>, vector<1x24x128xbf16>
    %7 = vector.shape_cast %6 : vector<1x24x128xbf16> to vector<24x128xbf16>
    %c0_9 = arith.constant 0 : index
    %c256 = arith.constant 256 : index
    %8 = vector.load %arg6[%c0_9, %c256] : memref<24x384xbf16, #tpu.memory_space<vmem>>, vector<24x128xbf16>
    tpu.vector_store %arg6[%c0_9, %c256], %7 {strides = array<i32>} : memref<24x384xbf16, #tpu.memory_space<vmem>>, vector<24x128xbf16>,
    %c0_10 = arith.constant 0 : index
    %c0_11 = arith.constant 0 : index
    %9 = vector.load %arg6[%c0_10, %c0_11] : memref<24x384xbf16, #tpu.memory_space<vmem>>, vector<8x384xbf16>
    %c0_12 = arith.constant 0 : index
    %c0_13 = arith.constant 0 : index
    %c0_14 = arith.constant 0 : index
    %10 = vector.load %arg3[%c0_12, %c0_13, %c0_14] : memref<3x384x128xbf16, #tpu.memory_space<vmem>>, vector<1x384x128xbf16>
    %11 = vector.shape_cast %10 : vector<1x384x128xbf16> to vector<384x128xbf16>
    %cst = arith.constant dense<0.000000e+00> : vector<8x128xf32>
    %12 = tpu.matmul %9, %11, %cst {dimension_numbers = #tpu.dot_dimension_numbers<[1], [0], [0], [1], [0, 0, 1, 1], [], []>} : vector<8x384xbf16>, vector<384x128xbf16>, vector<8x128xf32> -> vector<8x128xf32>
    %c0_15 = arith.constant 0 : index
    %c0_16 = arith.constant 0 : index
    %13 = vector.load %arg4[%c0_15, %c0_16] : memref<1x128xf32, #tpu.memory_space<vmem>>, vector<1x128xf32>
    %14 = vector.broadcast %13 : vector<1x128xf32> to vector<8x128xf32>
    %15 = arith.addf %12, %14 : vector<8x128xf32>
    %c8 = arith.constant 8 : index
    %c0_17 = arith.constant 0 : index
    %16 = vector.load %arg6[%c8, %c0_17] : memref<24x384xbf16, #tpu.memory_space<vmem>>, vector<8x384xbf16>
    %c1_18 = arith.constant 1 : index
    %c0_19 = arith.constant 0 : index
    %c0_20 = arith.constant 0 : index
    %17 = vector.load %arg3[%c1_18, %c0_19, %c0_20] : memref<3x384x128xbf16, #tpu.memory_space<vmem>>, vector<1x384x128xbf16>
    %18 = vector.shape_cast %17 : vector<1x384x128xbf16> to vector<384x128xbf16>
    %cst_21 = arith.constant dense<0.000000e+00> : vector<8x128xf32>
    %19 = tpu.matmul %16, %18, %cst_21 {dimension_numbers = #tpu.dot_dimension_numbers<[1], [0], [0], [1], [0, 0, 1, 1], [], []>} : vector<8x384xbf16>, vector<384x128xbf16>, vector<8x128xf32> -> vector<8x128xf32>
    %20 = arith.addf %15, %19 : vector<8x128xf32>
    %c16 = arith.constant 16 : index
    %c0_22 = arith.constant 0 : index
    %21 = vector.load %arg6[%c16, %c0_22] : memref<24x384xbf16, #tpu.memory_space<vmem>>, vector<8x384xbf16>
    %c2_23 = arith.constant 2 : index
    %c0_24 = arith.constant 0 : index
    %c0_25 = arith.constant 0 : index
    %22 = vector.load %arg3[%c2_23, %c0_24, %c0_25] : memref<3x384x128xbf16, #tpu.memory_space<vmem>>, vector<1x384x128xbf16>
    %23 = vector.shape_cast %22 : vector<1x384x128xbf16> to vector<384x128xbf16>
    %cst_26 = arith.constant dense<0.000000e+00> : vector<8x128xf32>
    %24 = tpu.matmul %21, %23, %cst_26 {dimension_numbers = #tpu.dot_dimension_numbers<[1], [0], [0], [1], [0, 0, 1, 1], [], []>} : vector<8x384xbf16>, vector<384x128xbf16>, vector<8x128xf32> -> vector<8x128xf32>
    %25 = arith.addf %20, %24 : vector<8x128xf32>
    %cst_27 = arith.constant 5.000000e-01 : f32
    %26 = vector.broadcast %cst_27 : f32 to vector<8x128xf32>
    %27 = arith.mulf %26, %25 : vector<8x128xf32>
    %cst_28 = arith.constant 0.707106769 : f32
    %28 = vector.broadcast %cst_28 : f32 to vector<8x128xf32>
    %29 = arith.mulf %25, %28 : vector<8x128xf32>
    %30 = math.absf %29 : vector<8x128xf32>
    %cst_29 = arith.constant 0.327591091 : f32
    %31 = vector.broadcast %cst_29 : f32 to vector<8x128xf32>
    %32 = arith.mulf %31, %30 : vector<8x128xf32>
    %cst_30 = arith.constant 1.000000e+00 : f32
    %33 = vector.broadcast %cst_30 : f32 to vector<8x128xf32>
    %34 = arith.addf %33, %32 : vector<8x128xf32>
    %cst_31 = arith.constant 1.000000e+00 : f32
    %35 = vector.broadcast %cst_31 : f32 to vector<8x128xf32>
    %36 = arith.divf %35, %34 : vector<8x128xf32>
    %cst_32 = arith.constant 1.06140542 : f32
    %37 = vector.broadcast %cst_32 : f32 to vector<8x128xf32>
    %38 = arith.mulf %37, %36 : vector<8x128xf32>
    %cst_33 = arith.constant -1.45315206 : f32
    %39 = vector.broadcast %cst_33 : f32 to vector<8x128xf32>
    %40 = arith.addf %38, %39 : vector<8x128xf32>
    %41 = arith.mulf %40, %36 : vector<8x128xf32>
    %cst_34 = arith.constant 1.42141378 : f32
    %42 = vector.broadcast %cst_34 : f32 to vector<8x128xf32>
    %43 = arith.addf %41, %42 : vector<8x128xf32>
    %44 = arith.mulf %43, %36 : vector<8x128xf32>
    %cst_35 = arith.constant -0.284496725 : f32
    %45 = vector.broadcast %cst_35 : f32 to vector<8x128xf32>
    %46 = arith.addf %44, %45 : vector<8x128xf32>
    %47 = arith.mulf %46, %36 : vector<8x128xf32>
    %cst_36 = arith.constant 0.254829586 : f32
    %48 = vector.broadcast %cst_36 : f32 to vector<8x128xf32>
    %49 = arith.addf %47, %48 : vector<8x128xf32>
    %50 = arith.mulf %49, %36 : vector<8x128xf32>
    %cst_37 = arith.constant 0.000000e+00 : f32
    %51 = vector.broadcast %cst_37 : f32 to vector<8x128xf32>
    %52 = arith.subf %51, %30 : vector<8x128xf32>
    %53 = arith.mulf %52, %30 : vector<8x128xf32>
    %54 = math.exp %53 : vector<8x128xf32>
    %55 = arith.mulf %50, %54 : vector<8x128xf32>
    %cst_38 = arith.constant 1.000000e+00 : f32
    %56 = vector.broadcast %cst_38 : f32 to vector<8x128xf32>
    %57 = arith.subf %56, %55 : vector<8x128xf32>
    %cst_39 = arith.constant 0.000000e+00 : f32
    %58 = vector.broadcast %cst_39 : f32 to vector<8x128xf32>
    %59 = arith.cmpf olt, %29, %58 : vector<8x128xf32>
    %cst_40 = arith.constant 0.000000e+00 : f32
    %60 = vector.broadcast %cst_40 : f32 to vector<8x128xf32>
    %61 = arith.subf %60, %57 : vector<8x128xf32>
    %62 = arith.select %59, %61, %57 : vector<8x128xi1>, vector<8x128xf32>
    %cst_41 = arith.constant 1.000000e+00 : f32
    %63 = vector.broadcast %cst_41 : f32 to vector<8x128xf32>
    %64 = arith.addf %63, %62 : vector<8x128xf32>
    %65 = arith.mulf %27, %64 : vector<8x128xf32>
    %66 = arith.truncf %65 : vector<8x128xf32> to vector<8x128xbf16>
    %c0_42 = arith.constant 0 : index
    %c0_43 = arith.constant 0 : index
    %c0_44 = arith.constant 0 : index
    %67 = vector.load %arg5[%c0_42, %c0_43, %c0_44] : memref<1x8x128xbf16, #tpu.memory_space<vmem>>, vector<1x8x128xbf16>
    %68 = vector.shape_cast %67 : vector<1x8x128xbf16> to vector<8x128xbf16>
    %69 = vector.shape_cast %66 : vector<8x128xbf16> to vector<1x8x128xbf16>
    tpu.vector_store %arg5[%c0_42, %c0_43, %c0_44], %69 {strides = array<i32>} : memref<1x8x128xbf16, #tpu.memory_space<vmem>>, vector<1x8x128xbf16>,
    return
  }
  func.func @transform_0(%arg0: i32, %arg1: i32) -> (i32, i32, i32) {
    %c0_i32 = arith.constant 0 : i32
    %c0_i32_0 = arith.constant 0 : i32
    %c0_i32_1 = arith.constant 0 : i32
    return %arg0, %c0_i32, %c0_i32_0 : i32, i32, i32
  }
  func.func @transform_1(%arg0: i32, %arg1: i32) -> (i32, i32, i32) {
    %c0_i32 = arith.constant 0 : i32
    %c0_i32_0 = arith.constant 0 : i32
    %c0_i32_1 = arith.constant 0 : i32
    return %c0_i32, %c0_i32_0, %arg1 : i32, i32, i32
  }
  func.func @transform_2(%arg0: i32, %arg1: i32) -> (i32, i32) {
    %c0_i32 = arith.constant 0 : i32
    %c0_i32_0 = arith.constant 0 : i32
    return %c0_i32, %arg1 : i32, i32
  }
  func.func @transform_3(%arg0: i32, %arg1: i32) -> (i32, i32, i32) {
    %c0_i32 = arith.constant 0 : i32
    %c0_i32_0 = arith.constant 0 : i32
    return %arg0, %c0_i32, %arg1 : i32, i32, i32
  }
}

module attributes {stable_mosaic.version = 11 : i64} {
  func.func @kernel(%arg0: i32, %arg1: i32, %arg2: memref<1x32x128xbf16, #tpu.memory_space<vmem>>, %arg3: memref<3x384x128xbf16, #tpu.memory_space<vmem>>, %arg4: memref<1x128xf32, #tpu.memory_space<vmem>>, %arg5: memref<1x32x128xbf16, #tpu.memory_space<vmem>>, %arg6: memref<1x8x128xbf16, #tpu.memory_space<vmem>>, %arg7: memref<24x384xbf16, #tpu.memory_space<vmem>>) attributes {dimension_semantics = [#tpu.dimension_semantics<parallel>, #tpu.dimension_semantics<parallel>], iteration_bounds = array<i64: 4, 1>, scalar_prefetch = 0 : i64, scratch_operands = 1 : i64, tpu.core_type = #tpu.core_type<tc>, window_params = [{transform_indices = @transform_0, window_bounds = array<i64: 1, 32, 128>}, {transform_indices = @transform_1, window_bounds = array<i64: 3, 384, 128>}, {transform_indices = @transform_2, window_bounds = array<i64: 1, 128>}, {transform_indices = @transform_3, window_bounds = array<i64: 1, 32, 128>}, {transform_indices = @transform_4, window_bounds = array<i64: 1, 8, 128>}]} {
    %c0 = arith.constant 0 : index
    %c0_0 = arith.constant 0 : index
    %c0_1 = arith.constant 0 : index
    %0 = vector.load %arg2[%c0, %c0_0, %c0_1] : memref<1x32x128xbf16, #tpu.memory_space<vmem>>, vector<1x24x128xbf16>
    %1 = vector.shape_cast %0 : vector<1x24x128xbf16> to vector<24x128xbf16>
    %c0_2 = arith.constant 0 : index
    %c0_3 = arith.constant 0 : index
    %2 = vector.load %arg7[%c0_2, %c0_3] : memref<24x384xbf16, #tpu.memory_space<vmem>>, vector<24x128xbf16>
    tpu.vector_store %arg7[%c0_2, %c0_3], %1 {strides = array<i32>} : memref<24x384xbf16, #tpu.memory_space<vmem>>, vector<24x128xbf16>,
    %c0_4 = arith.constant 0 : index
    %c1 = arith.constant 1 : index
    %c0_5 = arith.constant 0 : index
    %3 = vector.load %arg2[%c0_4, %c1, %c0_5] : memref<1x32x128xbf16, #tpu.memory_space<vmem>>, vector<1x24x128xbf16>
    %4 = vector.shape_cast %3 : vector<1x24x128xbf16> to vector<24x128xbf16>
    %c0_6 = arith.constant 0 : index
    %c128 = arith.constant 128 : index
    %5 = vector.load %arg7[%c0_6, %c128] : memref<24x384xbf16, #tpu.memory_space<vmem>>, vector<24x128xbf16>
    tpu.vector_store %arg7[%c0_6, %c128], %4 {strides = array<i32>} : memref<24x384xbf16, #tpu.memory_space<vmem>>, vector<24x128xbf16>,
    %c0_7 = arith.constant 0 : index
    %c2 = arith.constant 2 : index
    %c0_8 = arith.constant 0 : index
    %6 = vector.load %arg2[%c0_7, %c2, %c0_8] : memref<1x32x128xbf16, #tpu.memory_space<vmem>>, vector<1x24x128xbf16>
    %7 = vector.shape_cast %6 : vector<1x24x128xbf16> to vector<24x128xbf16>
    %c0_9 = arith.constant 0 : index
    %c256 = arith.constant 256 : index
    %8 = vector.load %arg7[%c0_9, %c256] : memref<24x384xbf16, #tpu.memory_space<vmem>>, vector<24x128xbf16>
    tpu.vector_store %arg7[%c0_9, %c256], %7 {strides = array<i32>} : memref<24x384xbf16, #tpu.memory_space<vmem>>, vector<24x128xbf16>,
    %c0_10 = arith.constant 0 : index
    %c0_11 = arith.constant 0 : index
    %9 = vector.load %arg7[%c0_10, %c0_11] : memref<24x384xbf16, #tpu.memory_space<vmem>>, vector<8x384xbf16>
    %c0_12 = arith.constant 0 : index
    %c0_13 = arith.constant 0 : index
    %c0_14 = arith.constant 0 : index
    %10 = vector.load %arg3[%c0_12, %c0_13, %c0_14] : memref<3x384x128xbf16, #tpu.memory_space<vmem>>, vector<1x384x128xbf16>
    %11 = vector.shape_cast %10 : vector<1x384x128xbf16> to vector<384x128xbf16>
    %cst = arith.constant dense<0.000000e+00> : vector<8x128xf32>
    %12 = tpu.matmul %9, %11, %cst {dimension_numbers = #tpu.dot_dimension_numbers<[1], [0], [0], [1], [0, 0, 1, 1], [], []>} : vector<8x384xbf16>, vector<384x128xbf16>, vector<8x128xf32> -> vector<8x128xf32>
    %c0_15 = arith.constant 0 : index
    %c0_16 = arith.constant 0 : index
    %13 = vector.load %arg4[%c0_15, %c0_16] : memref<1x128xf32, #tpu.memory_space<vmem>>, vector<1x128xf32>
    %14 = vector.broadcast %13 : vector<1x128xf32> to vector<8x128xf32>
    %15 = arith.addf %12, %14 : vector<8x128xf32>
    %c8 = arith.constant 8 : index
    %c0_17 = arith.constant 0 : index
    %16 = vector.load %arg7[%c8, %c0_17] : memref<24x384xbf16, #tpu.memory_space<vmem>>, vector<8x384xbf16>
    %c1_18 = arith.constant 1 : index
    %c0_19 = arith.constant 0 : index
    %c0_20 = arith.constant 0 : index
    %17 = vector.load %arg3[%c1_18, %c0_19, %c0_20] : memref<3x384x128xbf16, #tpu.memory_space<vmem>>, vector<1x384x128xbf16>
    %18 = vector.shape_cast %17 : vector<1x384x128xbf16> to vector<384x128xbf16>
    %cst_21 = arith.constant dense<0.000000e+00> : vector<8x128xf32>
    %19 = tpu.matmul %16, %18, %cst_21 {dimension_numbers = #tpu.dot_dimension_numbers<[1], [0], [0], [1], [0, 0, 1, 1], [], []>} : vector<8x384xbf16>, vector<384x128xbf16>, vector<8x128xf32> -> vector<8x128xf32>
    %20 = arith.addf %15, %19 : vector<8x128xf32>
    %c16 = arith.constant 16 : index
    %c0_22 = arith.constant 0 : index
    %21 = vector.load %arg7[%c16, %c0_22] : memref<24x384xbf16, #tpu.memory_space<vmem>>, vector<8x384xbf16>
    %c2_23 = arith.constant 2 : index
    %c0_24 = arith.constant 0 : index
    %c0_25 = arith.constant 0 : index
    %22 = vector.load %arg3[%c2_23, %c0_24, %c0_25] : memref<3x384x128xbf16, #tpu.memory_space<vmem>>, vector<1x384x128xbf16>
    %23 = vector.shape_cast %22 : vector<1x384x128xbf16> to vector<384x128xbf16>
    %cst_26 = arith.constant dense<0.000000e+00> : vector<8x128xf32>
    %24 = tpu.matmul %21, %23, %cst_26 {dimension_numbers = #tpu.dot_dimension_numbers<[1], [0], [0], [1], [0, 0, 1, 1], [], []>} : vector<8x384xbf16>, vector<384x128xbf16>, vector<8x128xf32> -> vector<8x128xf32>
    %25 = arith.addf %20, %24 : vector<8x128xf32>
    %cst_27 = arith.constant 5.000000e-01 : f32
    %26 = vector.broadcast %cst_27 : f32 to vector<8x128xf32>
    %27 = arith.mulf %26, %25 : vector<8x128xf32>
    %cst_28 = arith.constant 0.707106769 : f32
    %28 = vector.broadcast %cst_28 : f32 to vector<8x128xf32>
    %29 = arith.mulf %25, %28 : vector<8x128xf32>
    %30 = math.absf %29 : vector<8x128xf32>
    %cst_29 = arith.constant 0.327591091 : f32
    %31 = vector.broadcast %cst_29 : f32 to vector<8x128xf32>
    %32 = arith.mulf %31, %30 : vector<8x128xf32>
    %cst_30 = arith.constant 1.000000e+00 : f32
    %33 = vector.broadcast %cst_30 : f32 to vector<8x128xf32>
    %34 = arith.addf %33, %32 : vector<8x128xf32>
    %cst_31 = arith.constant 1.000000e+00 : f32
    %35 = vector.broadcast %cst_31 : f32 to vector<8x128xf32>
    %36 = arith.divf %35, %34 : vector<8x128xf32>
    %cst_32 = arith.constant 1.06140542 : f32
    %37 = vector.broadcast %cst_32 : f32 to vector<8x128xf32>
    %38 = arith.mulf %37, %36 : vector<8x128xf32>
    %cst_33 = arith.constant -1.45315206 : f32
    %39 = vector.broadcast %cst_33 : f32 to vector<8x128xf32>
    %40 = arith.addf %38, %39 : vector<8x128xf32>
    %41 = arith.mulf %40, %36 : vector<8x128xf32>
    %cst_34 = arith.constant 1.42141378 : f32
    %42 = vector.broadcast %cst_34 : f32 to vector<8x128xf32>
    %43 = arith.addf %41, %42 : vector<8x128xf32>
    %44 = arith.mulf %43, %36 : vector<8x128xf32>
    %cst_35 = arith.constant -0.284496725 : f32
    %45 = vector.broadcast %cst_35 : f32 to vector<8x128xf32>
    %46 = arith.addf %44, %45 : vector<8x128xf32>
    %47 = arith.mulf %46, %36 : vector<8x128xf32>
    %cst_36 = arith.constant 0.254829586 : f32
    %48 = vector.broadcast %cst_36 : f32 to vector<8x128xf32>
    %49 = arith.addf %47, %48 : vector<8x128xf32>
    %50 = arith.mulf %49, %36 : vector<8x128xf32>
    %cst_37 = arith.constant 0.000000e+00 : f32
    %51 = vector.broadcast %cst_37 : f32 to vector<8x128xf32>
    %52 = arith.subf %51, %30 : vector<8x128xf32>
    %53 = arith.mulf %52, %30 : vector<8x128xf32>
    %54 = math.exp %53 : vector<8x128xf32>
    %55 = arith.mulf %50, %54 : vector<8x128xf32>
    %cst_38 = arith.constant 1.000000e+00 : f32
    %56 = vector.broadcast %cst_38 : f32 to vector<8x128xf32>
    %57 = arith.subf %56, %55 : vector<8x128xf32>
    %cst_39 = arith.constant 0.000000e+00 : f32
    %58 = vector.broadcast %cst_39 : f32 to vector<8x128xf32>
    %59 = arith.cmpf olt, %29, %58 : vector<8x128xf32>
    %cst_40 = arith.constant 0.000000e+00 : f32
    %60 = vector.broadcast %cst_40 : f32 to vector<8x128xf32>
    %61 = arith.subf %60, %57 : vector<8x128xf32>
    %62 = arith.select %59, %61, %57 : vector<8x128xi1>, vector<8x128xf32>
    %cst_41 = arith.constant 1.000000e+00 : f32
    %63 = vector.broadcast %cst_41 : f32 to vector<8x128xf32>
    %64 = arith.addf %63, %62 : vector<8x128xf32>
    %65 = arith.mulf %27, %64 : vector<8x128xf32>
    %c0_42 = arith.constant 0 : index
    %c9 = arith.constant 9 : index
    %c0_43 = arith.constant 0 : index
    %66 = vector.load %arg5[%c0_42, %c9, %c0_43] : memref<1x32x128xbf16, #tpu.memory_space<vmem>>, vector<1x8x128xbf16>
    %67 = vector.shape_cast %66 : vector<1x8x128xbf16> to vector<8x128xbf16>
    %68 = arith.extf %67 : vector<8x128xbf16> to vector<8x128xf32>
    %69 = arith.addf %65, %68 : vector<8x128xf32>
    %70 = arith.truncf %69 : vector<8x128xf32> to vector<8x128xbf16>
    %c0_44 = arith.constant 0 : index
    %c0_45 = arith.constant 0 : index
    %c0_46 = arith.constant 0 : index
    %71 = vector.load %arg6[%c0_44, %c0_45, %c0_46] : memref<1x8x128xbf16, #tpu.memory_space<vmem>>, vector<1x8x128xbf16>
    %72 = vector.shape_cast %71 : vector<1x8x128xbf16> to vector<8x128xbf16>
    %73 = vector.shape_cast %70 : vector<8x128xbf16> to vector<1x8x128xbf16>
    tpu.vector_store %arg6[%c0_44, %c0_45, %c0_46], %73 {strides = array<i32>} : memref<1x8x128xbf16, #tpu.memory_space<vmem>>, vector<1x8x128xbf16>,
    return
  }
  func.func @transform_0(%arg0: i32, %arg1: i32) -> (i32, i32, i32) {
    %c0_i32 = arith.constant 0 : i32
    %c0_i32_0 = arith.constant 0 : i32
    %c0_i32_1 = arith.constant 0 : i32
    return %arg0, %c0_i32, %c0_i32_0 : i32, i32, i32
  }
  func.func @transform_1(%arg0: i32, %arg1: i32) -> (i32, i32, i32) {
    %c0_i32 = arith.constant 0 : i32
    %c0_i32_0 = arith.constant 0 : i32
    %c0_i32_1 = arith.constant 0 : i32
    return %c0_i32, %c0_i32_0, %arg1 : i32, i32, i32
  }
  func.func @transform_2(%arg0: i32, %arg1: i32) -> (i32, i32) {
    %c0_i32 = arith.constant 0 : i32
    %c0_i32_0 = arith.constant 0 : i32
    return %c0_i32, %arg1 : i32, i32
  }
  func.func @transform_3(%arg0: i32, %arg1: i32) -> (i32, i32, i32) {
    %c0_i32 = arith.constant 0 : i32
    %c0_i32_0 = arith.constant 0 : i32
    return %arg0, %c0_i32, %arg1 : i32, i32, i32
  }
  func.func @transform_4(%arg0: i32, %arg1: i32) -> (i32, i32, i32) {
    %c0_i32 = arith.constant 0 : i32
    %c0_i32_0 = arith.constant 0 : i32
    return %arg0, %c0_i32, %arg1 : i32, i32, i32
  }
}

module attributes {stable_mosaic.version = 11 : i64} {
  func.func @_mm_bias_kernel(%arg0: i32, %arg1: i32, %arg2: memref<2x1152xbf16, #tpu.memory_space<vmem>>, %arg3: memref<1152x128xbf16, #tpu.memory_space<vmem>>, %arg4: memref<1x128xf32, #tpu.memory_space<vmem>>, %arg5: memref<2x128xbf16, #tpu.memory_space<vmem>>) attributes {dimension_semantics = [#tpu.dimension_semantics<parallel>, #tpu.dimension_semantics<parallel>], iteration_bounds = array<i64: 1, 1>, scalar_prefetch = 0 : i64, scratch_operands = 0 : i64, tpu.core_type = #tpu.core_type<tc>, window_params = [{transform_indices = @transform_0, window_bounds = array<i64: 2, 1152>}, {transform_indices = @transform_1, window_bounds = array<i64: 1152, 128>}, {transform_indices = @transform_2, window_bounds = array<i64: 1, 128>}, {transform_indices = @transform_3, window_bounds = array<i64: 2, 128>}]} {
    %c0 = arith.constant 0 : index
    %c0_0 = arith.constant 0 : index
    %0 = vector.load %arg2[%c0, %c0_0] : memref<2x1152xbf16, #tpu.memory_space<vmem>>, vector<2x1152xbf16>
    %c0_1 = arith.constant 0 : index
    %c0_2 = arith.constant 0 : index
    %1 = vector.load %arg3[%c0_1, %c0_2] : memref<1152x128xbf16, #tpu.memory_space<vmem>>, vector<1152x128xbf16>
    %cst = arith.constant dense<0.000000e+00> : vector<2x128xf32>
    %2 = tpu.matmul %0, %1, %cst {dimension_numbers = #tpu.dot_dimension_numbers<[1], [0], [0], [1], [0, 0, 1, 1], [], []>} : vector<2x1152xbf16>, vector<1152x128xbf16>, vector<2x128xf32> -> vector<2x128xf32>
    %c0_3 = arith.constant 0 : index
    %c0_4 = arith.constant 0 : index
    %3 = vector.load %arg4[%c0_3, %c0_4] : memref<1x128xf32, #tpu.memory_space<vmem>>, vector<1x128xf32>
    %4 = vector.broadcast %3 : vector<1x128xf32> to vector<2x128xf32>
    %5 = arith.addf %2, %4 : vector<2x128xf32>
    %6 = arith.truncf %5 : vector<2x128xf32> to vector<2x128xbf16>
    %c0_5 = arith.constant 0 : index
    %c0_6 = arith.constant 0 : index
    %7 = vector.load %arg5[%c0_5, %c0_6] : memref<2x128xbf16, #tpu.memory_space<vmem>>, vector<2x128xbf16>
    tpu.vector_store %arg5[%c0_5, %c0_6], %6 {strides = array<i32>} : memref<2x128xbf16, #tpu.memory_space<vmem>>, vector<2x128xbf16>,
    return
  }
  func.func @transform_0(%arg0: i32, %arg1: i32) -> (i32, i32) {
    %c0_i32 = arith.constant 0 : i32
    %c0_i32_0 = arith.constant 0 : i32
    return %arg0, %c0_i32 : i32, i32
  }
  func.func @transform_1(%arg0: i32, %arg1: i32) -> (i32, i32) {
    %c0_i32 = arith.constant 0 : i32
    %c0_i32_0 = arith.constant 0 : i32
    return %c0_i32, %arg1 : i32, i32
  }
  func.func @transform_2(%arg0: i32, %arg1: i32) -> (i32, i32) {
    %c0_i32 = arith.constant 0 : i32
    %c0_i32_0 = arith.constant 0 : i32
    return %c0_i32, %arg1 : i32, i32
  }
  func.func @transform_3(%arg0: i32, %arg1: i32) -> (i32, i32) {
    %c0_i32 = arith.constant 0 : i32
    return %arg0, %arg1 : i32, i32
  }
}

module attributes {stable_mosaic.version = 11 : i64} {
  func.func @kernel(%arg0: i32, %arg1: i32, %arg2: memref<1x32x128xbf16, #tpu.memory_space<vmem>>, %arg3: memref<3x384x128xbf16, #tpu.memory_space<vmem>>, %arg4: memref<1x128xf32, #tpu.memory_space<vmem>>, %arg5: memref<1x8x128xbf16, #tpu.memory_space<vmem>>, %arg6: memref<24x384xbf16, #tpu.memory_space<vmem>>) attributes {dimension_semantics = [#tpu.dimension_semantics<parallel>, #tpu.dimension_semantics<parallel>], iteration_bounds = array<i64: 2, 1>, scalar_prefetch = 0 : i64, scratch_operands = 1 : i64, tpu.core_type = #tpu.core_type<tc>, window_params = [{transform_indices = @transform_0, window_bounds = array<i64: 1, 32, 128>}, {transform_indices = @transform_1, window_bounds = array<i64: 3, 384, 128>}, {transform_indices = @transform_2, window_bounds = array<i64: 1, 128>}, {transform_indices = @transform_3, window_bounds = array<i64: 1, 8, 128>}]} {
    %c0 = arith.constant 0 : index
    %c0_0 = arith.constant 0 : index
    %c0_1 = arith.constant 0 : index
    %0 = vector.load %arg2[%c0, %c0_0, %c0_1] : memref<1x32x128xbf16, #tpu.memory_space<vmem>>, vector<1x24x128xbf16>
    %1 = vector.shape_cast %0 : vector<1x24x128xbf16> to vector<24x128xbf16>
    %c0_2 = arith.constant 0 : index
    %c0_3 = arith.constant 0 : index
    %2 = vector.load %arg6[%c0_2, %c0_3] : memref<24x384xbf16, #tpu.memory_space<vmem>>, vector<24x128xbf16>
    tpu.vector_store %arg6[%c0_2, %c0_3], %1 {strides = array<i32>} : memref<24x384xbf16, #tpu.memory_space<vmem>>, vector<24x128xbf16>,
    %c0_4 = arith.constant 0 : index
    %c1 = arith.constant 1 : index
    %c0_5 = arith.constant 0 : index
    %3 = vector.load %arg2[%c0_4, %c1, %c0_5] : memref<1x32x128xbf16, #tpu.memory_space<vmem>>, vector<1x24x128xbf16>
    %4 = vector.shape_cast %3 : vector<1x24x128xbf16> to vector<24x128xbf16>
    %c0_6 = arith.constant 0 : index
    %c128 = arith.constant 128 : index
    %5 = vector.load %arg6[%c0_6, %c128] : memref<24x384xbf16, #tpu.memory_space<vmem>>, vector<24x128xbf16>
    tpu.vector_store %arg6[%c0_6, %c128], %4 {strides = array<i32>} : memref<24x384xbf16, #tpu.memory_space<vmem>>, vector<24x128xbf16>,
    %c0_7 = arith.constant 0 : index
    %c2 = arith.constant 2 : index
    %c0_8 = arith.constant 0 : index
    %6 = vector.load %arg2[%c0_7, %c2, %c0_8] : memref<1x32x128xbf16, #tpu.memory_space<vmem>>, vector<1x24x128xbf16>
    %7 = vector.shape_cast %6 : vector<1x24x128xbf16> to vector<24x128xbf16>
    %c0_9 = arith.constant 0 : index
    %c256 = arith.constant 256 : index
    %8 = vector.load %arg6[%c0_9, %c256] : memref<24x384xbf16, #tpu.memory_space<vmem>>, vector<24x128xbf16>
    tpu.vector_store %arg6[%c0_9, %c256], %7 {strides = array<i32>} : memref<24x384xbf16, #tpu.memory_space<vmem>>, vector<24x128xbf16>,
    %c0_10 = arith.constant 0 : index
    %c0_11 = arith.constant 0 : index
    %9 = vector.load %arg6[%c0_10, %c0_11] : memref<24x384xbf16, #tpu.memory_space<vmem>>, vector<8x384xbf16>
    %c0_12 = arith.constant 0 : index
    %c0_13 = arith.constant 0 : index
    %c0_14 = arith.constant 0 : index
    %10 = vector.load %arg3[%c0_12, %c0_13, %c0_14] : memref<3x384x128xbf16, #tpu.memory_space<vmem>>, vector<1x384x128xbf16>
    %11 = vector.shape_cast %10 : vector<1x384x128xbf16> to vector<384x128xbf16>
    %cst = arith.constant dense<0.000000e+00> : vector<8x128xf32>
    %12 = tpu.matmul %9, %11, %cst {dimension_numbers = #tpu.dot_dimension_numbers<[1], [0], [0], [1], [0, 0, 1, 1], [], []>} : vector<8x384xbf16>, vector<384x128xbf16>, vector<8x128xf32> -> vector<8x128xf32>
    %c0_15 = arith.constant 0 : index
    %c0_16 = arith.constant 0 : index
    %13 = vector.load %arg4[%c0_15, %c0_16] : memref<1x128xf32, #tpu.memory_space<vmem>>, vector<1x128xf32>
    %14 = vector.broadcast %13 : vector<1x128xf32> to vector<8x128xf32>
    %15 = arith.addf %12, %14 : vector<8x128xf32>
    %c8 = arith.constant 8 : index
    %c0_17 = arith.constant 0 : index
    %16 = vector.load %arg6[%c8, %c0_17] : memref<24x384xbf16, #tpu.memory_space<vmem>>, vector<8x384xbf16>
    %c1_18 = arith.constant 1 : index
    %c0_19 = arith.constant 0 : index
    %c0_20 = arith.constant 0 : index
    %17 = vector.load %arg3[%c1_18, %c0_19, %c0_20] : memref<3x384x128xbf16, #tpu.memory_space<vmem>>, vector<1x384x128xbf16>
    %18 = vector.shape_cast %17 : vector<1x384x128xbf16> to vector<384x128xbf16>
    %cst_21 = arith.constant dense<0.000000e+00> : vector<8x128xf32>
    %19 = tpu.matmul %16, %18, %cst_21 {dimension_numbers = #tpu.dot_dimension_numbers<[1], [0], [0], [1], [0, 0, 1, 1], [], []>} : vector<8x384xbf16>, vector<384x128xbf16>, vector<8x128xf32> -> vector<8x128xf32>
    %20 = arith.addf %15, %19 : vector<8x128xf32>
    %c16 = arith.constant 16 : index
    %c0_22 = arith.constant 0 : index
    %21 = vector.load %arg6[%c16, %c0_22] : memref<24x384xbf16, #tpu.memory_space<vmem>>, vector<8x384xbf16>
    %c2_23 = arith.constant 2 : index
    %c0_24 = arith.constant 0 : index
    %c0_25 = arith.constant 0 : index
    %22 = vector.load %arg3[%c2_23, %c0_24, %c0_25] : memref<3x384x128xbf16, #tpu.memory_space<vmem>>, vector<1x384x128xbf16>
    %23 = vector.shape_cast %22 : vector<1x384x128xbf16> to vector<384x128xbf16>
    %cst_26 = arith.constant dense<0.000000e+00> : vector<8x128xf32>
    %24 = tpu.matmul %21, %23, %cst_26 {dimension_numbers = #tpu.dot_dimension_numbers<[1], [0], [0], [1], [0, 0, 1, 1], [], []>} : vector<8x384xbf16>, vector<384x128xbf16>, vector<8x128xf32> -> vector<8x128xf32>
    %25 = arith.addf %20, %24 : vector<8x128xf32>
    %cst_27 = arith.constant 5.000000e-01 : f32
    %26 = vector.broadcast %cst_27 : f32 to vector<8x128xf32>
    %27 = arith.mulf %26, %25 : vector<8x128xf32>
    %cst_28 = arith.constant 0.707106769 : f32
    %28 = vector.broadcast %cst_28 : f32 to vector<8x128xf32>
    %29 = arith.mulf %25, %28 : vector<8x128xf32>
    %30 = math.absf %29 : vector<8x128xf32>
    %cst_29 = arith.constant 0.327591091 : f32
    %31 = vector.broadcast %cst_29 : f32 to vector<8x128xf32>
    %32 = arith.mulf %31, %30 : vector<8x128xf32>
    %cst_30 = arith.constant 1.000000e+00 : f32
    %33 = vector.broadcast %cst_30 : f32 to vector<8x128xf32>
    %34 = arith.addf %33, %32 : vector<8x128xf32>
    %cst_31 = arith.constant 1.000000e+00 : f32
    %35 = vector.broadcast %cst_31 : f32 to vector<8x128xf32>
    %36 = arith.divf %35, %34 : vector<8x128xf32>
    %cst_32 = arith.constant 1.06140542 : f32
    %37 = vector.broadcast %cst_32 : f32 to vector<8x128xf32>
    %38 = arith.mulf %37, %36 : vector<8x128xf32>
    %cst_33 = arith.constant -1.45315206 : f32
    %39 = vector.broadcast %cst_33 : f32 to vector<8x128xf32>
    %40 = arith.addf %38, %39 : vector<8x128xf32>
    %41 = arith.mulf %40, %36 : vector<8x128xf32>
    %cst_34 = arith.constant 1.42141378 : f32
    %42 = vector.broadcast %cst_34 : f32 to vector<8x128xf32>
    %43 = arith.addf %41, %42 : vector<8x128xf32>
    %44 = arith.mulf %43, %36 : vector<8x128xf32>
    %cst_35 = arith.constant -0.284496725 : f32
    %45 = vector.broadcast %cst_35 : f32 to vector<8x128xf32>
    %46 = arith.addf %44, %45 : vector<8x128xf32>
    %47 = arith.mulf %46, %36 : vector<8x128xf32>
    %cst_36 = arith.constant 0.254829586 : f32
    %48 = vector.broadcast %cst_36 : f32 to vector<8x128xf32>
    %49 = arith.addf %47, %48 : vector<8x128xf32>
    %50 = arith.mulf %49, %36 : vector<8x128xf32>
    %cst_37 = arith.constant 0.000000e+00 : f32
    %51 = vector.broadcast %cst_37 : f32 to vector<8x128xf32>
    %52 = arith.subf %51, %30 : vector<8x128xf32>
    %53 = arith.mulf %52, %30 : vector<8x128xf32>
    %54 = math.exp %53 : vector<8x128xf32>
    %55 = arith.mulf %50, %54 : vector<8x128xf32>
    %cst_38 = arith.constant 1.000000e+00 : f32
    %56 = vector.broadcast %cst_38 : f32 to vector<8x128xf32>
    %57 = arith.subf %56, %55 : vector<8x128xf32>
    %cst_39 = arith.constant 0.000000e+00 : f32
    %58 = vector.broadcast %cst_39 : f32 to vector<8x128xf32>
    %59 = arith.cmpf olt, %29, %58 : vector<8x128xf32>
    %cst_40 = arith.constant 0.000000e+00 : f32
    %60 = vector.broadcast %cst_40 : f32 to vector<8x128xf32>
    %61 = arith.subf %60, %57 : vector<8x128xf32>
    %62 = arith.select %59, %61, %57 : vector<8x128xi1>, vector<8x128xf32>
    %cst_41 = arith.constant 1.000000e+00 : f32
    %63 = vector.broadcast %cst_41 : f32 to vector<8x128xf32>
    %64 = arith.addf %63, %62 : vector<8x128xf32>
    %65 = arith.mulf %27, %64 : vector<8x128xf32>
    %66 = arith.truncf %65 : vector<8x128xf32> to vector<8x128xbf16>
    %c0_42 = arith.constant 0 : index
    %c0_43 = arith.constant 0 : index
    %c0_44 = arith.constant 0 : index
    %67 = vector.load %arg5[%c0_42, %c0_43, %c0_44] : memref<1x8x128xbf16, #tpu.memory_space<vmem>>, vector<1x8x128xbf16>
    %68 = vector.shape_cast %67 : vector<1x8x128xbf16> to vector<8x128xbf16>
    %69 = vector.shape_cast %66 : vector<8x128xbf16> to vector<1x8x128xbf16>
    tpu.vector_store %arg5[%c0_42, %c0_43, %c0_44], %69 {strides = array<i32>} : memref<1x8x128xbf16, #tpu.memory_space<vmem>>, vector<1x8x128xbf16>,
    return
  }
  func.func @transform_0(%arg0: i32, %arg1: i32) -> (i32, i32, i32) {
    %c0_i32 = arith.constant 0 : i32
    %c0_i32_0 = arith.constant 0 : i32
    %c0_i32_1 = arith.constant 0 : i32
    return %arg0, %c0_i32, %c0_i32_0 : i32, i32, i32
  }
  func.func @transform_1(%arg0: i32, %arg1: i32) -> (i32, i32, i32) {
    %c0_i32 = arith.constant 0 : i32
    %c0_i32_0 = arith.constant 0 : i32
    %c0_i32_1 = arith.constant 0 : i32
    return %c0_i32, %c0_i32_0, %arg1 : i32, i32, i32
  }
  func.func @transform_2(%arg0: i32, %arg1: i32) -> (i32, i32) {
    %c0_i32 = arith.constant 0 : i32
    %c0_i32_0 = arith.constant 0 : i32
    return %c0_i32, %arg1 : i32, i32
  }
  func.func @transform_3(%arg0: i32, %arg1: i32) -> (i32, i32, i32) {
    %c0_i32 = arith.constant 0 : i32
    %c0_i32_0 = arith.constant 0 : i32
    return %arg0, %c0_i32, %arg1 : i32, i32, i32
  }
}

module attributes {stable_mosaic.version = 11 : i64} {
  func.func @kernel(%arg0: i32, %arg1: i32, %arg2: memref<1x32x128xbf16, #tpu.memory_space<vmem>>, %arg3: memref<3x384x128xbf16, #tpu.memory_space<vmem>>, %arg4: memref<1x128xf32, #tpu.memory_space<vmem>>, %arg5: memref<1x8x128xbf16, #tpu.memory_space<vmem>>, %arg6: memref<24x384xbf16, #tpu.memory_space<vmem>>) attributes {dimension_semantics = [#tpu.dimension_semantics<parallel>, #tpu.dimension_semantics<parallel>], iteration_bounds = array<i64: 2, 1>, scalar_prefetch = 0 : i64, scratch_operands = 1 : i64, tpu.core_type = #tpu.core_type<tc>, window_params = [{transform_indices = @transform_0, window_bounds = array<i64: 1, 32, 128>}, {transform_indices = @transform_1, window_bounds = array<i64: 3, 384, 128>}, {transform_indices = @transform_2, window_bounds = array<i64: 1, 128>}, {transform_indices = @transform_3, window_bounds = array<i64: 1, 8, 128>}]} {
    %c0 = arith.constant 0 : index
    %c0_0 = arith.constant 0 : index
    %c0_1 = arith.constant 0 : index
    %0 = vector.load %arg2[%c0, %c0_0, %c0_1] : memref<1x32x128xbf16, #tpu.memory_space<vmem>>, vector<1x24x128xbf16>
    %1 = vector.shape_cast %0 : vector<1x24x128xbf16> to vector<24x128xbf16>
    %c0_2 = arith.constant 0 : index
    %c0_3 = arith.constant 0 : index
    %2 = vector.load %arg6[%c0_2, %c0_3] : memref<24x384xbf16, #tpu.memory_space<vmem>>, vector<24x128xbf16>
    tpu.vector_store %arg6[%c0_2, %c0_3], %1 {strides = array<i32>} : memref<24x384xbf16, #tpu.memory_space<vmem>>, vector<24x128xbf16>,
    %c0_4 = arith.constant 0 : index
    %c1 = arith.constant 1 : index
    %c0_5 = arith.constant 0 : index
    %3 = vector.load %arg2[%c0_4, %c1, %c0_5] : memref<1x32x128xbf16, #tpu.memory_space<vmem>>, vector<1x24x128xbf16>
    %4 = vector.shape_cast %3 : vector<1x24x128xbf16> to vector<24x128xbf16>
    %c0_6 = arith.constant 0 : index
    %c128 = arith.constant 128 : index
    %5 = vector.load %arg6[%c0_6, %c128] : memref<24x384xbf16, #tpu.memory_space<vmem>>, vector<24x128xbf16>
    tpu.vector_store %arg6[%c0_6, %c128], %4 {strides = array<i32>} : memref<24x384xbf16, #tpu.memory_space<vmem>>, vector<24x128xbf16>,
    %c0_7 = arith.constant 0 : index
    %c2 = arith.constant 2 : index
    %c0_8 = arith.constant 0 : index
    %6 = vector.load %arg2[%c0_7, %c2, %c0_8] : memref<1x32x128xbf16, #tpu.memory_space<vmem>>, vector<1x24x128xbf16>
    %7 = vector.shape_cast %6 : vector<1x24x128xbf16> to vector<24x128xbf16>
    %c0_9 = arith.constant 0 : index
    %c256 = arith.constant 256 : index
    %8 = vector.load %arg6[%c0_9, %c256] : memref<24x384xbf16, #tpu.memory_space<vmem>>, vector<24x128xbf16>
    tpu.vector_store %arg6[%c0_9, %c256], %7 {strides = array<i32>} : memref<24x384xbf16, #tpu.memory_space<vmem>>, vector<24x128xbf16>,
    %c0_10 = arith.constant 0 : index
    %c0_11 = arith.constant 0 : index
    %9 = vector.load %arg6[%c0_10, %c0_11] : memref<24x384xbf16, #tpu.memory_space<vmem>>, vector<8x384xbf16>
    %c0_12 = arith.constant 0 : index
    %c0_13 = arith.constant 0 : index
    %c0_14 = arith.constant 0 : index
    %10 = vector.load %arg3[%c0_12, %c0_13, %c0_14] : memref<3x384x128xbf16, #tpu.memory_space<vmem>>, vector<1x384x128xbf16>
    %11 = vector.shape_cast %10 : vector<1x384x128xbf16> to vector<384x128xbf16>
    %cst = arith.constant dense<0.000000e+00> : vector<8x128xf32>
    %12 = tpu.matmul %9, %11, %cst {dimension_numbers = #tpu.dot_dimension_numbers<[1], [0], [0], [1], [0, 0, 1, 1], [], []>} : vector<8x384xbf16>, vector<384x128xbf16>, vector<8x128xf32> -> vector<8x128xf32>
    %c0_15 = arith.constant 0 : index
    %c0_16 = arith.constant 0 : index
    %13 = vector.load %arg4[%c0_15, %c0_16] : memref<1x128xf32, #tpu.memory_space<vmem>>, vector<1x128xf32>
    %14 = vector.broadcast %13 : vector<1x128xf32> to vector<8x128xf32>
    %15 = arith.addf %12, %14 : vector<8x128xf32>
    %c8 = arith.constant 8 : index
    %c0_17 = arith.constant 0 : index
    %16 = vector.load %arg6[%c8, %c0_17] : memref<24x384xbf16, #tpu.memory_space<vmem>>, vector<8x384xbf16>
    %c1_18 = arith.constant 1 : index
    %c0_19 = arith.constant 0 : index
    %c0_20 = arith.constant 0 : index
    %17 = vector.load %arg3[%c1_18, %c0_19, %c0_20] : memref<3x384x128xbf16, #tpu.memory_space<vmem>>, vector<1x384x128xbf16>
    %18 = vector.shape_cast %17 : vector<1x384x128xbf16> to vector<384x128xbf16>
    %cst_21 = arith.constant dense<0.000000e+00> : vector<8x128xf32>
    %19 = tpu.matmul %16, %18, %cst_21 {dimension_numbers = #tpu.dot_dimension_numbers<[1], [0], [0], [1], [0, 0, 1, 1], [], []>} : vector<8x384xbf16>, vector<384x128xbf16>, vector<8x128xf32> -> vector<8x128xf32>
    %20 = arith.addf %15, %19 : vector<8x128xf32>
    %c16 = arith.constant 16 : index
    %c0_22 = arith.constant 0 : index
    %21 = vector.load %arg6[%c16, %c0_22] : memref<24x384xbf16, #tpu.memory_space<vmem>>, vector<8x384xbf16>
    %c2_23 = arith.constant 2 : index
    %c0_24 = arith.constant 0 : index
    %c0_25 = arith.constant 0 : index
    %22 = vector.load %arg3[%c2_23, %c0_24, %c0_25] : memref<3x384x128xbf16, #tpu.memory_space<vmem>>, vector<1x384x128xbf16>
    %23 = vector.shape_cast %22 : vector<1x384x128xbf16> to vector<384x128xbf16>
    %cst_26 = arith.constant dense<0.000000e+00> : vector<8x128xf32>
    %24 = tpu.matmul %21, %23, %cst_26 {dimension_numbers = #tpu.dot_dimension_numbers<[1], [0], [0], [1], [0, 0, 1, 1], [], []>} : vector<8x384xbf16>, vector<384x128xbf16>, vector<8x128xf32> -> vector<8x128xf32>
    %25 = arith.addf %20, %24 : vector<8x128xf32>
    %cst_27 = arith.constant 5.000000e-01 : f32
    %26 = vector.broadcast %cst_27 : f32 to vector<8x128xf32>
    %27 = arith.mulf %26, %25 : vector<8x128xf32>
    %cst_28 = arith.constant 0.707106769 : f32
    %28 = vector.broadcast %cst_28 : f32 to vector<8x128xf32>
    %29 = arith.mulf %25, %28 : vector<8x128xf32>
    %30 = math.absf %29 : vector<8x128xf32>
    %cst_29 = arith.constant 0.327591091 : f32
    %31 = vector.broadcast %cst_29 : f32 to vector<8x128xf32>
    %32 = arith.mulf %31, %30 : vector<8x128xf32>
    %cst_30 = arith.constant 1.000000e+00 : f32
    %33 = vector.broadcast %cst_30 : f32 to vector<8x128xf32>
    %34 = arith.addf %33, %32 : vector<8x128xf32>
    %cst_31 = arith.constant 1.000000e+00 : f32
    %35 = vector.broadcast %cst_31 : f32 to vector<8x128xf32>
    %36 = arith.divf %35, %34 : vector<8x128xf32>
    %cst_32 = arith.constant 1.06140542 : f32
    %37 = vector.broadcast %cst_32 : f32 to vector<8x128xf32>
    %38 = arith.mulf %37, %36 : vector<8x128xf32>
    %cst_33 = arith.constant -1.45315206 : f32
    %39 = vector.broadcast %cst_33 : f32 to vector<8x128xf32>
    %40 = arith.addf %38, %39 : vector<8x128xf32>
    %41 = arith.mulf %40, %36 : vector<8x128xf32>
    %cst_34 = arith.constant 1.42141378 : f32
    %42 = vector.broadcast %cst_34 : f32 to vector<8x128xf32>
    %43 = arith.addf %41, %42 : vector<8x128xf32>
    %44 = arith.mulf %43, %36 : vector<8x128xf32>
    %cst_35 = arith.constant -0.284496725 : f32
    %45 = vector.broadcast %cst_35 : f32 to vector<8x128xf32>
    %46 = arith.addf %44, %45 : vector<8x128xf32>
    %47 = arith.mulf %46, %36 : vector<8x128xf32>
    %cst_36 = arith.constant 0.254829586 : f32
    %48 = vector.broadcast %cst_36 : f32 to vector<8x128xf32>
    %49 = arith.addf %47, %48 : vector<8x128xf32>
    %50 = arith.mulf %49, %36 : vector<8x128xf32>
    %cst_37 = arith.constant 0.000000e+00 : f32
    %51 = vector.broadcast %cst_37 : f32 to vector<8x128xf32>
    %52 = arith.subf %51, %30 : vector<8x128xf32>
    %53 = arith.mulf %52, %30 : vector<8x128xf32>
    %54 = math.exp %53 : vector<8x128xf32>
    %55 = arith.mulf %50, %54 : vector<8x128xf32>
    %cst_38 = arith.constant 1.000000e+00 : f32
    %56 = vector.broadcast %cst_38 : f32 to vector<8x128xf32>
    %57 = arith.subf %56, %55 : vector<8x128xf32>
    %cst_39 = arith.constant 0.000000e+00 : f32
    %58 = vector.broadcast %cst_39 : f32 to vector<8x128xf32>
    %59 = arith.cmpf olt, %29, %58 : vector<8x128xf32>
    %cst_40 = arith.constant 0.000000e+00 : f32
    %60 = vector.broadcast %cst_40 : f32 to vector<8x128xf32>
    %61 = arith.subf %60, %57 : vector<8x128xf32>
    %62 = arith.select %59, %61, %57 : vector<8x128xi1>, vector<8x128xf32>
    %cst_41 = arith.constant 1.000000e+00 : f32
    %63 = vector.broadcast %cst_41 : f32 to vector<8x128xf32>
    %64 = arith.addf %63, %62 : vector<8x128xf32>
    %65 = arith.mulf %27, %64 : vector<8x128xf32>
    %66 = arith.truncf %65 : vector<8x128xf32> to vector<8x128xbf16>
    %c0_42 = arith.constant 0 : index
    %c0_43 = arith.constant 0 : index
    %c0_44 = arith.constant 0 : index
    %67 = vector.load %arg5[%c0_42, %c0_43, %c0_44] : memref<1x8x128xbf16, #tpu.memory_space<vmem>>, vector<1x8x128xbf16>
    %68 = vector.shape_cast %67 : vector<1x8x128xbf16> to vector<8x128xbf16>
    %69 = vector.shape_cast %66 : vector<8x128xbf16> to vector<1x8x128xbf16>
    tpu.vector_store %arg5[%c0_42, %c0_43, %c0_44], %69 {strides = array<i32>} : memref<1x8x128xbf16, #tpu.memory_space<vmem>>, vector<1x8x128xbf16>,
    return
  }
  func.func @transform_0(%arg0: i32, %arg1: i32) -> (i32, i32, i32) {
    %c0_i32 = arith.constant 0 : i32
    %c0_i32_0 = arith.constant 0 : i32
    %c0_i32_1 = arith.constant 0 : i32
    return %arg0, %c0_i32, %c0_i32_0 : i32, i32, i32
  }
  func.func @transform_1(%arg0: i32, %arg1: i32) -> (i32, i32, i32) {
    %c0_i32 = arith.constant 0 : i32
    %c0_i32_0 = arith.constant 0 : i32
    %c0_i32_1 = arith.constant 0 : i32
    return %c0_i32, %c0_i32_0, %arg1 : i32, i32, i32
  }
  func.func @transform_2(%arg0: i32, %arg1: i32) -> (i32, i32) {
    %c0_i32 = arith.constant 0 : i32
    %c0_i32_0 = arith.constant 0 : i32
    return %c0_i32, %arg1 : i32, i32
  }
  func.func @transform_3(%arg0: i32, %arg1: i32) -> (i32, i32, i32) {
    %c0_i32 = arith.constant 0 : i32
    %c0_i32_0 = arith.constant 0 : i32
    return %arg0, %c0_i32, %arg1 : i32, i32, i32
  }
}

module attributes {stable_mosaic.version = 11 : i64} {
  func.func @kernel(%arg0: i32, %arg1: i32, %arg2: memref<1x32x128xbf16, #tpu.memory_space<vmem>>, %arg3: memref<3x384x128xbf16, #tpu.memory_space<vmem>>, %arg4: memref<1x128xf32, #tpu.memory_space<vmem>>, %arg5: memref<1x32x128xbf16, #tpu.memory_space<vmem>>, %arg6: memref<1x8x128xbf16, #tpu.memory_space<vmem>>, %arg7: memref<24x384xbf16, #tpu.memory_space<vmem>>) attributes {dimension_semantics = [#tpu.dimension_semantics<parallel>, #tpu.dimension_semantics<parallel>], iteration_bounds = array<i64: 2, 1>, scalar_prefetch = 0 : i64, scratch_operands = 1 : i64, tpu.core_type = #tpu.core_type<tc>, window_params = [{transform_indices = @transform_0, window_bounds = array<i64: 1, 32, 128>}, {transform_indices = @transform_1, window_bounds = array<i64: 3, 384, 128>}, {transform_indices = @transform_2, window_bounds = array<i64: 1, 128>}, {transform_indices = @transform_3, window_bounds = array<i64: 1, 32, 128>}, {transform_indices = @transform_4, window_bounds = array<i64: 1, 8, 128>}]} {
    %c0 = arith.constant 0 : index
    %c0_0 = arith.constant 0 : index
    %c0_1 = arith.constant 0 : index
    %0 = vector.load %arg2[%c0, %c0_0, %c0_1] : memref<1x32x128xbf16, #tpu.memory_space<vmem>>, vector<1x24x128xbf16>
    %1 = vector.shape_cast %0 : vector<1x24x128xbf16> to vector<24x128xbf16>
    %c0_2 = arith.constant 0 : index
    %c0_3 = arith.constant 0 : index
    %2 = vector.load %arg7[%c0_2, %c0_3] : memref<24x384xbf16, #tpu.memory_space<vmem>>, vector<24x128xbf16>
    tpu.vector_store %arg7[%c0_2, %c0_3], %1 {strides = array<i32>} : memref<24x384xbf16, #tpu.memory_space<vmem>>, vector<24x128xbf16>,
    %c0_4 = arith.constant 0 : index
    %c1 = arith.constant 1 : index
    %c0_5 = arith.constant 0 : index
    %3 = vector.load %arg2[%c0_4, %c1, %c0_5] : memref<1x32x128xbf16, #tpu.memory_space<vmem>>, vector<1x24x128xbf16>
    %4 = vector.shape_cast %3 : vector<1x24x128xbf16> to vector<24x128xbf16>
    %c0_6 = arith.constant 0 : index
    %c128 = arith.constant 128 : index
    %5 = vector.load %arg7[%c0_6, %c128] : memref<24x384xbf16, #tpu.memory_space<vmem>>, vector<24x128xbf16>
    tpu.vector_store %arg7[%c0_6, %c128], %4 {strides = array<i32>} : memref<24x384xbf16, #tpu.memory_space<vmem>>, vector<24x128xbf16>,
    %c0_7 = arith.constant 0 : index
    %c2 = arith.constant 2 : index
    %c0_8 = arith.constant 0 : index
    %6 = vector.load %arg2[%c0_7, %c2, %c0_8] : memref<1x32x128xbf16, #tpu.memory_space<vmem>>, vector<1x24x128xbf16>
    %7 = vector.shape_cast %6 : vector<1x24x128xbf16> to vector<24x128xbf16>
    %c0_9 = arith.constant 0 : index
    %c256 = arith.constant 256 : index
    %8 = vector.load %arg7[%c0_9, %c256] : memref<24x384xbf16, #tpu.memory_space<vmem>>, vector<24x128xbf16>
    tpu.vector_store %arg7[%c0_9, %c256], %7 {strides = array<i32>} : memref<24x384xbf16, #tpu.memory_space<vmem>>, vector<24x128xbf16>,
    %c0_10 = arith.constant 0 : index
    %c0_11 = arith.constant 0 : index
    %9 = vector.load %arg7[%c0_10, %c0_11] : memref<24x384xbf16, #tpu.memory_space<vmem>>, vector<8x384xbf16>
    %c0_12 = arith.constant 0 : index
    %c0_13 = arith.constant 0 : index
    %c0_14 = arith.constant 0 : index
    %10 = vector.load %arg3[%c0_12, %c0_13, %c0_14] : memref<3x384x128xbf16, #tpu.memory_space<vmem>>, vector<1x384x128xbf16>
    %11 = vector.shape_cast %10 : vector<1x384x128xbf16> to vector<384x128xbf16>
    %cst = arith.constant dense<0.000000e+00> : vector<8x128xf32>
    %12 = tpu.matmul %9, %11, %cst {dimension_numbers = #tpu.dot_dimension_numbers<[1], [0], [0], [1], [0, 0, 1, 1], [], []>} : vector<8x384xbf16>, vector<384x128xbf16>, vector<8x128xf32> -> vector<8x128xf32>
    %c0_15 = arith.constant 0 : index
    %c0_16 = arith.constant 0 : index
    %13 = vector.load %arg4[%c0_15, %c0_16] : memref<1x128xf32, #tpu.memory_space<vmem>>, vector<1x128xf32>
    %14 = vector.broadcast %13 : vector<1x128xf32> to vector<8x128xf32>
    %15 = arith.addf %12, %14 : vector<8x128xf32>
    %c8 = arith.constant 8 : index
    %c0_17 = arith.constant 0 : index
    %16 = vector.load %arg7[%c8, %c0_17] : memref<24x384xbf16, #tpu.memory_space<vmem>>, vector<8x384xbf16>
    %c1_18 = arith.constant 1 : index
    %c0_19 = arith.constant 0 : index
    %c0_20 = arith.constant 0 : index
    %17 = vector.load %arg3[%c1_18, %c0_19, %c0_20] : memref<3x384x128xbf16, #tpu.memory_space<vmem>>, vector<1x384x128xbf16>
    %18 = vector.shape_cast %17 : vector<1x384x128xbf16> to vector<384x128xbf16>
    %cst_21 = arith.constant dense<0.000000e+00> : vector<8x128xf32>
    %19 = tpu.matmul %16, %18, %cst_21 {dimension_numbers = #tpu.dot_dimension_numbers<[1], [0], [0], [1], [0, 0, 1, 1], [], []>} : vector<8x384xbf16>, vector<384x128xbf16>, vector<8x128xf32> -> vector<8x128xf32>
    %20 = arith.addf %15, %19 : vector<8x128xf32>
    %c16 = arith.constant 16 : index
    %c0_22 = arith.constant 0 : index
    %21 = vector.load %arg7[%c16, %c0_22] : memref<24x384xbf16, #tpu.memory_space<vmem>>, vector<8x384xbf16>
    %c2_23 = arith.constant 2 : index
    %c0_24 = arith.constant 0 : index
    %c0_25 = arith.constant 0 : index
    %22 = vector.load %arg3[%c2_23, %c0_24, %c0_25] : memref<3x384x128xbf16, #tpu.memory_space<vmem>>, vector<1x384x128xbf16>
    %23 = vector.shape_cast %22 : vector<1x384x128xbf16> to vector<384x128xbf16>
    %cst_26 = arith.constant dense<0.000000e+00> : vector<8x128xf32>
    %24 = tpu.matmul %21, %23, %cst_26 {dimension_numbers = #tpu.dot_dimension_numbers<[1], [0], [0], [1], [0, 0, 1, 1], [], []>} : vector<8x384xbf16>, vector<384x128xbf16>, vector<8x128xf32> -> vector<8x128xf32>
    %25 = arith.addf %20, %24 : vector<8x128xf32>
    %cst_27 = arith.constant 5.000000e-01 : f32
    %26 = vector.broadcast %cst_27 : f32 to vector<8x128xf32>
    %27 = arith.mulf %26, %25 : vector<8x128xf32>
    %cst_28 = arith.constant 0.707106769 : f32
    %28 = vector.broadcast %cst_28 : f32 to vector<8x128xf32>
    %29 = arith.mulf %25, %28 : vector<8x128xf32>
    %30 = math.absf %29 : vector<8x128xf32>
    %cst_29 = arith.constant 0.327591091 : f32
    %31 = vector.broadcast %cst_29 : f32 to vector<8x128xf32>
    %32 = arith.mulf %31, %30 : vector<8x128xf32>
    %cst_30 = arith.constant 1.000000e+00 : f32
    %33 = vector.broadcast %cst_30 : f32 to vector<8x128xf32>
    %34 = arith.addf %33, %32 : vector<8x128xf32>
    %cst_31 = arith.constant 1.000000e+00 : f32
    %35 = vector.broadcast %cst_31 : f32 to vector<8x128xf32>
    %36 = arith.divf %35, %34 : vector<8x128xf32>
    %cst_32 = arith.constant 1.06140542 : f32
    %37 = vector.broadcast %cst_32 : f32 to vector<8x128xf32>
    %38 = arith.mulf %37, %36 : vector<8x128xf32>
    %cst_33 = arith.constant -1.45315206 : f32
    %39 = vector.broadcast %cst_33 : f32 to vector<8x128xf32>
    %40 = arith.addf %38, %39 : vector<8x128xf32>
    %41 = arith.mulf %40, %36 : vector<8x128xf32>
    %cst_34 = arith.constant 1.42141378 : f32
    %42 = vector.broadcast %cst_34 : f32 to vector<8x128xf32>
    %43 = arith.addf %41, %42 : vector<8x128xf32>
    %44 = arith.mulf %43, %36 : vector<8x128xf32>
    %cst_35 = arith.constant -0.284496725 : f32
    %45 = vector.broadcast %cst_35 : f32 to vector<8x128xf32>
    %46 = arith.addf %44, %45 : vector<8x128xf32>
    %47 = arith.mulf %46, %36 : vector<8x128xf32>
    %cst_36 = arith.constant 0.254829586 : f32
    %48 = vector.broadcast %cst_36 : f32 to vector<8x128xf32>
    %49 = arith.addf %47, %48 : vector<8x128xf32>
    %50 = arith.mulf %49, %36 : vector<8x128xf32>
    %cst_37 = arith.constant 0.000000e+00 : f32
    %51 = vector.broadcast %cst_37 : f32 to vector<8x128xf32>
    %52 = arith.subf %51, %30 : vector<8x128xf32>
    %53 = arith.mulf %52, %30 : vector<8x128xf32>
    %54 = math.exp %53 : vector<8x128xf32>
    %55 = arith.mulf %50, %54 : vector<8x128xf32>
    %cst_38 = arith.constant 1.000000e+00 : f32
    %56 = vector.broadcast %cst_38 : f32 to vector<8x128xf32>
    %57 = arith.subf %56, %55 : vector<8x128xf32>
    %cst_39 = arith.constant 0.000000e+00 : f32
    %58 = vector.broadcast %cst_39 : f32 to vector<8x128xf32>
    %59 = arith.cmpf olt, %29, %58 : vector<8x128xf32>
    %cst_40 = arith.constant 0.000000e+00 : f32
    %60 = vector.broadcast %cst_40 : f32 to vector<8x128xf32>
    %61 = arith.subf %60, %57 : vector<8x128xf32>
    %62 = arith.select %59, %61, %57 : vector<8x128xi1>, vector<8x128xf32>
    %cst_41 = arith.constant 1.000000e+00 : f32
    %63 = vector.broadcast %cst_41 : f32 to vector<8x128xf32>
    %64 = arith.addf %63, %62 : vector<8x128xf32>
    %65 = arith.mulf %27, %64 : vector<8x128xf32>
    %c0_42 = arith.constant 0 : index
    %c9 = arith.constant 9 : index
    %c0_43 = arith.constant 0 : index
    %66 = vector.load %arg5[%c0_42, %c9, %c0_43] : memref<1x32x128xbf16, #tpu.memory_space<vmem>>, vector<1x8x128xbf16>
    %67 = vector.shape_cast %66 : vector<1x8x128xbf16> to vector<8x128xbf16>
    %68 = arith.extf %67 : vector<8x128xbf16> to vector<8x128xf32>
    %69 = arith.addf %65, %68 : vector<8x128xf32>
    %70 = arith.truncf %69 : vector<8x128xf32> to vector<8x128xbf16>
    %c0_44 = arith.constant 0 : index
    %c0_45 = arith.constant 0 : index
    %c0_46 = arith.constant 0 : index
    %71 = vector.load %arg6[%c0_44, %c0_45, %c0_46] : memref<1x8x128xbf16, #tpu.memory_space<vmem>>, vector<1x8x128xbf16>
    %72 = vector.shape_cast %71 : vector<1x8x128xbf16> to vector<8x128xbf16>
    %73 = vector.shape_cast %70 : vector<8x128xbf16> to vector<1x8x128xbf16>
    tpu.vector_store %arg6[%c0_44, %c0_45, %c0_46], %73 {strides = array<i32>} : memref<1x8x128xbf16, #tpu.memory_space<vmem>>, vector<1x8x128xbf16>,
    return
  }
  func.func @transform_0(%arg0: i32, %arg1: i32) -> (i32, i32, i32) {
    %c0_i32 = arith.constant 0 : i32
    %c0_i32_0 = arith.constant 0 : i32
    %c0_i32_1 = arith.constant 0 : i32
    return %arg0, %c0_i32, %c0_i32_0 : i32, i32, i32
  }
  func.func @transform_1(%arg0: i32, %arg1: i32) -> (i32, i32, i32) {
    %c0_i32 = arith.constant 0 : i32
    %c0_i32_0 = arith.constant 0 : i32
    %c0_i32_1 = arith.constant 0 : i32
    return %c0_i32, %c0_i32_0, %arg1 : i32, i32, i32
  }
  func.func @transform_2(%arg0: i32, %arg1: i32) -> (i32, i32) {
    %c0_i32 = arith.constant 0 : i32
    %c0_i32_0 = arith.constant 0 : i32
    return %c0_i32, %arg1 : i32, i32
  }
  func.func @transform_3(%arg0: i32, %arg1: i32) -> (i32, i32, i32) {
    %c0_i32 = arith.constant 0 : i32
    %c0_i32_0 = arith.constant 0 : i32
    return %arg0, %c0_i32, %arg1 : i32, i32, i32
  }
  func.func @transform_4(%arg0: i32, %arg1: i32) -> (i32, i32, i32) {
    %c0_i32 = arith.constant 0 : i32
    %c0_i32_0 = arith.constant 0 : i32
    return %arg0, %c0_i32, %arg1 : i32, i32, i32
  }
}

module attributes {stable_mosaic.version = 11 : i64} {
  func.func @_mm_bias_kernel(%arg0: i32, %arg1: i32, %arg2: memref<2x1152xbf16, #tpu.memory_space<vmem>>, %arg3: memref<1152x128xbf16, #tpu.memory_space<vmem>>, %arg4: memref<1x128xf32, #tpu.memory_space<vmem>>, %arg5: memref<2x128xbf16, #tpu.memory_space<vmem>>) attributes {dimension_semantics = [#tpu.dimension_semantics<parallel>, #tpu.dimension_semantics<parallel>], iteration_bounds = array<i64: 1, 1>, scalar_prefetch = 0 : i64, scratch_operands = 0 : i64, tpu.core_type = #tpu.core_type<tc>, window_params = [{transform_indices = @transform_0, window_bounds = array<i64: 2, 1152>}, {transform_indices = @transform_1, window_bounds = array<i64: 1152, 128>}, {transform_indices = @transform_2, window_bounds = array<i64: 1, 128>}, {transform_indices = @transform_3, window_bounds = array<i64: 2, 128>}]} {
    %c0 = arith.constant 0 : index
    %c0_0 = arith.constant 0 : index
    %0 = vector.load %arg2[%c0, %c0_0] : memref<2x1152xbf16, #tpu.memory_space<vmem>>, vector<2x1152xbf16>
    %c0_1 = arith.constant 0 : index
    %c0_2 = arith.constant 0 : index
    %1 = vector.load %arg3[%c0_1, %c0_2] : memref<1152x128xbf16, #tpu.memory_space<vmem>>, vector<1152x128xbf16>
    %cst = arith.constant dense<0.000000e+00> : vector<2x128xf32>
    %2 = tpu.matmul %0, %1, %cst {dimension_numbers = #tpu.dot_dimension_numbers<[1], [0], [0], [1], [0, 0, 1, 1], [], []>} : vector<2x1152xbf16>, vector<1152x128xbf16>, vector<2x128xf32> -> vector<2x128xf32>
    %c0_3 = arith.constant 0 : index
    %c0_4 = arith.constant 0 : index
    %3 = vector.load %arg4[%c0_3, %c0_4] : memref<1x128xf32, #tpu.memory_space<vmem>>, vector<1x128xf32>
    %4 = vector.broadcast %3 : vector<1x128xf32> to vector<2x128xf32>
    %5 = arith.addf %2, %4 : vector<2x128xf32>
    %6 = arith.truncf %5 : vector<2x128xf32> to vector<2x128xbf16>
    %c0_5 = arith.constant 0 : index
    %c0_6 = arith.constant 0 : index
    %7 = vector.load %arg5[%c0_5, %c0_6] : memref<2x128xbf16, #tpu.memory_space<vmem>>, vector<2x128xbf16>
    tpu.vector_store %arg5[%c0_5, %c0_6], %6 {strides = array<i32>} : memref<2x128xbf16, #tpu.memory_space<vmem>>, vector<2x128xbf16>,
    return
  }
  func.func @transform_0(%arg0: i32, %arg1: i32) -> (i32, i32) {
    %c0_i32 = arith.constant 0 : i32
    %c0_i32_0 = arith.constant 0 : i32
    return %arg0, %c0_i32 : i32, i32
  }
  func.func @transform_1(%arg0: i32, %arg1: i32) -> (i32, i32) {
    %c0_i32 = arith.constant 0 : i32
    %c0_i32_0 = arith.constant 0 : i32
    return %c0_i32, %arg1 : i32, i32
  }
  func.func @transform_2(%arg0: i32, %arg1: i32) -> (i32, i32) {
    %c0_i32 = arith.constant 0 : i32
    %c0_i32_0 = arith.constant 0 : i32
    return %c0_i32, %arg1 : i32, i32
  }
  func.func @transform_3(%arg0: i32, %arg1: i32) -> (i32, i32) {
    %c0_i32 = arith.constant 0 : i32
    return %arg0, %arg1 : i32, i32
  }
}

module attributes {stable_mosaic.version = 11 : i64} {
  func.func @_avgpool_kernel(%arg0: i32, %arg1: memref<1x1x128xbf16, #tpu.memory_space<vmem>>, %arg2: memref<1x1x128xf32, #tpu.memory_space<vmem>>) attributes {dimension_semantics = [#tpu.dimension_semantics<parallel>], iteration_bounds = array<i64: 2>, scalar_prefetch = 0 : i64, scratch_operands = 0 : i64, tpu.core_type = #tpu.core_type<tc>, window_params = [{transform_indices = @transform_0, window_bounds = array<i64: 1, 1, 128>}, {transform_indices = @transform_1, window_bounds = array<i64: 1, 1, 128>}]} {
    %c0 = arith.constant 0 : index
    %c0_0 = arith.constant 0 : index
    %c0_1 = arith.constant 0 : index
    %0 = vector.load %arg1[%c0, %c0_0, %c0_1] : memref<1x1x128xbf16, #tpu.memory_space<vmem>>, vector<1x1x128xbf16>
    %1 = vector.shape_cast %0 : vector<1x1x128xbf16> to vector<1x128xbf16>
    %2 = arith.extf %1 : vector<1x128xbf16> to vector<1x128xf32>
    %cst = arith.constant dense<0.000000e+00> : vector<128xf32>
    %3 = vector.multi_reduction <add>, %2, %cst [0] : vector<1x128xf32> to vector<128xf32>
    %4 = vector.shape_cast %3 : vector<128xf32> to vector<1x128xf32>
    %cst_2 = arith.constant 1.000000e+00 : f32
    %5 = vector.broadcast %cst_2 : f32 to vector<1x128xf32>
    %6 = arith.divf %4, %5 : vector<1x128xf32>
    %c0_3 = arith.constant 0 : index
    %c0_4 = arith.constant 0 : index
    %c0_5 = arith.constant 0 : index
    %7 = vector.load %arg2[%c0_3, %c0_4, %c0_5] : memref<1x1x128xf32, #tpu.memory_space<vmem>>, vector<1x1x128xf32>
    %8 = vector.shape_cast %7 : vector<1x1x128xf32> to vector<1x128xf32>
    %9 = vector.shape_cast %6 : vector<1x128xf32> to vector<1x1x128xf32>
    tpu.vector_store %arg2[%c0_3, %c0_4, %c0_5], %9 {strides = array<i32>} : memref<1x1x128xf32, #tpu.memory_space<vmem>>, vector<1x1x128xf32>,
    return
  }
  func.func @transform_0(%arg0: i32) -> (i32, i32, i32) {
    %c0_i32 = arith.constant 0 : i32
    %c0_i32_0 = arith.constant 0 : i32
    %c0_i32_1 = arith.constant 0 : i32
    return %arg0, %c0_i32, %c0_i32_0 : i32, i32, i32
  }
  func.func @transform_1(%arg0: i32) -> (i32, i32, i32) {
    %c0_i32 = arith.constant 0 : i32
    %c0_i32_0 = arith.constant 0 : i32
    %c0_i32_1 = arith.constant 0 : i32
    return %arg0, %c0_i32, %c0_i32_0 : i32, i32, i32
  }
}

</mosaic_0001>

<bundles_post_ra>
// kernel: conv_layer_forward.16
= control target key start
LH: loop header
LB: loop body
LE: loop exit
PB: predicated region body
PF: predicated region fallthrough
CT: control target
= control target key end

     0   :  { %s2491_s12 = smov 0   ;;  %s2493_s13 = smov 0   ;;  %s2952_s0 = inlined_call_operand.vmem [shape: bf16[32,2048], index: 0, kind: input, shape index: {}]   ;;  %s2953_s1 = inlined_call_operand.vmem [shape: bf16[2048,128], index: 1, kind: input, shape index: {}]   ;;  %s2954_s2 = inlined_call_operand.vmem [shape: f32[1,128], index: 2, kind: input, shape index: {}]   ;;  %s2955_s3 = inlined_call_operand.vmem [shape: bf16[32,128], index: 3, kind: output, shape index: {}]  }
   0x1   :  { %s2495_s14 = smov 0  }
   0x2 LB: > { %s25_s15 = sadd.s32 1, %s2465_s13  ;;  %p1688_p0 = scmp.ge.s32.totalorder %s2469_s14, 1  ;;  %s2469_s14 = sphi %s2495_s14, %s13_s14   ;;  %s2465_s13 = sphi %s2493_s13, %s2957_s13   ;;  %s2461_s12 = sphi %s2491_s12, %s2956_s12  }
   0x3   : > { %p27_p1 = scmp.ge.s32.totalorder %s25_s15, 2  ;;  %p170_p2 = scmp.lt.s32.totalorder %s2469_s14, 3 }
   0x5   : > { %s2959_s15 = smov (%p27_p1, %s25_s15), 0  ;;  %p171_p3 = pnand %p1688_p0, %p170_p2 }
   0x6   : > { %s1689_s17 = sshll.u32 (!%p171_p3), %s2461_s12, 1 }
   0x7   : > { %174 = sbr.rel (%p171_p3) target bundleno = 289 (0x121), region = 32  ;;  %p206_p4 = scmp.lt.s32.totalorder (!%p171_p3), %s1689_s17, 3 }
   0xc   : > { %v2296_v0 = vld [vmem:[%s2953_s1 + $0x38] sm:$0xff]  ;;  %v2295_v4 = vld [vmem:[%s2953_s1 + $0x30] sm:$0xff]  ;;  %v2294_v8 = vld [vmem:[%s2953_s1 + $0x28] sm:$0xff]  ;;  %s2961_s17 = smov (!%p206_p4, %s1689_s17), 3 }
   0xd   : > { %v2304_v1 = vld [vmem:[%s2953_s1 + $0x78] sm:$0xff]  ;;  %1352 = vmatpush.bf16.msra.mxu0 %v2296_v0  ;;  %v2303_v5 = vld [vmem:[%s2953_s1 + $0x70] sm:$0xff]  ;;  %v2302_v9 = vld [vmem:[%s2953_s1 + $0x68] sm:$0xff]  ;;  %s2272_s19 = sshll.u32 %s2961_s17, 6  ;;  %s1693_s6 = sshll.u32 %s2961_s17, 2 }
   0xe   : > { %v2312_v2 = vld [vmem:[%s2953_s1 + $0xb8] sm:$0xff]  ;;  %1366 = vmatpush.bf16.msra.mxu1 %v2304_v1  ;;  %v2311_v6 = vld [vmem:[%s2953_s1 + $0xb0] sm:$0xff]  ;;  %v2310_v10 = vld [vmem:[%s2953_s1 + $0xa8] sm:$0xff]  ;;  %s2602_s29 = scalar_lea.vmem %s2952_s0, %s2272_s19  ;;  %s226_s9 = scalar_lea.vmem %s2955_s3, %s1693_s6 }
   0xf   : > { %v2320_v3 = vld [vmem:[%s2953_s1 + $0xf8] sm:$0xff]  ;;  %1380 = vmatpush.bf16.msra.mxu2 %v2312_v2  ;;  %v2319_v7 = vld [vmem:[%s2953_s1 + $0xf0] sm:$0xff]  ;;  %v2318_v11 = vld [vmem:[%s2953_s1 + $0xe8] sm:$0xff] }
  0x10   : > { %1394 = vmatpush.bf16.msra.mxu3 %v2320_v3  ;;  %v2293_v12 = vld [vmem:[%s2953_s1 + $0x20] sm:$0xff]  ;;  %v2292_v16 = vld [vmem:[%s2953_s1 + $0x18] sm:$0xff]  ;;  %v2291_v20 = vld [vmem:[%s2953_s1 + $0x10] sm:$0xff] }
  0x11   : > { %1353 = vmatpush.bf16.msra.mxu0 %v2295_v4  ;;  %v2301_v13 = vld [vmem:[%s2953_s1 + $0x60] sm:$0xff]  ;;  %v2300_v17 = vld [vmem:[%s2953_s1 + $0x58] sm:$0xff]  ;;  %v2299_v21 = vld [vmem:[%s2953_s1 + $0x50] sm:$0xff] }
  0x12   : > { %1367 = vmatpush.bf16.msra.mxu1 %v2303_v5  ;;  %v2309_v14 = vld [vmem:[%s2953_s1 + $0xa0] sm:$0xff]  ;;  %v2308_v18 = vld [vmem:[%s2953_s1 + $0x98] sm:$0xff]  ;;  %v2307_v22 = vld [vmem:[%s2953_s1 + $0x90] sm:$0xff] }
  0x13   : > { %1381 = vmatpush.bf16.msra.mxu2 %v2311_v6  ;;  %v2317_v15 = vld [vmem:[%s2953_s1 + $0xe0] sm:$0xff]  ;;  %v2316_v19 = vld [vmem:[%s2953_s1 + $0xd8] sm:$0xff]  ;;  %v2315_v23 = vld [vmem:[%s2953_s1 + $0xd0] sm:$0xff] }
  0x14   : > { %1395 = vmatpush.bf16.msra.mxu3 %v2319_v7  ;;  %v2290_v24 = vld [vmem:[%s2953_s1 + $0x8] sm:$0xff]  ;;  %v2289_v28 = vld [vmem:[%s2953_s1] sm:$0xff]  ;;  %v2328_v32 = vld [vmem:[%s2953_s1 + $0x138] sm:$0xff] }
  0x15   : > { %1354 = vmatpush.bf16.msra.mxu0 %v2294_v8  ;;  %v2298_v25 = vld [vmem:[%s2953_s1 + $0x48] sm:$0xff]  ;;  %v2297_v29 = vld [vmem:[%s2953_s1 + $0x40] sm:$0xff]  ;;  %v2336_v33 = vld [vmem:[%s2953_s1 + $0x178] sm:$0xff] }
  0x16   : > { %1368 = vmatpush.bf16.msra.mxu1 %v2302_v9  ;;  %v2306_v26 = vld [vmem:[%s2953_s1 + $0x88] sm:$0xff]  ;;  %v2305_v30 = vld [vmem:[%s2953_s1 + $0x80] sm:$0xff]  ;;  %v2344_v42 = vld [vmem:[%s2953_s1 + $0x1b8] sm:$0xff] }
  0x17   : > { %1382 = vmatpush.bf16.msra.mxu2 %v2310_v10  ;;  %v2314_v27 = vld [vmem:[%s2953_s1 + $0xc8] sm:$0xff]  ;;  %v2313_v31 = vld [vmem:[%s2953_s1 + $0xc0] sm:$0xff]  ;;  %v2352_v43 = vld [vmem:[%s2953_s1 + $0x1f8] sm:$0xff] }
  0x18   : > { %1396 = vmatpush.bf16.msra.mxu3 %v2318_v11  ;;  %v1696_v34 = vld [vmem:[%s2602_s29] sm:$0xf]  ;;  %v1704_v36 = vld [vmem:[%s2602_s29 + $0x8] sm:$0xf]  ;;  %v2273_v38 = vld [vmem:[%s2602_s29 + $0x4] sm:$0xf] }
  0x19   : > { %1355 = vmatpush.bf16.msra.mxu0 %v2293_v12  ;;  %v2281_v35 = vld [vmem:[%s2602_s29 + $0x3c] sm:$0xf0]  ;;  %v2282_v37 = vld [vmem:[%s2602_s29 + $0x44] sm:$0xf0]  ;;  %v1698_v39 = vld [vmem:[%s2602_s29 + $0x40] sm:$0xf0] }
  0x1a   : > { %1369 = vmatpush.bf16.msra.mxu1 %v2301_v13  ;;  %v2274_v40 = vld [vmem:[%s2602_s29 + $0xc] sm:$0xf]  ;;  %v1697_v44 = vor.u32 %v2281_v35, %v1696_v34  ;;  %v1705_v45 = vor.u32 %v2282_v37, %v1704_v36  ;;  %v1701_v46 = vor.u32 %v2273_v38, %v1698_v39  ;;  %v2327_v48 = vld [vmem:[%s2953_s1 + $0x130] sm:$0xff]  ;;  %v2325_v56 = vld [vmem:[%s2953_s1 + $0x120] sm:$0xff] }
  0x1b   : > { %1383 = vmatpush.bf16.msra.mxu2 %v2309_v14  ;;  %v1706_v41 = vld [vmem:[%s2602_s29 + $0x48] sm:$0xf0]  ;;  %v2335_v49 = vld [vmem:[%s2953_s1 + $0x170] sm:$0xff]  ;;  %v2333_v57 = vld [vmem:[%s2953_s1 + $0x160] sm:$0xff] }
  0x1c   : > { %1397 = vmatpush.bf16.msra.mxu3 %v2317_v15  ;;  %v1709_v47 = vor.u32 %v2274_v40, %v1706_v41  ;;  %v2343_v50 = vld [vmem:[%s2953_s1 + $0x1b0] sm:$0xff]  ;;  %v2326_v52 = vld [vmem:[%s2953_s1 + $0x128] sm:$0xff]  ;;  %v2341_v58 = vld [vmem:[%s2953_s1 + $0x1a0] sm:$0xff] }
  0x1d   : > { %1356 = vmatpush.bf16.msra.mxu0 %v2292_v16  ;;  %v2351_v51 = vld [vmem:[%s2953_s1 + $0x1f0] sm:$0xff]  ;;  %v2334_v53 = vld [vmem:[%s2953_s1 + $0x168] sm:$0xff]  ;;  %v2349_v59 = vld [vmem:[%s2953_s1 + $0x1e0] sm:$0xff] }
  0x1e   : > { %1370 = vmatpush.bf16.msra.mxu1 %v2300_v17  ;;  %v2342_v54 = vld [vmem:[%s2953_s1 + $0x1a8] sm:$0xff]  ;;  %v2324_v60 = vld [vmem:[%s2953_s1 + $0x118] sm:$0xff]  ;;  %v2323_v0 = vld [vmem:[%s2953_s1 + $0x110] sm:$0xff] }
  0x1f   : > { %1384 = vmatpush.bf16.msra.mxu2 %v2308_v18  ;;  %v2350_v55 = vld [vmem:[%s2953_s1 + $0x1e8] sm:$0xff]  ;;  %v2332_v61 = vld [vmem:[%s2953_s1 + $0x158] sm:$0xff]  ;;  %v2331_v1 = vld [vmem:[%s2953_s1 + $0x150] sm:$0xff] }
  0x20   : > { %1398 = vmatpush.bf16.msra.mxu3 %v2316_v19  ;;  %v2340_v62 = vld [vmem:[%s2953_s1 + $0x198] sm:$0xff]  ;;  %v2339_v2 = vld [vmem:[%s2953_s1 + $0x190] sm:$0xff]  ;;  %v2322_v4 = vld [vmem:[%s2953_s1 + $0x108] sm:$0xff] }
  0x21   : > { %1357 = vmatpush.bf16.msra.mxu0 %v2291_v20  ;;  %v2348_v63 = vld [vmem:[%s2953_s1 + $0x1d8] sm:$0xff]  ;;  %v2347_v3 = vld [vmem:[%s2953_s1 + $0x1d0] sm:$0xff]  ;;  %v2330_v5 = vld [vmem:[%s2953_s1 + $0x148] sm:$0xff] }
  0x22   : > { %1371 = vmatpush.bf16.msra.mxu1 %v2299_v21  ;;  %v2338_v6 = vld [vmem:[%s2953_s1 + $0x188] sm:$0xff]  ;;  %v2321_v8 = vld [vmem:[%s2953_s1 + $0x100] sm:$0xff]  ;;  %v2360_v12 = vld [vmem:[%s2953_s1 + $0x238] sm:$0xff] }
  0x23   : > { %1385 = vmatpush.bf16.msra.mxu2 %v2307_v22  ;;  %v2346_v7 = vld [vmem:[%s2953_s1 + $0x1c8] sm:$0xff]  ;;  %v2329_v9 = vld [vmem:[%s2953_s1 + $0x140] sm:$0xff]  ;;  %v2368_v13 = vld [vmem:[%s2953_s1 + $0x278] sm:$0xff] }
  0x24   : > { %1399 = vmatpush.bf16.msra.mxu3 %v2315_v23  ;;  %v2337_v10 = vld [vmem:[%s2953_s1 + $0x180] sm:$0xff]  ;;  %v1712_v14 = vld [vmem:[%s2602_s29 + $0x10] sm:$0xf]  ;;  %v1720_v16 = vld [vmem:[%s2602_s29 + $0x18] sm:$0xf] }
  0x25   : > { %1358 = vmatpush.bf16.msra.mxu0 %v2290_v24  ;;  %v2345_v11 = vld [vmem:[%s2953_s1 + $0x1c0] sm:$0xff]  ;;  %v2283_v15 = vld [vmem:[%s2602_s29 + $0x4c] sm:$0xf0]  ;;  %v2284_v17 = vld [vmem:[%s2602_s29 + $0x54] sm:$0xf0] }
  0x26   : > { %1372 = vmatpush.bf16.msra.mxu1 %v2298_v25  ;;  %v2275_v18 = vld [vmem:[%s2602_s29 + $0x14] sm:$0xf]  ;;  %v2276_v20 = vld [vmem:[%s2602_s29 + $0x1c] sm:$0xf]  ;;  %v1713_v24 = vor.u32 %v2283_v15, %v1712_v14  ;;  %v1721_v25 = vor.u32 %v2284_v17, %v1720_v16  ;;  %v2374_v34 = vld [vmem:[%s2953_s1 + $0x2a8] sm:$0xff] }
  0x27   : > { %1386 = vmatpush.bf16.msra.mxu2 %v2306_v26  ;;  %v1714_v19 = vld [vmem:[%s2602_s29 + $0x50] sm:$0xf0]  ;;  %v1722_v21 = vld [vmem:[%s2602_s29 + $0x58] sm:$0xf0]  ;;  %v2382_v35 = vld [vmem:[%s2953_s1 + $0x2e8] sm:$0xff] }
  0x28   : > { %1400 = vmatpush.bf16.msra.mxu3 %v2314_v27  ;;  %v2376_v22 = vld [vmem:[%s2953_s1 + $0x2b8] sm:$0xff]  ;;  %v1717_v26 = vor.u32 %v2275_v18, %v1714_v19  ;;  %v1725_v27 = vor.u32 %v2276_v20, %v1722_v21  ;;  %v2357_v36 = vld [vmem:[%s2953_s1 + $0x220] sm:$0xff]  ;;  %v2406_v14 = vld [vmem:[%s2953_s1 + $0x3a8] sm:$0xff] }
  0x29   : > { %1359 = vmatpush.bf16.msra.mxu0 %v2289_v28  ;;  %v2384_v23 = vld [vmem:[%s2953_s1 + $0x2f8] sm:$0xff]  ;;  %v2359_v28 = vld [vmem:[%s2953_s1 + $0x230] sm:$0xff]  ;;  %v2365_v37 = vld [vmem:[%s2953_s1 + $0x260] sm:$0xff] }
  0x2a   : > { %1373 = vmatpush.bf16.msra.mxu1 %v2297_v29  ;;  %v2367_v29 = vld [vmem:[%s2953_s1 + $0x270] sm:$0xff]  ;;  %v2373_v38 = vld [vmem:[%s2953_s1 + $0x2a0] sm:$0xff]  ;;  %v2356_v40 = vld [vmem:[%s2953_s1 + $0x218] sm:$0xff] }
  0x2b   : > { %1387 = vmatpush.bf16.msra.mxu2 %v2305_v30  ;;  %v2375_v30 = vld [vmem:[%s2953_s1 + $0x2b0] sm:$0xff]  ;;  %v2381_v39 = vld [vmem:[%s2953_s1 + $0x2e0] sm:$0xff]  ;;  %v2364_v41 = vld [vmem:[%s2953_s1 + $0x258] sm:$0xff] }
  0x2c   : > { %1401 = vmatpush.bf16.msra.mxu3 %v2313_v31  ;;  %1360 = vmatmul.bf16.vlgmr.msra.gmra.mxu0 %v1697_v44  ;;  %v2383_v31 = vld [vmem:[%s2953_s1 + $0x2f0] sm:$0xff]  ;;  %v2414_v15 = vld [vmem:[%s2953_s1 + $0x3e8] sm:$0xff]  ;;  %v2389_v16 = vld [vmem:[%s2953_s1 + $0x320] sm:$0xff] }
  0x2d   : > { %1408 = vmatpush.bf16.msrb.mxu0 %v2328_v32  ;;  %1374 = vmatmul.bf16.vlgmr.msra.gmra.mxu1 %v1701_v46  ;;  %v2358_v32 = vld [vmem:[%s2953_s1 + $0x228] sm:$0xff]  ;;  %v2355_v44 = vld [vmem:[%s2953_s1 + $0x210] sm:$0xff]  ;;  %v2397_v17 = vld [vmem:[%s2953_s1 + $0x360] sm:$0xff] }
  0x2e   : > { %1422 = vmatpush.bf16.msrb.mxu1 %v2336_v33  ;;  %1388 = vmatmul.bf16.vlgmr.msra.gmra.mxu2 %v1705_v45  ;;  %v2366_v33 = vld [vmem:[%s2953_s1 + $0x268] sm:$0xff]  ;;  %v2363_v45 = vld [vmem:[%s2953_s1 + $0x250] sm:$0xff]  ;;  %v2405_v18 = vld [vmem:[%s2953_s1 + $0x3a0] sm:$0xff] }
  0x2f   : > { %1436 = vmatpush.bf16.msrb.mxu2 %v2344_v42  ;;  %1402 = vmatmul.bf16.vlgmr.msra.gmra.mxu3 %v1709_v47  ;;  %v2372_v42 = vld [vmem:[%s2953_s1 + $0x298] sm:$0xff]  ;;  %v2371_v46 = vld [vmem:[%s2953_s1 + $0x290] sm:$0xff]  ;;  %v2413_v19 = vld [vmem:[%s2953_s1 + $0x3e0] sm:$0xff] }
  0x30   : > { %1450 = vmatpush.bf16.msrb.mxu3 %v2352_v43  ;;  %v2380_v43 = vld [vmem:[%s2953_s1 + $0x2d8] sm:$0xff]  ;;  %v2379_v47 = vld [vmem:[%s2953_s1 + $0x2d0] sm:$0xff] }
  0x31   : > { %1409 = vmatpush.bf16.msrb.mxu0 %v2327_v48  ;;  %v2354_v48 = vld [vmem:[%s2953_s1 + $0x208] sm:$0xff]  ;;  %v2388_v20 = vld [vmem:[%s2953_s1 + $0x318] sm:$0xff] }
  0x32   : > { %1423 = vmatpush.bf16.msrb.mxu1 %v2335_v49  ;;  %v2362_v49 = vld [vmem:[%s2953_s1 + $0x248] sm:$0xff]  ;;  %v2396_v21 = vld [vmem:[%s2953_s1 + $0x358] sm:$0xff] }
  0x33   : > { %1437 = vmatpush.bf16.msrb.mxu2 %v2343_v50  ;;  %v2370_v50 = vld [vmem:[%s2953_s1 + $0x288] sm:$0xff] }
  0x34   : > { %1451 = vmatpush.bf16.msrb.mxu3 %v2351_v51  ;;  %v2378_v51 = vld [vmem:[%s2953_s1 + $0x2c8] sm:$0xff] }
  0x35   : > { %1410 = vmatpush.bf16.msrb.mxu0 %v2326_v52  ;;  %v2353_v52 = vld [vmem:[%s2953_s1 + $0x200] sm:$0xff] }
  0x36   : > { %1424 = vmatpush.bf16.msrb.mxu1 %v2334_v53  ;;  %v2361_v53 = vld [vmem:[%s2953_s1 + $0x240] sm:$0xff] }
  0x37   : > { %1438 = vmatpush.bf16.msrb.mxu2 %v2342_v54  ;;  %v2369_v54 = vld [vmem:[%s2953_s1 + $0x280] sm:$0xff] }
  0x38   : > { %1452 = vmatpush.bf16.msrb.mxu3 %v2350_v55  ;;  %v2377_v55 = vld [vmem:[%s2953_s1 + $0x2c0] sm:$0xff] }
  0x39   : > { %1411 = vmatpush.bf16.msrb.mxu0 %v2325_v56  ;;  %v2392_v56 = vld [vmem:[%s2953_s1 + $0x338] sm:$0xff] }
  0x3a   : > { %1425 = vmatpush.bf16.msrb.mxu1 %v2333_v57  ;;  %v2400_v57 = vld [vmem:[%s2953_s1 + $0x378] sm:$0xff] }
  0x3b   : > { %1439 = vmatpush.bf16.msrb.mxu2 %v2341_v58  ;;  %v1728_v58 = vld [vmem:[%s2602_s29 + $0x20] sm:$0xf] }
  0x3c   : > { %1453 = vmatpush.bf16.msrb.mxu3 %v2349_v59  ;;  %v2285_v59 = vld [vmem:[%s2602_s29 + $0x5c] sm:$0xf0] }
  0x3d   : > { %1412 = vmatpush.bf16.msrb.mxu0 %v2324_v60  ;;  %v1736_v60 = vld [vmem:[%s2602_s29 + $0x28] sm:$0xf] }
  0x3e   : > { %1426 = vmatpush.bf16.msrb.mxu1 %v2332_v61  ;;  %v2286_v61 = vld [vmem:[%s2602_s29 + $0x64] sm:$0xf0] }
  0x3f   : > { %1440 = vmatpush.bf16.msrb.mxu2 %v2340_v62  ;;  %v2277_v62 = vld [vmem:[%s2602_s29 + $0x24] sm:$0xf] }
  0x40   : > { %1454 = vmatpush.bf16.msrb.mxu3 %v2348_v63  ;;  %v1730_v63 = vld [vmem:[%s2602_s29 + $0x60] sm:$0xf0] }
  0x41   : > { %1413 = vmatpush.bf16.msrb.mxu0 %v2323_v0  ;;  %v2278_v0 = vld [vmem:[%s2602_s29 + $0x2c] sm:$0xf] }
  0x42   : > { %1427 = vmatpush.bf16.msrb.mxu1 %v2331_v1  ;;  %v1738_v1 = vld [vmem:[%s2602_s29 + $0x68] sm:$0xf0] }
  0x43   : > { %1441 = vmatpush.bf16.msrb.mxu2 %v2339_v2  ;;  %v2408_v2 = vld [vmem:[%s2953_s1 + $0x3b8] sm:$0xff] }
  0x44   : > { %1455 = vmatpush.bf16.msrb.mxu3 %v2347_v3  ;;  %v2416_v3 = vld [vmem:[%s2953_s1 + $0x3f8] sm:$0xff] }
  0x45   : > { %1414 = vmatpush.bf16.msrb.mxu0 %v2322_v4  ;;  %v1729_v4 = vor.u32 %v2285_v59, %v1728_v58 }
  0x46   : > { %1428 = vmatpush.bf16.msrb.mxu1 %v2330_v5  ;;  %v1737_v5 = vor.u32 %v2286_v61, %v1736_v60 }
  0x47   : > { %1442 = vmatpush.bf16.msrb.mxu2 %v2338_v6  ;;  %v1733_v6 = vor.u32 %v2277_v62, %v1730_v63 }
  0x48   : > { %1456 = vmatpush.bf16.msrb.mxu3 %v2346_v7  ;;  %v1741_v7 = vor.u32 %v2278_v0, %v1738_v1 }
  0x49   : > { %1415 = vmatpush.bf16.msrb.mxu0 %v2321_v8  ;;  %v2391_v8 = vld [vmem:[%s2953_s1 + $0x330] sm:$0xff] }
  0x4a   : > { %1429 = vmatpush.bf16.msrb.mxu1 %v2329_v9  ;;  %v2399_v9 = vld [vmem:[%s2953_s1 + $0x370] sm:$0xff] }
  0x4b   : > { %1443 = vmatpush.bf16.msrb.mxu2 %v2337_v10  ;;  %v2407_v10 = vld [vmem:[%s2953_s1 + $0x3b0] sm:$0xff] }
  0x4c   : > { %1457 = vmatpush.bf16.msrb.mxu3 %v2345_v11  ;;  %1416 = vmatmul.bf16.vlgmr.msrb.gmra.mxu0 %v1713_v24  ;;  %v2415_v11 = vld [vmem:[%s2953_s1 + $0x3f0] sm:$0xff] }
  0x4d   : > { %1464 = vmatpush.bf16.msra.mxu0 %v2360_v12  ;;  %1430 = vmatmul.bf16.vlgmr.msrb.gmra.mxu1 %v1717_v26  ;;  %v2390_v12 = vld [vmem:[%s2953_s1 + $0x328] sm:$0xff]  ;;  %v2387_v24 = vld [vmem:[%s2953_s1 + $0x310] sm:$0xff] }
  0x4e   : > { %1478 = vmatpush.bf16.msra.mxu1 %v2368_v13  ;;  %1444 = vmatmul.bf16.vlgmr.msrb.gmra.mxu2 %v1721_v25  ;;  %v2398_v13 = vld [vmem:[%s2953_s1 + $0x368] sm:$0xff]  ;;  %v2395_v25 = vld [vmem:[%s2953_s1 + $0x350] sm:$0xff] }
  0x4f   : > { %1492 = vmatpush.bf16.msra.mxu2 %v2376_v22  ;;  %1458 = vmatmul.bf16.vlgmr.msrb.gmra.mxu3 %v1725_v27  ;;  %v2404_v22 = vld [vmem:[%s2953_s1 + $0x398] sm:$0xff]  ;;  %v2403_v26 = vld [vmem:[%s2953_s1 + $0x390] sm:$0xff] }
  0x50   : > { %1506 = vmatpush.bf16.msra.mxu3 %v2384_v23  ;;  %v2412_v23 = vld [vmem:[%s2953_s1 + $0x3d8] sm:$0xff]  ;;  %v2411_v27 = vld [vmem:[%s2953_s1 + $0x3d0] sm:$0xff] }
  0x51   : > { %1465 = vmatpush.bf16.msra.mxu0 %v2359_v28  ;;  %v2386_v28 = vld [vmem:[%s2953_s1 + $0x308] sm:$0xff] }
  0x52   : > { %1479 = vmatpush.bf16.msra.mxu1 %v2367_v29  ;;  %v2394_v29 = vld [vmem:[%s2953_s1 + $0x348] sm:$0xff] }
  0x53   : > { %1493 = vmatpush.bf16.msra.mxu2 %v2375_v30  ;;  %v2402_v30 = vld [vmem:[%s2953_s1 + $0x388] sm:$0xff] }
  0x54   : > { %1507 = vmatpush.bf16.msra.mxu3 %v2383_v31  ;;  %v2410_v31 = vld [vmem:[%s2953_s1 + $0x3c8] sm:$0xff] }
  0x55   : > { %1466 = vmatpush.bf16.msra.mxu0 %v2358_v32  ;;  %v2385_v32 = vld [vmem:[%s2953_s1 + $0x300] sm:$0xff] }
  0x56   : > { %1480 = vmatpush.bf16.msra.mxu1 %v2366_v33  ;;  %v2393_v33 = vld [vmem:[%s2953_s1 + $0x340] sm:$0xff] }
  0x57   : > { %1494 = vmatpush.bf16.msra.mxu2 %v2374_v34  ;;  %v2401_v34 = vld [vmem:[%s2953_s1 + $0x380] sm:$0xff] }
  0x58   : > { %1508 = vmatpush.bf16.msra.mxu3 %v2382_v35  ;;  %v2409_v35 = vld [vmem:[%s2953_s1 + $0x3c0] sm:$0xff] }
  0x59   : > { %1467 = vmatpush.bf16.msra.mxu0 %v2357_v36  ;;  %v1744_v36 = vld [vmem:[%s2602_s29 + $0x30] sm:$0xf] }
  0x5a   : > { %1481 = vmatpush.bf16.msra.mxu1 %v2365_v37  ;;  %v2287_v37 = vld [vmem:[%s2602_s29 + $0x6c] sm:$0xf0] }
  0x5b   : > { %1495 = vmatpush.bf16.msra.mxu2 %v2373_v38  ;;  %v2279_v38 = vld [vmem:[%s2602_s29 + $0x34] sm:$0xf] }
  0x5c   : > { %1509 = vmatpush.bf16.msra.mxu3 %v2381_v39  ;;  %v1746_v39 = vld [vmem:[%s2602_s29 + $0x70] sm:$0xf0] }
  0x5d   : > { %1468 = vmatpush.bf16.msra.mxu0 %v2356_v40  ;;  %v1752_v40 = vld [vmem:[%s2602_s29 + $0x38] sm:$0xf] }
  0x5e   : > { %1482 = vmatpush.bf16.msra.mxu1 %v2364_v41  ;;  %v2288_v41 = vld [vmem:[%s2602_s29 + $0x74] sm:$0xf0] }
  0x5f   : > { %1496 = vmatpush.bf16.msra.mxu2 %v2372_v42  ;;  %v2280_v42 = vld [vmem:[%s2602_s29 + $0x3c] sm:$0xf] }
  0x60   : > { %1510 = vmatpush.bf16.msra.mxu3 %v2380_v43  ;;  %v1754_v43 = vld [vmem:[%s2602_s29 + $0x78] sm:$0xf0] }
  0x61   : > { %1469 = vmatpush.bf16.msra.mxu0 %v2355_v44  ;;  %v1745_v44 = vor.u32 %v2287_v37, %v1744_v36 }
  0x62   : > { %1483 = vmatpush.bf16.msra.mxu1 %v2363_v45  ;;  %v1749_v45 = vor.u32 %v2279_v38, %v1746_v39 }
  0x63   : > { %1497 = vmatpush.bf16.msra.mxu2 %v2371_v46  ;;  %v1753_v46 = vor.u32 %v2288_v41, %v1752_v40 }
  0x64   : > { %1511 = vmatpush.bf16.msra.mxu3 %v2379_v47  ;;  %v1757_v47 = vor.u32 %v2280_v42, %v1754_v43 }
  0x65   : > { %1470 = vmatpush.bf16.msra.mxu0 %v2354_v48 }
  0x66   : > { %1484 = vmatpush.bf16.msra.mxu1 %v2362_v49 }
  0x67   : > { %1498 = vmatpush.bf16.msra.mxu2 %v2370_v50 }
  0x68   : > { %1512 = vmatpush.bf16.msra.mxu3 %v2378_v51 }
  0x69   : > { %1471 = vmatpush.bf16.msra.mxu0 %v2353_v52 }
  0x6a   : > { %1485 = vmatpush.bf16.msra.mxu1 %v2361_v53 }
  0x6b   : > { %1499 = vmatpush.bf16.msra.mxu2 %v2369_v54 }
  0x6c   : > { %1513 = vmatpush.bf16.msra.mxu3 %v2377_v55  ;;  %1472 = vmatmul.bf16.vlgmr.msra.gmra.mxu0 %v1729_v4 }
  0x6d   : > { %1520 = vmatpush.bf16.msrb.mxu0 %v2392_v56  ;;  %1486 = vmatmul.bf16.vlgmr.msra.gmra.mxu1 %v1733_v6  ;;  %v2446_v56 = vld [vmem:[%s2954_s2] ss:$0 sm:$0xff] }
  0x6e   : > { %1534 = vmatpush.bf16.msrb.mxu1 %v2400_v57  ;;  %1500 = vmatmul.bf16.vlgmr.msra.gmra.mxu2 %v1737_v5 }
  0x6f   : > { %1548 = vmatpush.bf16.msrb.mxu2 %v2408_v2  ;;  %1514 = vmatmul.bf16.vlgmr.msra.gmra.mxu3 %v1741_v7 }
  0x70   : > { %1562 = vmatpush.bf16.msrb.mxu3 %v2416_v3 }
  0x71   : > { %1521 = vmatpush.bf16.msrb.mxu0 %v2391_v8 }
  0x72   : > { %1535 = vmatpush.bf16.msrb.mxu1 %v2399_v9 }
  0x73   : > { %1549 = vmatpush.bf16.msrb.mxu2 %v2407_v10 }
  0x74   : > { %1563 = vmatpush.bf16.msrb.mxu3 %v2415_v11 }
  0x75   : > { %1522 = vmatpush.bf16.msrb.mxu0 %v2390_v12 }
  0x76   : > { %1536 = vmatpush.bf16.msrb.mxu1 %v2398_v13 }
  0x77   : > { %1550 = vmatpush.bf16.msrb.mxu2 %v2406_v14 }
  0x78   : > { %1564 = vmatpush.bf16.msrb.mxu3 %v2414_v15 }
  0x79   : > { %1523 = vmatpush.bf16.msrb.mxu0 %v2389_v16 }
  0x7a   : > { %1537 = vmatpush.bf16.msrb.mxu1 %v2397_v17 }
  0x7b   : > { %1551 = vmatpush.bf16.msrb.mxu2 %v2405_v18 }
  0x7c   : > { %1565 = vmatpush.bf16.msrb.mxu3 %v2413_v19 }
  0x7d   : > { %1524 = vmatpush.bf16.msrb.mxu0 %v2388_v20 }
  0x7e   : > { %1538 = vmatpush.bf16.msrb.mxu1 %v2396_v21 }
  0x7f   : > { %1552 = vmatpush.bf16.msrb.mxu2 %v2404_v22 }
  0x80   : > { %1566 = vmatpush.bf16.msrb.mxu3 %v2412_v23 }
  0x81   : > { %1525 = vmatpush.bf16.msrb.mxu0 %v2387_v24 }
  0x82   : > { %1539 = vmatpush.bf16.msrb.mxu1 %v2395_v25 }
  0x83   : > { %1553 = vmatpush.bf16.msrb.mxu2 %v2403_v26 }
  0x84   : > { %1567 = vmatpush.bf16.msrb.mxu3 %v2411_v27 }
  0x85   : > { %1526 = vmatpush.bf16.msrb.mxu0 %v2386_v28 }
  0x86   : > { %1540 = vmatpush.bf16.msrb.mxu1 %v2394_v29 }
  0x87   : > { %1554 = vmatpush.bf16.msrb.mxu2 %v2402_v30 }
  0x88   : > { %1568 = vmatpush.bf16.msrb.mxu3 %v2410_v31 }
  0x89   : > { %1527 = vmatpush.bf16.msrb.mxu0 %v2385_v32 }
  0x8a   : > { %1541 = vmatpush.bf16.msrb.mxu1 %v2393_v33 }
  0x8b   : > { %1555 = vmatpush.bf16.msrb.mxu2 %v2401_v34 }
  0x8c   : > { %1569 = vmatpush.bf16.msrb.mxu3 %v2409_v35  ;;  %1528 = vmatmul.bf16.vlgmr.msrb.gmra.mxu0 %v1745_v44 }
  0x8d   : > { %1542 = vmatmul.bf16.vlgmr.msrb.gmra.mxu1 %v1749_v45 }
  0x8e   : > { %1556 = vmatmul.bf16.vlgmr.msrb.gmra.mxu2 %v1753_v46 }
  0x8f   : > { %1570 = vmatmul.bf16.vlgmr.msrb.gmra.mxu3 %v1757_v47 }
  0xa9   : > { %v1361_v48 = vpop.f32.mrf.mxu0 }
  0xaa   : > { %v1375_v49 = vpop.f32.mrf.mxu1  ;;  %v1362_v58 = vadd.f32 %v2446_v56, %v1361_v48 }
  0xac   : > { %v1376_v60 = vadd.f32 %v1375_v49, %v1362_v58 }
  0xb1   : > { %v1389_v50 = vpop.f32.mrf.mxu2  ;;  %v1363_v52 = vpop.f32.mrf.mxu0 }
  0xb2   : > { %v1403_v51 = vpop.f32.mrf.mxu3  ;;  %v1377_v53 = vpop.f32.mrf.mxu1  ;;  %v1364_v61 = vadd.f32 %v2446_v56, %v1363_v52  ;;  %v1390_v0 = vadd.f32 %v1389_v50, %v1376_v60 }
  0xb4   : > { %v1378_v1 = vadd.f32 %v1377_v53, %v1364_v61  ;;  %v1404_v4 = vadd.f32 %v1403_v51, %v1390_v0 }
  0xb9   : > { %v1391_v54 = vpop.f32.mrf.mxu2 }
  0xba   : > { %v1405_v55 = vpop.f32.mrf.mxu3  ;;  %v1392_v5 = vadd.f32 %v1391_v54, %v1378_v1 }
  0xbc   : > { %v1406_v8 = vadd.f32 %v1405_v55, %v1392_v5 }
  0xc9   : > { %v1417_v57 = vpop.f32.mrf.mxu0 }
  0xca   : > { %v1431_v59 = vpop.f32.mrf.mxu1  ;;  %v1418_v9 = vadd.f32 %v1417_v57, %v1404_v4 }
  0xcc   : > { %v1432_v12 = vadd.f32 %v1431_v59, %v1418_v9 }
  0xd1   : > { %v1445_v62 = vpop.f32.mrf.mxu2  ;;  %v1419_v2 = vpop.f32.mrf.mxu0 }
  0xd2   : > { %v1459_v63 = vpop.f32.mrf.mxu3  ;;  %v1433_v3 = vpop.f32.mrf.mxu1  ;;  %v1420_v13 = vadd.f32 %v1419_v2, %v1406_v8  ;;  %v1446_v16 = vadd.f32 %v1445_v62, %v1432_v12 }
  0xd4   : > { %v1434_v17 = vadd.f32 %v1433_v3, %v1420_v13  ;;  %v1460_v20 = vadd.f32 %v1459_v63, %v1446_v16 }
  0xd9   : > { %v1447_v6 = vpop.f32.mrf.mxu2 }
  0xda   : > { %v1461_v7 = vpop.f32.mrf.mxu3  ;;  %v1448_v18 = vadd.f32 %v1447_v6, %v1434_v17 }
  0xdc   : > { %v1462_v22 = vadd.f32 %v1461_v7, %v1448_v18 }
  0xe9   : > { %v1473_v10 = vpop.f32.mrf.mxu0 }
  0xea   : > { %v1487_v11 = vpop.f32.mrf.mxu1  ;;  %v1474_v23 = vadd.f32 %v1473_v10, %v1460_v20 }
  0xec   : > { %v1488_v27 = vadd.f32 %v1487_v11, %v1474_v23 }
  0xf1   : > { %v1501_v14 = vpop.f32.mrf.mxu2  ;;  %v1475_v19 = vpop.f32.mrf.mxu0 }
  0xf2   : > { %v1515_v15 = vpop.f32.mrf.mxu3  ;;  %v1489_v21 = vpop.f32.mrf.mxu1  ;;  %v1476_v24 = vadd.f32 %v1475_v19, %v1462_v22  ;;  %v1502_v29 = vadd.f32 %v1501_v14, %v1488_v27 }
  0xf4   : > { %v1490_v30 = vadd.f32 %v1489_v21, %v1476_v24  ;;  %v1516_v33 = vadd.f32 %v1515_v15, %v1502_v29 }
  0xf9   : > { %v1503_v25 = vpop.f32.mrf.mxu2 }
  0xfa   : > { %v1517_v26 = vpop.f32.mrf.mxu3  ;;  %v1504_v32 = vadd.f32 %v1503_v25, %v1490_v30 }
  0xfc   : > { %v1518_v36 = vadd.f32 %v1517_v26, %v1504_v32 }
 0x109   : > { %v1529_v28 = vpop.f32.mrf.mxu0 }
 0x10a   : > { %v1543_v31 = vpop.f32.mrf.mxu1  ;;  %v1530_v37 = vadd.f32 %v1529_v28, %v1516_v33 }
 0x10c   : > { %v1544_v40 = vadd.f32 %v1543_v31, %v1530_v37 }
 0x111   : > { %v1557_v34 = vpop.f32.mrf.mxu2  ;;  %v1531_v38 = vpop.f32.mrf.mxu0 }
 0x112   : > { %v1571_v35 = vpop.f32.mrf.mxu3  ;;  %v1532_v39 = vadd.f32 %v1531_v38, %v1518_v36  ;;  %v1545_v41 = vpop.f32.mrf.mxu1  ;;  %v1558_v42 = vadd.f32 %v1557_v34, %v1544_v40 }
 0x114   : > { %v1546_v43 = vadd.f32 %v1545_v41, %v1532_v39  ;;  %v1572_v47 = vadd.f32 %v1571_v35, %v1558_v42 }
 0x119   : > { %v1559_v44 = vpop.f32.mrf.mxu2 }
 0x11a   : > { %v1560_v45 = vadd.f32 %v1559_v44, %v1546_v43  ;;  %v1573_v46 = vpop.f32.mrf.mxu3 }
 0x11c   : > { %v1574_v48 = vadd.f32 %v1573_v46, %v1560_v45 }
 0x11e   : > { %v2420_v49 = vpack.c.bf16 %v1574_v48, %v1572_v47 }
 0x120   : > { %2421 = vst [vmem:[%s226_s9] sm:$0xff] %v2420_v49  }
 0x121 PF: > { %s13_s14 = sadd.s32 1, %s2469_s14   ;;  %s2956_s12 = smov %s2465_s13 }
 0x122   : > { %p10_p5 = scmp.ge.s32.totalorder %s13_s14, 4   ;;  %s2957_s13 = smov %s2959_s15 }
 0x124   :  { %12 = sbr.rel (!%p10_p5) target bundleno = 2 (0x2), region = 68 }

// kernel: conv_layer_forward.15
= control target key start
LH: loop header
LB: loop body
LE: loop exit
PB: predicated region body
PF: predicated region fallthrough
CT: control target
= control target key end

     0   :  { %s4194_s12 = smov 0   ;;  %s4196_s13 = smov 0   ;;  %s5023_s0 = inlined_call_operand.vmem [shape: bf16[4,264,128], index: 0, kind: input, shape index: {}]   ;;  %s5024_s1 = inlined_call_operand.vmem [shape: bf16[3,384,128], index: 1, kind: input, shape index: {}]   ;;  %s5025_s2 = inlined_call_operand.vmem [shape: f32[1,128], index: 2, kind: input, shape index: {}]   ;;  %s5026_s3 = inlined_call_operand.vmem [shape: bf16[4,192,128], index: 3, kind: output, shape index: {}]  }
   0x1   :  { %s4198_s14 = smov 0  }
   0x2 LB: > { %s25_s15 = sadd.s32 1, %s4168_s13  ;;  %p3026_p0 = scmp.ge.s32.totalorder %s4172_s14, 1  ;;  %s4172_s14 = sphi %s4198_s14, %s13_s14   ;;  %s4168_s13 = sphi %s4196_s13, %s5058_s13   ;;  %s4164_s12 = sphi %s4194_s12, %s5057_s12  }
   0x3   : > { %p27_p1 = scmp.ge.s32.totalorder %s25_s15, 4  ;;  %p168_p2 = scmp.lt.s32.totalorder %s4172_s14, 5 }
   0x5   : > { %s5060_s15 = smov (%p27_p1, %s25_s15), 0  ;;  %p169_p3 = pnand %p3026_p0, %p168_p2 }
   0x7   : > { %172 = sbr.rel (%p169_p3) target bundleno = 610 (0x262), region = 32 }
   0xc   : > { %v3891_v0 = vld [vmem:[%s5024_s1 + $0x38] sm:$0xff]  ;;  %p202_p4 = scmp.lt.s32.totalorder %s4164_s12, 3  ;;  %v3890_v1 = vld [vmem:[%s5024_s1 + $0x30] sm:$0xff]  ;;  %v3889_v2 = vld [vmem:[%s5024_s1 + $0x28] sm:$0xff]  ;;  %vm313_vm0 = vsmask.f32 3328 }
   0xd   : > { %1332 = vmatpush.bf16.msra.mxu0 %v3891_v0  ;;  %4099 = vmatpush.bf16.msra.mxu1 %v3891_v0  ;;  %v3888_v8 = vld [vmem:[%s5024_s1 + $0x20] sm:$0xff]  ;;  %v3887_v13 = vld [vmem:[%s5024_s1 + $0x18] sm:$0xff]  ;;  %v3886_v18 = vld [vmem:[%s5024_s1 + $0x10] sm:$0xff]  ;;  %vm314_vm1 = vsmask.f32 7440  ;;  %vm742_vm2 = vcmask 1042432  }
   0xe   : > { %s5062_s12 = smov (!%p202_p4, %s4164_s12), 3  ;;  %4100 = vmatpush.bf16.msra.mxu2 %v3891_v0  ;;  %4101 = vmatpush.bf16.msra.mxu3 %v3891_v0  ;;  %v3885_v22 = vld [vmem:[%s5024_s1 + $0x8] sm:$0xff]  ;;  %v3884_v23 = vld [vmem:[%s5024_s1] sm:$0xff]  ;;  %v3907_v37 = vld [vmem:[%s5024_s1 + $0xb8] sm:$0xff]  ;;  %vm743_vm3 = vcmask 1046532  }
   0xf   : > { %s4123_s20 = smul.u32 132, %s5062_s12  ;;  %v3951_v38 = vld [vmem:[%s5024_s1 + $0xf8] sm:$0xff]  ;;  %v3906_v50 = vld [vmem:[%s5024_s1 + $0xb0] sm:$0xff]  ;;  %v3905_v57 = vld [vmem:[%s5024_s1 + $0xa8] sm:$0xff] }
  0x10   : > { %v3899_v45 = vld [vmem:[%s5024_s1 + $0x78] sm:$0xff]  ;;  %v3950_v51 = vld [vmem:[%s5024_s1 + $0xf0] sm:$0xff]  ;;  %v3949_v58 = vld [vmem:[%s5024_s1 + $0xe8] sm:$0xff] }
  0x11   : > { %1333 = vmatpush.bf16.msra.mxu0 %v3890_v1  ;;  %4102 = vmatpush.bf16.msra.mxu1 %v3890_v1  ;;  %s4227_s25 = scalar_lea.vmem %s5023_s0, %s4123_s20  ;;  %v3959_v46 = vld [vmem:[%s5024_s1 + $0x138] sm:$0xff]  ;;  %v3898_v56 = vld [vmem:[%s5024_s1 + $0x70] sm:$0xff]  ;;  %v3897_v63 = vld [vmem:[%s5024_s1 + $0x68] sm:$0xff] }
  0x12   : > { %4103 = vmatpush.bf16.msra.mxu2 %v3890_v1  ;;  %4104 = vmatpush.bf16.msra.mxu3 %v3890_v1  ;;  %v222_v3 = vld [vmem:[%s4227_s25] sm:$0xf]  ;;  %v223_v4 = vld [vmem:[%s4227_s25 + $0x4] sm:$0xf]  ;;  %v228_v5 = vld [vmem:[%s4227_s25 + $0x18] sm:$0xf] }
  0x13   : > { %252 = vst [vmem:[#allocation2] sm:$0xf] %v222_v3  ;;  %v229_v6 = vld [vmem:[%s4227_s25 + $0x1c] sm:$0xf]  ;;  %v234_v7 = vld [vmem:[%s4227_s25 + $0x30] sm:$0xf]  ;;  %vm4325_vm4 = vmor %vm313_vm0, %vm314_vm1 }
  0x14   : > { %253 = vst [vmem:[#allocation2 + $0xc] sm:$0xf] %v223_v4  ;;  %v235_v9 = vld [vmem:[%s4227_s25 + $0x34] sm:$0xf]  ;;  %v240_v10 = vld [vmem:[%s4227_s25 + $0x48] sm:$0xf]  ;;  %vm4338_vm5 = vmor %vm742_vm2, %vm743_vm3 }
  0x15   : > { %1334 = vmatpush.bf16.msra.mxu0 %v3889_v2  ;;  %4105 = vmatpush.bf16.msra.mxu1 %v3889_v2  ;;  %258 = vst [vmem:[#allocation2 + $0x48] sm:$0xf] %v228_v5  ;;  %v241_v11 = vld [vmem:[%s4227_s25 + $0x4c] sm:$0xf]  ;;  %v224_v12 = vld [vmem:[%s4227_s25 + $0x8] sm:$0xf] }
  0x16   : > { %4106 = vmatpush.bf16.msra.mxu2 %v3889_v2  ;;  %4107 = vmatpush.bf16.msra.mxu3 %v3889_v2  ;;  %259 = vst [vmem:[#allocation2 + $0x54] sm:$0xf] %v229_v6  ;;  %v225_v14 = vld [vmem:[%s4227_s25 + $0xc] sm:$0xf]  ;;  %v230_v15 = vld [vmem:[%s4227_s25 + $0x20] sm:$0xf] }
  0x17   : > { %264 = vst [vmem:[#allocation2 + $0x90] sm:$0xf] %v234_v7  ;;  %v231_v16 = vld [vmem:[%s4227_s25 + $0x24] sm:$0xf]  ;;  %v236_v17 = vld [vmem:[%s4227_s25 + $0x38] sm:$0xf] }
  0x18   : > { %265 = vst [vmem:[#allocation2 + $0x9c] sm:$0xf] %v235_v9  ;;  %v237_v19 = vld [vmem:[%s4227_s25 + $0x3c] sm:$0xf]  ;;  %v242_v20 = vld [vmem:[%s4227_s25 + $0x50] sm:$0xf] }
  0x19   : > { %1335 = vmatpush.bf16.msra.mxu0 %v3888_v8  ;;  %4108 = vmatpush.bf16.msra.mxu1 %v3888_v8  ;;  %270 = vst [vmem:[#allocation2 + $0xd8] sm:$0xf] %v240_v10  ;;  %v243_v21 = vld [vmem:[%s4227_s25 + $0x54] sm:$0xf]  ;;  %v226_v28 = vld [vmem:[%s4227_s25 + $0x10] sm:$0xf] }
  0x1a   : > { %4109 = vmatpush.bf16.msra.mxu2 %v3888_v8  ;;  %4110 = vmatpush.bf16.msra.mxu3 %v3888_v8  ;;  %271 = vst [vmem:[#allocation2 + $0xe4] sm:$0xf] %v241_v11  ;;  %v3032_v24 = vld [vmem:[#allocation2] sm:$0xf]  ;;  %v227_v29 = vld [vmem:[%s4227_s25 + $0x14] sm:$0xf] }
  0x1b   : > { %254 = vst [vmem:[#allocation2 + $0x18] sm:$0xf] %v224_v12  ;;  %v3849_v25 = vld [vmem:[#allocation2 + $0x8] sm:$0xf0]  ;;  %v232_v32 = vld [vmem:[%s4227_s25 + $0x28] sm:$0xf] }
  0x1c   : > { %255 = vst [vmem:[#allocation2 + $0x24] sm:$0xf] %v225_v14  ;;  %v3068_v26 = vld [vmem:[#allocation2 + $0x48] sm:$0xf]  ;;  %v233_v34 = vld [vmem:[%s4227_s25 + $0x2c] sm:$0xf]  ;;  %v3033_v40 = vor.u32 %v3849_v25, %v3032_v24 }
  0x1d   : > { %1336 = vmatpush.bf16.msra.mxu0 %v3887_v13  ;;  %4111 = vmatpush.bf16.msra.mxu1 %v3887_v13  ;;  %260 = vst [vmem:[#allocation2 + $0x60] sm:$0xf] %v230_v15  ;;  %v3858_v27 = vld [vmem:[#allocation2 + $0x50] sm:$0xf0]  ;;  %v238_v36 = vld [vmem:[%s4227_s25 + $0x40] sm:$0xf] }
  0x1e   : > { %4112 = vmatpush.bf16.msra.mxu2 %v3887_v13  ;;  %4113 = vmatpush.bf16.msra.mxu3 %v3887_v13  ;;  %261 = vst [vmem:[#allocation2 + $0x6c] sm:$0xf] %v231_v16  ;;  %v3104_v30 = vld [vmem:[#allocation2 + $0x90] sm:$0xf]  ;;  %v239_v39 = vld [vmem:[%s4227_s25 + $0x44] sm:$0xf]  ;;  %v3069_v41 = vor.u32 %v3858_v27, %v3068_v26 }
  0x1f   : > { %266 = vst [vmem:[#allocation2 + $0xa8] sm:$0xf] %v236_v17  ;;  %v3867_v31 = vld [vmem:[#allocation2 + $0x98] sm:$0xf0]  ;;  %v244_v42 = vld [vmem:[%s4227_s25 + $0x58] sm:$0xf] }
  0x20   : > { %267 = vst [vmem:[#allocation2 + $0xb4] sm:$0xf] %v237_v19  ;;  %v3140_v33 = vld [vmem:[#allocation2 + $0xd8] sm:$0xf]  ;;  %v3105_v43 = vor.u32 %v3867_v31, %v3104_v30  ;;  %v245_v47 = vld [vmem:[%s4227_s25 + $0x5c] sm:$0xf] }
  0x21   : > { %1337 = vmatpush.bf16.msra.mxu0 %v3886_v18  ;;  %4114 = vmatpush.bf16.msra.mxu1 %v3886_v18  ;;  %272 = vst [vmem:[#allocation2 + $0xf0] sm:$0xf] %v242_v20  ;;  %v3876_v35 = vld [vmem:[#allocation2 + $0xe0] sm:$0xf0]  ;;  %v282_v48 = vld [vmem:[%s4227_s25] sm:$0xf] }
  0x22   : > { %4115 = vmatpush.bf16.msra.mxu2 %v3886_v18  ;;  %4116 = vmatpush.bf16.msra.mxu3 %v3886_v18  ;;  %273 = vst [vmem:[#allocation2 + $0xfc] sm:$0xf] %v243_v21  ;;  %v3141_v44 = vor.u32 %v3876_v35, %v3140_v33  ;;  %v283_v49 = vld [vmem:[%s4227_s25 + $0x4] sm:$0xf]  ;;  %v317_v52 = vshrl.u32 %v282_v48, 16  ;;  %v320_v53 = vshll.u32 %v282_v48, 16 }
  0x23   : > { %256 = vst [vmem:[#allocation2 + $0x30] sm:$0xf] %v226_v28  ;;  %v326_v54 = vshll.u32 %v283_v49, 16  ;;  %v330_v55 = vshrl.u32 %v283_v49, 16  ;;  %v3958_v59 = vld [vmem:[%s5024_s1 + $0x130] sm:$0xff]  ;;  %v3957_v0 = vld [vmem:[%s5024_s1 + $0x128] sm:$0xff] }
  0x24   : > { %257 = vst [vmem:[#allocation2 + $0x3c] sm:$0xf] %v227_v29  ;;  %v319_v60 = vrot.slane %v317_v52, 4  ;;  %v322_v61 = vrot.slane %v320_v53, 5  ;;  %v4300_v62 = vld [vmem:[#allocation2 + $0x18] sm:$0xf] }
  0x25   : > { %1338 = vmatpush.bf16.msra.mxu0 %v3885_v22  ;;  %4117 = vmatpush.bf16.msra.mxu1 %v3885_v22  ;;  %262 = vst [vmem:[#allocation2 + $0x78] sm:$0xf] %v232_v32  ;;  %v328_v1 = vrot.slane %v326_v54, 5  ;;  %v332_v2 = vrot.slane %v330_v55, 4  ;;  %v4308_v3 = vld [vmem:[#allocation2 + $0x20] sm:$0xf0] }
  0x26   : > { %4118 = vmatpush.bf16.msra.mxu2 %v3885_v22  ;;  %4119 = vmatpush.bf16.msra.mxu3 %v3885_v22  ;;  %263 = vst [vmem:[#allocation2 + $0x84] sm:$0xf] %v233_v34  ;;  %v4310_v4 = vld [vmem:[#allocation2 + $0x60] sm:$0xf]  ;;  %v323_v7 = vor.u32 %v322_v61, %v319_v60  ;;  %v4318_v8 = vld [vmem:[#allocation2 + $0x68] sm:$0xf0]  ;;  %v3045_v27 = vor.u32 %v4308_v3, %v4300_v62 }
  0x27   : > { %268 = vst [vmem:[#allocation2 + $0xc0] sm:$0xf] %v238_v36  ;;  %v3904_v5 = vld [vmem:[%s5024_s1 + $0xa0] sm:$0xff]  ;;  %v4321_v9 = vld [vmem:[%s4227_s25 + $0x8] sm:$0xf]  ;;  %v333_v11 = vor.u32 %v332_v2, %v328_v1  ;;  %v3903_v28 = vld [vmem:[%s5024_s1 + $0x98] sm:$0xff]  ;;  %v3081_v34 = vor.u32 %v4318_v8, %v4310_v4 }
  0x28   : > { %269 = vst [vmem:[#allocation2 + $0xcc] sm:$0xf] %v239_v39  ;;  %v3948_v6 = vld [vmem:[%s5024_s1 + $0xe0] sm:$0xff]  ;;  %v4329_v12 = vld [vmem:[#allocation2 + $0xa8] sm:$0xf]  ;;  %v324_v14 = vrot.slane %v323_v7, 4 }
  0x29   : > { %1339 = vmatpush.bf16.msra.mxu0 %v3884_v23  ;;  %4120 = vmatpush.bf16.msra.mxu1 %v3884_v23  ;;  %274 = vst [vmem:[#allocation2 + $0x108] sm:$0xf] %v244_v42  ;;  %v4331_v13 = vld [vmem:[#allocation2 + $0xb0] sm:$0xf0]  ;;  %v336_v15 = vshll.u32 %v4321_v9, 16  ;;  %v3896_v21 = vld [vmem:[%s5024_s1 + $0x60] sm:$0xff] }
  0x2a   : > { %4121 = vmatpush.bf16.msra.mxu2 %v3884_v23  ;;  %4122 = vmatpush.bf16.msra.mxu3 %v3884_v23  ;;  %275 = vst [vmem:[#allocation2 + $0x114] sm:$0xf] %v245_v47  ;;  %v680_v16 = vld [vmem:[%s4227_s25] sm:$0xe]  ;;  %v681_v17 = vld [vmem:[%s4227_s25 + $0x4] sm:$0xf]  ;;  %v329_v29 = vsel %vm4325_vm4, %v324_v14, %v328_v1 }
  0x2b   : > { %v3152_v19 = vld [vmem:[#allocation2 + $0xf0] sm:$0xf]  ;;  %v3879_v20 = vld [vmem:[#allocation2 + $0xf8] sm:$0xf0]  ;;  %v3956_v22 = vld [vmem:[%s5024_s1 + $0x120] sm:$0xff]  ;;  %v334_v23 = vrot.slane %v333_v11, 4 }
  0x2c   : > { %1340 = vmatmul.bf16.vlgmr.msra.gmra.mxu0 %v3033_v40  ;;  %1355 = vmatmul.bf16.vlgmr.msra.gmra.mxu1 %v3069_v41  ;;  %v4349_v24 = vld [vmem:[%s4227_s25 + $0x8] sm:$0xf]  ;;  %v3029_v25 = vrot.slane %v680_v16, 9  ;;  %v747_v26 = vrot.slane %v681_v17, 5  ;;  %v4358_v30 = vrot.slane %v336_v15, 5  ;;  %v3947_v39 = vld [vmem:[%s5024_s1 + $0xd8] sm:$0xff]  ;;  %v3153_v48 = vor.u32 %v3879_v20, %v3152_v19 }
  0x2d   : > { %1370 = vmatmul.bf16.vlgmr.msra.gmra.mxu2 %v3105_v43  ;;  %1385 = vmatmul.bf16.vlgmr.msra.gmra.mxu3 %v3141_v44  ;;  %v750_v31 = vrot.slane %v4349_v24, 5  ;;  %v285_v32 = vld [vmem:[%s4227_s25 + $0xc] sm:$0xf]  ;;  %v286_v33 = vld [vmem:[%s4227_s25 + $0x10] sm:$0xf]  ;;  %v3117_v44 = vor.u32 %v4331_v13, %v4329_v12  ;;  %v3895_v52 = vld [vmem:[%s5024_s1 + $0x58] sm:$0xff] }
  0x2e   : > { %1470 = vmatpush.bf16.msrb.mxu2 %v3907_v37  ;;  %1972 = vmatpush.bf16.msrb.mxu3 %v3951_v38  ;;  %650 = vst [vmem:[#allocation2 + $0x4] sm:$0xf] %v329_v29  ;;  %v748_v35 = vsel %vm4338_vm5, %v3029_v25, %v747_v26  ;;  %v749_v36 = vrot.slane %v747_v26, 4  ;;  %v287_v37 = vld [vmem:[%s4227_s25 + $0x14] sm:$0xf]  ;;  %v346_v38 = vshll.u32 %v285_v32, 16  ;;  %v339_v40 = vsel %vm4325_vm4, %v334_v23, %v4358_v30 }
  0x2f   : > { %1401 = vmatpush.bf16.msrb.mxu1 %v3899_v45  ;;  %2041 = vmatpush.bf16.msrb.mxu0 %v3959_v46  ;;  %866 = vst [vmem:[#allocation2 + $0x8] sm:$0xf] %v748_v35  ;;  %v350_v41 = vshrl.u32 %v285_v32, 16  ;;  %v356_v42 = vshll.u32 %v286_v33, 16  ;;  %v360_v43 = vshrl.u32 %v286_v33, 16  ;;  %v366_v47 = vshll.u32 %v287_v37, 16 }
  0x30   : > { %651 = vst [vmem:[#allocation2 + $0x10] sm:$0xf] %v339_v40  ;;  %v751_v45 = vsel %vm4338_vm5, %v749_v36, %v750_v31  ;;  %v4380_v46 = vrot.slane %v346_v38, 5  ;;  %v3955_v53 = vld [vmem:[%s5024_s1 + $0x118] sm:$0xff]  ;;  %v340_v54 = vshrl.u32 %v4321_v9, 16  ;;  %v3902_v55 = vld [vmem:[%s5024_s1 + $0x90] sm:$0xff] }
  0x31   : > { %867 = vst [vmem:[#allocation2 + $0x14] sm:$0xf] %v751_v45  ;;  %v352_v49 = vrot.slane %v350_v41, 4  ;;  %v288_v60 = vld [vmem:[%s4227_s25 + $0x18] sm:$0xf]  ;;  %v370_v61 = vshrl.u32 %v287_v37, 16 }
  0x32   : > { %1471 = vmatpush.bf16.msrb.mxu2 %v3906_v50  ;;  %1973 = vmatpush.bf16.msrb.mxu3 %v3950_v51  ;;  %v358_v50 = vrot.slane %v356_v42, 5  ;;  %v362_v51 = vrot.slane %v360_v43, 4  ;;  %v342_v62 = vrot.slane %v340_v54, 4  ;;  %v3894_v2 = vld [vmem:[%s5024_s1 + $0x50] sm:$0xff]  ;;  %v3901_v3 = vld [vmem:[%s5024_s1 + $0x88] sm:$0xff]  ;;  %v380_v7 = vshrl.u32 %v288_v60, 16 }
  0x33   : > { %1402 = vmatpush.bf16.msrb.mxu1 %v3898_v56  ;;  %2042 = vmatpush.bf16.msrb.mxu0 %v3958_v59  ;;  %v3946_v56 = vld [vmem:[%s5024_s1 + $0xd0] sm:$0xff]  ;;  %v368_v59 = vrot.slane %v366_v47, 5  ;;  %v3945_v8 = vld [vmem:[%s5024_s1 + $0xc8] sm:$0xff]  ;;  %v752_v15 = vrot.slane %v750_v31, 4  ;;  %v3855_v29 = vld [vmem:[#allocation2 + $0x38] sm:$0xf0] }
  0x34   : > { %v3954_v4 = vld [vmem:[%s5024_s1 + $0x110] sm:$0xff]  ;;  %v683_v12 = vld [vmem:[%s4227_s25 + $0xc] sm:$0xf]  ;;  %v382_v26 = vrot.slane %v380_v7, 4  ;;  %v3864_v31 = vld [vmem:[#allocation2 + $0x80] sm:$0xf0] }
  0x35   : > { %v4416_v13 = vld [vmem:[%s4227_s25 + $0x10] sm:$0xf]  ;;  %v753_v19 = vrot.slane %v683_v12, 5  ;;  %v3953_v23 = vld [vmem:[%s5024_s1 + $0x108] sm:$0xff]  ;;  %v3900_v32 = vld [vmem:[%s5024_s1 + $0x80] sm:$0xff] }
  0x36   : > { %1472 = vmatpush.bf16.msrb.mxu2 %v3905_v57  ;;  %1974 = vmatpush.bf16.msrb.mxu3 %v3949_v58  ;;  %v353_v57 = vor.u32 %v352_v49, %v4380_v46  ;;  %v363_v58 = vor.u32 %v362_v51, %v358_v50  ;;  %v756_v20 = vrot.slane %v4416_v13, 5  ;;  %v3944_v33 = vld [vmem:[%s5024_s1 + $0xc0] sm:$0xff]  ;;  %v3873_v37 = vld [vmem:[#allocation2 + $0xc8] sm:$0xf0]  ;;  %v4011_v38 = vld [vmem:[%s5024_s1 + $0x1b8] sm:$0xff] }
  0x37   : > { %1403 = vmatpush.bf16.msrb.mxu1 %v3897_v63  ;;  %2043 = vmatpush.bf16.msrb.mxu0 %v3957_v0  ;;  %v376_v63 = vshll.u32 %v288_v60, 16  ;;  %v755_v35 = vrot.slane %v753_v19, 4  ;;  %v3128_v36 = vld [vmem:[#allocation2 + $0xc0] sm:$0xf]  ;;  %v3164_v43 = vld [vmem:[#allocation2 + $0x108] sm:$0xf] }
  0x38   : > { %v354_v0 = vrot.slane %v353_v57, 4  ;;  %v364_v1 = vrot.slane %v363_v58, 4  ;;  %v3952_v47 = vld [vmem:[%s5024_s1 + $0x100] sm:$0xff]  ;;  %v3967_v49 = vld [vmem:[%s5024_s1 + $0x178] sm:$0xff]  ;;  %v3129_v54 = vor.u32 %v3873_v37, %v3128_v36  ;;  %v4010_v60 = vld [vmem:[%s5024_s1 + $0x1b0] sm:$0xff] }
  0x39   : > { %v378_v17 = vrot.slane %v376_v63, 5  ;;  %v757_v45 = vsel %vm4338_vm5, %v755_v35, %v756_v20  ;;  %v3320_v13 = vld [vmem:[#allocation2 + $0x24] sm:$0xf]  ;;  %v4026_v37 = vld [vmem:[%s5024_s1 + $0x230] sm:$0xff] }
  0x3a   : > { %1473 = vmatpush.bf16.msrb.mxu2 %v3904_v5  ;;  %1975 = vmatpush.bf16.msrb.mxu3 %v3948_v6  ;;  %v343_v5 = vor.u32 %v342_v62, %v4358_v30  ;;  %v372_v6 = vrot.slane %v370_v61, 4  ;;  %v359_v9 = vsel %vm4325_vm4, %v354_v0, %v358_v50  ;;  %v369_v11 = vsel %vm4325_vm4, %v364_v1, %v368_v59  ;;  %v3092_v30 = vld [vmem:[#allocation2 + $0x78] sm:$0xf]  ;;  %v4018_v61 = vld [vmem:[%s5024_s1 + $0x1f0] sm:$0xff] }
  0x3b   : > { %1404 = vmatpush.bf16.msrb.mxu1 %v3896_v21  ;;  %2044 = vmatpush.bf16.msrb.mxu0 %v3956_v22  ;;  %653 = vst [vmem:[#allocation2 + $0x28] sm:$0xf] %v359_v9  ;;  %v4422_v21 = vld [vmem:[%s4227_s25 + $0x1c] sm:$0xf]  ;;  %v3893_v22 = vld [vmem:[%s5024_s1 + $0x48] sm:$0xff]  ;;  %v383_v41 = vor.u32 %v382_v26, %v378_v17  ;;  %v3966_v0 = vld [vmem:[%s5024_s1 + $0x170] sm:$0xff] }
  0x3c   : > { %1345 = vmatmul.bf16.gmra.mxu0 %v3045_v27  ;;  %1360 = vmatmul.bf16.gmra.mxu1 %v3081_v34  ;;  %v344_v14 = vrot.slane %v343_v5, 4  ;;  %v373_v16 = vor.u32 %v372_v6, %v368_v59  ;;  %654 = vst [vmem:[#allocation2 + $0x34] sm:$0xf] %v369_v11  ;;  %v386_v27 = vshll.u32 %v4422_v21, 16  ;;  %v754_v34 = vsel %vm4338_vm5, %v752_v15, %v753_v19  ;;  %v4027_v50 = vld [vmem:[%s5024_s1 + $0x238] sm:$0xff] }
  0x3d   : > { %1375 = vmatmul.bf16.gmra.mxu2 %v3117_v44  ;;  %1390 = vmatmul.bf16.gmra.mxu3 %v3153_v48  ;;  %868 = vst [vmem:[#allocation2 + $0x20] sm:$0xf] %v754_v34  ;;  %v3892_v44 = vld [vmem:[%s5024_s1 + $0x40] sm:$0xff]  ;;  %v384_v48 = vrot.slane %v383_v41, 4  ;;  %v390_v57 = vshrl.u32 %v4422_v21, 16  ;;  %v758_v6 = vrot.slane %v756_v20, 4 }
  0x3e   : > { %1474 = vmatpush.bf16.msrb.mxu2 %v3903_v28  ;;  %1976 = vmatpush.bf16.msrb.mxu3 %v3947_v39  ;;  %v349_v24 = vsel %vm4325_vm4, %v344_v14, %v4380_v46  ;;  %v374_v25 = vrot.slane %v373_v16, 4  ;;  %v3056_v28 = vld [vmem:[#allocation2 + $0x30] sm:$0xf]  ;;  %v4019_v39 = vld [vmem:[%s5024_s1 + $0x1f8] sm:$0xff]  ;;  %v388_v42 = vrot.slane %v386_v27, 5 }
  0x3f   : > { %1405 = vmatpush.bf16.msrb.mxu1 %v3895_v52  ;;  %2045 = vmatpush.bf16.msrb.mxu0 %v3955_v53  ;;  %652 = vst [vmem:[#allocation2 + $0x1c] sm:$0xf] %v349_v24  ;;  %v3882_v46 = vld [vmem:[#allocation2 + $0x110] sm:$0xf0]  ;;  %v3057_v51 = vor.u32 %v3855_v29, %v3056_v28  ;;  %v3093_v52 = vor.u32 %v3864_v31, %v3092_v30  ;;  %v392_v62 = vrot.slane %v390_v57, 4 }
  0x40   : > { %v379_v40 = vsel %vm4325_vm4, %v374_v25, %v378_v17  ;;  %869 = vst [vmem:[#allocation2 + $0x2c] sm:$0xf] %v757_v45  ;;  %v389_v53 = vsel %vm4325_vm4, %v384_v48, %v388_v42  ;;  %v3848_v21 = vld [vmem:[#allocation2 + $0x4] sm:$0xf]  ;;  %v3909_v20 = vld [vmem:[#allocation2 + $0x2c] sm:$0xf0] }
  0x41   : > { %655 = vst [vmem:[#allocation2 + $0x40] sm:$0xf] %v379_v40  ;;  %v393_v5 = vor.u32 %v392_v62, %v388_v42  ;;  %v3040_v27 = vld [vmem:[#allocation2 + $0x8] sm:$0xf]  ;;  %v3850_v28 = vld [vmem:[#allocation2 + $0x10] sm:$0xf0] }
  0x42   : > { %1475 = vmatpush.bf16.msrb.mxu2 %v3902_v55  ;;  %1977 = vmatpush.bf16.msrb.mxu3 %v3946_v56  ;;  %v3165_v55 = vor.u32 %v3882_v46, %v3164_v43  ;;  %656 = vst [vmem:[#allocation2 + $0x4c] sm:$0xf] %v389_v53  ;;  %v290_v56 = vld [vmem:[%s4227_s25 + $0x20] sm:$0xf]  ;;  %v3908_v24 = vld [vmem:[#allocation2 + $0x28] sm:$0xf]  ;;  %v3041_v31 = vor.u32 %v3850_v28, %v3040_v27 }
  0x43   : > { %1406 = vmatpush.bf16.msrb.mxu1 %v3894_v2  ;;  %2046 = vmatpush.bf16.msrb.mxu0 %v3954_v4  ;;  %v396_v58 = vshll.u32 %v290_v56, 16  ;;  %v400_v59 = vshrl.u32 %v290_v56, 16  ;;  %v685_v2 = vld [vmem:[%s4227_s25 + $0x14] sm:$0xf]  ;;  %v291_v4 = vld [vmem:[%s4227_s25 + $0x24] sm:$0xf] }
  0x44   : > { %v759_v7 = vrot.slane %v685_v2, 5  ;;  %v394_v11 = vrot.slane %v393_v5, 4  ;;  %v406_v12 = vshll.u32 %v291_v4, 16  ;;  %v3322_v25 = vld [vmem:[#allocation2 + $0x30] sm:$0xf0]  ;;  %v410_v34 = vshrl.u32 %v291_v4, 16 }
  0x45   : > { %v398_v63 = vrot.slane %v396_v58, 5  ;;  %v402_v1 = vrot.slane %v400_v59, 4  ;;  %v3325_v30 = vor.u32 %v3908_v24, %v3322_v25  ;;  %v293_v40 = vld [vmem:[%s4227_s25 + $0x2c] sm:$0xf]  ;;  %v688_v41 = vld [vmem:[%s4227_s25 + $0x20] sm:$0xf] }
  0x46   : > { %1476 = vmatpush.bf16.msrb.mxu2 %v3901_v3  ;;  %1978 = vmatpush.bf16.msrb.mxu3 %v3945_v8  ;;  %v686_v3 = vld [vmem:[%s4227_s25 + $0x18] sm:$0xf]  ;;  %v760_v14 = vsel %vm4338_vm5, %v758_v6, %v759_v7  ;;  %v761_v15 = vrot.slane %v759_v7, 4  ;;  %v408_v19 = vrot.slane %v406_v12, 5  ;;  %v768_v46 = vrot.slane %v688_v41, 5  ;;  %v4017_v12 = vld [vmem:[%s5024_s1 + $0x1e8] sm:$0xff] }
  0x47   : > { %1407 = vmatpush.bf16.msrb.mxu1 %v3893_v22  ;;  %2047 = vmatpush.bf16.msrb.mxu0 %v3953_v23  ;;  %v762_v8 = vrot.slane %v686_v3, 5  ;;  %v403_v9 = vor.u32 %v402_v1, %v398_v63  ;;  %870 = vst [vmem:[#allocation2 + $0x38] sm:$0xf] %v760_v14  ;;  %v399_v17 = vsel %vm4325_vm4, %v394_v11, %v398_v63  ;;  %v3034_v22 = vld [vmem:[#allocation2 + $0xc] sm:$0xf0]  ;;  %v426_v48 = vshll.u32 %v293_v40, 16 }
  0x48   : > { %657 = vst [vmem:[#allocation2 + $0x58] sm:$0xf] %v399_v17  ;;  %v3037_v29 = vor.u32 %v3848_v21, %v3034_v22  ;;  %v3332_v58 = vld [vmem:[#allocation2 + $0x3c] sm:$0xf]  ;;  %v3052_v62 = vld [vmem:[#allocation2 + $0x20] sm:$0xf] }
  0x49   : > { %v404_v16 = vrot.slane %v403_v9, 4  ;;  %v763_v23 = vsel %vm4338_vm5, %v761_v15, %v762_v8  ;;  %v764_v45 = vrot.slane %v762_v8, 4  ;;  %v428_v53 = vrot.slane %v426_v48, 5  ;;  %v3853_v63 = vld [vmem:[#allocation2 + $0x28] sm:$0xf0] }
  0x4a   : > { %1477 = vmatpush.bf16.msrb.mxu2 %v3900_v32  ;;  %1979 = vmatpush.bf16.msrb.mxu3 %v3944_v33  ;;  %871 = vst [vmem:[#allocation2 + $0x44] sm:$0xf] %v763_v23  ;;  %v3321_v32 = vor.u32 %v3909_v20, %v3320_v13  ;;  %v292_v33 = vld [vmem:[%s4227_s25 + $0x28] sm:$0xf]  ;;  %v3053_v4 = vor.u32 %v3853_v63, %v3052_v62  ;;  %v294_v6 = vld [vmem:[%s4227_s25 + $0x30] sm:$0xf] }
  0x4b   : > { %1408 = vmatpush.bf16.msrb.mxu1 %v3892_v44  ;;  %2048 = vmatpush.bf16.msrb.mxu0 %v3952_v47  ;;  %v409_v26 = vsel %vm4325_vm4, %v404_v16, %v408_v19  ;;  %v416_v35 = vshll.u32 %v292_v33, 16  ;;  %v420_v36 = vshrl.u32 %v292_v33, 16  ;;  %v430_v7 = vshrl.u32 %v293_v40, 16  ;;  %v4009_v11 = vld [vmem:[%s5024_s1 + $0x1a8] sm:$0xff]  ;;  %v689_v21 = vld [vmem:[%s4227_s25 + $0x24] sm:$0xf] }
  0x4c   : > { %1350 = vmatmul.bf16.gmra.mxu0 %v3057_v51  ;;  %1365 = vmatmul.bf16.gmra.mxu1 %v3093_v52  ;;  %658 = vst [vmem:[#allocation2 + $0x64] sm:$0xf] %v409_v26  ;;  %v436_v8 = vshll.u32 %v294_v6, 16  ;;  %v440_v9 = vshrl.u32 %v294_v6, 16  ;;  %v3965_v14 = vld [vmem:[%s5024_s1 + $0x168] sm:$0xff]  ;;  %v770_v23 = vrot.slane %v768_v46, 4 }
  0x4d   : > { %1380 = vmatmul.bf16.gmra.mxu2 %v3129_v54  ;;  %1395 = vmatmul.bf16.gmra.mxu3 %v3165_v55  ;;  %v418_v44 = vrot.slane %v416_v35, 5  ;;  %v422_v47 = vrot.slane %v420_v36, 4  ;;  %v3851_v54 = vld [vmem:[#allocation2 + $0x1c] sm:$0xf]  ;;  %v3046_v55 = vld [vmem:[#allocation2 + $0x24] sm:$0xf0] }
  0x4e   : > { %2636 = vmatpush.bf16.msra.mxu2 %v4011_v38  ;;  %2705 = vmatpush.bf16.msra.mxu3 %v4019_v39  ;;  %v412_v38 = vrot.slane %v410_v34, 4  ;;  %v687_v39 = vld [vmem:[%s4227_s25 + $0x1c] sm:$0xf]  ;;  %v3049_v2 = vor.u32 %v3851_v54, %v3046_v55  ;;  %v432_v15 = vrot.slane %v430_v7, 4  ;;  %v438_v16 = vrot.slane %v436_v8, 5 }
  0x4f   : > { %2110 = vmatpush.bf16.msra.mxu1 %v3967_v49  ;;  %2774 = vmatpush.bf16.msra.mxu0 %v4027_v50  ;;  %v765_v42 = vrot.slane %v687_v39, 5  ;;  %v423_v52 = vor.u32 %v422_v47, %v418_v44  ;;  %v442_v17 = vrot.slane %v440_v9, 4  ;;  %v690_v22 = vld [vmem:[%s4227_s25 + $0x28] sm:$0xf]  ;;  %v771_v24 = vrot.slane %v689_v21, 5 }
  0x50   : > { %v413_v43 = vor.u32 %v412_v38, %v408_v19  ;;  %v4025_v19 = vld [vmem:[%s5024_s1 + $0x228] sm:$0xff]  ;;  %v433_v13 = vor.u32 %v432_v15, %v428_v53  ;;  %v774_v25 = vrot.slane %v690_v22, 5  ;;  %v295_v26 = vld [vmem:[%s4227_s25 + $0x34] sm:$0xf]  ;;  %v3058_v33 = vld [vmem:[#allocation2 + $0x3c] sm:$0xf0] }
  0x51   : > { %v767_v49 = vrot.slane %v765_v42, 4  ;;  %v766_v51 = vsel %vm4338_vm5, %v764_v45, %v765_v42  ;;  %v424_v59 = vrot.slane %v423_v52, 4  ;;  %v443_v20 = vor.u32 %v442_v17, %v438_v16  ;;  %v3064_v36 = vld [vmem:[#allocation2 + $0x38] sm:$0xf]  ;;  %v3856_v42 = vld [vmem:[#allocation2 + $0x40] sm:$0xf0] }
  0x52   : > { %2637 = vmatpush.bf16.msra.mxu2 %v4010_v60  ;;  %2706 = vmatpush.bf16.msra.mxu3 %v4018_v61  ;;  %v414_v50 = vrot.slane %v413_v43, 4  ;;  %872 = vst [vmem:[#allocation2 + $0x50] sm:$0xf] %v766_v51  ;;  %v3911_v60 = vld [vmem:[#allocation2 + $0x40] sm:$0xf]  ;;  %v434_v27 = vrot.slane %v433_v13, 4 }
  0x53   : > { %2111 = vmatpush.bf16.msra.mxu1 %v3966_v0  ;;  %2775 = vmatpush.bf16.msra.mxu0 %v4026_v37  ;;  %v769_v56 = vsel %vm4338_vm5, %v767_v49, %v768_v46  ;;  %v3334_v61 = vld [vmem:[#allocation2 + $0x48] sm:$0xf0]  ;;  %v3912_v0 = vld [vmem:[#allocation2 + $0x44] sm:$0xf0]  ;;  %v429_v1 = vsel %vm4325_vm4, %v424_v59, %v428_v53  ;;  %v444_v28 = vrot.slane %v443_v20, 4  ;;  %v3065_v46 = vor.u32 %v3856_v42, %v3064_v36  ;;  %v4008_v52 = vld [vmem:[%s5024_s1 + $0x1a0] sm:$0xff] }
  0x54   : > { %v419_v57 = vsel %vm4325_vm4, %v414_v50, %v418_v44  ;;  %873 = vst [vmem:[#allocation2 + $0x5c] sm:$0xf] %v769_v56  ;;  %v3337_v3 = vor.u32 %v3911_v60, %v3334_v61  ;;  %v3333_v5 = vor.u32 %v3912_v0, %v3332_v58  ;;  %v439_v34 = vsel %vm4325_vm4, %v434_v27, %v438_v16  ;;  %v3344_v37 = vld [vmem:[#allocation2 + $0x54] sm:$0xf]  ;;  %v3914_v39 = vld [vmem:[#allocation2 + $0x58] sm:$0xf] }
  0x55   : > { %659 = vst [vmem:[#allocation2 + $0x70] sm:$0xf] %v419_v57  ;;  %v3346_v40 = vld [vmem:[#allocation2 + $0x60] sm:$0xf0]  ;;  %v3915_v43 = vld [vmem:[#allocation2 + $0x5c] sm:$0xf0] }
  0x56   : > { %660 = vst [vmem:[#allocation2 + $0x7c] sm:$0xf] %v429_v1  ;;  %2638 = vmatpush.bf16.msra.mxu2 %v4009_v11  ;;  %2707 = vmatpush.bf16.msra.mxu3 %v4017_v12  ;;  %v3349_v45 = vor.u32 %v3914_v39, %v3346_v40  ;;  %v3345_v47 = vor.u32 %v3915_v43, %v3344_v37  ;;  %v296_v48 = vld [vmem:[%s4227_s25 + $0x38] sm:$0xf]  ;;  %v450_v49 = vshrl.u32 %v295_v26, 16  ;;  %v4016_v53 = vld [vmem:[%s5024_s1 + $0x1e0] sm:$0xff] }
  0x57   : > { %2112 = vmatpush.bf16.msra.mxu1 %v3965_v14  ;;  %2776 = vmatpush.bf16.msra.mxu0 %v4025_v19  ;;  %661 = vst [vmem:[#allocation2 + $0x88] sm:$0xf] %v439_v34  ;;  %v456_v50 = vshll.u32 %v296_v48, 16  ;;  %v460_v51 = vshrl.u32 %v296_v48, 16  ;;  %v691_v56 = vld [vmem:[%s4227_s25 + $0x2c] sm:$0xf] }
  0x58   : > { %v452_v54 = vrot.slane %v450_v49, 4  ;;  %v297_v57 = vld [vmem:[%s4227_s25 + $0x3c] sm:$0xf]  ;;  %v692_v58 = vld [vmem:[%s4227_s25 + $0x30] sm:$0xf]  ;;  %v777_v59 = vrot.slane %v691_v56, 5 }
  0x59   : > { %v458_v55 = vrot.slane %v456_v50, 5  ;;  %v462_v61 = vrot.slane %v460_v51, 4  ;;  %v466_v62 = vshll.u32 %v297_v57, 16  ;;  %v776_v63 = vrot.slane %v774_v25, 4  ;;  %v3857_v6 = vld [vmem:[#allocation2 + $0x4c] sm:$0xf] }
  0x5a   : > { %2639 = vmatpush.bf16.msra.mxu2 %v4008_v52  ;;  %2708 = vmatpush.bf16.msra.mxu3 %v4016_v53  ;;  %v780_v0 = vrot.slane %v692_v58, 5  ;;  %v779_v1 = vrot.slane %v777_v59, 4  ;;  %v3070_v7 = vld [vmem:[#allocation2 + $0x54] sm:$0xf0]  ;;  %v3076_v12 = vld [vmem:[#allocation2 + $0x50] sm:$0xf] }
  0x5b   : > { %v3356_v14 = vld [vmem:[#allocation2 + $0x6c] sm:$0xf]  ;;  %v3859_v19 = vld [vmem:[#allocation2 + $0x58] sm:$0xf0]  ;;  %v3918_v21 = vld [vmem:[#allocation2 + $0x74] sm:$0xf0]  ;;  %v3073_v22 = vor.u32 %v3857_v6, %v3070_v7 }
  0x5c   : > { %1409 = vmatmul.bf16.vlgmr.msrb.gmra.mxu1 %v3037_v29  ;;  %2049 = vmatmul.bf16.vlgmr.msrb.gmra.mxu0 %v3325_v30  ;;  %v446_v29 = vshll.u32 %v295_v26, 16  ;;  %v772_v30 = vsel %vm4338_vm5, %v770_v23, %v771_v24  ;;  %v781_v8 = vsel %vm4338_vm5, %v779_v1, %v780_v0  ;;  %v3917_v15 = vld [vmem:[#allocation2 + $0x70] sm:$0xf]  ;;  %v3077_v20 = vor.u32 %v3859_v19, %v3076_v12  ;;  %v694_v36 = vld [vmem:[%s4227_s25 + $0x38] sm:$0xf] }
  0x5d   : > { %1478 = vmatmul.bf16.vlgmr.msrb.gmra.mxu2 %v3041_v31  ;;  %1980 = vmatmul.bf16.vlgmr.msrb.gmra.mxu3 %v3321_v32  ;;  %v773_v31 = vrot.slane %v771_v24, 4  ;;  %v3854_v32 = vld [vmem:[#allocation2 + $0x34] sm:$0xf]  ;;  %874 = vst [vmem:[#allocation2 + $0x68] sm:$0xf] %v772_v30  ;;  %v3357_v23 = vor.u32 %v3918_v21, %v3356_v14  ;;  %v470_v26 = vshrl.u32 %v297_v57, 16 }
  0x5e   : > { %v448_v35 = vrot.slane %v446_v29, 5  ;;  %v3061_v44 = vor.u32 %v3854_v32, %v3058_v33  ;;  %877 = vst [vmem:[#allocation2 + $0x8c] sm:$0xf] %v781_v8  ;;  %v3358_v16 = vld [vmem:[#allocation2 + $0x78] sm:$0xf0]  ;;  %v4024_v29 = vld [vmem:[%s5024_s1 + $0x220] sm:$0xff] }
  0x5f   : > { %v775_v38 = vsel %vm4338_vm5, %v773_v31, %v774_v25  ;;  %v3361_v13 = vor.u32 %v3917_v15, %v3358_v16  ;;  %v298_v24 = vld [vmem:[%s4227_s25 + $0x40] sm:$0xf]  ;;  %v472_v27 = vrot.slane %v470_v26, 4  ;;  %v693_v30 = vld [vmem:[%s4227_s25 + $0x34] sm:$0xf]  ;;  %2777 = vmatpush.bf16.msra.mxu0 %v4024_v29  ;;  %v782_v39 = vrot.slane %v780_v0, 4 }
  0x60   : > { %875 = vst [vmem:[#allocation2 + $0x74] sm:$0xf] %v775_v38  ;;  %v449_v41 = vsel %vm4325_vm4, %v444_v28, %v448_v35  ;;  %v453_v60 = vor.u32 %v452_v54, %v448_v35  ;;  %v3964_v25 = vld [vmem:[%s5024_s1 + $0x160] sm:$0xff]  ;;  %v476_v28 = vshll.u32 %v298_v24, 16  ;;  %v480_v31 = vshrl.u32 %v298_v24, 16  ;;  %v4007_v1 = vld [vmem:[%s5024_s1 + $0x198] sm:$0xff] }
  0x61   : > { %662 = vst [vmem:[#allocation2 + $0x94] sm:$0xf] %v449_v41  ;;  %2113 = vmatpush.bf16.msra.mxu1 %v3964_v25  ;;  %v783_v32 = vrot.slane %v693_v30, 5  ;;  %v299_v33 = vld [vmem:[%s4227_s25 + $0x44] sm:$0xf]  ;;  %v786_v41 = vrot.slane %v694_v36, 5  ;;  %2640 = vmatpush.bf16.msra.mxu2 %v4007_v1 }
  0x62   : > { %v478_v35 = vrot.slane %v476_v28, 5  ;;  %v482_v37 = vrot.slane %v480_v31, 4  ;;  %v486_v38 = vshll.u32 %v299_v33, 16  ;;  %v3860_v48 = vld [vmem:[#allocation2 + $0x64] sm:$0xf]  ;;  %v4006_v1 = vld [vmem:[%s5024_s1 + $0x190] sm:$0xff] }
  0x63   : > { %v785_v40 = vrot.slane %v783_v32, 4  ;;  %v3082_v49 = vld [vmem:[#allocation2 + $0x6c] sm:$0xf0]  ;;  %v3368_v52 = vld [vmem:[#allocation2 + $0x84] sm:$0xf]  ;;  %v788_v14 = vrot.slane %v786_v41, 4 }
  0x64   : > { %v483_v43 = vor.u32 %v482_v37, %v478_v35  ;;  %v3088_v51 = vld [vmem:[#allocation2 + $0x68] sm:$0xf]  ;;  %v3921_v57 = vld [vmem:[#allocation2 + $0x8c] sm:$0xf0]  ;;  %v3085_v58 = vor.u32 %v3860_v48, %v3082_v49  ;;  %v696_v8 = vld [vmem:[%s4227_s25 + $0x40] sm:$0xf] }
  0x65   : > { %v3920_v53 = vld [vmem:[#allocation2 + $0x88] sm:$0xf]  ;;  %v792_v15 = vrot.slane %v696_v8, 5  ;;  %v3863_v24 = vld [vmem:[#allocation2 + $0x7c] sm:$0xf]  ;;  %2641 = vmatpush.bf16.msra.mxu2 %v4006_v1 }
  0x66   : > { %v484_v50 = vrot.slane %v483_v43, 4  ;;  %v3094_v25 = vld [vmem:[#allocation2 + $0x84] sm:$0xf0]  ;;  %v3865_v29 = vld [vmem:[#allocation2 + $0x88] sm:$0xf0] }
  0x67   : > { %v3862_v56 = vld [vmem:[#allocation2 + $0x70] sm:$0xf0]  ;;  %v3097_v36 = vor.u32 %v3863_v24, %v3094_v25 }
  0x68   : > { %v3370_v54 = vld [vmem:[#allocation2 + $0x90] sm:$0xf0] }
  0x6c   : > { %1414 = vmatmul.bf16.gmra.mxu1 %v3049_v2  ;;  %2054 = vmatmul.bf16.gmra.mxu0 %v3337_v3  ;;  %v454_v2 = vrot.slane %v453_v60, 4  ;;  %v463_v3 = vor.u32 %v462_v61, %v458_v55  ;;  %v3089_v60 = vor.u32 %v3862_v56, %v3088_v51  ;;  %v3369_v61 = vor.u32 %v3921_v57, %v3368_v52 }
  0x6d   : > { %1483 = vmatmul.bf16.gmra.mxu2 %v3053_v4  ;;  %1985 = vmatmul.bf16.gmra.mxu3 %v3333_v5  ;;  %v468_v4 = vrot.slane %v466_v62, 5  ;;  %v778_v5 = vsel %vm4338_vm5, %v776_v63, %v777_v59  ;;  %v3373_v59 = vor.u32 %v3920_v53, %v3370_v54  ;;  %v300_v62 = vld [vmem:[%s4227_s25 + $0x48] sm:$0xf]  ;;  %v490_v63 = vshrl.u32 %v299_v33, 16 }
  0x6e   : > { %876 = vst [vmem:[#allocation2 + $0x80] sm:$0xf] %v778_v5  ;;  %v459_v9 = vsel %vm4325_vm4, %v454_v2, %v458_v55  ;;  %v464_v11 = vrot.slane %v463_v3, 4  ;;  %v496_v0 = vshll.u32 %v300_v62, 16  ;;  %v4015_v2 = vld [vmem:[%s5024_s1 + $0x1d8] sm:$0xff]  ;;  %v500_v3 = vshrl.u32 %v300_v62, 16 }
  0x6f   : > { %663 = vst [vmem:[#allocation2 + $0xa0] sm:$0xf] %v459_v9  ;;  %v473_v34 = vor.u32 %v472_v27, %v468_v4  ;;  %v301_v5 = vld [vmem:[%s4227_s25 + $0x4c] sm:$0xf]  ;;  %v492_v6 = vrot.slane %v490_v63, 4  ;;  %2709 = vmatpush.bf16.msra.mxu3 %v4015_v2  ;;  %v794_v56 = vrot.slane %v792_v15, 4 }
  0x70   : > { %v469_v17 = vsel %vm4325_vm4, %v464_v11, %v468_v4  ;;  %v695_v4 = vld [vmem:[%s4227_s25 + $0x3c] sm:$0xf]  ;;  %v498_v7 = vrot.slane %v496_v0, 5  ;;  %v502_v11 = vrot.slane %v500_v3, 4  ;;  %v506_v12 = vshll.u32 %v301_v5, 16  ;;  %v4014_v2 = vld [vmem:[%s5024_s1 + $0x1d0] sm:$0xff] }
  0x71   : > { %664 = vst [vmem:[#allocation2 + $0xac] sm:$0xf] %v469_v17  ;;  %v474_v42 = vrot.slane %v473_v34, 4  ;;  %v789_v9 = vrot.slane %v695_v4, 5  ;;  %v3380_v34 = vld [vmem:[#allocation2 + $0x9c] sm:$0xf] }
  0x72   : > { %v503_v19 = vor.u32 %v502_v11, %v498_v7  ;;  %v4577_v21 = vrot.slane %v506_v12, 5  ;;  %v510_v43 = vshrl.u32 %v301_v5, 16  ;;  %v3866_v5 = vld [vmem:[#allocation2 + $0x94] sm:$0xf] }
  0x73   : > { %v791_v17 = vrot.slane %v789_v9, 4  ;;  %2710 = vmatpush.bf16.msra.mxu3 %v4014_v2 }
  0x74   : > { %v504_v27 = vrot.slane %v503_v19, 4  ;;  %v512_v49 = vrot.slane %v510_v43, 4  ;;  %v3392_v19 = vld [vmem:[#allocation2 + $0xb4] sm:$0xf] }
  0x75   : > { %v793_v26 = vsel %vm4338_vm5, %v791_v17, %v792_v15  ;;  %v3100_v28 = vld [vmem:[#allocation2 + $0x80] sm:$0xf] }
  0x76   : > { %881 = vst [vmem:[#allocation2 + $0xbc] sm:$0xf] %v793_v26  ;;  %v3923_v31 = vld [vmem:[#allocation2 + $0xa0] sm:$0xf]  ;;  %v509_v33 = vsel %vm4325_vm4, %v504_v27, %v4577_v21 }
  0x77   : > { %668 = vst [vmem:[#allocation2 + $0xdc] sm:$0xf] %v509_v33  ;;  %v3962_v33 = vld [vmem:[%s5024_s1 + $0x150] sm:$0xff] }
  0x7c   : > { %1419 = vmatmul.bf16.gmra.mxu1 %v3061_v44  ;;  %2059 = vmatmul.bf16.gmra.mxu0 %v3349_v45  ;;  %v488_v44 = vrot.slane %v486_v38, 5  ;;  %v784_v45 = vsel %vm4338_vm5, %v782_v39, %v783_v32  ;;  %v3382_v32 = vld [vmem:[#allocation2 + $0xa8] sm:$0xf0] }
  0x7d   : > { %1488 = vmatmul.bf16.gmra.mxu2 %v3065_v46  ;;  %1990 = vmatmul.bf16.gmra.mxu3 %v3345_v47  ;;  %v787_v46 = vsel %vm4338_vm5, %v785_v40, %v786_v41  ;;  %v479_v47 = vsel %vm4325_vm4, %v474_v42, %v478_v35  ;;  %878 = vst [vmem:[#allocation2 + $0x98] sm:$0xf] %v784_v45  ;;  %v3924_v35 = vld [vmem:[#allocation2 + $0xa4] sm:$0xf0]  ;;  %v302_v42 = vld [vmem:[%s4227_s25 + $0x50] sm:$0xf] }
  0x7e   : > { %879 = vst [vmem:[#allocation2 + $0xa4] sm:$0xf] %v787_v46  ;;  %v489_v55 = vsel %vm4325_vm4, %v484_v50, %v488_v44  ;;  %v493_v16 = vor.u32 %v492_v6, %v488_v44  ;;  %v3385_v37 = vor.u32 %v3923_v31, %v3382_v32  ;;  %v3101_v40 = vor.u32 %v3865_v29, %v3100_v28  ;;  %v4602_v45 = vld [vmem:[%s5025_s2] ss:$0 sm:$0xff]  ;;  %v697_v46 = vld [vmem:[%s4227_s25 + $0x44] sm:$0xf] }
  0x7f   : > { %665 = vst [vmem:[#allocation2 + $0xb8] sm:$0xf] %v479_v47  ;;  %v3381_v41 = vor.u32 %v3924_v35, %v3380_v34  ;;  %v516_v44 = vshll.u32 %v302_v42, 16  ;;  %v303_v47 = vld [vmem:[%s4227_s25 + $0x54] sm:$0xf]  ;;  %v795_v48 = vrot.slane %v697_v46, 5 }
  0x80   : > { %666 = vst [vmem:[#allocation2 + $0xc4] sm:$0xf] %v489_v55  ;;  %v4607_v50 = vld [vmem:[%s4227_s25 + $0x48] sm:$0xf]  ;;  %v520_v52 = vshrl.u32 %v302_v42, 16  ;;  %v526_v53 = vshll.u32 %v303_v47, 16 }
  0x81   : > { %v518_v51 = vrot.slane %v516_v44, 5  ;;  %v797_v57 = vrot.slane %v795_v48, 4  ;;  %v796_v3 = vsel %vm4338_vm5, %v794_v56, %v795_v48  ;;  %v3106_v6 = vld [vmem:[#allocation2 + $0x9c] sm:$0xf0]  ;;  %v304_v31 = vld [vmem:[%s4227_s25 + $0x58] sm:$0xf] }
  0x82   : > { %v522_v0 = vrot.slane %v520_v52, 4  ;;  %882 = vst [vmem:[#allocation2 + $0xc8] sm:$0xf] %v796_v3  ;;  %v530_v34 = vshrl.u32 %v303_v47, 16  ;;  %v305_v46 = vld [vmem:[%s4227_s25 + $0x5c] sm:$0xf] }
  0x83   : > { %v4656_v47 = vld [vmem:[%s4227_s25 + $0x50] sm:$0xf] }
  0x84   : > { %v523_v8 = vor.u32 %v522_v0, %v518_v51  ;;  %v3112_v11 = vld [vmem:[#allocation2 + $0x98] sm:$0xf]  ;;  %v532_v35 = vrot.slane %v530_v34, 4  ;;  %v550_v34 = vshrl.u32 %v305_v46, 16 }
  0x85   : > { %v3868_v12 = vld [vmem:[#allocation2 + $0xa0] sm:$0xf0] }
  0x86   : > { %v524_v17 = vrot.slane %v523_v8, 4  ;;  %v3113_v29 = vor.u32 %v3868_v12, %v3112_v11  ;;  %v3871_v11 = vld [vmem:[#allocation2 + $0xb8] sm:$0xf0] }
  0x87   : > { %v3394_v15 = vld [vmem:[#allocation2 + $0xc0] sm:$0xf0] }
  0x8c   : > { %1424 = vmatmul.bf16.gmra.mxu1 %v3073_v22  ;;  %2064 = vmatmul.bf16.gmra.mxu0 %v3361_v13  ;;  %v3963_v22 = vld [vmem:[%s5024_s1 + $0x158] sm:$0xff] }
  0x8d   : > { %1493 = vmatmul.bf16.gmra.mxu2 %v3077_v20  ;;  %1995 = vmatmul.bf16.gmra.mxu3 %v3357_v23  ;;  %v4023_v13 = vld [vmem:[%s5024_s1 + $0x218] sm:$0xff]  ;;  %v790_v20 = vsel %vm4338_vm5, %v788_v14, %v789_v9  ;;  %v494_v23 = vrot.slane %v493_v16, 4  ;;  %v528_v9 = vrot.slane %v526_v53, 5 }
  0x8e   : > { %880 = vst [vmem:[#allocation2 + $0xb0] sm:$0xf] %v790_v20  ;;  %2114 = vmatpush.bf16.msra.mxu1 %v3963_v22  ;;  %2778 = vmatpush.bf16.msra.mxu0 %v4023_v13  ;;  %v3926_v14 = vld [vmem:[#allocation2 + $0xb8] sm:$0xf] }
  0x8f   : > { %v499_v30 = vsel %vm4325_vm4, %v494_v23, %v498_v7  ;;  %v529_v22 = vsel %vm4325_vm4, %v524_v17, %v528_v9  ;;  %v3109_v23 = vor.u32 %v3866_v5, %v3106_v6  ;;  %v3397_v24 = vor.u32 %v3926_v14, %v3394_v15  ;;  %v3869_v5 = vld [vmem:[#allocation2 + $0xac] sm:$0xf]  ;;  %v3118_v6 = vld [vmem:[#allocation2 + $0xb4] sm:$0xf0]  ;;  %v3406_v14 = vld [vmem:[#allocation2 + $0xd8] sm:$0xf0] }
  0x90   : > { %667 = vst [vmem:[#allocation2 + $0xd0] sm:$0xf] %v499_v30  ;;  %v533_v43 = vor.u32 %v532_v35, %v528_v9  ;;  %v3930_v17 = vld [vmem:[#allocation2 + $0xd4] sm:$0xf0] }
  0x91   : > { %670 = vst [vmem:[#allocation2 + $0xf4] sm:$0xf] %v529_v22  ;;  %v3121_v22 = vor.u32 %v3869_v5, %v3118_v6 }
  0x92   : > { %2115 = vmatpush.bf16.msra.mxu1 %v3962_v33 }
  0x95   : > { %v3124_v9 = vld [vmem:[#allocation2 + $0xb0] sm:$0xf] }
  0x97   : > { %v3929_v12 = vld [vmem:[#allocation2 + $0xd0] sm:$0xf] }
  0x9c   : > { %1429 = vmatmul.bf16.gmra.mxu1 %v3085_v58  ;;  %2069 = vmatmul.bf16.gmra.mxu0 %v3373_v59  ;;  %v798_v58 = vrot.slane %v4607_v50, 5  ;;  %v513_v59 = vor.u32 %v512_v49, %v4577_v21  ;;  %v3927_v21 = vld [vmem:[#allocation2 + $0xbc] sm:$0xf0]  ;;  %v546_v50 = vshll.u32 %v305_v46, 16  ;;  %v4704_v46 = vld [vmem:[%s4227_s25 + $0x58] sm:$0xf] }
  0x9d   : > { %1498 = vmatmul.bf16.gmra.mxu2 %v3089_v60  ;;  %2000 = vmatmul.bf16.gmra.mxu3 %v3369_v61  ;;  %v3393_v30 = vor.u32 %v3927_v21, %v3392_v19 }
  0x9e   : > { %v799_v4 = vsel %vm4338_vm5, %v797_v57, %v798_v58  ;;  %v514_v7 = vrot.slane %v513_v59, 4  ;;  %v800_v42 = vrot.slane %v798_v58, 4  ;;  %v4667_v1 = vrot.slane %v546_v50, 5 }
  0x9f   : > { %883 = vst [vmem:[#allocation2 + $0xd4] sm:$0xf] %v799_v4 }
  0xa0   : > { %v519_v16 = vsel %vm4325_vm4, %v514_v7, %v518_v51 }
  0xa1   : > { %669 = vst [vmem:[#allocation2 + $0xe8] sm:$0xf] %v519_v16  ;;  %v3404_v16 = vld [vmem:[#allocation2 + $0xcc] sm:$0xf] }
  0xa9   : > { %v4594_v38 = vpop.f32.mrf.mxu0  ;;  %v4596_v39 = vpop.f32.mrf.mxu1 }
  0xac   : > { %1434 = vmatmul.bf16.gmra.mxu1 %v3097_v36  ;;  %2074 = vmatmul.bf16.gmra.mxu0 %v3385_v37  ;;  %v536_v36 = vshll.u32 %v304_v31, 16  ;;  %v4022_v37 = vld [vmem:[%s5024_s1 + $0x210] sm:$0xff] }
  0xad   : > { %1503 = vmatmul.bf16.gmra.mxu2 %v3101_v40  ;;  %2005 = vmatmul.bf16.gmra.mxu3 %v3381_v41  ;;  %v699_v40 = vld [vmem:[%s4227_s25 + $0x4c] sm:$0xf]  ;;  %v540_v41 = vshrl.u32 %v304_v31, 16  ;;  %v306_v31 = vld [vmem:[%s4227_s25 + $0x60] sm:$0xf] }
  0xae   : > { %v801_v44 = vrot.slane %v699_v40, 5  ;;  %v538_v48 = vrot.slane %v536_v36, 5  ;;  %2779 = vmatpush.bf16.msra.mxu0 %v4022_v37  ;;  %v556_v35 = vshll.u32 %v306_v31, 16  ;;  %v4005_v36 = vld [vmem:[%s5024_s1 + $0x188] sm:$0xff]  ;;  %v560_v40 = vshrl.u32 %v306_v31, 16 }
  0xaf   : > { %v542_v49 = vrot.slane %v540_v41, 4  ;;  %v4013_v37 = vld [vmem:[%s5024_s1 + $0x1c8] sm:$0xff]  ;;  %v701_v41 = vld [vmem:[%s4227_s25 + $0x54] sm:$0xf]  ;;  %2642 = vmatpush.bf16.msra.mxu2 %v4005_v36  ;;  %v3933_v31 = vld [vmem:[#allocation2 + $0xec] sm:$0xf0] }
  0xb0   : > { %v1371_v54 = vpop.f32.mrf.mxu2  ;;  %v1386_v55 = vpop.f32.mrf.mxu3  ;;  %v803_v53 = vrot.slane %v801_v44, 4  ;;  %v802_v3 = vsel %vm4338_vm5, %v800_v42, %v801_v44  ;;  %v4701_v42 = vld [vmem:[%s4227_s25 + $0x64] sm:$0xf]  ;;  %v558_v44 = vrot.slane %v556_v35, 5  ;;  %2711 = vmatpush.bf16.msra.mxu3 %v4013_v37 }
  0xb1   : > { %v4612_v60 = vadd.f32 %v4602_v45, %v1371_v54  ;;  %v4615_v61 = vadd.f32 %v4602_v45, %v1386_v55  ;;  %v4617_v62 = vpop.f32.mrf.mxu0  ;;  %v4619_v63 = vpop.f32.mrf.mxu1  ;;  %v804_v54 = vrot.slane %v4656_v47, 5  ;;  %v534_v55 = vrot.slane %v533_v43, 4  ;;  %884 = vst [vmem:[#allocation2 + $0xe0] sm:$0xf] %v802_v3 }
  0xb2   : > { %v543_v0 = vor.u32 %v542_v49, %v538_v48  ;;  %v552_v43 = vrot.slane %v550_v34, 4  ;;  %v562_v47 = vrot.slane %v560_v40, 4  ;;  %v566_v49 = vshll.u32 %v4701_v42, 16 }
  0xb3   : > { %v805_v4 = vsel %vm4338_vm5, %v803_v53, %v804_v54  ;;  %v539_v7 = vsel %vm4325_vm4, %v534_v55, %v538_v48  ;;  %v807_v48 = vrot.slane %v701_v41, 5  ;;  %v810_v53 = vrot.slane %v4704_v46, 5  ;;  %v4004_v46 = vld [vmem:[%s5024_s1 + $0x180] sm:$0xff] }
  0xb4   : > { %v544_v8 = vrot.slane %v543_v0, 4  ;;  %885 = vst [vmem:[#allocation2 + $0xec] sm:$0xf] %v805_v4  ;;  %v553_v55 = vor.u32 %v552_v43, %v4667_v1  ;;  %v563_v6 = vor.u32 %v562_v47, %v558_v44  ;;  %v1342_v34 = vadd.f32 %v4602_v45, %v4594_v38  ;;  %2643 = vmatpush.bf16.msra.mxu2 %v4004_v46 }
  0xb5   : > { %671 = vst [vmem:[#allocation2 + $0x100] sm:$0xf] %v539_v7  ;;  %v809_v5 = vrot.slane %v807_v48, 4  ;;  %v570_v38 = vshrl.u32 %v4701_v42, 16 }
  0xb6   : > { %v549_v15 = vsel %vm4325_vm4, %v544_v8, %v4667_v1  ;;  %v4021_v1 = vld [vmem:[%s5024_s1 + $0x208] sm:$0xff] }
  0xb7   : > { %672 = vst [vmem:[#allocation2 + $0x10c] sm:$0xf] %v549_v15  ;;  %v811_v15 = vsel %vm4338_vm5, %v809_v5, %v810_v53  ;;  %2780 = vmatpush.bf16.msra.mxu0 %v4021_v1  ;;  %v4749_v5 = vld [vmem:[%s4227_s25 + $0x6c] sm:$0xf] }
  0xb8   : > { %v1373_v13 = vpop.f32.mrf.mxu2  ;;  %v1388_v20 = vpop.f32.mrf.mxu3  ;;  %887 = vst [vmem:[#allocation2 + $0x104] sm:$0xf] %v811_v15  ;;  %v586_v42 = vshll.u32 %v4749_v5, 16  ;;  %v812_v15 = vrot.slane %v810_v53, 4  ;;  %v4012_v53 = vld [vmem:[%s5024_s1 + $0x1c0] sm:$0xff] }
  0xb9   : > { %v4636_v25 = vadd.f32 %v4602_v45, %v1373_v13  ;;  %v4639_v26 = vadd.f32 %v4602_v45, %v1388_v20  ;;  %v4641_v27 = vpop.f32.mrf.mxu0  ;;  %v1361_v28 = vpop.f32.mrf.mxu1  ;;  %v3409_v13 = vor.u32 %v3929_v12, %v3406_v14  ;;  %v3872_v12 = vld [vmem:[#allocation2 + $0xc4] sm:$0xf]  ;;  %v3130_v14 = vld [vmem:[#allocation2 + $0xcc] sm:$0xf0]  ;;  %2712 = vmatpush.bf16.msra.mxu3 %v4012_v53 }
  0xba   : > { %v4645_v32 = vadd.f32 %v4602_v45, %v1361_v28  ;;  %v3133_v37 = vor.u32 %v3872_v12, %v3130_v14 }
  0xbc   : > { %1439 = vmatmul.bf16.gmra.mxu1 %v3109_v23  ;;  %2079 = vmatmul.bf16.gmra.mxu0 %v3397_v24 }
  0xbd   : > { %1508 = vmatmul.bf16.gmra.mxu2 %v3113_v29  ;;  %2010 = vmatmul.bf16.gmra.mxu3 %v3393_v30  ;;  %v3125_v29 = vor.u32 %v3871_v11, %v3124_v9  ;;  %v3405_v30 = vor.u32 %v3930_v17, %v3404_v16  ;;  %v246_v9 = vld [vmem:[%s4227_s25 + $0x60] sm:$0xf]  ;;  %v554_v11 = vrot.slane %v553_v55, 4  ;;  %v564_v16 = vrot.slane %v563_v6, 4 }
  0xbe   : > { %v568_v17 = vrot.slane %v566_v49, 5  ;;  %276 = vst [vmem:[#allocation2 + $0x120] sm:$0xf] %v246_v9  ;;  %v1344_v9 = vadd.f32 %v4602_v45, %v4617_v62 }
  0xc0   : > { %v1376_v51 = vpop.f32.mrf.mxu2  ;;  %v1391_v52 = vpop.f32.mrf.mxu3 }
  0xc1   : > { %v4660_v56 = vadd.f32 %v4602_v45, %v1376_v51  ;;  %v4663_v57 = vadd.f32 %v4602_v45, %v1391_v52  ;;  %v4665_v58 = vpop.f32.mrf.mxu0  ;;  %v1363_v59 = vpop.f32.mrf.mxu1  ;;  %v806_v52 = vrot.slane %v804_v54, 4  ;;  %v3961_v54 = vld [vmem:[%s5024_s1 + $0x148] sm:$0xff] }
  0xc2   : > { %v4670_v2 = vadd.f32 %v4602_v45, %v1363_v59  ;;  %2116 = vmatpush.bf16.msra.mxu1 %v3961_v54  ;;  %v572_v54 = vrot.slane %v570_v38, 4  ;;  %v3430_v38 = vld [vmem:[#allocation2 + $0x108] sm:$0xf0] }
  0xc3   : > { %v808_v8 = vsel %vm4338_vm5, %v806_v52, %v807_v48 }
  0xc4   : > { %886 = vst [vmem:[#allocation2 + $0xf8] sm:$0xf] %v808_v8 }
  0xc8   : > { %v1378_v19 = vpop.f32.mrf.mxu2  ;;  %v1393_v21 = vpop.f32.mrf.mxu3 }
  0xc9   : > { %v4682_v20 = vadd.f32 %v4602_v45, %v1378_v19  ;;  %v4685_v23 = vadd.f32 %v4602_v45, %v1393_v21  ;;  %v4687_v24 = vpop.f32.mrf.mxu0  ;;  %v1366_v28 = vpop.f32.mrf.mxu1  ;;  %v3136_v19 = vld [vmem:[#allocation2 + $0xc8] sm:$0xf]  ;;  %v3874_v21 = vld [vmem:[#allocation2 + $0xd0] sm:$0xf0] }
  0xca   : > { %v4691_v33 = vadd.f32 %v4602_v45, %v1366_v28  ;;  %v3418_v28 = vld [vmem:[#allocation2 + $0xf0] sm:$0xf0]  ;;  %v3137_v47 = vor.u32 %v3874_v21, %v3136_v19  ;;  %v573_v21 = vor.u32 %v572_v54, %v568_v17 }
  0xcc   : > { %1444 = vmatmul.bf16.gmra.mxu1 %v3121_v22  ;;  %2084 = vmatmul.bf16.gmra.mxu0 %v3409_v13  ;;  %v559_v22 = vsel %vm4325_vm4, %v554_v11, %v558_v44  ;;  %v3932_v13 = vld [vmem:[#allocation2 + $0xe8] sm:$0xf]  ;;  %v4754_v11 = vld [vmem:[%s4227_s25 + $0x60] sm:$0xf] }
  0xcd   : > { %1513 = vmatmul.bf16.gmra.mxu2 %v3125_v29  ;;  %2015 = vmatmul.bf16.gmra.mxu3 %v3405_v30  ;;  %v569_v29 = vsel %vm4325_vm4, %v564_v16, %v568_v17  ;;  %v3416_v30 = vld [vmem:[#allocation2 + $0xe4] sm:$0xf]  ;;  %673 = vst [vmem:[#allocation2 + $0x118] sm:$0xf] %v559_v22  ;;  %v3421_v40 = vor.u32 %v3932_v13, %v3418_v28  ;;  %v5027_v19 = vrot.slane %v4754_v11, 5 }
  0xce   : > { %674 = vst [vmem:[#allocation2 + $0x124] sm:$0xf] %v569_v29  ;;  %v3417_v49 = vor.u32 %v3933_v31, %v3416_v30  ;;  %v4764_v30 = vrot.slane %v586_v42, 5 }
  0xd0   : > { %v1381_v50 = vpop.f32.mrf.mxu2  ;;  %v1396_v51 = vpop.f32.mrf.mxu3 }
  0xd1   : > { %v4710_v59 = vadd.f32 %v4602_v45, %v1381_v50  ;;  %v4713_v0 = vadd.f32 %v4602_v45, %v1396_v51  ;;  %v4715_v3 = vpop.f32.mrf.mxu0  ;;  %v1368_v4 = vpop.f32.mrf.mxu1  ;;  %v308_v50 = vld [vmem:[%s4227_s25 + $0x68] sm:$0xf] }
  0xd2   : > { %v4718_v7 = vadd.f32 %v4602_v45, %v1368_v4  ;;  %v576_v52 = vshll.u32 %v308_v50, 16  ;;  %v580_v55 = vshrl.u32 %v308_v50, 16  ;;  %v703_v4 = vld [vmem:[%s4227_s25 + $0x5c] sm:$0xf] }
  0xd3   : > { %v813_v6 = vrot.slane %v703_v4, 5  ;;  %v3936_v4 = vld [vmem:[#allocation2 + $0x104] sm:$0xf0] }
  0xd4   : > { %v578_v1 = vrot.slane %v576_v52, 5  ;;  %v582_v8 = vrot.slane %v580_v55, 4  ;;  %v3428_v55 = vld [vmem:[#allocation2 + $0xfc] sm:$0xf] }
  0xd5   : > { %v815_v16 = vrot.slane %v813_v6, 4  ;;  %v814_v17 = vsel %vm4338_vm5, %v812_v15, %v813_v6  ;;  %v1347_v6 = vadd.f32 %v4602_v45, %v4641_v27  ;;  %v4020_v27 = vld [vmem:[%s5024_s1 + $0x200] sm:$0xff] }
  0xd6   : > { %v583_v29 = vor.u32 %v582_v8, %v578_v1  ;;  %888 = vst [vmem:[#allocation2 + $0x110] sm:$0xf] %v814_v17  ;;  %2781 = vmatpush.bf16.msra.mxu0 %v4020_v27 }
  0xd8   : > { %v1383_v35 = vpop.f32.mrf.mxu2  ;;  %v1398_v36 = vpop.f32.mrf.mxu3 }
  0xd9   : > { %v4740_v41 = vadd.f32 %v4602_v45, %v1383_v35  ;;  %v4743_v43 = vadd.f32 %v4602_v45, %v1398_v36  ;;  %v1410_v44 = vpop.f32.mrf.mxu1  ;;  %v2050_v48 = vpop.f32.mrf.mxu0  ;;  %v247_v35 = vld [vmem:[%s4227_s25 + $0x64] sm:$0xf]  ;;  %v574_v36 = vrot.slane %v573_v21, 4  ;;  %v3429_v21 = vor.u32 %v3936_v4, %v3428_v55 }
  0xda   : > { %v1411_v51 = vadd.f32 %v1410_v44, %v1342_v34  ;;  %v817_v34 = vsel %vm4338_vm5, %v815_v16, %v5027_v19  ;;  %v248_v44 = vld [vmem:[%s4227_s25 + $0x68] sm:$0xf]  ;;  %277 = vst [vmem:[#allocation2 + $0x12c] sm:$0xf] %v247_v35 }
  0xdb   : > { %889 = vst [vmem:[#allocation2 + $0x11c] sm:$0xf] %v817_v34  ;;  %v579_v50 = vsel %vm4325_vm4, %v574_v36, %v578_v1 }
  0xdc   : > { %1449 = vmatmul.bf16.gmra.mxu1 %v3133_v37  ;;  %2089 = vmatmul.bf16.gmra.mxu0 %v3421_v40  ;;  %v3875_v37 = vld [vmem:[#allocation2 + $0xdc] sm:$0xf]  ;;  %v3142_v40 = vld [vmem:[#allocation2 + $0xe4] sm:$0xf0]  ;;  %278 = vst [vmem:[#allocation2 + $0x138] sm:$0xf] %v248_v44 }
  0xdd   : > { %1518 = vmatmul.bf16.gmra.mxu2 %v3137_v47  ;;  %2020 = vmatmul.bf16.gmra.mxu3 %v3417_v49  ;;  %v3148_v47 = vld [vmem:[#allocation2 + $0xe0] sm:$0xf]  ;;  %v3877_v49 = vld [vmem:[#allocation2 + $0xe8] sm:$0xf0]  ;;  %675 = vst [vmem:[#allocation2 + $0x130] sm:$0xf] %v579_v50 }
  0xde   : > { %v3149_v16 = vor.u32 %v3877_v49, %v3148_v47  ;;  %v3160_v44 = vld [vmem:[#allocation2 + $0xf8] sm:$0xf]  ;;  %v3442_v47 = vld [vmem:[#allocation2 + $0x120] sm:$0xf0]  ;;  %v3440_v50 = vld [vmem:[#allocation2 + $0x114] sm:$0xf] }
  0xdf   : > { %v3880_v49 = vld [vmem:[#allocation2 + $0x100] sm:$0xf0] }
  0xe0   : > { %v1479_v12 = vpop.f32.mrf.mxu2  ;;  %v1981_v14 = vpop.f32.mrf.mxu3 }
  0xe1   : > { %v4760_v22 = vadd.f32 %v1479_v12, %v1411_v51  ;;  %v4762_v13 = vadd.f32 %v2050_v48, %v1981_v14  ;;  %v1412_v62 = vpop.f32.mrf.mxu1  ;;  %v2052_v28 = vpop.f32.mrf.mxu0  ;;  %v584_v48 = vrot.slane %v583_v29, 4  ;;  %v3935_v51 = vld [vmem:[#allocation2 + $0x100] sm:$0xf] }
  0xe2   : > { %v1413_v31 = vadd.f32 %v1412_v62, %v1344_v9  ;;  %v3145_v9 = vor.u32 %v3875_v37, %v3142_v40  ;;  %v3433_v42 = vor.u32 %v3935_v51, %v3430_v38  ;;  %v3960_v29 = vld [vmem:[%s5024_s1 + $0x140] sm:$0xff]  ;;  %v3878_v37 = vld [vmem:[#allocation2 + $0xf4] sm:$0xf] }
  0xe3   : > { %v589_v52 = vsel %vm4325_vm4, %v584_v48, %v4764_v30  ;;  %2117 = vmatpush.bf16.msra.mxu1 %v3960_v29  ;;  %v3154_v40 = vld [vmem:[#allocation2 + $0xfc] sm:$0xf0]  ;;  %v3938_v48 = vld [vmem:[#allocation2 + $0x118] sm:$0xf] }
  0xe4   : > { %676 = vst [vmem:[#allocation2 + $0x13c] sm:$0xf] %v589_v52  ;;  %v3939_v51 = vld [vmem:[#allocation2 + $0x11c] sm:$0xf0]  ;;  %v3157_v55 = vor.u32 %v3878_v37, %v3154_v40  ;;  %v3445_v4 = vor.u32 %v3938_v48, %v3442_v47  ;;  %v3883_v40 = vld [vmem:[#allocation2 + $0x118] sm:$0xf0] }
  0xe5   : > { %v3942_v48 = vld [vmem:[#allocation2 + $0x134] sm:$0xf0] }
  0xe8   : > { %v1481_v54 = vpop.f32.mrf.mxu2  ;;  %v1983_v8 = vpop.f32.mrf.mxu3 }
  0xe9   : > { %v4787_v1 = vadd.f32 %v1481_v54, %v1413_v31  ;;  %v4789_v12 = vadd.f32 %v2052_v28, %v1983_v8  ;;  %v1415_v14 = vpop.f32.mrf.mxu1  ;;  %v2055_v15 = vpop.f32.mrf.mxu0  ;;  %v1349_v28 = vadd.f32 %v4602_v45, %v4665_v58  ;;  %v1352_v58 = vadd.f32 %v4602_v45, %v4687_v24 }
  0xea   : > { %v1416_v62 = vadd.f32 %v1415_v14, %v1347_v6  ;;  %v3441_v14 = vor.u32 %v3939_v51, %v3440_v50  ;;  %v1354_v24 = vadd.f32 %v4602_v45, %v4715_v3  ;;  %v1357_v3 = vadd.f32 %v4602_v45, %v4596_v39 }
  0xeb   : > { %v3454_v37 = vld [vmem:[#allocation2 + $0x138] sm:$0xf0]  ;;  %v1359_v39 = vadd.f32 %v4602_v45, %v4619_v63 }
  0xec   : > { %1454 = vmatmul.bf16.gmra.mxu1 %v3145_v9  ;;  %2094 = vmatmul.bf16.gmra.mxu0 %v3433_v42  ;;  %v3161_v42 = vor.u32 %v3880_v49, %v3160_v44  ;;  %v3452_v44 = vld [vmem:[#allocation2 + $0x12c] sm:$0xf] }
  0xed   : > { %1523 = vmatmul.bf16.gmra.mxu2 %v3149_v16  ;;  %2025 = vmatmul.bf16.gmra.mxu3 %v3429_v21 }
  0xf0   : > { %v1484_v31 = vpop.f32.mrf.mxu2  ;;  %v1986_v46 = vpop.f32.mrf.mxu3 }
  0xf1   : > { %v4799_v53 = vadd.f32 %v1484_v31, %v1416_v62  ;;  %v4801_v17 = vadd.f32 %v2055_v15, %v1986_v46  ;;  %v1417_v34 = vpop.f32.mrf.mxu1  ;;  %v2057_v35 = vpop.f32.mrf.mxu0  ;;  %v3881_v46 = vld [vmem:[#allocation2 + $0x10c] sm:$0xf] }
  0xf2   : > { %v1418_v36 = vadd.f32 %v1417_v34, %v1349_v28  ;;  %v3166_v34 = vld [vmem:[#allocation2 + $0x114] sm:$0xf0] }
  0xf3   : > { %v3169_v50 = vor.u32 %v3881_v46, %v3166_v34  ;;  %v3608_v46 = vld [vmem:[#allocation2 + $0x48] sm:$0xf]  ;;  %v3616_v34 = vld [vmem:[#allocation2 + $0x50] sm:$0xf] }
  0xf8   : > { %v1486_v38 = vpop.f32.mrf.mxu2  ;;  %v1988_v52 = vpop.f32.mrf.mxu3 }
  0xf9   : > { %v4805_v6 = vadd.f32 %v1486_v38, %v1418_v36  ;;  %v4807_v54 = vadd.f32 %v2057_v35, %v1988_v52  ;;  %v1420_v8 = vpop.f32.mrf.mxu1  ;;  %v2060_v9 = vpop.f32.mrf.mxu0  ;;  %v3172_v35 = vld [vmem:[#allocation2 + $0x110] sm:$0xf] }
  0xfa   : > { %v1421_v15 = vadd.f32 %v1420_v8, %v1352_v58  ;;  %v3941_v36 = vld [vmem:[#allocation2 + $0x130] sm:$0xf]  ;;  %v3453_v8 = vor.u32 %v3942_v48, %v3452_v44 }
  0xfb   : > { %v3457_v51 = vor.u32 %v3941_v36, %v3454_v37  ;;  %v3969_v36 = vld [vmem:[#allocation2 + $0x50] sm:$0xf0]  ;;  %v3968_v37 = vld [vmem:[#allocation2 + $0x4c] sm:$0xf] }
  0xfc   : > { %1459 = vmatmul.bf16.gmra.mxu1 %v3157_v55  ;;  %2099 = vmatmul.bf16.gmra.mxu0 %v3445_v4  ;;  %v3173_v4 = vor.u32 %v3883_v40, %v3172_v35  ;;  %v3970_v35 = vld [vmem:[#allocation2 + $0x58] sm:$0xf0]  ;;  %v3610_v40 = vld [vmem:[#allocation2 + $0x54] sm:$0xf0] }
  0xfd   : > { %1528 = vmatmul.bf16.gmra.mxu2 %v3161_v42  ;;  %2030 = vmatmul.bf16.gmra.mxu3 %v3441_v14  ;;  %v3617_v63 = vor.u32 %v3970_v35, %v3616_v34  ;;  %v3971_v34 = vld [vmem:[#allocation2 + $0x64] sm:$0xf]  ;;  %v3622_v35 = vld [vmem:[#allocation2 + $0x6c] sm:$0xf0] }
 0x100   : > { %v1489_v16 = vpop.f32.mrf.mxu2  ;;  %v1991_v21 = vpop.f32.mrf.mxu3 }
 0x101   : > { %v4811_v62 = vadd.f32 %v1489_v16, %v1421_v15  ;;  %v4813_v29 = vadd.f32 %v2060_v9, %v1991_v21  ;;  %v1422_v27 = vpop.f32.mrf.mxu1  ;;  %v2062_v28 = vpop.f32.mrf.mxu0 }
 0x102   : > { %v1423_v31 = vadd.f32 %v1422_v27, %v1354_v24 }
 0x108   : > { %v1491_v47 = vpop.f32.mrf.mxu2  ;;  %v1993_v49 = vpop.f32.mrf.mxu3 }
 0x109   : > { %v4817_v58 = vadd.f32 %v1491_v47, %v1423_v31  ;;  %v4819_v38 = vadd.f32 %v2062_v28, %v1993_v49  ;;  %v1425_v52 = vpop.f32.mrf.mxu1  ;;  %v2065_v55 = vpop.f32.mrf.mxu0  ;;  %v3328_v28 = vld [vmem:[#allocation2 + $0x2c] sm:$0xf]  ;;  %v3910_v31 = vld [vmem:[#allocation2 + $0x34] sm:$0xf0] }
 0x10a   : > { %v1426_v9 = vadd.f32 %v1425_v52, %v1357_v3  ;;  %v3329_v45 = vor.u32 %v3910_v31, %v3328_v28  ;;  %v3613_v52 = vor.u32 %v3968_v37, %v3610_v40  ;;  %v3620_v28 = vld [vmem:[#allocation2 + $0x60] sm:$0xf]  ;;  %v3628_v31 = vld [vmem:[#allocation2 + $0x68] sm:$0xf] }
 0x10c   : > { %1464 = vmatmul.bf16.gmra.mxu1 %v3169_v50  ;;  %2104 = vmatmul.bf16.gmra.mxu0 %v3457_v51  ;;  %v3609_v51 = vor.u32 %v3969_v36, %v3608_v46  ;;  %v3973_v46 = vld [vmem:[#allocation2 + $0x70] sm:$0xf0] }
 0x10d   : > { %1533 = vmatmul.bf16.gmra.mxu2 %v3173_v4  ;;  %2035 = vmatmul.bf16.gmra.mxu3 %v3453_v8 }
 0x110   : > { %v1494_v42 = vpop.f32.mrf.mxu2  ;;  %v1996_v14 = vpop.f32.mrf.mxu3 }
 0x111   : > { %v4823_v15 = vadd.f32 %v1494_v42, %v1426_v9  ;;  %v4825_v24 = vadd.f32 %v2065_v55, %v1996_v14  ;;  %v1427_v16 = vpop.f32.mrf.mxu1  ;;  %v2067_v21 = vpop.f32.mrf.mxu0 }
 0x112   : > { %v1428_v27 = vadd.f32 %v1427_v16, %v1359_v39 }
 0x118   : > { %v1496_v44 = vpop.f32.mrf.mxu2  ;;  %v1998_v48 = vpop.f32.mrf.mxu3 }
 0x119   : > { %v4827_v3 = vadd.f32 %v1496_v44, %v1428_v27  ;;  %v4829_v47 = vadd.f32 %v2067_v21, %v1998_v48  ;;  %v1430_v49 = vpop.f32.mrf.mxu1  ;;  %v2070_v50 = vpop.f32.mrf.mxu0  ;;  %v3340_v21 = vld [vmem:[#allocation2 + $0x44] sm:$0xf]  ;;  %v3913_v27 = vld [vmem:[#allocation2 + $0x4c] sm:$0xf0]  ;;  %v3629_v44 = vor.u32 %v3973_v46, %v3628_v31  ;;  %v3640_v31 = vld [vmem:[#allocation2 + $0x80] sm:$0xf] }
 0x11a   : > { %v1431_v55 = vadd.f32 %v1430_v49, %v4645_v32  ;;  %v3972_v32 = vld [vmem:[#allocation2 + $0x68] sm:$0xf0]  ;;  %v3341_v40 = vor.u32 %v3913_v27, %v3340_v21  ;;  %v3352_v21 = vld [vmem:[#allocation2 + $0x5c] sm:$0xf]  ;;  %v3916_v27 = vld [vmem:[#allocation2 + $0x64] sm:$0xf0] }
 0x11b   : > { %v3976_v46 = vld [vmem:[#allocation2 + $0x88] sm:$0xf0] }
 0x11c   : > { %2118 = vmatmul.bf16.vlgmr.msra.gmra.mxu1 %v3329_v45  ;;  %2782 = vmatmul.bf16.vlgmr.msra.gmra.mxu0 %v3617_v63 }
 0x11d   : > { %2644 = vmatmul.bf16.vlgmr.msra.gmra.mxu2 %v3609_v51  ;;  %2713 = vmatmul.bf16.vlgmr.msra.gmra.mxu3 %v3613_v52 }
 0x120   : > { %v1499_v4 = vpop.f32.mrf.mxu2  ;;  %v2001_v8 = vpop.f32.mrf.mxu3 }
 0x121   : > { %v4832_v9 = vadd.f32 %v1499_v4, %v1431_v55  ;;  %v4834_v39 = vadd.f32 %v2070_v50, %v2001_v8  ;;  %v1432_v42 = vpop.f32.mrf.mxu1  ;;  %v2072_v14 = vpop.f32.mrf.mxu0  ;;  %v3621_v50 = vor.u32 %v3972_v32, %v3620_v28  ;;  %v3632_v28 = vld [vmem:[#allocation2 + $0x78] sm:$0xf]  ;;  %v3974_v32 = vld [vmem:[#allocation2 + $0x7c] sm:$0xf] }
 0x122   : > { %v1433_v16 = vadd.f32 %v1432_v42, %v4670_v2  ;;  %v3625_v2 = vor.u32 %v3971_v34, %v3622_v35  ;;  %v3634_v34 = vld [vmem:[#allocation2 + $0x84] sm:$0xf0] }
 0x128   : > { %v1501_v36 = vpop.f32.mrf.mxu2  ;;  %v2003_v37 = vpop.f32.mrf.mxu3 }
 0x129   : > { %v4837_v48 = vadd.f32 %v1501_v36, %v1433_v16  ;;  %v4839_v45 = vadd.f32 %v2072_v14, %v2003_v37  ;;  %v1435_v63 = vpop.f32.mrf.mxu1  ;;  %v2075_v49 = vpop.f32.mrf.mxu0  ;;  %v3353_v37 = vor.u32 %v3916_v27, %v3352_v21 }
 0x12a   : > { %v1436_v51 = vadd.f32 %v1435_v63, %v4691_v33  ;;  %v3975_v33 = vld [vmem:[#allocation2 + $0x80] sm:$0xf0] }
 0x12c   : > { %2123 = vmatmul.bf16.gmra.mxu1 %v3341_v40  ;;  %2787 = vmatmul.bf16.gmra.mxu0 %v3629_v44  ;;  %v3641_v40 = vor.u32 %v3976_v46, %v3640_v31  ;;  %v3364_v31 = vld [vmem:[#allocation2 + $0x74] sm:$0xf]  ;;  %v3919_v46 = vld [vmem:[#allocation2 + $0x7c] sm:$0xf0] }
 0x12d   : > { %2649 = vmatmul.bf16.gmra.mxu2 %v3621_v50  ;;  %2718 = vmatmul.bf16.gmra.mxu3 %v3625_v2  ;;  %v3633_v2 = vor.u32 %v3975_v33, %v3632_v28  ;;  %v3644_v28 = vld [vmem:[#allocation2 + $0x90] sm:$0xf]  ;;  %v3652_v33 = vld [vmem:[#allocation2 + $0x98] sm:$0xf] }
 0x130   : > { %v1504_v52 = vpop.f32.mrf.mxu2  ;;  %v2006_v55 = vpop.f32.mrf.mxu3 }
 0x131   : > { %v4842_v4 = vadd.f32 %v1504_v52, %v1436_v51  ;;  %v4844_v8 = vadd.f32 %v2075_v49, %v2006_v55  ;;  %v1437_v42 = vpop.f32.mrf.mxu1  ;;  %v2077_v16 = vpop.f32.mrf.mxu0 }
 0x132   : > { %v1438_v14 = vadd.f32 %v1437_v42, %v4718_v7  ;;  %v3637_v7 = vor.u32 %v3974_v32, %v3634_v34  ;;  %v3979_v32 = vld [vmem:[#allocation2 + $0xa0] sm:$0xf0]  ;;  %v3977_v34 = vld [vmem:[#allocation2 + $0x94] sm:$0xf] }
 0x138   : > { %v1506_v35 = vpop.f32.mrf.mxu2  ;;  %v2008_v36 = vpop.f32.mrf.mxu3 }
 0x139   : > { %v4847_v44 = vadd.f32 %v1506_v35, %v1438_v14  ;;  %v4849_v63 = vadd.f32 %v2077_v16, %v2008_v36  ;;  %v1440_v49 = vpop.f32.mrf.mxu1  ;;  %v2080_v50 = vpop.f32.mrf.mxu0  ;;  %v3646_v35 = vld [vmem:[#allocation2 + $0x9c] sm:$0xf0] }
 0x13a   : > { %v1441_v51 = vadd.f32 %v1440_v49, %v4612_v60  ;;  %v3978_v60 = vld [vmem:[#allocation2 + $0x98] sm:$0xf0]  ;;  %v3653_v49 = vor.u32 %v3979_v32, %v3652_v33  ;;  %v3376_v33 = vld [vmem:[#allocation2 + $0x8c] sm:$0xf]  ;;  %v3922_v32 = vld [vmem:[#allocation2 + $0x94] sm:$0xf0] }
 0x13c   : > { %2128 = vmatmul.bf16.gmra.mxu1 %v3353_v37  ;;  %2792 = vmatmul.bf16.gmra.mxu0 %v3641_v40  ;;  %v3365_v40 = vor.u32 %v3919_v46, %v3364_v31 }
 0x13d   : > { %2654 = vmatmul.bf16.gmra.mxu2 %v3633_v2  ;;  %2723 = vmatmul.bf16.gmra.mxu3 %v3637_v7 }
 0x140   : > { %v1509_v52 = vpop.f32.mrf.mxu2  ;;  %v2011_v55 = vpop.f32.mrf.mxu3 }
 0x141   : > { %v4852_v42 = vadd.f32 %v1509_v52, %v1441_v51  ;;  %v4854_v21 = vadd.f32 %v2080_v50, %v2011_v55  ;;  %v1442_v14 = vpop.f32.mrf.mxu1  ;;  %v2082_v27 = vpop.f32.mrf.mxu0  ;;  %v3645_v52 = vor.u32 %v3978_v60, %v3644_v28  ;;  %v3656_v28 = vld [vmem:[#allocation2 + $0xa8] sm:$0xf]  ;;  %v3664_v60 = vld [vmem:[#allocation2 + $0xb0] sm:$0xf] }
 0x142   : > { %v1443_v16 = vadd.f32 %v1442_v14, %v4636_v25  ;;  %v3649_v25 = vor.u32 %v3977_v34, %v3646_v35  ;;  %v3982_v34 = vld [vmem:[#allocation2 + $0xb8] sm:$0xf0]  ;;  %v3980_v35 = vld [vmem:[#allocation2 + $0xac] sm:$0xf] }
 0x143   : > { %5032 = vst [vmem:[#allocation3_spill] sm:$0xff] %v4852_v42 }
 0x148   : > { %v1511_v36 = vpop.f32.mrf.mxu2  ;;  %v2013_v37 = vpop.f32.mrf.mxu3 }
 0x149   : > { %v4857_v2 = vadd.f32 %v1511_v36, %v1443_v16  ;;  %v4859_v50 = vadd.f32 %v2082_v27, %v2013_v37  ;;  %v1445_v7 = vpop.f32.mrf.mxu1  ;;  %v2085_v51 = vpop.f32.mrf.mxu0  ;;  %v3658_v36 = vld [vmem:[#allocation2 + $0xb4] sm:$0xf0] }
 0x14a   : > { %v1446_v55 = vadd.f32 %v1445_v7, %v4660_v56  ;;  %v3981_v56 = vld [vmem:[#allocation2 + $0xb0] sm:$0xf0]  ;;  %v3665_v7 = vor.u32 %v3982_v34, %v3664_v60  ;;  %v3388_v60 = vld [vmem:[#allocation2 + $0xa4] sm:$0xf]  ;;  %v3925_v34 = vld [vmem:[#allocation2 + $0xac] sm:$0xf0] }
 0x14c   : > { %2133 = vmatmul.bf16.gmra.mxu1 %v3365_v40  ;;  %2797 = vmatmul.bf16.gmra.mxu0 %v3653_v49  ;;  %v3377_v49 = vor.u32 %v3922_v32, %v3376_v33 }
 0x14d   : > { %2659 = vmatmul.bf16.gmra.mxu2 %v3645_v52  ;;  %2728 = vmatmul.bf16.gmra.mxu3 %v3649_v25 }
 0x150   : > { %v1514_v14 = vpop.f32.mrf.mxu2  ;;  %v2016_v19 = vpop.f32.mrf.mxu3 }
 0x151   : > { %v4862_v42 = vadd.f32 %v1514_v14, %v1446_v55  ;;  %v4864_v31 = vadd.f32 %v2085_v51, %v2016_v19  ;;  %v1447_v16 = vpop.f32.mrf.mxu1  ;;  %v2087_v46 = vpop.f32.mrf.mxu0  ;;  %v3657_v55 = vor.u32 %v3981_v56, %v3656_v28  ;;  %v3668_v28 = vld [vmem:[#allocation2 + $0xc0] sm:$0xf]  ;;  %v3676_v56 = vld [vmem:[#allocation2 + $0xc8] sm:$0xf] }
 0x152   : > { %v1448_v27 = vadd.f32 %v1447_v16, %v4682_v20  ;;  %v3661_v20 = vor.u32 %v3980_v35, %v3658_v36  ;;  %v3985_v35 = vld [vmem:[#allocation2 + $0xd0] sm:$0xf0]  ;;  %v3983_v36 = vld [vmem:[#allocation2 + $0xc4] sm:$0xf] }
 0x153   : > { %5033 = vst [vmem:[#allocation4_spill] sm:$0xff] %v4862_v42 }
 0x154   : > { %5034 = vst [vmem:[#allocation5_spill] sm:$0xff] %v4864_v31 }
 0x158   : > { %v1516_v37 = vpop.f32.mrf.mxu2  ;;  %v2018_v40 = vpop.f32.mrf.mxu3 }
 0x159   : > { %v4867_v52 = vadd.f32 %v1516_v37, %v1448_v27  ;;  %v4869_v19 = vadd.f32 %v2087_v46, %v2018_v40  ;;  %v1450_v51 = vpop.f32.mrf.mxu1  ;;  %v2090_v25 = vpop.f32.mrf.mxu0  ;;  %v3670_v37 = vld [vmem:[#allocation2 + $0xcc] sm:$0xf0] }
 0x15a   : > { %v1451_v14 = vadd.f32 %v1450_v51, %v4710_v59  ;;  %v3984_v59 = vld [vmem:[#allocation2 + $0xc8] sm:$0xf0]  ;;  %v3677_v51 = vor.u32 %v3985_v35, %v3676_v56  ;;  %v3400_v56 = vld [vmem:[#allocation2 + $0xbc] sm:$0xf]  ;;  %v3928_v35 = vld [vmem:[#allocation2 + $0xc4] sm:$0xf0] }
 0x15c   : > { %2138 = vmatmul.bf16.gmra.mxu1 %v3377_v49  ;;  %2802 = vmatmul.bf16.gmra.mxu0 %v3665_v7  ;;  %v3389_v7 = vor.u32 %v3925_v34, %v3388_v60 }
 0x15d   : > { %2664 = vmatmul.bf16.gmra.mxu2 %v3657_v55  ;;  %2733 = vmatmul.bf16.gmra.mxu3 %v3661_v20 }
 0x160   : > { %v1519_v16 = vpop.f32.mrf.mxu2  ;;  %v2021_v42 = vpop.f32.mrf.mxu3 }
 0x161   : > { %v4872_v31 = vadd.f32 %v1519_v16, %v1451_v14  ;;  %v4874_v33 = vadd.f32 %v2090_v25, %v2021_v42  ;;  %v1452_v27 = vpop.f32.mrf.mxu1  ;;  %v2092_v32 = vpop.f32.mrf.mxu0  ;;  %v3669_v14 = vor.u32 %v3984_v59, %v3668_v28  ;;  %v3680_v28 = vld [vmem:[#allocation2 + $0xd8] sm:$0xf]  ;;  %v3688_v59 = vld [vmem:[#allocation2 + $0xe0] sm:$0xf] }
 0x162   : > { %v1453_v46 = vadd.f32 %v1452_v27, %v4740_v41  ;;  %v3673_v41 = vor.u32 %v3983_v36, %v3670_v37  ;;  %v3988_v36 = vld [vmem:[#allocation2 + $0xe8] sm:$0xf0]  ;;  %v3986_v37 = vld [vmem:[#allocation2 + $0xdc] sm:$0xf] }
 0x163   : > { %5035 = vst [vmem:[#allocation6_spill] sm:$0xff] %v4872_v31 }
 0x164   : > { %5036 = vst [vmem:[#allocation7_spill] sm:$0xff] %v4874_v33 }
 0x168   : > { %v1521_v40 = vpop.f32.mrf.mxu2  ;;  %v2023_v49 = vpop.f32.mrf.mxu3 }
 0x169   : > { %v4877_v55 = vadd.f32 %v1521_v40, %v1453_v46  ;;  %v4879_v42 = vadd.f32 %v2092_v32, %v2023_v49  ;;  %v1455_v25 = vpop.f32.mrf.mxu1  ;;  %v2095_v20 = vpop.f32.mrf.mxu0  ;;  %v3682_v40 = vld [vmem:[#allocation2 + $0xe4] sm:$0xf0] }
 0x16a   : > { %v1456_v16 = vadd.f32 %v1455_v25, %v4615_v61  ;;  %v3987_v61 = vld [vmem:[#allocation2 + $0xe0] sm:$0xf0]  ;;  %v3689_v25 = vor.u32 %v3988_v36, %v3688_v59 }
 0x16b   : > { %5037 = vst [vmem:[#allocation8_spill] sm:$0xff] %v4877_v55 }
 0x16c   : > { %2143 = vmatmul.bf16.gmra.mxu1 %v3389_v7  ;;  %2807 = vmatmul.bf16.gmra.mxu0 %v3677_v51  ;;  %v3401_v51 = vor.u32 %v3928_v35, %v3400_v56 }
 0x16d   : > { %2669 = vmatmul.bf16.gmra.mxu2 %v3669_v14  ;;  %2738 = vmatmul.bf16.gmra.mxu3 %v3673_v41  ;;  %v3681_v41 = vor.u32 %v3987_v61, %v3680_v28 }
 0x170   : > { %v1524_v27 = vpop.f32.mrf.mxu2  ;;  %v2026_v31 = vpop.f32.mrf.mxu3 }
 0x171   : > { %v4882_v33 = vadd.f32 %v1524_v27, %v1456_v16  ;;  %v4884_v60 = vadd.f32 %v2095_v20, %v2026_v31  ;;  %v1457_v46 = vpop.f32.mrf.mxu1  ;;  %v2097_v34 = vpop.f32.mrf.mxu0  ;;  %v3685_v16 = vor.u32 %v3986_v37, %v3682_v40 }
 0x172   : > { %v1458_v32 = vadd.f32 %v1457_v46, %v4639_v26  ;;  %v705_v46 = vld [vmem:[%s4227_s25 + $0x64] sm:$0xf] }
 0x173   : > { %5038 = vst [vmem:[#allocation9_spill] sm:$0xff] %v4882_v33  ;;  %v819_v33 = vrot.slane %v705_v46, 5 }
 0x174   : > { %5039 = vst [vmem:[#allocation10_spill] sm:$0xff] %v4884_v60  ;;  %v706_v60 = vld [vmem:[%s4227_s25 + $0x68] sm:$0xf] }
 0x175   : > { %v822_v59 = vrot.slane %v706_v60, 5  ;;  %v3700_v60 = vld [vmem:[#allocation2 + $0xf8] sm:$0xf] }
 0x178   : > { %v1526_v49 = vpop.f32.mrf.mxu2  ;;  %v2028_v7 = vpop.f32.mrf.mxu3 }
 0x179   : > { %v4887_v31 = vadd.f32 %v1526_v49, %v1458_v32  ;;  %v4889_v20 = vadd.f32 %v2097_v34, %v2028_v7  ;;  %v1460_v14 = vpop.f32.mrf.mxu1  ;;  %v2100_v26 = vpop.f32.mrf.mxu0  ;;  %v5040_v32 = vrot.slane %v4754_v11, 5  ;;  %v821_v34 = vrot.slane %v819_v33, 4  ;;  %v3412_v7 = vld [vmem:[#allocation2 + $0xd4] sm:$0xf]  ;;  %v3931_v11 = vld [vmem:[#allocation2 + $0xdc] sm:$0xf0] }
 0x17a   : > { %v1461_v27 = vadd.f32 %v1460_v14, %v4663_v57  ;;  %v3989_v14 = vld [vmem:[#allocation2 + $0xf4] sm:$0xf] }
 0x17b   : > { %v818_v35 = vrot.slane %v5040_v32, 4  ;;  %v823_v49 = vsel %vm4338_vm5, %v821_v34, %v822_v59 }
 0x17c   : > { %2148 = vmatmul.bf16.gmra.mxu1 %v3401_v51  ;;  %2812 = vmatmul.bf16.gmra.mxu0 %v3689_v25  ;;  %891 = vst [vmem:[#allocation2 + $0x134] sm:$0xf] %v823_v49  ;;  %v3692_v51 = vld [vmem:[#allocation2 + $0xf0] sm:$0xf]  ;;  %v3990_v25 = vld [vmem:[#allocation2 + $0xf8] sm:$0xf0] }
 0x17d   : > { %2674 = vmatmul.bf16.gmra.mxu2 %v3681_v41  ;;  %2743 = vmatmul.bf16.gmra.mxu3 %v3685_v16  ;;  %v820_v40 = vsel %vm4338_vm5, %v818_v35, %v819_v33  ;;  %v590_v41 = vshrl.u32 %v4749_v5, 16  ;;  %v3413_v33 = vor.u32 %v3931_v11, %v3412_v7  ;;  %v3693_v34 = vor.u32 %v3990_v25, %v3692_v51  ;;  %v310_v49 = vld [vmem:[%s4227_s25 + $0x70] sm:$0xf] }
 0x17e   : > { %890 = vst [vmem:[#allocation2 + $0x128] sm:$0xf] %v820_v40  ;;  %v708_v11 = vld [vmem:[%s4227_s25 + $0x70] sm:$0xf]  ;;  %v824_v25 = vrot.slane %v822_v59, 4 }
 0x17f   : > { %v592_v5 = vrot.slane %v590_v41, 4 }
 0x180   : > { %v1529_v55 = vpop.f32.mrf.mxu2  ;;  %v2031_v56 = vpop.f32.mrf.mxu3 }
 0x181   : > { %v4896_v36 = vadd.f32 %v1529_v55, %v1461_v27  ;;  %v4898_v28 = vadd.f32 %v2100_v26, %v2031_v56  ;;  %v1462_v61 = vpop.f32.mrf.mxu1  ;;  %v2102_v57 = vpop.f32.mrf.mxu0  ;;  %v3991_v55 = vld [vmem:[#allocation2 + $0x100] sm:$0xf0]  ;;  %v3694_v26 = vld [vmem:[#allocation2 + $0xfc] sm:$0xf0]  ;;  %v593_v7 = vor.u32 %v592_v5, %v4764_v30  ;;  %v249_v30 = vld [vmem:[%s4227_s25 + $0x6c] sm:$0xf] }
 0x182   : > { %v1463_v37 = vadd.f32 %v1462_v61, %v4685_v23  ;;  %v3701_v27 = vor.u32 %v3991_v55, %v3700_v60  ;;  %v3697_v61 = vor.u32 %v3989_v14, %v3694_v26  ;;  %279 = vst [vmem:[#allocation2 + $0x144] sm:$0xf] %v249_v30  ;;  %v3712_v5 = vld [vmem:[#allocation2 + $0x110] sm:$0xf] }
 0x183   : > { %5041 = vst [vmem:[#allocation11_spill] sm:$0xff] %v4896_v36  ;;  %v707_v36 = vld [vmem:[%s4227_s25 + $0x6c] sm:$0xf] }
 0x188   : > { %v1531_v16 = vpop.f32.mrf.mxu2  ;;  %v2033_v23 = vpop.f32.mrf.mxu3 }
 0x189   : > { %v4906_v46 = vadd.f32 %v1531_v16, %v1463_v37  ;;  %v4908_v56 = vadd.f32 %v2102_v57, %v2033_v23  ;;  %v1465_v32 = vpop.f32.mrf.mxu1  ;;  %v2105_v35 = vpop.f32.mrf.mxu0  ;;  %v596_v37 = vshll.u32 %v310_v49, 16  ;;  %v825_v57 = vrot.slane %v707_v36, 5 }
 0x18a   : > { %v1466_v40 = vadd.f32 %v1465_v32, %v4713_v0  ;;  %v594_v16 = vrot.slane %v593_v7, 4  ;;  %v3994_v7 = vld [vmem:[#allocation2 + $0x118] sm:$0xf0] }
 0x18b   : > { %5042 = vst [vmem:[#allocation12_spill] sm:$0xff] %v4906_v46  ;;  %v598_v51 = vrot.slane %v596_v37, 5  ;;  %v827_v14 = vrot.slane %v825_v57, 4  ;;  %v826_v32 = vsel %vm4338_vm5, %v824_v25, %v825_v57  ;;  %v3706_v37 = vld [vmem:[#allocation2 + $0x114] sm:$0xf0]  ;;  %v3713_v57 = vor.u32 %v3994_v7, %v3712_v5 }
 0x18c   : > { %2153 = vmatmul.bf16.gmra.mxu1 %v3413_v33  ;;  %2817 = vmatmul.bf16.gmra.mxu0 %v3701_v27  ;;  %v828_v33 = vrot.slane %v708_v11, 5  ;;  %892 = vst [vmem:[#allocation2 + $0x140] sm:$0xf] %v826_v32  ;;  %v709_v5 = vld [vmem:[%s4227_s25 + $0x74] sm:$0xf] }
 0x18d   : > { %2679 = vmatmul.bf16.gmra.mxu2 %v3693_v34  ;;  %2748 = vmatmul.bf16.gmra.mxu3 %v3697_v61  ;;  %v599_v36 = vsel %vm4325_vm4, %v594_v16, %v598_v51  ;;  %v3424_v34 = vld [vmem:[#allocation2 + $0xec] sm:$0xf]  ;;  %v3934_v61 = vld [vmem:[#allocation2 + $0xf4] sm:$0xf0] }
 0x18e   : > { %v829_v59 = vsel %vm4338_vm5, %v827_v14, %v828_v33  ;;  %677 = vst [vmem:[#allocation2 + $0x148] sm:$0xf] %v599_v36  ;;  %v710_v7 = vld [vmem:[%s4227_s25 + $0x78] sm:$0x1] }
 0x18f   : > { %893 = vst [vmem:[#allocation2 + $0x14c] sm:$0xf] %v829_v59 }
 0x190   : > { %v1534_v60 = vpop.f32.mrf.mxu2  ;;  %v2036_v55 = vpop.f32.mrf.mxu3 }
 0x191   : > { %v4915_v0 = vadd.f32 %v1534_v60, %v1466_v40  ;;  %v4917_v26 = vadd.f32 %v2105_v35, %v2036_v55  ;;  %v1467_v41 = vpop.f32.mrf.mxu1  ;;  %v2107_v23 = vpop.f32.mrf.mxu0  ;;  %v3704_v35 = vld [vmem:[#allocation2 + $0x108] sm:$0xf]  ;;  %v3993_v40 = vld [vmem:[#allocation2 + $0x110] sm:$0xf0]  ;;  %v3425_v55 = vor.u32 %v3934_v61, %v3424_v34 }
 0x192   : > { %v1468_v27 = vadd.f32 %v1467_v41, %v4743_v43  ;;  %v3992_v43 = vld [vmem:[#allocation2 + $0x10c] sm:$0xf]  ;;  %v3705_v30 = vor.u32 %v3993_v40, %v3704_v35 }
 0x193   : > { %5043 = vst [vmem:[#allocation13_spill] sm:$0xff] %v4915_v0  ;;  %v3709_v36 = vor.u32 %v3992_v43, %v3706_v37  ;;  %v311_v0 = vld [vmem:[%s4227_s25 + $0x74] sm:$0xf] }
 0x194   : > { %5044 = vst [vmem:[#allocation14_spill] sm:$0xff] %v4917_v26  ;;  %v600_v26 = vshrl.u32 %v310_v49, 16  ;;  %v606_v59 = vshll.u32 %v311_v0, 16  ;;  %v831_v49 = vrot.slane %v709_v5, 5 }
 0x196   : > { %v602_v34 = vrot.slane %v600_v26, 4  ;;  %v608_v61 = vrot.slane %v606_v59, 5 }
 0x198   : > { %v1536_v11 = vpop.f32.mrf.mxu2  ;;  %v2038_v60 = vpop.f32.mrf.mxu3 }
 0x199   : > { %v4927_v16 = vadd.f32 %v1536_v11, %v1468_v27  ;;  %v4929_v25 = vadd.f32 %v2107_v23, %v2038_v60  ;;  %v2119_v14 = vpop.f32.mrf.mxu1  ;;  %v2783_v41 = vpop.f32.mrf.mxu0  ;;  %v610_v27 = vshrl.u32 %v311_v0, 16  ;;  %v312_v23 = vld [vmem:[%s4227_s25 + $0x78] sm:$0x1]  ;;  %v830_v60 = vrot.slane %v828_v33, 4  ;;  %v3996_v33 = vld [vmem:[#allocation2 + $0x128] sm:$0xf0] }
 0x19a   : > { %v2120_v32 = vadd.f32 %v2119_v14, %v4762_v13  ;;  %v616_v40 = vshll.u32 %v312_v23, 16  ;;  %v603_v13 = vor.u32 %v602_v34, %v598_v51  ;;  %v833_v14 = vrot.slane %v831_v49, 4  ;;  %v3937_v23 = vld [vmem:[#allocation2 + $0x10c] sm:$0xf0] }
 0x19b   : > { %v612_v35 = vrot.slane %v610_v27, 4  ;;  %v3436_v27 = vld [vmem:[#allocation2 + $0x104] sm:$0xf] }
 0x19c   : > { %v4934_v46 = vadd.f32 %v2120_v32, %v4760_v22  ;;  %2158 = vmatmul.bf16.gmra.mxu1 %v3425_v55  ;;  %2822 = vmatmul.bf16.gmra.mxu0 %v3713_v57  ;;  %v618_v11 = vrot.slane %v616_v40, 5  ;;  %v604_v57 = vrot.slane %v603_v13, 4  ;;  %v251_v32 = vld [vmem:[%s4227_s25 + $0x74] sm:$0xf]  ;;  %v3724_v13 = vld [vmem:[#allocation2 + $0x128] sm:$0xf] }
 0x19d   : > { %2684 = vmatmul.bf16.gmra.mxu2 %v3705_v30  ;;  %2753 = vmatmul.bf16.gmra.mxu3 %v3709_v36  ;;  %v613_v22 = vor.u32 %v612_v35, %v608_v61  ;;  %v834_v30 = vrot.slane %v710_v7, 5  ;;  %v250_v36 = vld [vmem:[%s4227_s25 + $0x70] sm:$0xf]  ;;  %v3716_v35 = vld [vmem:[#allocation2 + $0x120] sm:$0xf]  ;;  %s4124_s25 = smul.u32 96, %s5062_s12 }
 0x19e   : > { %280 = vst [vmem:[#allocation2 + $0x150] sm:$0xf] %v250_v36  ;;  %v609_v51 = vsel %vm4325_vm4, %v604_v57, %v608_v61  ;;  %v3997_v7 = vld [vmem:[#allocation2 + $0x130] sm:$0xf0]  ;;  %v3995_v61 = vld [vmem:[#allocation2 + $0x124] sm:$0xf] }
 0x19f   : > { %v614_v59 = vrot.slane %v613_v22, 4  ;;  %281 = vst [vmem:[#allocation2 + $0x15c] sm:$0xf] %v251_v32  ;;  %v835_v22 = vsel %vm4338_vm5, %v833_v14, %v834_v30  ;;  %v3725_v10 = vor.u32 %v3997_v7, %v3724_v13  ;;  %s4958_s9 = scalar_lea.vmem %s5026_s3, %s4124_s25  ;;  %v3998_v13 = vld [vmem:[#allocation2 + $0x13c] sm:$0xf] }
 0x1a0   : > { %v2645_v43 = vpop.f32.mrf.mxu2  ;;  %v2714_v37 = vpop.f32.mrf.mxu3  ;;  %678 = vst [vmem:[#allocation2 + $0x154] sm:$0xf] %v609_v51  ;;  %v3730_v7 = vld [vmem:[#allocation2 + $0x144] sm:$0xf0] }
 0x1a1   : > { %v2121_v55 = vpop.f32.mrf.mxu1  ;;  %v2785_v0 = vpop.f32.mrf.mxu0  ;;  %v619_v40 = vsel %vm4325_vm4, %v614_v59, %v618_v11  ;;  %v2715_v5 = vadd.f32 %v2714_v37, %v2645_v43  ;;  %895 = vst [vmem:[#allocation2 + $0x164] sm:$0xf] %v835_v22  ;;  %v3717_v37 = vor.u32 %v3996_v33, %v3716_v35  ;;  %v3728_v33 = vld [vmem:[#allocation2 + $0x138] sm:$0xf] }
 0x1a2   : > { %v2122_v26 = vadd.f32 %v2121_v55, %v4789_v12  ;;  %v832_v12 = vsel %vm4338_vm5, %v830_v60, %v831_v49  ;;  %v3718_v55 = vld [vmem:[#allocation2 + $0x12c] sm:$0xf0]  ;;  %679 = vst [vmem:[#allocation2 + $0x160] sm:$0xf] %v619_v40  ;;  %v3736_v40 = vld [vmem:[#allocation2 + $0x140] sm:$0xf] }
 0x1a3   : > { %894 = vst [vmem:[#allocation2 + $0x158] sm:$0xf] %v832_v12  ;;  %v2784_v11 = vadd.f32 %v2783_v41, %v2715_v5  ;;  %v3721_v60 = vor.u32 %v3995_v61, %v3718_v55  ;;  %v4000_v12 = vld [vmem:[#allocation2 + $0x148] sm:$0xf0]  ;;  %v3999_v5 = vld [vmem:[#allocation2 + $0x140] sm:$0xf0] }
 0x1a4   : > { %v2180_v34 = vadd.f32 %v2122_v26, %v4787_v1  ;;  %v3437_v26 = vor.u32 %v3937_v23, %v3436_v27 }
 0x1a5   : > { %v2843_v32 = vadd.f32 %v2784_v11, %v4934_v46  ;;  %v3448_v46 = vld [vmem:[#allocation2 + $0x11c] sm:$0xf]  ;;  %v3729_v11 = vor.u32 %v3999_v5, %v3728_v33 }
 0x1a8   : > { %v2647_v1 = vpop.f32.mrf.mxu2  ;;  %v2716_v57 = vpop.f32.mrf.mxu3 }
 0x1a9   : > { %v2717_v36 = vadd.f32 %v2716_v57, %v2647_v1  ;;  %v2124_v49 = vpop.f32.mrf.mxu1  ;;  %v2788_v43 = vpop.f32.mrf.mxu0  ;;  %v3737_v1 = vor.u32 %v4000_v12, %v3736_v40 }
 0x1aa   : > { %v2125_v18 = vadd.f32 %v2124_v49, %v4801_v17 }
 0x1ab   : > { %v2786_v14 = vadd.f32 %v2785_v0, %v2717_v36 }
 0x1ac   : > { %v2181_v30 = vadd.f32 %v2125_v18, %v4799_v53  ;;  %2163 = vmatmul.bf16.gmra.mxu1 %v3437_v26  ;;  %2827 = vmatmul.bf16.gmra.mxu0 %v3725_v10 }
 0x1ad   : > { %v2844_v59 = vadd.f32 %v2786_v14, %v2180_v34  ;;  %2689 = vmatmul.bf16.gmra.mxu2 %v3717_v37  ;;  %2758 = vmatmul.bf16.gmra.mxu3 %v3721_v60  ;;  %v3940_v34 = vld [vmem:[#allocation2 + $0x124] sm:$0xf0] }
 0x1ae   : > { %v3449_v55 = vor.u32 %v3940_v34, %v3448_v46  ;;  %v4003_v46 = vld [vmem:[#allocation2 + $0x160] sm:$0xf0]  ;;  %v3742_v34 = vld [vmem:[#allocation2 + $0x15c] sm:$0xf0] }
 0x1af   : > { %v4031_v41 = vpack.c.bf16 %v2844_v59, %v2843_v32 }
 0x1b0   : > { %v2650_v27 = vpop.f32.mrf.mxu2  ;;  %v2719_v23 = vpop.f32.mrf.mxu3 }
 0x1b1   : > { %4032 = vst [vmem:[%s4958_s9] sm:$0xff] %v4031_v41   ;;  %v2126_v17 = vpop.f32.mrf.mxu1  ;;  %v2790_v0 = vpop.f32.mrf.mxu0  ;;  %v2720_v35 = vadd.f32 %v2719_v23, %v2650_v27 }
 0x1b2   : > { %v2127_v53 = vadd.f32 %v2126_v17, %v4807_v54  ;;  %v3943_v17 = vld [vmem:[#allocation2 + $0x13c] sm:$0xf0] }
 0x1b3   : > { %v2789_v57 = vadd.f32 %v2788_v43, %v2720_v35 }
 0x1b4   : > { %v2182_v51 = vadd.f32 %v2127_v53, %v4805_v6  ;;  %v3733_v6 = vor.u32 %v3998_v13, %v3730_v7  ;;  %v3748_v53 = vld [vmem:[#allocation2 + $0x158] sm:$0xf] }
 0x1b5   : > { %v2845_v60 = vadd.f32 %v2789_v57, %v2181_v30  ;;  %v4002_v30 = vld [vmem:[#allocation2 + $0x158] sm:$0xf0]  ;;  %v3749_v12 = vor.u32 %v4003_v46, %v3748_v53 }
 0x1b8   : > { %v2652_v22 = vpop.f32.mrf.mxu2  ;;  %v2721_v61 = vpop.f32.mrf.mxu3 }
 0x1b9   : > { %v2722_v26 = vadd.f32 %v2721_v61, %v2652_v22  ;;  %v2129_v10 = vpop.f32.mrf.mxu1  ;;  %v2793_v54 = vpop.f32.mrf.mxu0 }
 0x1ba   : > { %v2130_v36 = vadd.f32 %v2129_v10, %v4813_v29  ;;  %v3460_v29 = vld [vmem:[#allocation2 + $0x134] sm:$0xf] }
 0x1bb   : > { %v2791_v49 = vadd.f32 %v2790_v0, %v2722_v26  ;;  %v3461_v40 = vor.u32 %v3943_v17, %v3460_v29 }
 0x1bc   : > { %v2183_v37 = vadd.f32 %v2130_v36, %v4811_v62  ;;  %2168 = vmatmul.bf16.gmra.mxu1 %v3449_v55  ;;  %2832 = vmatmul.bf16.gmra.mxu0 %v3737_v1  ;;  %v3740_v62 = vld [vmem:[#allocation2 + $0x150] sm:$0xf] }
 0x1bd   : > { %v2846_v18 = vadd.f32 %v2791_v49, %v2182_v51  ;;  %2694 = vmatmul.bf16.gmra.mxu2 %v3729_v11  ;;  %2763 = vmatmul.bf16.gmra.mxu3 %v3733_v6  ;;  %v4001_v51 = vld [vmem:[#allocation2 + $0x154] sm:$0xf]  ;;  %v3741_v22 = vor.u32 %v4002_v30, %v3740_v62 }
 0x1bf   : > { %v4036_v14 = vpack.c.bf16 %v2846_v18, %v2845_v60 }
 0x1c0   : > { %v2655_v32 = vpop.f32.mrf.mxu2  ;;  %v2724_v43 = vpop.f32.mrf.mxu3 }
 0x1c1   : > { %4088 = vst [vmem:[%s4958_s9 + $0x8] sm:$0xff] %v4036_v14   ;;  %v2131_v59 = vpop.f32.mrf.mxu1  ;;  %v2795_v41 = vpop.f32.mrf.mxu0  ;;  %v2725_v0 = vadd.f32 %v2724_v43, %v2655_v32 }
 0x1c2   : > { %v2132_v27 = vadd.f32 %v2131_v59, %v4819_v38 }
 0x1c3   : > { %v2794_v5 = vadd.f32 %v2793_v54, %v2725_v0 }
 0x1c4   : > { %v2184_v23 = vadd.f32 %v2132_v27, %v4817_v58  ;;  %v3745_v58 = vor.u32 %v4001_v51, %v3742_v34 }
 0x1c5   : > { %v2847_v57 = vadd.f32 %v2794_v5, %v2183_v37 }
 0x1c8   : > { %v2657_v35 = vpop.f32.mrf.mxu2  ;;  %v2726_v33 = vpop.f32.mrf.mxu3 }
 0x1c9   : > { %v2727_v13 = vadd.f32 %v2726_v33, %v2657_v35  ;;  %v2134_v7 = vpop.f32.mrf.mxu1  ;;  %v2798_v38 = vpop.f32.mrf.mxu0 }
 0x1ca   : > { %v2135_v61 = vadd.f32 %v2134_v7, %v4825_v24 }
 0x1cb   : > { %v2796_v55 = vadd.f32 %v2795_v41, %v2727_v13 }
 0x1cc   : > { %v2185_v1 = vadd.f32 %v2135_v61, %v4823_v15  ;;  %2173 = vmatmul.bf16.gmra.mxu1 %v3461_v40  ;;  %2837 = vmatmul.bf16.gmra.mxu0 %v3749_v12 }
 0x1cd   : > { %v2848_v26 = vadd.f32 %v2796_v55, %v2184_v23  ;;  %2699 = vmatmul.bf16.gmra.mxu2 %v3741_v22  ;;  %2768 = vmatmul.bf16.gmra.mxu3 %v3745_v58 }
 0x1cf   : > { %v4041_v10 = vpack.c.bf16 %v2848_v26, %v2847_v57 }
 0x1d0   : > { %v2660_v11 = vpop.f32.mrf.mxu2  ;;  %v2729_v54 = vpop.f32.mrf.mxu3 }
 0x1d1   : > { %4089 = vst [vmem:[%s4958_s9 + $0x10] sm:$0xff] %v4041_v10   ;;  %v2136_v6 = vpop.f32.mrf.mxu1  ;;  %v2800_v36 = vpop.f32.mrf.mxu0  ;;  %v2730_v24 = vadd.f32 %v2729_v54, %v2660_v11 }
 0x1d2   : > { %v2137_v49 = vadd.f32 %v2136_v6, %v4829_v47 }
 0x1d3   : > { %v2799_v14 = vadd.f32 %v2798_v38, %v2730_v24 }
 0x1d4   : > { %v2186_v60 = vadd.f32 %v2137_v49, %v4827_v3 }
 0x1d5   : > { %v2849_v23 = vadd.f32 %v2799_v14, %v2185_v1 }
 0x1d8   : > { %v2662_v18 = vpop.f32.mrf.mxu2  ;;  %v2731_v15 = vpop.f32.mrf.mxu3 }
 0x1d9   : > { %v2732_v32 = vadd.f32 %v2731_v15, %v2662_v18  ;;  %v2139_v37 = vpop.f32.mrf.mxu1  ;;  %v2803_v43 = vpop.f32.mrf.mxu0 }
 0x1da   : > { %v2140_v59 = vadd.f32 %v2139_v37, %v4834_v39 }
 0x1db   : > { %v2801_v41 = vadd.f32 %v2800_v36, %v2732_v32  ;;  %v5045_v36 = vld [vmem:[#allocation3_spill] sm:$0xff] }
 0x1dc   : > { %v2187_v27 = vadd.f32 %v2140_v59, %v4832_v9 }
 0x1dd   : > { %v2850_v29 = vadd.f32 %v2801_v41, %v2186_v60 }
 0x1df   : > { %v4046_v17 = vpack.c.bf16 %v2850_v29, %v2849_v23 }
 0x1e0   : > { %v2665_v0 = vpop.f32.mrf.mxu2  ;;  %v2734_v47 = vpop.f32.mrf.mxu3 }
 0x1e1   : > { %4090 = vst [vmem:[%s4958_s9 + $0x18] sm:$0xff] %v4046_v17   ;;  %v2141_v3 = vpop.f32.mrf.mxu1  ;;  %v2805_v62 = vpop.f32.mrf.mxu0  ;;  %v2735_v30 = vadd.f32 %v2734_v47, %v2665_v0  ;;  %v5046_v17 = vld [vmem:[#allocation5_spill] sm:$0xff] }
 0x1e2   : > { %v2142_v53 = vadd.f32 %v2141_v3, %v4839_v45  ;;  %v5047_v3 = vld [vmem:[#allocation4_spill] sm:$0xff] }
 0x1e3   : > { %v2804_v39 = vadd.f32 %v2803_v43, %v2735_v30 }
 0x1e4   : > { %v2188_v46 = vadd.f32 %v2142_v53, %v4837_v48 }
 0x1e5   : > { %v2851_v13 = vadd.f32 %v2804_v39, %v2187_v27 }
 0x1e8   : > { %v2667_v51 = vpop.f32.mrf.mxu2  ;;  %v2736_v34 = vpop.f32.mrf.mxu3 }
 0x1e9   : > { %v2737_v35 = vadd.f32 %v2736_v34, %v2667_v51  ;;  %v2144_v33 = vpop.f32.mrf.mxu1  ;;  %v2808_v9 = vpop.f32.mrf.mxu0 }
 0x1ea   : > { %v2145_v40 = vadd.f32 %v2144_v33, %v4844_v8 }
 0x1eb   : > { %v2806_v12 = vadd.f32 %v2805_v62, %v2737_v35 }
 0x1ec   : > { %v2189_v5 = vadd.f32 %v2145_v40, %v4842_v4 }
 0x1ed   : > { %v2852_v7 = vadd.f32 %v2806_v12, %v2188_v46 }
 0x1ef   : > { %v4051_v38 = vpack.c.bf16 %v2852_v7, %v2851_v13 }
 0x1f0   : > { %v2670_v22 = vpop.f32.mrf.mxu2  ;;  %v2739_v45 = vpop.f32.mrf.mxu3 }
 0x1f1   : > { %4091 = vst [vmem:[%s4958_s9 + $0x20] sm:$0xff] %v4051_v38   ;;  %v2146_v48 = vpop.f32.mrf.mxu1  ;;  %v2810_v58 = vpop.f32.mrf.mxu0  ;;  %v2740_v1 = vadd.f32 %v2739_v45, %v2670_v22  ;;  %v5048_v38 = vld [vmem:[#allocation7_spill] sm:$0xff] }
 0x1f2   : > { %v2147_v61 = vadd.f32 %v2146_v48, %v4849_v63  ;;  %v5049_v48 = vld [vmem:[#allocation6_spill] sm:$0xff] }
 0x1f3   : > { %v2809_v8 = vadd.f32 %v2808_v9, %v2740_v1 }
 0x1f4   : > { %v2190_v55 = vadd.f32 %v2147_v61, %v4847_v44 }
 0x1f5   : > { %v2853_v60 = vadd.f32 %v2809_v8, %v2189_v5 }
 0x1f8   : > { %v2672_v57 = vpop.f32.mrf.mxu2  ;;  %v2741_v26 = vpop.f32.mrf.mxu3 }
 0x1f9   : > { %v2742_v10 = vadd.f32 %v2741_v26, %v2672_v57  ;;  %v2149_v11 = vpop.f32.mrf.mxu1  ;;  %v2813_v4 = vpop.f32.mrf.mxu0 }
 0x1fa   : > { %v2150_v54 = vadd.f32 %v2149_v11, %v4854_v21 }
 0x1fb   : > { %v2811_v6 = vadd.f32 %v2810_v58, %v2742_v10  ;;  %v5050_v10 = vld [vmem:[#allocation8_spill] sm:$0xff] }
 0x1fc   : > { %v2191_v49 = vadd.f32 %v2150_v54, %v5045_v36 }
 0x1fd   : > { %v2854_v24 = vadd.f32 %v2811_v6, %v2190_v55 }
 0x1ff   : > { %v4056_v18 = vpack.c.bf16 %v2854_v24, %v2853_v60 }
 0x200   : > { %v2675_v15 = vpop.f32.mrf.mxu2  ;;  %v2744_v63 = vpop.f32.mrf.mxu3 }
 0x201   : > { %4092 = vst [vmem:[%s4958_s9 + $0x28] sm:$0xff] %v4056_v18   ;;  %v2151_v44 = vpop.f32.mrf.mxu1  ;;  %v2815_v14 = vpop.f32.mrf.mxu0  ;;  %v2745_v43 = vadd.f32 %v2744_v63, %v2675_v15  ;;  %v5051_v18 = vld [vmem:[#allocation10_spill] sm:$0xff] }
 0x202   : > { %v2152_v32 = vadd.f32 %v2151_v44, %v4859_v50  ;;  %v5052_v44 = vld [vmem:[#allocation9_spill] sm:$0xff] }
 0x203   : > { %v2814_v21 = vadd.f32 %v2813_v4, %v2745_v43 }
 0x204   : > { %v2192_v37 = vadd.f32 %v2152_v32, %v4857_v2 }
 0x205   : > { %v2855_v53 = vadd.f32 %v2814_v21, %v2191_v49 }
 0x208   : > { %v2677_v59 = vpop.f32.mrf.mxu2  ;;  %v2746_v41 = vpop.f32.mrf.mxu3 }
 0x209   : > { %v2747_v27 = vadd.f32 %v2746_v41, %v2677_v59  ;;  %v2154_v23 = vpop.f32.mrf.mxu1  ;;  %v2818_v29 = vpop.f32.mrf.mxu0 }
 0x20a   : > { %v2155_v0 = vadd.f32 %v2154_v23, %v5046_v17 }
 0x20b   : > { %v2816_v47 = vadd.f32 %v2815_v14, %v2747_v27 }
 0x20c   : > { %v2193_v62 = vadd.f32 %v2155_v0, %v5047_v3 }
 0x20d   : > { %v2856_v46 = vadd.f32 %v2816_v47, %v2192_v37 }
 0x20f   : > { %v4061_v30 = vpack.c.bf16 %v2856_v46, %v2855_v53 }
 0x210   : > { %v2680_v51 = vpop.f32.mrf.mxu2  ;;  %v2749_v50 = vpop.f32.mrf.mxu3 }
 0x211   : > { %4093 = vst [vmem:[%s4958_s9 + $0x30] sm:$0xff] %v4061_v30   ;;  %v2156_v2 = vpop.f32.mrf.mxu1  ;;  %v2820_v34 = vpop.f32.mrf.mxu0  ;;  %v2750_v33 = vadd.f32 %v2749_v50, %v2680_v51  ;;  %v5053_v51 = vld [vmem:[#allocation11_spill] sm:$0xff] }
 0x212   : > { %v2157_v39 = vadd.f32 %v2156_v2, %v4869_v19 }
 0x213   : > { %v2819_v12 = vadd.f32 %v2818_v29, %v2750_v33 }
 0x214   : > { %v2194_v35 = vadd.f32 %v2157_v39, %v4867_v52 }
 0x215   : > { %v2857_v61 = vadd.f32 %v2819_v12, %v2193_v62 }
 0x218   : > { %v2682_v9 = vpop.f32.mrf.mxu2  ;;  %v2751_v40 = vpop.f32.mrf.mxu3 }
 0x219   : > { %v2752_v5 = vadd.f32 %v2751_v40, %v2682_v9  ;;  %v2159_v13 = vpop.f32.mrf.mxu1  ;;  %v2823_v7 = vpop.f32.mrf.mxu0  ;;  %v5054_v9 = vld [vmem:[#allocation12_spill] sm:$0xff] }
 0x21a   : > { %v2160_v22 = vadd.f32 %v2159_v13, %v5048_v38 }
 0x21b   : > { %v2821_v45 = vadd.f32 %v2820_v34, %v2752_v5 }
 0x21c   : > { %v2195_v58 = vadd.f32 %v2160_v22, %v5049_v48 }
 0x21d   : > { %v2858_v55 = vadd.f32 %v2821_v45, %v2194_v35  ;;  %v5055_v45 = vld [vmem:[#allocation14_spill] sm:$0xff] }
 0x21f   : > { %v4066_v1 = vpack.c.bf16 %v2858_v55, %v2857_v61  ;;  %v5056_v61 = vld [vmem:[#allocation13_spill] sm:$0xff] }
 0x220   : > { %v2685_v57 = vpop.f32.mrf.mxu2  ;;  %v2754_v19 = vpop.f32.mrf.mxu3 }
 0x221   : > { %4094 = vst [vmem:[%s4958_s9 + $0x38] sm:$0xff] %v4066_v1   ;;  %v2161_v52 = vpop.f32.mrf.mxu1  ;;  %v2825_v26 = vpop.f32.mrf.mxu0  ;;  %v2755_v4 = vadd.f32 %v2754_v19, %v2685_v57 }
 0x222   : > { %v2162_v8 = vadd.f32 %v2161_v52, %v4879_v42 }
 0x223   : > { %v2824_v36 = vadd.f32 %v2823_v7, %v2755_v4 }
 0x224   : > { %v2196_v11 = vadd.f32 %v2162_v8, %v5050_v10 }
 0x225   : > { %v2859_v32 = vadd.f32 %v2824_v36, %v2195_v58 }
 0x228   : > { %v2687_v54 = vpop.f32.mrf.mxu2  ;;  %v2756_v6 = vpop.f32.mrf.mxu3 }
 0x229   : > { %v2757_v49 = vadd.f32 %v2756_v6, %v2687_v54  ;;  %v2164_v60 = vpop.f32.mrf.mxu1  ;;  %v2828_v24 = vpop.f32.mrf.mxu0 }
 0x22a   : > { %v2165_v15 = vadd.f32 %v2164_v60, %v5051_v18 }
 0x22b   : > { %v2826_v63 = vadd.f32 %v2825_v26, %v2757_v49 }
 0x22c   : > { %v2197_v14 = vadd.f32 %v2165_v15, %v5052_v44 }
 0x22d   : > { %v2860_v37 = vadd.f32 %v2826_v63, %v2196_v11 }
 0x22f   : > { %v4071_v43 = vpack.c.bf16 %v2860_v37, %v2859_v32 }
 0x230   : > { %v2690_v59 = vpop.f32.mrf.mxu2  ;;  %v2759_v42 = vpop.f32.mrf.mxu3 }
 0x231   : > { %4095 = vst [vmem:[%s4958_s9 + $0x40] sm:$0xff] %v4071_v43   ;;  %v2166_v41 = vpop.f32.mrf.mxu1  ;;  %v2830_v21 = vpop.f32.mrf.mxu0  ;;  %v2760_v29 = vadd.f32 %v2759_v42, %v2690_v59 }
 0x232   : > { %v2167_v27 = vadd.f32 %v2166_v41, %v4889_v20 }
 0x233   : > { %v2829_v47 = vadd.f32 %v2828_v24, %v2760_v29 }
 0x234   : > { %v2198_v23 = vadd.f32 %v2167_v27, %v4887_v31 }
 0x235   : > { %v2861_v2 = vadd.f32 %v2829_v47, %v2197_v14 }
 0x238   : > { %v2692_v17 = vpop.f32.mrf.mxu2  ;;  %v2761_v0 = vpop.f32.mrf.mxu3 }
 0x239   : > { %v2762_v3 = vadd.f32 %v2761_v0, %v2692_v17  ;;  %v2169_v62 = vpop.f32.mrf.mxu1  ;;  %v2833_v30 = vpop.f32.mrf.mxu0 }
 0x23a   : > { %v2170_v53 = vadd.f32 %v2169_v62, %v4898_v28 }
 0x23b   : > { %v2831_v46 = vadd.f32 %v2830_v21, %v2762_v3 }
 0x23c   : > { %v2199_v50 = vadd.f32 %v2170_v53, %v5053_v51 }
 0x23d   : > { %v2862_v34 = vadd.f32 %v2831_v46, %v2198_v23 }
 0x23f   : > { %v4076_v39 = vpack.c.bf16 %v2862_v34, %v2861_v2 }
 0x240   : > { %v2695_v35 = vpop.f32.mrf.mxu2  ;;  %v2764_v20 = vpop.f32.mrf.mxu3 }
 0x241   : > { %4096 = vst [vmem:[%s4958_s9 + $0x48] sm:$0xff] %v4076_v39   ;;  %v2171_v31 = vpop.f32.mrf.mxu1  ;;  %v2765_v12 = vadd.f32 %v2764_v20, %v2695_v35  ;;  %v2835_v5 = vpop.f32.mrf.mxu0 }
 0x242   : > { %v2172_v33 = vadd.f32 %v2171_v31, %v4908_v56 }
 0x243   : > { %v2834_v7 = vadd.f32 %v2833_v30, %v2765_v12 }
 0x244   : > { %v2200_v40 = vadd.f32 %v2172_v33, %v5054_v9 }
 0x245   : > { %v2863_v1 = vadd.f32 %v2834_v7, %v2199_v50 }
 0x248   : > { %v2697_v13 = vpop.f32.mrf.mxu2  ;;  %v2766_v28 = vpop.f32.mrf.mxu3 }
 0x249   : > { %v2767_v38 = vadd.f32 %v2766_v28, %v2697_v13  ;;  %v2174_v22 = vpop.f32.mrf.mxu1  ;;  %v2838_v52 = vpop.f32.mrf.mxu0 }
 0x24a   : > { %v2175_v48 = vadd.f32 %v2174_v22, %v5055_v45 }
 0x24b   : > { %v2836_v58 = vadd.f32 %v2835_v5, %v2767_v38 }
 0x24c   : > { %v2201_v55 = vadd.f32 %v2175_v48, %v5056_v61 }
 0x24d   : > { %v2864_v57 = vadd.f32 %v2836_v58, %v2200_v40 }
 0x24f   : > { %v4081_v19 = vpack.c.bf16 %v2864_v57, %v2863_v1 }
 0x250   : > { %v2700_v56 = vpop.f32.mrf.mxu2  ;;  %v2769_v26 = vpop.f32.mrf.mxu3 }
 0x251   : > { %4097 = vst [vmem:[%s4958_s9 + $0x50] sm:$0xff] %v4081_v19   ;;  %v2176_v8 = vpop.f32.mrf.mxu1  ;;  %v2770_v4 = vadd.f32 %v2769_v26, %v2700_v56  ;;  %v2840_v60 = vpop.f32.mrf.mxu0 }
 0x252   : > { %v2177_v10 = vadd.f32 %v2176_v8, %v4929_v25 }
 0x253   : > { %v2839_v36 = vadd.f32 %v2838_v52, %v2770_v4 }
 0x254   : > { %v2202_v11 = vadd.f32 %v2177_v10, %v4927_v16 }
 0x255   : > { %v2865_v18 = vadd.f32 %v2839_v36, %v2201_v55 }
 0x258   : > { %v2702_v54 = vpop.f32.mrf.mxu2  ;;  %v2771_v6 = vpop.f32.mrf.mxu3 }
 0x259   : > { %v2772_v49 = vadd.f32 %v2771_v6, %v2702_v54 }
 0x25b   : > { %v2841_v24 = vadd.f32 %v2840_v60, %v2772_v49 }
 0x25d   : > { %v2866_v15 = vadd.f32 %v2841_v24, %v2202_v11 }
 0x25f   : > { %v4086_v63 = vpack.c.bf16 %v2866_v15, %v2865_v18 }
 0x261   : > { %4098 = vst [vmem:[%s4958_s9 + $0x58] sm:$0xff] %v4086_v63  }
 0x262 PF: > { %s13_s14 = sadd.s32 1, %s4172_s14   ;;  %s5057_s12 = smov %s4168_s13 }
 0x263   : > { %p10_p5 = scmp.ge.s32.totalorder %s13_s14, 6   ;;  %s5058_s13 = smov %s5060_s15 }
 0x265   :  { %12 = sbr.rel (!%p10_p5) target bundleno = 2 (0x2), region = 70 }

// kernel: conv_layer_forward.17
= control target key start
LH: loop header
LB: loop body
LE: loop exit
PB: predicated region body
PF: predicated region fallthrough
CT: control target
= control target key end

     0   :  { %s1883_s12 = smov 0   ;;  %s1885_s13 = smov 0   ;;  %s2202_s0 = inlined_call_operand.vmem [shape: bf16[4,40,128], index: 0, kind: input, shape index: {}]   ;;  %s2203_s1 = inlined_call_operand.vmem [shape: bf16[3,384,128], index: 1, kind: input, shape index: {}]   ;;  %s2204_s2 = inlined_call_operand.vmem [shape: f32[1,128], index: 2, kind: input, shape index: {}]   ;;  %s2205_s3 = inlined_call_operand.vmem [shape: bf16[4,16,128], index: 3, kind: output, shape index: {}]  }
   0x1   :  { %s1887_s14 = smov 0  }
   0x2 LB: > { %s25_s15 = sadd.s32 1, %s1857_s13  ;;  %p1291_p0 = scmp.ge.s32.totalorder %s1861_s14, 1  ;;  %s1861_s14 = sphi %s1887_s14, %s13_s14   ;;  %s1857_s13 = sphi %s1885_s13, %s2211_s13   ;;  %s1853_s12 = sphi %s1883_s12, %s2210_s12  }
   0x3   : > { %p27_p1 = scmp.ge.s32.totalorder %s25_s15, 4  ;;  %p168_p2 = scmp.lt.s32.totalorder %s1861_s14, 5 }
   0x5   : > { %s2213_s15 = smov (%p27_p1, %s25_s15), 0  ;;  %p169_p3 = pnand %p1291_p0, %p168_p2 }
   0x6   : > { %p202_p4 = scmp.lt.s32.totalorder (!%p169_p3), %s1853_s12, 3 }
   0x7   : > { %172 = sbr.rel (%p169_p3) target bundleno = 303 (0x12f), region = 32 }
   0xc   : > { %v1729_v0 = vld [vmem:[%s2203_s1 + $0x38] sm:$0xff]  ;;  %v1728_v2 = vld [vmem:[%s2203_s1 + $0x30] sm:$0xff]  ;;  %s2215_s12 = smov (!%p202_p4, %s1853_s12), 3  ;;  %v1727_v8 = vld [vmem:[%s2203_s1 + $0x28] sm:$0xff]  ;;  %vm235_vm0 = vsmask.f32 3328 }
   0xd   : > { %v1737_v1 = vld [vmem:[%s2203_s1 + $0x78] sm:$0xff]  ;;  %540 = vmatpush.bf16.msra.mxu0 %v1729_v0  ;;  %v1736_v3 = vld [vmem:[%s2203_s1 + $0x70] sm:$0xff]  ;;  %v1735_v9 = vld [vmem:[%s2203_s1 + $0x68] sm:$0xff]  ;;  %s1805_s17 = smul.u32 20, %s2215_s12  ;;  %vm236_vm1 = vsmask.f32 7440 }
   0xe   : > { %554 = vmatpush.bf16.msra.mxu1 %v1737_v1  ;;  %v1745_v4 = vld [vmem:[%s2203_s1 + $0xb8] sm:$0xff]  ;;  %v1744_v6 = vld [vmem:[%s2203_s1 + $0xb0] sm:$0xff]  ;;  %v1743_v10 = vld [vmem:[%s2203_s1 + $0xa8] sm:$0xff]  ;;  %vm300_vm2 = vcmask 1042432   ;;  %vm301_vm3 = vcmask 1046532   ;;  %s1718_s4 = sshll.u32 %s2215_s12, 3 }
   0xf   : > { %v1756_v5 = vld [vmem:[%s2203_s1 + $0xf8] sm:$0xff]  ;;  %568 = vmatpush.bf16.msra.mxu2 %v1745_v4  ;;  %v1755_v7 = vld [vmem:[%s2203_s1 + $0xf0] sm:$0xff]  ;;  %v1754_v11 = vld [vmem:[%s2203_s1 + $0xe8] sm:$0xff]  ;;  %s1958_s30 = scalar_lea.vmem %s2202_s0, %s1805_s17  ;;  %s221_s7 = scalar_lea.vmem %s2205_s3, %s1718_s4 }
  0x10   : > { %795 = vmatpush.bf16.msra.mxu3 %v1756_v5  ;;  %v1726_v12 = vld [vmem:[%s2203_s1 + $0x20] sm:$0xff]  ;;  %v1725_v14 = vld [vmem:[%s2203_s1 + $0x18] sm:$0xff]  ;;  %v232_v24 = vld [vmem:[%s1958_s30 + $0x8] sm:$0xf] }
  0x11   : > { %541 = vmatpush.bf16.msra.mxu0 %v1728_v2  ;;  %v1734_v13 = vld [vmem:[%s2203_s1 + $0x60] sm:$0xff]  ;;  %v1733_v17 = vld [vmem:[%s2203_s1 + $0x58] sm:$0xff]  ;;  %v1724_v27 = vld [vmem:[%s2203_s1 + $0x10] sm:$0xff]  ;;  %v258_v31 = vshll.u32 %v232_v24, 16  ;;  %v262_v32 = vshrl.u32 %v232_v24, 16 }
  0x12   : > { %555 = vmatpush.bf16.msra.mxu1 %v1736_v3  ;;  %v1742_v15 = vld [vmem:[%s2203_s1 + $0xa0] sm:$0xff]  ;;  %v1741_v18 = vld [vmem:[%s2203_s1 + $0x98] sm:$0xff]  ;;  %v1732_v28 = vld [vmem:[%s2203_s1 + $0x50] sm:$0xff] }
  0x13   : > { %569 = vmatpush.bf16.msra.mxu2 %v1744_v6  ;;  %v1753_v16 = vld [vmem:[%s2203_s1 + $0xe0] sm:$0xff]  ;;  %v1752_v19 = vld [vmem:[%s2203_s1 + $0xd8] sm:$0xff]  ;;  %v260_v39 = vrot.slane %v258_v31, 5  ;;  %v264_v40 = vrot.slane %v262_v32, 4  ;;  %v292_v41 = vld [vmem:[%s1958_s30 + $0x8] sm:$0xf] }
  0x14   : > { %796 = vmatpush.bf16.msra.mxu3 %v1755_v7  ;;  %v222_v20 = vld [vmem:[%s1958_s30] sm:$0xf]  ;;  %v223_v21 = vld [vmem:[%s1958_s30 + $0x4] sm:$0xf]  ;;  %vm1985_vm4 = vmor %vm300_vm2, %vm301_vm3  ;;  %v308_v48 = vrot.slane %v292_v41, 5 }
  0x15   : > { %542 = vmatpush.bf16.msra.mxu0 %v1727_v8  ;;  %226 = vst [vmem:[#allocation2] sm:$0xf] %v222_v20  ;;  %v230_v22 = vld [vmem:[%s1958_s30] sm:$0xf]  ;;  %v231_v23 = vld [vmem:[%s1958_s30 + $0x4] sm:$0xf]  ;;  %vm1997_vm5 = vmor %vm235_vm0, %vm236_vm1  ;;  %v265_v54 = vor.u32 %v264_v40, %v260_v39 }
  0x16   : > { %556 = vmatpush.bf16.msra.mxu1 %v1735_v9  ;;  %227 = vst [vmem:[#allocation2 + $0xc] sm:$0xf] %v223_v21  ;;  %v239_v25 = vshrl.u32 %v230_v22, 16  ;;  %v242_v26 = vshll.u32 %v230_v22, 16  ;;  %v248_v29 = vshll.u32 %v231_v23, 16  ;;  %v252_v30 = vshrl.u32 %v231_v23, 16 }
  0x17   : > { %570 = vmatpush.bf16.msra.mxu2 %v1743_v10  ;;  %v290_v35 = vld [vmem:[%s1958_s30] sm:$0xe]  ;;  %v291_v36 = vld [vmem:[%s1958_s30 + $0x4] sm:$0xf]  ;;  %v1740_v43 = vld [vmem:[%s2203_s1 + $0x90] sm:$0xff]  ;;  %v310_v0 = vrot.slane %v308_v48, 4 }
  0x18   : > { %797 = vmatpush.bf16.msra.mxu3 %v1754_v11  ;;  %v241_v33 = vrot.slane %v239_v25, 4  ;;  %v244_v34 = vrot.slane %v242_v26, 5  ;;  %v250_v37 = vrot.slane %v248_v29, 5  ;;  %v254_v38 = vrot.slane %v252_v30, 4  ;;  %v1751_v44 = vld [vmem:[%s2203_s1 + $0xd0] sm:$0xff]  ;;  %v1723_v51 = vld [vmem:[%s2203_s1 + $0x8] sm:$0xff] }
  0x19   : > { %543 = vmatpush.bf16.msra.mxu0 %v1726_v12  ;;  %v1295_v46 = vrot.slane %v290_v35, 9  ;;  %v305_v47 = vrot.slane %v291_v36, 5  ;;  %v1731_v52 = vld [vmem:[%s2203_s1 + $0x48] sm:$0xff]  ;;  %v1722_v58 = vld [vmem:[%s2203_s1] sm:$0xff]  ;;  %v1764_v1 = vld [vmem:[%s2203_s1 + $0x138] sm:$0xff]  ;;  %v266_v9 = vrot.slane %v265_v54, 4 }
  0x1a   : > { %557 = vmatpush.bf16.msra.mxu1 %v1734_v13  ;;  %v245_v45 = vor.u32 %v244_v34, %v241_v33  ;;  %v255_v50 = vor.u32 %v254_v38, %v250_v37  ;;  %v1730_v59 = vld [vmem:[%s2203_s1 + $0x40] sm:$0xff]  ;;  %v1739_v60 = vld [vmem:[%s2203_s1 + $0x88] sm:$0xff]  ;;  %v1772_v2 = vld [vmem:[%s2203_s1 + $0x178] sm:$0xff] }
  0x1b   : > { %571 = vmatpush.bf16.msra.mxu2 %v1742_v15  ;;  %v306_v55 = vsel %vm1985_vm4, %v1295_v46, %v305_v47  ;;  %v307_v56 = vrot.slane %v305_v47, 4  ;;  %v1750_v61 = vld [vmem:[%s2203_s1 + $0xc8] sm:$0xff]  ;;  %v1738_v7 = vld [vmem:[%s2203_s1 + $0x80] sm:$0xff]  ;;  %v1763_v24 = vld [vmem:[%s2203_s1 + $0x130] sm:$0xff] }
  0x1c   : > { %798 = vmatpush.bf16.msra.mxu3 %v1753_v16  ;;  %v246_v53 = vrot.slane %v245_v45, 4  ;;  %v256_v57 = vrot.slane %v255_v50, 4  ;;  %320 = vst [vmem:[#allocation2 + $0x8] sm:$0xf] %v306_v55  ;;  %v1298_v3 = vld [vmem:[#allocation2] sm:$0xf] }
  0x1d   : > { %544 = vmatpush.bf16.msra.mxu0 %v1725_v14  ;;  %v309_v63 = vsel %vm1985_vm4, %v307_v56, %v308_v48  ;;  %v224_v5 = vld [vmem:[%s1958_s30 + $0x8] sm:$0xf]  ;;  %v233_v6 = vld [vmem:[%s1958_s30 + $0xc] sm:$0xf]  ;;  %v1749_v11 = vld [vmem:[%s2203_s1 + $0xc0] sm:$0xff] }
  0x1e   : > { %558 = vmatpush.bf16.msra.mxu1 %v1733_v17  ;;  %v251_v62 = vsel %vm1997_vm5, %v246_v53, %v250_v37  ;;  %v261_v4 = vsel %vm1997_vm5, %v256_v57, %v260_v39  ;;  %v1720_v8 = vld [vmem:[#allocation2 + $0x8] sm:$0xf0]  ;;  %v268_v10 = vshll.u32 %v233_v6, 16  ;;  %321 = vst [vmem:[#allocation2 + $0x14] sm:$0xf] %v309_v63  ;;  %v272_v12 = vshrl.u32 %v233_v6, 16 }
  0x1f   : > { %572 = vmatpush.bf16.msra.mxu2 %v1741_v18  ;;  %286 = vst [vmem:[#allocation2 + $0x4] sm:$0xf] %v251_v62  ;;  %v2042_v13 = vld [vmem:[%s1958_s30 + $0xc] sm:$0xf]  ;;  %v234_v16 = vld [vmem:[%s1958_s30 + $0x10] sm:$0x1]  ;;  %v1299_v21 = vor.u32 %v1720_v8, %v1298_v3 }
  0x20   : > { %799 = vmatpush.bf16.msra.mxu3 %v1752_v19  ;;  %287 = vst [vmem:[#allocation2 + $0x10] sm:$0xf] %v261_v4  ;;  %v270_v14 = vrot.slane %v268_v10, 5  ;;  %v311_v15 = vrot.slane %v2042_v13, 5  ;;  %v1783_v17 = vld [vmem:[%s2203_s1 + $0x1b8] sm:$0xff]  ;;  %v274_v19 = vrot.slane %v272_v12, 4 }
  0x21   : > { %545 = vmatpush.bf16.msra.mxu0 %v1724_v27  ;;  %228 = vst [vmem:[#allocation2 + $0x18] sm:$0xf] %v224_v5  ;;  %v1791_v18 = vld [vmem:[%s2203_s1 + $0x1f8] sm:$0xff]  ;;  %v278_v20 = vshll.u32 %v234_v16, 16  ;;  %v1771_v25 = vld [vmem:[%s2203_s1 + $0x170] sm:$0xff]  ;;  %v1762_v38 = vld [vmem:[%s2203_s1 + $0x128] sm:$0xff] }
  0x22   : > { %559 = vmatpush.bf16.msra.mxu1 %v1732_v28  ;;  %v271_v22 = vsel %vm1997_vm5, %v266_v9, %v270_v14  ;;  %v312_v23 = vsel %vm1985_vm4, %v310_v0, %v311_v15  ;;  %v1782_v26 = vld [vmem:[%s2203_s1 + $0x1b0] sm:$0xff]  ;;  %v275_v27 = vor.u32 %v274_v19, %v270_v14  ;;  %v1454_v33 = vld [vmem:[#allocation2 + $0xc] sm:$0xf]  ;;  %v1761_v47 = vld [vmem:[%s2203_s1 + $0x120] sm:$0xff]  ;;  %v313_v53 = vrot.slane %v311_v15, 4 }
  0x23   : > { %573 = vmatpush.bf16.msra.mxu2 %v1740_v43  ;;  %288 = vst [vmem:[#allocation2 + $0x1c] sm:$0xf] %v271_v22  ;;  %v280_v28 = vrot.slane %v278_v20, 5  ;;  %v1306_v30 = vld [vmem:[#allocation2 + $0x8] sm:$0xf]  ;;  %v1790_v32 = vld [vmem:[%s2203_s1 + $0x1f0] sm:$0xff] }
  0x24   : > { %800 = vmatpush.bf16.msra.mxu3 %v1751_v44  ;;  %322 = vst [vmem:[#allocation2 + $0x20] sm:$0xf] %v312_v23  ;;  %v276_v34 = vrot.slane %v275_v27, 4  ;;  %v225_v37 = vld [vmem:[%s1958_s30 + $0xc] sm:$0xf]  ;;  %v1769_v48 = vld [vmem:[%s2203_s1 + $0x160] sm:$0xff] }
  0x25   : > { %546 = vmatpush.bf16.msra.mxu0 %v1723_v51  ;;  %v1721_v36 = vld [vmem:[#allocation2 + $0x10] sm:$0xf0]  ;;  %v1770_v39 = vld [vmem:[%s2203_s1 + $0x168] sm:$0xff]  ;;  %229 = vst [vmem:[#allocation2 + $0x24] sm:$0xf] %v225_v37  ;;  %v1780_v49 = vld [vmem:[%s2203_s1 + $0x1a0] sm:$0xff] }
  0x26   : > { %560 = vmatpush.bf16.msra.mxu1 %v1731_v52  ;;  %v1719_v29 = vld [vmem:[#allocation2 + $0x4] sm:$0xf]  ;;  %v1307_v40 = vor.u32 %v1721_v36, %v1306_v30  ;;  %v281_v43 = vsel %vm1997_vm5, %v276_v34, %v280_v28  ;;  %v1781_v45 = vld [vmem:[%s2203_s1 + $0x1a8] sm:$0xff]  ;;  %v1760_v51 = vld [vmem:[%s2203_s1 + $0x118] sm:$0xff] }
  0x27   : > { %574 = vmatpush.bf16.msra.mxu2 %v1739_v60  ;;  %v1300_v31 = vld [vmem:[#allocation2 + $0xc] sm:$0xf0]  ;;  %289 = vst [vmem:[#allocation2 + $0x28] sm:$0xf] %v281_v43  ;;  %v1789_v46 = vld [vmem:[%s2203_s1 + $0x1e8] sm:$0xff]  ;;  %v1788_v50 = vld [vmem:[%s2203_s1 + $0x1e0] sm:$0xff] }
  0x28   : > { %801 = vmatpush.bf16.msra.mxu3 %v1750_v61  ;;  %v1303_v35 = vor.u32 %v1719_v29, %v1300_v31  ;;  %v1747_v41 = vld [vmem:[#allocation2 + $0x14] sm:$0xf0]  ;;  %v294_v56 = vld [vmem:[%s1958_s30 + $0x10] sm:$0x1]  ;;  %v1758_v63 = vld [vmem:[%s2203_s1 + $0x108] sm:$0xff] }
  0x29   : > { %547 = vmatpush.bf16.msra.mxu0 %v1722_v58  ;;  %v1455_v44 = vor.u32 %v1747_v41, %v1454_v33  ;;  %v1768_v52 = vld [vmem:[%s2203_s1 + $0x158] sm:$0xff]  ;;  %v314_v57 = vrot.slane %v294_v56, 5  ;;  %v1759_v58 = vld [vmem:[%s2203_s1 + $0x110] sm:$0xff]  ;;  %v1766_v42 = vld [vmem:[%s2203_s1 + $0x148] sm:$0xff] }
  0x2a   : > { %561 = vmatpush.bf16.msra.mxu1 %v1730_v59  ;;  %v1779_v54 = vld [vmem:[%s2203_s1 + $0x198] sm:$0xff]  ;;  %v1767_v59 = vld [vmem:[%s2203_s1 + $0x150] sm:$0xff]  ;;  %v1777_v0 = vld [vmem:[%s2203_s1 + $0x188] sm:$0xff] }
  0x2b   : > { %575 = vmatpush.bf16.msra.mxu2 %v1738_v7  ;;  %v1787_v55 = vld [vmem:[%s2203_s1 + $0x1d8] sm:$0xff]  ;;  %v315_v60 = vsel %vm1985_vm4, %v313_v53, %v314_v57  ;;  %v1778_v61 = vld [vmem:[%s2203_s1 + $0x190] sm:$0xff]  ;;  %v1765_v3 = vld [vmem:[%s2203_s1 + $0x140] sm:$0xff] }
  0x2c   : > { %802 = vmatpush.bf16.msra.mxu3 %v1749_v11  ;;  %548 = vmatmul.bf16.vlgmr.msra.gmra.mxu0 %v1299_v21  ;;  %v1786_v62 = vld [vmem:[%s2203_s1 + $0x1d0] sm:$0xff]  ;;  %323 = vst [vmem:[#allocation2 + $0x2c] sm:$0xf] %v315_v60  ;;  %v1456_v5 = vld [vmem:[#allocation2 + $0x18] sm:$0xf0]  ;;  %v1776_v9 = vld [vmem:[%s2203_s1 + $0x180] sm:$0xff] }
  0x2d   : > { %809 = vmatpush.bf16.msrb.mxu0 %v1764_v1  ;;  %562 = vmatmul.bf16.vlgmr.msra.gmra.mxu1 %v1303_v35  ;;  %v1785_v1 = vld [vmem:[%s2203_s1 + $0x1c8] sm:$0xff]  ;;  %v1746_v4 = vld [vmem:[#allocation2 + $0x10] sm:$0xf]  ;;  %v1462_v6 = vld [vmem:[#allocation2 + $0x14] sm:$0xf] }
  0x2e   : > { %823 = vmatpush.bf16.msrb.mxu1 %v1772_v2  ;;  %576 = vmatmul.bf16.vlgmr.msra.gmra.mxu2 %v1307_v40  ;;  %v1757_v2 = vld [vmem:[%s2203_s1 + $0x100] sm:$0xff]  ;;  %v1799_v8 = vld [vmem:[%s2203_s1 + $0x238] sm:$0xff]  ;;  %v1459_v13 = vor.u32 %v1746_v4, %v1456_v5  ;;  %v1612_v16 = vld [vmem:[#allocation2 + $0x24] sm:$0xf0] }
  0x2f   : > { %1052 = vmatpush.bf16.msrb.mxu2 %v1783_v17  ;;  %803 = vmatmul.bf16.vlgmr.msra.gmra.mxu3 %v1455_v44  ;;  %v1748_v7 = vld [vmem:[#allocation2 + $0x1c] sm:$0xf0]  ;;  %v1610_v11 = vld [vmem:[#allocation2 + $0x18] sm:$0xf]  ;;  %v1774_v12 = vld [vmem:[#allocation2 + $0x20] sm:$0xf0] }
  0x30   : > { %1066 = vmatpush.bf16.msrb.mxu3 %v1791_v18  ;;  %v1784_v10 = vld [vmem:[%s2203_s1 + $0x1c0] sm:$0xff]  ;;  %v1463_v14 = vor.u32 %v1748_v7, %v1462_v6  ;;  %v1773_v15 = vld [vmem:[#allocation2 + $0x1c] sm:$0xf]  ;;  %v1798_v17 = vld [vmem:[%s2203_s1 + $0x230] sm:$0xff]  ;;  %v1611_v18 = vor.u32 %v1774_v12, %v1610_v11 }
  0x31   : > { %810 = vmatpush.bf16.msrb.mxu0 %v1763_v24  ;;  %v1615_v19 = vor.u32 %v1773_v15, %v1612_v16  ;;  %v1797_v20 = vld [vmem:[%s2203_s1 + $0x228] sm:$0xff]  ;;  %v1796_v21 = vld [vmem:[%s2203_s1 + $0x220] sm:$0xff]  ;;  %v1795_v22 = vld [vmem:[%s2203_s1 + $0x218] sm:$0xff] }
  0x32   : > { %824 = vmatpush.bf16.msrb.mxu1 %v1771_v25  ;;  %v1794_v23 = vld [vmem:[%s2203_s1 + $0x210] sm:$0xff]  ;;  %v1793_v24 = vld [vmem:[%s2203_s1 + $0x208] sm:$0xff]  ;;  %v1792_v25 = vld [vmem:[%s2203_s1 + $0x200] sm:$0xff] }
  0x33   : > { %1053 = vmatpush.bf16.msrb.mxu2 %v1782_v26  ;;  %v1618_v26 = vld [vmem:[#allocation2 + $0x20] sm:$0xf]  ;;  %v1775_v27 = vld [vmem:[#allocation2 + $0x28] sm:$0xf0] }
  0x34   : > { %1067 = vmatpush.bf16.msrb.mxu3 %v1790_v32  ;;  %v1619_v28 = vor.u32 %v1775_v27, %v1618_v26  ;;  %v1830_v36 = vld [vmem:[%s2204_s2] ss:$0 sm:$0xff] }
  0x35   : > { %811 = vmatpush.bf16.msrb.mxu0 %v1762_v38 }
  0x36   : > { %825 = vmatpush.bf16.msrb.mxu1 %v1770_v39 }
  0x37   : > { %1054 = vmatpush.bf16.msrb.mxu2 %v1781_v45 }
  0x38   : > { %1068 = vmatpush.bf16.msrb.mxu3 %v1789_v46 }
  0x39   : > { %812 = vmatpush.bf16.msrb.mxu0 %v1761_v47 }
  0x3a   : > { %826 = vmatpush.bf16.msrb.mxu1 %v1769_v48 }
  0x3b   : > { %1055 = vmatpush.bf16.msrb.mxu2 %v1780_v49 }
  0x3c   : > { %1069 = vmatpush.bf16.msrb.mxu3 %v1788_v50 }
  0x3d   : > { %813 = vmatpush.bf16.msrb.mxu0 %v1760_v51 }
  0x3e   : > { %827 = vmatpush.bf16.msrb.mxu1 %v1768_v52 }
  0x3f   : > { %1056 = vmatpush.bf16.msrb.mxu2 %v1779_v54 }
  0x40   : > { %1070 = vmatpush.bf16.msrb.mxu3 %v1787_v55 }
  0x41   : > { %814 = vmatpush.bf16.msrb.mxu0 %v1759_v58 }
  0x42   : > { %828 = vmatpush.bf16.msrb.mxu1 %v1767_v59 }
  0x43   : > { %1057 = vmatpush.bf16.msrb.mxu2 %v1778_v61 }
  0x44   : > { %1071 = vmatpush.bf16.msrb.mxu3 %v1786_v62 }
  0x45   : > { %815 = vmatpush.bf16.msrb.mxu0 %v1758_v63 }
  0x46   : > { %829 = vmatpush.bf16.msrb.mxu1 %v1766_v42 }
  0x47   : > { %1058 = vmatpush.bf16.msrb.mxu2 %v1777_v0 }
  0x48   : > { %1072 = vmatpush.bf16.msrb.mxu3 %v1785_v1 }
  0x49   : > { %816 = vmatpush.bf16.msrb.mxu0 %v1757_v2 }
  0x4a   : > { %830 = vmatpush.bf16.msrb.mxu1 %v1765_v3 }
  0x4b   : > { %1059 = vmatpush.bf16.msrb.mxu2 %v1776_v9 }
  0x4c   : > { %1073 = vmatpush.bf16.msrb.mxu3 %v1784_v10  ;;  %817 = vmatmul.bf16.vlgmr.msrb.gmra.mxu0 %v1459_v13 }
  0x4d   : > { %1080 = vmatpush.bf16.msra.mxu0 %v1799_v8  ;;  %831 = vmatmul.bf16.vlgmr.msrb.gmra.mxu1 %v1463_v14 }
  0x4e   : > { %1060 = vmatmul.bf16.vlgmr.msrb.gmra.mxu2 %v1611_v18 }
  0x4f   : > { %1074 = vmatmul.bf16.vlgmr.msrb.gmra.mxu3 %v1615_v19 }
  0x51   : > { %1081 = vmatpush.bf16.msra.mxu0 %v1798_v17 }
  0x55   : > { %1082 = vmatpush.bf16.msra.mxu0 %v1797_v20 }
  0x59   : > { %1083 = vmatpush.bf16.msra.mxu0 %v1796_v21 }
  0x5d   : > { %1084 = vmatpush.bf16.msra.mxu0 %v1795_v22 }
  0x61   : > { %1085 = vmatpush.bf16.msra.mxu0 %v1794_v23 }
  0x65   : > { %1086 = vmatpush.bf16.msra.mxu0 %v1793_v24 }
  0x69   : > { %1087 = vmatpush.bf16.msra.mxu0 %v1792_v25 }
  0x6c   : > { %1088 = vmatmul.bf16.vlgmr.msra.gmra.mxu0 %v1619_v28 }
  0xa9   : > { %v549_v29 = vpop.f32.mrf.mxu0 }
  0xaa   : > { %v563_v30 = vpop.f32.mrf.mxu1  ;;  %v550_v39 = vadd.f32 %v1830_v36, %v549_v29 }
  0xac   : > { %v564_v43 = vadd.f32 %v563_v30, %v550_v39 }
  0xb1   : > { %v551_v31 = vpop.f32.mrf.mxu0  ;;  %v577_v32 = vpop.f32.mrf.mxu2 }
  0xb2   : > { %v804_v33 = vpop.f32.mrf.mxu3  ;;  %v565_v34 = vpop.f32.mrf.mxu1  ;;  %v578_v47 = vadd.f32 %v577_v32, %v564_v43  ;;  %v552_v50 = vadd.f32 %v1830_v36, %v551_v31 }
  0xb4   : > { %v566_v56 = vadd.f32 %v565_v34, %v552_v50 }
  0xb9   : > { %v579_v37 = vpop.f32.mrf.mxu2 }
  0xba   : > { %v806_v38 = vpop.f32.mrf.mxu3  ;;  %v580_v62 = vadd.f32 %v579_v37, %v566_v56 }
  0xc9   : > { %v818_v35 = vpop.f32.mrf.mxu0 }
  0xca   : > { %v832_v40 = vpop.f32.mrf.mxu1  ;;  %v819_v44 = vadd.f32 %v818_v35, %v804_v33 }
  0xcc   : > { %v833_v48 = vadd.f32 %v832_v40, %v819_v44 }
  0xce   : > { %v837_v52 = vadd.f32 %v833_v48, %v578_v47 }
  0xd1   : > { %v820_v41 = vpop.f32.mrf.mxu0  ;;  %v1061_v45 = vpop.f32.mrf.mxu2 }
  0xd2   : > { %v1075_v46 = vpop.f32.mrf.mxu3  ;;  %v821_v53 = vadd.f32 %v820_v41, %v806_v38  ;;  %v834_v55 = vpop.f32.mrf.mxu1 }
  0xd3   : > { %v1076_v49 = vadd.f32 %v1075_v46, %v1061_v45 }
  0xd4   : > { %v835_v60 = vadd.f32 %v834_v55, %v821_v53 }
  0xd6   : > { %v838_v1 = vadd.f32 %v835_v60, %v580_v62 }
  0xd9   : > { %v1063_v58 = vpop.f32.mrf.mxu2 }
  0xda   : > { %v1077_v59 = vpop.f32.mrf.mxu3 }
  0xdb   : > { %v1078_v63 = vadd.f32 %v1077_v59, %v1063_v58 }
  0xe9   : > { %v1089_v51 = vpop.f32.mrf.mxu0 }
  0xea   : > { %v1090_v54 = vadd.f32 %v1089_v51, %v1076_v49 }
  0xec   : > { %v2173_v57 = vadd.f32 %v1090_v54, %v837_v52 }
  0xee   : > { %v2176_v61 = vmul.f32 0.70710677, %v2173_v57 }
  0xf0   : > { %v1100_v42 = vand.u32 2147483647, %v2176_v61  ;;  %vm1166_vm14 = vcmp.lt.f32.partialorder %v2176_v61, 0.0 }
  0xf1   : > { %v1091_v0 = vpop.f32.mrf.mxu0 }
  0xf2   : > { %v1102_v2 = vmul.f32 0.3275911, %v1100_v42  ;;  %v1092_v3 = vadd.f32 %v1091_v0, %v1078_v63  ;;  %v1154_v21 = vsub.f32 0.0, %v1100_v42 }
  0xf4   : > { %v1104_v4 = vadd.f32 1.0, %v1102_v2  ;;  %v2179_v5 = vadd.f32 %v1092_v3, %v838_v1  ;;  %v1156_v27 = vmul.f32 %v1154_v21, %v1100_v42  ;;  %v1096_v3 = vmul.f32 0.5, %v2173_v57 }
  0xf6   : > { %1831 = vrcp.f32 %v1104_v4  ;;  %v2182_v6 = vmul.f32 0.70710677, %v2179_v5  ;;  %v1117_v13 = vand.u32 2147483648, %v1104_v4  ;;  %v1115_v15 = vand.u32 2147483647, %v1104_v4 }
  0xf7   : > { %vm1111_vm7 = vweird.f32 %v1104_v4  ;;  %v1158_v34 = vmul.f32 1.442695, %v1156_v27 }
  0xf8   : > { %v1101_v7 = vand.u32 2147483647, %v2182_v6  ;;  %v1118_v17 = vor.u32 1.1754944e-38, %v1117_v13  ;;  %vm1116_vm9 = vcmp.eq.f32.partialorder %v1115_v15, 8.507059e+37  ;;  %vm1167_vm15 = vcmp.lt.f32.partialorder %v2182_v6, 0.0 }
  0xfa   : > { %v1103_v8 = vmul.f32 0.3275911, %v1101_v7  ;;  %v1155_v38 = vsub.f32 0.0, %v1101_v7 }
  0xfc   : > { %v1832_v9 = vpop.eup %1831  ;;  %v1105_v11 = vadd.f32 1.0, %v1103_v8  ;;  %v1157_v44 = vmul.f32 %v1155_v38, %v1101_v7 }
  0xfd   : > { %v1107_v10 = vmul.f32 %v1832_v9, %v1104_v4  ;;  %vm1112_vm6 = vweird.f32 %v1832_v9  ;;  %v1097_v4 = vmul.f32 0.5, %v2179_v5 }
  0xfe   : > { %1833 = vrcp.f32 %v1105_v11  ;;  %vm1113_vm8 = vmor %vm1111_vm7, %vm1112_vm6  ;;  %v1132_v26 = vand.u32 2147483648, %v1105_v11  ;;  %v1130_v29 = vand.u32 2147483647, %v1105_v11  ;;  %vm1126_vm11 = vweird.f32 %v1105_v11 }
  0xff   : > { %v1108_v12 = vsub.f32 1.0, %v1107_v10  ;;  %1835 = vpow2.f32 %v1158_v34  ;;  %v1160_v49 = vmul.f32 1.442695, %v1157_v44 }
 0x100   : > { %v1133_v33 = vor.u32 1.1754944e-38, %v1132_v26  ;;  %vm1131_vm13 = vcmp.eq.f32.partialorder %v1130_v29, 8.507059e+37 }
 0x101   : > { %v1109_v14 = vmul.f32 %v1832_v9, %v1108_v12  ;;  %1837 = vpow2.f32 %v1160_v49 }
 0x103   : > { %v1110_v16 = vadd.f32 %v1832_v9, %v1109_v14 }
 0x104   : > { %v1834_v18 = vpop.eup %1833 }
 0x105   : > { %v1114_v19 = vsel %vm1113_vm8, %v1832_v9, %v1110_v16  ;;  %v1122_v22 = vmul.f32 %v1834_v18, %v1105_v11  ;;  %vm1127_vm10 = vweird.f32 %v1834_v18  ;;  %v1836_v50 = vpop.eup %1835 }
 0x106   : > { %v1119_v20 = vsel %vm1116_vm9, %v1118_v17, %v1114_v19  ;;  %vm1128_vm12 = vmor %vm1126_vm11, %vm1127_vm10 }
 0x107   : > { %v1136_v23 = vmul.f32 1.0614054, %v1119_v20  ;;  %v1123_v24 = vsub.f32 1.0, %v1122_v22  ;;  %v1838_v60 = vpop.eup %1837 }
 0x109   : > { %v1138_v25 = vadd.f32 -1.4531521, %v1136_v23  ;;  %v1124_v28 = vmul.f32 %v1834_v18, %v1123_v24 }
 0x10b   : > { %v1140_v30 = vmul.f32 %v1138_v25, %v1119_v20  ;;  %v1125_v31 = vadd.f32 %v1834_v18, %v1124_v28 }
 0x10d   : > { %v1142_v32 = vadd.f32 1.4214138, %v1140_v30  ;;  %v1129_v35 = vsel %vm1128_vm12, %v1834_v18, %v1125_v31 }
 0x10e   : > { %v1134_v37 = vsel %vm1131_vm13, %v1133_v33, %v1129_v35 }
 0x10f   : > { %v1144_v36 = vmul.f32 %v1142_v32, %v1119_v20  ;;  %v1137_v39 = vmul.f32 1.0614054, %v1134_v37 }
 0x111   : > { %v1146_v40 = vadd.f32 -0.28449672, %v1144_v36  ;;  %v1139_v41 = vadd.f32 -1.4531521, %v1137_v39 }
 0x113   : > { %v1148_v43 = vmul.f32 %v1146_v40, %v1119_v20  ;;  %v1141_v45 = vmul.f32 %v1139_v41, %v1134_v37 }
 0x115   : > { %v1150_v46 = vadd.f32 0.2548296, %v1148_v43  ;;  %v1143_v47 = vadd.f32 1.4214138, %v1141_v45 }
 0x117   : > { %v1152_v48 = vmul.f32 %v1150_v46, %v1119_v20  ;;  %v1145_v51 = vmul.f32 %v1143_v47, %v1134_v37 }
 0x119   : > { %v1162_v52 = vmul.f32 %v1836_v50, %v1152_v48  ;;  %v1147_v53 = vadd.f32 -0.28449672, %v1145_v51 }
 0x11b   : > { %v1164_v54 = vsub.f32 1.0, %v1162_v52  ;;  %v1149_v55 = vmul.f32 %v1147_v53, %v1134_v37 }
 0x11d   : > { %v1151_v56 = vadd.f32 0.2548296, %v1149_v55  ;;  %v1168_v58 = vsub.f32 0.0, %v1164_v54 }
 0x11f   : > { %v1153_v59 = vmul.f32 %v1151_v56, %v1134_v37  ;;  %v1170_v63 = vsel %vm1166_vm14, %v1168_v58, %v1164_v54 }
 0x120   : > { %v1172_v1 = vadd.f32 1.0, %v1170_v63 }
 0x121   : > { %v1163_v62 = vmul.f32 %v1838_v60, %v1153_v59 }
 0x122   : > { %v1174_v8 = vmul.f32 %v1172_v1, %v1096_v3 }
 0x123   : > { %v1165_v42 = vsub.f32 1.0, %v1163_v62 }
 0x125   : > { %v1169_v0 = vsub.f32 0.0, %v1165_v42 }
 0x127   : > { %v1171_v2 = vsel %vm1167_vm15, %v1169_v0, %v1165_v42 }
 0x128   : > { %v1173_v7 = vadd.f32 1.0, %v1171_v2 }
 0x12a   : > { %v1175_v9 = vmul.f32 %v1173_v7, %v1097_v4 }
 0x12c   : > { %v1803_v61 = vpack.c.bf16 %v1175_v9, %v1174_v8 }
 0x12e   : > { %1804 = vst [vmem:[%s221_s7] sm:$0xff] %v1803_v61  }
 0x12f PF: > { %s13_s14 = sadd.s32 1, %s1861_s14   ;;  %s2210_s12 = smov %s1857_s13 }
 0x130   : > { %p10_p5 = scmp.ge.s32.totalorder %s13_s14, 6   ;;  %s2211_s13 = smov %s2213_s15 }
 0x132   :  { %12 = sbr.rel (!%p10_p5) target bundleno = 2 (0x2), region = 70 }

// kernel: conv_layer_forward.19
= control target key start
LH: loop header
LB: loop body
LE: loop exit
PB: predicated region body
PF: predicated region fallthrough
CT: control target
= control target key end

     0   :  { %s1984_s15 = smov 0   ;;  %s1986_s16 = smov 0   ;;  %s2310_s0 = inlined_call_operand.vmem [shape: bf16[4,40,128], index: 0, kind: input, shape index: {}]   ;;  %s2311_s1 = inlined_call_operand.vmem [shape: bf16[3,384,128], index: 1, kind: input, shape index: {}]   ;;  %s2312_s2 = inlined_call_operand.vmem [shape: f32[1,128], index: 2, kind: input, shape index: {}]   ;;  %s2313_s3 = inlined_call_operand.vmem [shape: bf16[4,40,128], index: 3, kind: input, shape index: {}]   ;;  %s2314_s4 = inlined_call_operand.vmem [shape: bf16[4,16,128], index: 4, kind: output, shape index: {}]  }
   0x1   :  { %s1988_s17 = smov 0  }
   0x2 LB: > { %s26_s18 = sadd.s32 1, %s1953_s16  ;;  %p1386_p0 = scmp.ge.s32.totalorder %s1957_s17, 1  ;;  %s1957_s17 = sphi %s1988_s17, %s14_s17   ;;  %s1953_s16 = sphi %s1986_s16, %s2320_s16   ;;  %s1949_s15 = sphi %s1984_s15, %s2319_s15  }
   0x3   : > { %p28_p1 = scmp.ge.s32.totalorder %s26_s18, 4  ;;  %p208_p2 = scmp.lt.s32.totalorder %s1957_s17, 5 }
   0x5   : > { %s2322_s18 = smov (%p28_p1, %s26_s18), 0  ;;  %p209_p3 = pnand %p1386_p0, %p208_p2 }
   0x6   : > { %p252_p4 = scmp.lt.s32.totalorder (!%p209_p3), %s1949_s15, 3 }
   0x7   : > { %212 = sbr.rel (%p209_p3) target bundleno = 305 (0x131), region = 36 }
   0xc   : > { %v1825_v0 = vld [vmem:[%s2311_s1 + $0x38] sm:$0xff]  ;;  %v1824_v2 = vld [vmem:[%s2311_s1 + $0x30] sm:$0xff]  ;;  %s2324_s15 = smov (!%p252_p4, %s1949_s15), 3  ;;  %v1823_v8 = vld [vmem:[%s2311_s1 + $0x28] sm:$0xff]  ;;  %vm293_vm0 = vsmask.f32 3328 }
   0xd   : > { %v1833_v1 = vld [vmem:[%s2311_s1 + $0x78] sm:$0xff]  ;;  %598 = vmatpush.bf16.msra.mxu0 %v1825_v0  ;;  %v1832_v3 = vld [vmem:[%s2311_s1 + $0x70] sm:$0xff]  ;;  %v1831_v9 = vld [vmem:[%s2311_s1 + $0x68] sm:$0xff]  ;;  %s1901_s21 = smul.u32 20, %s2324_s15  ;;  %vm294_vm1 = vsmask.f32 7440 }
   0xe   : > { %612 = vmatpush.bf16.msra.mxu1 %v1833_v1  ;;  %v1841_v4 = vld [vmem:[%s2311_s1 + $0xb8] sm:$0xff]  ;;  %v1840_v6 = vld [vmem:[%s2311_s1 + $0xb0] sm:$0xff]  ;;  %v1839_v10 = vld [vmem:[%s2311_s1 + $0xa8] sm:$0xff]  ;;  %vm358_vm2 = vcmask 1042432   ;;  %vm359_vm3 = vcmask 1046532   ;;  %vm1243_vm15 = vcmask 1046528  }
   0xf   : > { %v1852_v5 = vld [vmem:[%s2311_s1 + $0xf8] sm:$0xff]  ;;  %626 = vmatpush.bf16.msra.mxu2 %v1841_v4  ;;  %v1851_v7 = vld [vmem:[%s2311_s1 + $0xf0] sm:$0xff]  ;;  %v1850_v11 = vld [vmem:[%s2311_s1 + $0xe8] sm:$0xff]  ;;  %s2061_s8 = scalar_lea.vmem %s2310_s0, %s1901_s21  ;;  %s271_s26 = scalar_lea.vmem %s2313_s3, %s1901_s21 }
  0x10   : > { %853 = vmatpush.bf16.msra.mxu3 %v1852_v5  ;;  %v1822_v12 = vld [vmem:[%s2311_s1 + $0x20] sm:$0xff]  ;;  %v1821_v14 = vld [vmem:[%s2311_s1 + $0x18] sm:$0xff]  ;;  %v290_v24 = vld [vmem:[%s2061_s8 + $0x8] sm:$0xf]  ;;  %s1814_s21 = sshll.u32 %s2324_s15, 3 }
  0x11   : > { %599 = vmatpush.bf16.msra.mxu0 %v1824_v2  ;;  %v1830_v13 = vld [vmem:[%s2311_s1 + $0x60] sm:$0xff]  ;;  %v1829_v17 = vld [vmem:[%s2311_s1 + $0x58] sm:$0xff]  ;;  %v1820_v27 = vld [vmem:[%s2311_s1 + $0x10] sm:$0xff]  ;;  %v316_v31 = vshll.u32 %v290_v24, 16  ;;  %v320_v32 = vshrl.u32 %v290_v24, 16  ;;  %s279_s29 = scalar_lea.vmem %s2314_s4, %s1814_s21 }
  0x12   : > { %613 = vmatpush.bf16.msra.mxu1 %v1832_v3  ;;  %v1838_v15 = vld [vmem:[%s2311_s1 + $0xa0] sm:$0xff]  ;;  %v1837_v18 = vld [vmem:[%s2311_s1 + $0x98] sm:$0xff]  ;;  %v1828_v28 = vld [vmem:[%s2311_s1 + $0x50] sm:$0xff] }
  0x13   : > { %627 = vmatpush.bf16.msra.mxu2 %v1840_v6  ;;  %v1849_v16 = vld [vmem:[%s2311_s1 + $0xe0] sm:$0xff]  ;;  %v1848_v19 = vld [vmem:[%s2311_s1 + $0xd8] sm:$0xff]  ;;  %v318_v39 = vrot.slane %v316_v31, 5  ;;  %v322_v40 = vrot.slane %v320_v32, 4  ;;  %v350_v41 = vld [vmem:[%s2061_s8 + $0x8] sm:$0xf] }
  0x14   : > { %854 = vmatpush.bf16.msra.mxu3 %v1851_v7  ;;  %v280_v20 = vld [vmem:[%s2061_s8] sm:$0xf]  ;;  %v281_v21 = vld [vmem:[%s2061_s8 + $0x4] sm:$0xf]  ;;  %vm2088_vm4 = vmor %vm358_vm2, %vm359_vm3  ;;  %v366_v48 = vrot.slane %v350_v41, 5 }
  0x15   : > { %600 = vmatpush.bf16.msra.mxu0 %v1823_v8  ;;  %284 = vst [vmem:[#allocation2] sm:$0xf] %v280_v20  ;;  %v288_v22 = vld [vmem:[%s2061_s8] sm:$0xf]  ;;  %v289_v23 = vld [vmem:[%s2061_s8 + $0x4] sm:$0xf]  ;;  %vm2100_vm5 = vmor %vm293_vm0, %vm294_vm1  ;;  %v323_v54 = vor.u32 %v322_v40, %v318_v39 }
  0x16   : > { %614 = vmatpush.bf16.msra.mxu1 %v1831_v9  ;;  %285 = vst [vmem:[#allocation2 + $0xc] sm:$0xf] %v281_v21  ;;  %v297_v25 = vshrl.u32 %v288_v22, 16  ;;  %v300_v26 = vshll.u32 %v288_v22, 16  ;;  %v306_v29 = vshll.u32 %v289_v23, 16  ;;  %v310_v30 = vshrl.u32 %v289_v23, 16 }
  0x17   : > { %628 = vmatpush.bf16.msra.mxu2 %v1839_v10  ;;  %v348_v35 = vld [vmem:[%s2061_s8] sm:$0xe]  ;;  %v349_v36 = vld [vmem:[%s2061_s8 + $0x4] sm:$0xf]  ;;  %v1836_v43 = vld [vmem:[%s2311_s1 + $0x90] sm:$0xff]  ;;  %v368_v0 = vrot.slane %v366_v48, 4 }
  0x18   : > { %855 = vmatpush.bf16.msra.mxu3 %v1850_v11  ;;  %v299_v33 = vrot.slane %v297_v25, 4  ;;  %v302_v34 = vrot.slane %v300_v26, 5  ;;  %v308_v37 = vrot.slane %v306_v29, 5  ;;  %v312_v38 = vrot.slane %v310_v30, 4  ;;  %v1847_v44 = vld [vmem:[%s2311_s1 + $0xd0] sm:$0xff]  ;;  %v1819_v51 = vld [vmem:[%s2311_s1 + $0x8] sm:$0xff] }
  0x19   : > { %601 = vmatpush.bf16.msra.mxu0 %v1822_v12  ;;  %v1391_v46 = vrot.slane %v348_v35, 9  ;;  %v363_v47 = vrot.slane %v349_v36, 5  ;;  %v1827_v52 = vld [vmem:[%s2311_s1 + $0x48] sm:$0xff]  ;;  %v1818_v58 = vld [vmem:[%s2311_s1] sm:$0xff]  ;;  %v1860_v1 = vld [vmem:[%s2311_s1 + $0x138] sm:$0xff]  ;;  %v324_v9 = vrot.slane %v323_v54, 4 }
  0x1a   : > { %615 = vmatpush.bf16.msra.mxu1 %v1830_v13  ;;  %v303_v45 = vor.u32 %v302_v34, %v299_v33  ;;  %v313_v50 = vor.u32 %v312_v38, %v308_v37  ;;  %v1826_v59 = vld [vmem:[%s2311_s1 + $0x40] sm:$0xff]  ;;  %v1835_v60 = vld [vmem:[%s2311_s1 + $0x88] sm:$0xff]  ;;  %v1868_v2 = vld [vmem:[%s2311_s1 + $0x178] sm:$0xff] }
  0x1b   : > { %629 = vmatpush.bf16.msra.mxu2 %v1838_v15  ;;  %v364_v55 = vsel %vm2088_vm4, %v1391_v46, %v363_v47  ;;  %v365_v56 = vrot.slane %v363_v47, 4  ;;  %v1846_v61 = vld [vmem:[%s2311_s1 + $0xc8] sm:$0xff]  ;;  %v1834_v7 = vld [vmem:[%s2311_s1 + $0x80] sm:$0xff]  ;;  %v1859_v24 = vld [vmem:[%s2311_s1 + $0x130] sm:$0xff] }
  0x1c   : > { %856 = vmatpush.bf16.msra.mxu3 %v1849_v16  ;;  %v304_v53 = vrot.slane %v303_v45, 4  ;;  %v314_v57 = vrot.slane %v313_v50, 4  ;;  %378 = vst [vmem:[#allocation2 + $0x8] sm:$0xf] %v364_v55  ;;  %v1394_v3 = vld [vmem:[#allocation2] sm:$0xf] }
  0x1d   : > { %602 = vmatpush.bf16.msra.mxu0 %v1821_v14  ;;  %v367_v63 = vsel %vm2088_vm4, %v365_v56, %v366_v48  ;;  %v282_v5 = vld [vmem:[%s2061_s8 + $0x8] sm:$0xf]  ;;  %v291_v6 = vld [vmem:[%s2061_s8 + $0xc] sm:$0xf]  ;;  %v1845_v11 = vld [vmem:[%s2311_s1 + $0xc0] sm:$0xff] }
  0x1e   : > { %616 = vmatpush.bf16.msra.mxu1 %v1829_v17  ;;  %v309_v62 = vsel %vm2100_vm5, %v304_v53, %v308_v37  ;;  %v319_v4 = vsel %vm2100_vm5, %v314_v57, %v318_v39  ;;  %v1816_v8 = vld [vmem:[#allocation2 + $0x8] sm:$0xf0]  ;;  %v326_v10 = vshll.u32 %v291_v6, 16  ;;  %379 = vst [vmem:[#allocation2 + $0x14] sm:$0xf] %v367_v63  ;;  %v330_v12 = vshrl.u32 %v291_v6, 16 }
  0x1f   : > { %630 = vmatpush.bf16.msra.mxu2 %v1837_v18  ;;  %344 = vst [vmem:[#allocation2 + $0x4] sm:$0xf] %v309_v62  ;;  %v2145_v13 = vld [vmem:[%s2061_s8 + $0xc] sm:$0xf]  ;;  %v292_v16 = vld [vmem:[%s2061_s8 + $0x10] sm:$0x1]  ;;  %v1395_v21 = vor.u32 %v1816_v8, %v1394_v3 }
  0x20   : > { %857 = vmatpush.bf16.msra.mxu3 %v1848_v19  ;;  %345 = vst [vmem:[#allocation2 + $0x10] sm:$0xf] %v319_v4  ;;  %v328_v14 = vrot.slane %v326_v10, 5  ;;  %v369_v15 = vrot.slane %v2145_v13, 5  ;;  %v1879_v17 = vld [vmem:[%s2311_s1 + $0x1b8] sm:$0xff]  ;;  %v332_v19 = vrot.slane %v330_v12, 4 }
  0x21   : > { %603 = vmatpush.bf16.msra.mxu0 %v1820_v27  ;;  %286 = vst [vmem:[#allocation2 + $0x18] sm:$0xf] %v282_v5  ;;  %v1887_v18 = vld [vmem:[%s2311_s1 + $0x1f8] sm:$0xff]  ;;  %v336_v20 = vshll.u32 %v292_v16, 16  ;;  %v1867_v25 = vld [vmem:[%s2311_s1 + $0x170] sm:$0xff]  ;;  %v1858_v38 = vld [vmem:[%s2311_s1 + $0x128] sm:$0xff] }
  0x22   : > { %617 = vmatpush.bf16.msra.mxu1 %v1828_v28  ;;  %v329_v22 = vsel %vm2100_vm5, %v324_v9, %v328_v14  ;;  %v370_v23 = vsel %vm2088_vm4, %v368_v0, %v369_v15  ;;  %v1878_v26 = vld [vmem:[%s2311_s1 + $0x1b0] sm:$0xff]  ;;  %v333_v27 = vor.u32 %v332_v19, %v328_v14  ;;  %v1550_v33 = vld [vmem:[#allocation2 + $0xc] sm:$0xf]  ;;  %v1857_v47 = vld [vmem:[%s2311_s1 + $0x120] sm:$0xff]  ;;  %v371_v53 = vrot.slane %v369_v15, 4 }
  0x23   : > { %631 = vmatpush.bf16.msra.mxu2 %v1836_v43  ;;  %346 = vst [vmem:[#allocation2 + $0x1c] sm:$0xf] %v329_v22  ;;  %v338_v28 = vrot.slane %v336_v20, 5  ;;  %v1402_v30 = vld [vmem:[#allocation2 + $0x8] sm:$0xf]  ;;  %v1886_v32 = vld [vmem:[%s2311_s1 + $0x1f0] sm:$0xff] }
  0x24   : > { %858 = vmatpush.bf16.msra.mxu3 %v1847_v44  ;;  %380 = vst [vmem:[#allocation2 + $0x20] sm:$0xf] %v370_v23  ;;  %v334_v34 = vrot.slane %v333_v27, 4  ;;  %v283_v37 = vld [vmem:[%s2061_s8 + $0xc] sm:$0xf]  ;;  %v1865_v48 = vld [vmem:[%s2311_s1 + $0x160] sm:$0xff] }
  0x25   : > { %604 = vmatpush.bf16.msra.mxu0 %v1819_v51  ;;  %v1817_v36 = vld [vmem:[#allocation2 + $0x10] sm:$0xf0]  ;;  %v1866_v39 = vld [vmem:[%s2311_s1 + $0x168] sm:$0xff]  ;;  %287 = vst [vmem:[#allocation2 + $0x24] sm:$0xf] %v283_v37  ;;  %v1876_v49 = vld [vmem:[%s2311_s1 + $0x1a0] sm:$0xff] }
  0x26   : > { %618 = vmatpush.bf16.msra.mxu1 %v1827_v52  ;;  %v1815_v29 = vld [vmem:[#allocation2 + $0x4] sm:$0xf]  ;;  %v1403_v40 = vor.u32 %v1817_v36, %v1402_v30  ;;  %v339_v43 = vsel %vm2100_vm5, %v334_v34, %v338_v28  ;;  %v1877_v45 = vld [vmem:[%s2311_s1 + $0x1a8] sm:$0xff]  ;;  %v1856_v51 = vld [vmem:[%s2311_s1 + $0x118] sm:$0xff] }
  0x27   : > { %632 = vmatpush.bf16.msra.mxu2 %v1835_v60  ;;  %v1396_v31 = vld [vmem:[#allocation2 + $0xc] sm:$0xf0]  ;;  %347 = vst [vmem:[#allocation2 + $0x28] sm:$0xf] %v339_v43  ;;  %v1885_v46 = vld [vmem:[%s2311_s1 + $0x1e8] sm:$0xff]  ;;  %v1884_v50 = vld [vmem:[%s2311_s1 + $0x1e0] sm:$0xff] }
  0x28   : > { %859 = vmatpush.bf16.msra.mxu3 %v1846_v61  ;;  %v1399_v35 = vor.u32 %v1815_v29, %v1396_v31  ;;  %v1843_v41 = vld [vmem:[#allocation2 + $0x14] sm:$0xf0]  ;;  %v352_v56 = vld [vmem:[%s2061_s8 + $0x10] sm:$0x1]  ;;  %v1854_v63 = vld [vmem:[%s2311_s1 + $0x108] sm:$0xff] }
  0x29   : > { %605 = vmatpush.bf16.msra.mxu0 %v1818_v58  ;;  %v1551_v44 = vor.u32 %v1843_v41, %v1550_v33  ;;  %v1864_v52 = vld [vmem:[%s2311_s1 + $0x158] sm:$0xff]  ;;  %v372_v57 = vrot.slane %v352_v56, 5  ;;  %v1855_v58 = vld [vmem:[%s2311_s1 + $0x110] sm:$0xff]  ;;  %v1862_v42 = vld [vmem:[%s2311_s1 + $0x148] sm:$0xff] }
  0x2a   : > { %619 = vmatpush.bf16.msra.mxu1 %v1826_v59  ;;  %v1875_v54 = vld [vmem:[%s2311_s1 + $0x198] sm:$0xff]  ;;  %v1863_v59 = vld [vmem:[%s2311_s1 + $0x150] sm:$0xff]  ;;  %v1873_v0 = vld [vmem:[%s2311_s1 + $0x188] sm:$0xff] }
  0x2b   : > { %633 = vmatpush.bf16.msra.mxu2 %v1834_v7  ;;  %v1883_v55 = vld [vmem:[%s2311_s1 + $0x1d8] sm:$0xff]  ;;  %v373_v60 = vsel %vm2088_vm4, %v371_v53, %v372_v57  ;;  %v1874_v61 = vld [vmem:[%s2311_s1 + $0x190] sm:$0xff]  ;;  %v1861_v3 = vld [vmem:[%s2311_s1 + $0x140] sm:$0xff] }
  0x2c   : > { %860 = vmatpush.bf16.msra.mxu3 %v1845_v11  ;;  %606 = vmatmul.bf16.vlgmr.msra.gmra.mxu0 %v1395_v21  ;;  %v1882_v62 = vld [vmem:[%s2311_s1 + $0x1d0] sm:$0xff]  ;;  %381 = vst [vmem:[#allocation2 + $0x2c] sm:$0xf] %v373_v60  ;;  %v1552_v5 = vld [vmem:[#allocation2 + $0x18] sm:$0xf0]  ;;  %v1872_v9 = vld [vmem:[%s2311_s1 + $0x180] sm:$0xff] }
  0x2d   : > { %867 = vmatpush.bf16.msrb.mxu0 %v1860_v1  ;;  %620 = vmatmul.bf16.vlgmr.msra.gmra.mxu1 %v1399_v35  ;;  %v1881_v1 = vld [vmem:[%s2311_s1 + $0x1c8] sm:$0xff]  ;;  %v1842_v4 = vld [vmem:[#allocation2 + $0x10] sm:$0xf]  ;;  %v1558_v6 = vld [vmem:[#allocation2 + $0x14] sm:$0xf] }
  0x2e   : > { %881 = vmatpush.bf16.msrb.mxu1 %v1868_v2  ;;  %634 = vmatmul.bf16.vlgmr.msra.gmra.mxu2 %v1403_v40  ;;  %v1853_v2 = vld [vmem:[%s2311_s1 + $0x100] sm:$0xff]  ;;  %v1895_v8 = vld [vmem:[%s2311_s1 + $0x238] sm:$0xff]  ;;  %v1555_v13 = vor.u32 %v1842_v4, %v1552_v5  ;;  %v1708_v16 = vld [vmem:[#allocation2 + $0x24] sm:$0xf0] }
  0x2f   : > { %1110 = vmatpush.bf16.msrb.mxu2 %v1879_v17  ;;  %861 = vmatmul.bf16.vlgmr.msra.gmra.mxu3 %v1551_v44  ;;  %v1844_v7 = vld [vmem:[#allocation2 + $0x1c] sm:$0xf0]  ;;  %v1706_v11 = vld [vmem:[#allocation2 + $0x18] sm:$0xf]  ;;  %v1870_v12 = vld [vmem:[#allocation2 + $0x20] sm:$0xf0] }
  0x30   : > { %1124 = vmatpush.bf16.msrb.mxu3 %v1887_v18  ;;  %v1880_v10 = vld [vmem:[%s2311_s1 + $0x1c0] sm:$0xff]  ;;  %v1559_v14 = vor.u32 %v1844_v7, %v1558_v6  ;;  %v1869_v15 = vld [vmem:[#allocation2 + $0x1c] sm:$0xf]  ;;  %v1894_v17 = vld [vmem:[%s2311_s1 + $0x230] sm:$0xff]  ;;  %v1707_v18 = vor.u32 %v1870_v12, %v1706_v11 }
  0x31   : > { %868 = vmatpush.bf16.msrb.mxu0 %v1859_v24  ;;  %v1711_v19 = vor.u32 %v1869_v15, %v1708_v16  ;;  %v1893_v20 = vld [vmem:[%s2311_s1 + $0x228] sm:$0xff]  ;;  %v1892_v21 = vld [vmem:[%s2311_s1 + $0x220] sm:$0xff]  ;;  %v1891_v22 = vld [vmem:[%s2311_s1 + $0x218] sm:$0xff] }
  0x32   : > { %882 = vmatpush.bf16.msrb.mxu1 %v1867_v25  ;;  %v1890_v23 = vld [vmem:[%s2311_s1 + $0x210] sm:$0xff]  ;;  %v1889_v24 = vld [vmem:[%s2311_s1 + $0x208] sm:$0xff]  ;;  %v1888_v25 = vld [vmem:[%s2311_s1 + $0x200] sm:$0xff] }
  0x33   : > { %1111 = vmatpush.bf16.msrb.mxu2 %v1878_v26  ;;  %v1714_v26 = vld [vmem:[#allocation2 + $0x20] sm:$0xf]  ;;  %v1871_v27 = vld [vmem:[#allocation2 + $0x28] sm:$0xf0] }
  0x34   : > { %1125 = vmatpush.bf16.msrb.mxu3 %v1886_v32  ;;  %v1715_v28 = vor.u32 %v1871_v27, %v1714_v26  ;;  %v1926_v36 = vld [vmem:[%s2312_s2] ss:$0 sm:$0xff] }
  0x35   : > { %869 = vmatpush.bf16.msrb.mxu0 %v1858_v38 }
  0x36   : > { %883 = vmatpush.bf16.msrb.mxu1 %v1866_v39 }
  0x37   : > { %1112 = vmatpush.bf16.msrb.mxu2 %v1877_v45 }
  0x38   : > { %1126 = vmatpush.bf16.msrb.mxu3 %v1885_v46 }
  0x39   : > { %870 = vmatpush.bf16.msrb.mxu0 %v1857_v47 }
  0x3a   : > { %884 = vmatpush.bf16.msrb.mxu1 %v1865_v48 }
  0x3b   : > { %1113 = vmatpush.bf16.msrb.mxu2 %v1876_v49 }
  0x3c   : > { %1127 = vmatpush.bf16.msrb.mxu3 %v1884_v50 }
  0x3d   : > { %871 = vmatpush.bf16.msrb.mxu0 %v1856_v51 }
  0x3e   : > { %885 = vmatpush.bf16.msrb.mxu1 %v1864_v52 }
  0x3f   : > { %1114 = vmatpush.bf16.msrb.mxu2 %v1875_v54 }
  0x40   : > { %1128 = vmatpush.bf16.msrb.mxu3 %v1883_v55 }
  0x41   : > { %872 = vmatpush.bf16.msrb.mxu0 %v1855_v58 }
  0x42   : > { %886 = vmatpush.bf16.msrb.mxu1 %v1863_v59 }
  0x43   : > { %1115 = vmatpush.bf16.msrb.mxu2 %v1874_v61 }
  0x44   : > { %1129 = vmatpush.bf16.msrb.mxu3 %v1882_v62 }
  0x45   : > { %873 = vmatpush.bf16.msrb.mxu0 %v1854_v63 }
  0x46   : > { %887 = vmatpush.bf16.msrb.mxu1 %v1862_v42 }
  0x47   : > { %1116 = vmatpush.bf16.msrb.mxu2 %v1873_v0 }
  0x48   : > { %1130 = vmatpush.bf16.msrb.mxu3 %v1881_v1 }
  0x49   : > { %874 = vmatpush.bf16.msrb.mxu0 %v1853_v2 }
  0x4a   : > { %888 = vmatpush.bf16.msrb.mxu1 %v1861_v3 }
  0x4b   : > { %1117 = vmatpush.bf16.msrb.mxu2 %v1872_v9 }
  0x4c   : > { %1131 = vmatpush.bf16.msrb.mxu3 %v1880_v10  ;;  %875 = vmatmul.bf16.vlgmr.msrb.gmra.mxu0 %v1555_v13 }
  0x4d   : > { %1138 = vmatpush.bf16.msra.mxu0 %v1895_v8  ;;  %889 = vmatmul.bf16.vlgmr.msrb.gmra.mxu1 %v1559_v14 }
  0x4e   : > { %1118 = vmatmul.bf16.vlgmr.msrb.gmra.mxu2 %v1707_v18 }
  0x4f   : > { %1132 = vmatmul.bf16.vlgmr.msrb.gmra.mxu3 %v1711_v19 }
  0x51   : > { %1139 = vmatpush.bf16.msra.mxu0 %v1894_v17 }
  0x55   : > { %1140 = vmatpush.bf16.msra.mxu0 %v1893_v20 }
  0x59   : > { %1141 = vmatpush.bf16.msra.mxu0 %v1892_v21 }
  0x5d   : > { %1142 = vmatpush.bf16.msra.mxu0 %v1891_v22 }
  0x61   : > { %1143 = vmatpush.bf16.msra.mxu0 %v1890_v23 }
  0x65   : > { %1144 = vmatpush.bf16.msra.mxu0 %v1889_v24 }
  0x69   : > { %1145 = vmatpush.bf16.msra.mxu0 %v1888_v25 }
  0x6c   : > { %1146 = vmatmul.bf16.vlgmr.msra.gmra.mxu0 %v1715_v28 }
  0xa9   : > { %v607_v29 = vpop.f32.mrf.mxu0 }
  0xaa   : > { %v621_v30 = vpop.f32.mrf.mxu1  ;;  %v608_v39 = vadd.f32 %v1926_v36, %v607_v29 }
  0xac   : > { %v622_v43 = vadd.f32 %v621_v30, %v608_v39 }
  0xb1   : > { %v609_v31 = vpop.f32.mrf.mxu0  ;;  %v635_v32 = vpop.f32.mrf.mxu2 }
  0xb2   : > { %v862_v33 = vpop.f32.mrf.mxu3  ;;  %v623_v34 = vpop.f32.mrf.mxu1  ;;  %v636_v47 = vadd.f32 %v635_v32, %v622_v43  ;;  %v610_v50 = vadd.f32 %v1926_v36, %v609_v31 }
  0xb4   : > { %v624_v56 = vadd.f32 %v623_v34, %v610_v50 }
  0xb9   : > { %v637_v37 = vpop.f32.mrf.mxu2 }
  0xba   : > { %v864_v38 = vpop.f32.mrf.mxu3  ;;  %v638_v62 = vadd.f32 %v637_v37, %v624_v56 }
  0xc9   : > { %v876_v35 = vpop.f32.mrf.mxu0 }
  0xca   : > { %v890_v40 = vpop.f32.mrf.mxu1  ;;  %v877_v44 = vadd.f32 %v876_v35, %v862_v33 }
  0xcc   : > { %v891_v48 = vadd.f32 %v890_v40, %v877_v44 }
  0xce   : > { %v895_v52 = vadd.f32 %v891_v48, %v636_v47 }
  0xd1   : > { %v878_v41 = vpop.f32.mrf.mxu0  ;;  %v1119_v45 = vpop.f32.mrf.mxu2 }
  0xd2   : > { %v1133_v46 = vpop.f32.mrf.mxu3  ;;  %v879_v53 = vadd.f32 %v878_v41, %v864_v38  ;;  %v892_v55 = vpop.f32.mrf.mxu1 }
  0xd3   : > { %v1134_v49 = vadd.f32 %v1133_v46, %v1119_v45 }
  0xd4   : > { %v893_v60 = vadd.f32 %v892_v55, %v879_v53 }
  0xd6   : > { %v896_v1 = vadd.f32 %v893_v60, %v638_v62  ;;  %v1236_v60 = vld [vmem:[%s271_s26 + $0xc] sm:$0x1] }
  0xd9   : > { %v1121_v58 = vpop.f32.mrf.mxu2 }
  0xda   : > { %v1135_v59 = vpop.f32.mrf.mxu3 }
  0xdb   : > { %v1136_v63 = vadd.f32 %v1135_v59, %v1121_v58  ;;  %v1234_v58 = vld [vmem:[%s271_s26 + $0x4] sm:$0xff]  }
  0xe9   : > { %v1147_v51 = vpop.f32.mrf.mxu0 }
  0xea   : > { %v1148_v54 = vadd.f32 %v1147_v51, %v1134_v49 }
  0xec   : > { %v2276_v57 = vadd.f32 %v1148_v54, %v895_v52 }
  0xee   : > { %v2279_v61 = vmul.f32 0.70710677, %v2276_v57 }
  0xf0   : > { %v1158_v42 = vand.u32 2147483647, %v2279_v61  ;;  %vm1224_vm14 = vcmp.lt.f32.partialorder %v2279_v61, 0.0 }
  0xf1   : > { %v1149_v0 = vpop.f32.mrf.mxu0 }
  0xf2   : > { %v1160_v2 = vmul.f32 0.3275911, %v1158_v42  ;;  %v1150_v3 = vadd.f32 %v1149_v0, %v1136_v63  ;;  %v1212_v21 = vsub.f32 0.0, %v1158_v42 }
  0xf4   : > { %v1162_v4 = vadd.f32 1.0, %v1160_v2  ;;  %v2282_v5 = vadd.f32 %v1150_v3, %v896_v1  ;;  %v1214_v27 = vmul.f32 %v1212_v21, %v1158_v42  ;;  %v1237_v42 = vunpack.c.l.bf16 %v1234_v58 }
  0xf5   : > { %v1238_v1 = vunpack.c.h.bf16 %v1234_v58  ;;  %v1239_v3 = vunpack.c.l.bf16 %v1236_v60 }
  0xf6   : > { %1927 = vrcp.f32 %v1162_v4  ;;  %v2285_v6 = vmul.f32 0.70710677, %v2282_v5  ;;  %v1175_v13 = vand.u32 2147483648, %v1162_v4  ;;  %v1173_v15 = vand.u32 2147483647, %v1162_v4 }
  0xf7   : > { %vm1169_vm7 = vweird.f32 %v1162_v4  ;;  %v1216_v34 = vmul.f32 1.442695, %v1214_v27  ;;  %v1155_v61 = vmul.f32 0.5, %v2282_v5 }
  0xf8   : > { %v1159_v7 = vand.u32 2147483647, %v2285_v6  ;;  %v1176_v17 = vor.u32 1.1754944e-38, %v1175_v13  ;;  %vm1174_vm9 = vcmp.eq.f32.partialorder %v1173_v15, 8.507059e+37  ;;  %vm1225_vm0 = vcmp.lt.f32.partialorder %v2285_v6, 0.0 }
  0xfa   : > { %v1161_v8 = vmul.f32 0.3275911, %v1159_v7  ;;  %v1213_v38 = vsub.f32 0.0, %v1159_v7 }
  0xfc   : > { %v1928_v9 = vpop.eup %1927  ;;  %v1163_v11 = vadd.f32 1.0, %v1161_v8  ;;  %v1215_v44 = vmul.f32 %v1213_v38, %v1159_v7  ;;  %v1244_v8 = vrot.slane %v1237_v42, 1 }
  0xfd   : > { %v1165_v10 = vmul.f32 %v1928_v9, %v1162_v4  ;;  %vm1170_vm6 = vweird.f32 %v1928_v9 }
  0xfe   : > { %1929 = vrcp.f32 %v1163_v11  ;;  %vm1171_vm8 = vmor %vm1169_vm7, %vm1170_vm6  ;;  %v1190_v26 = vand.u32 2147483648, %v1163_v11  ;;  %v1188_v29 = vand.u32 2147483647, %v1163_v11  ;;  %vm1184_vm11 = vweird.f32 %v1163_v11 }
  0xff   : > { %v1166_v12 = vsub.f32 1.0, %v1165_v10  ;;  %1931 = vpow2.f32 %v1216_v34  ;;  %v1218_v49 = vmul.f32 1.442695, %v1215_v44 }
 0x100   : > { %v1191_v33 = vor.u32 1.1754944e-38, %v1190_v26  ;;  %vm1189_vm13 = vcmp.eq.f32.partialorder %v1188_v29, 8.507059e+37 }
 0x101   : > { %v1167_v14 = vmul.f32 %v1928_v9, %v1166_v12  ;;  %1933 = vpow2.f32 %v1218_v49  ;;  %v1154_v12 = vmul.f32 0.5, %v2276_v57 }
 0x103   : > { %v1168_v16 = vadd.f32 %v1928_v9, %v1167_v14 }
 0x104   : > { %v1930_v18 = vpop.eup %1929 }
 0x105   : > { %v1172_v19 = vsel %vm1171_vm8, %v1928_v9, %v1168_v16  ;;  %v1180_v22 = vmul.f32 %v1930_v18, %v1163_v11  ;;  %vm1185_vm10 = vweird.f32 %v1930_v18  ;;  %v1932_v50 = vpop.eup %1931  ;;  %v1245_v9 = vrot.slane %v1238_v1, 1 }
 0x106   : > { %v1177_v20 = vsel %vm1174_vm9, %v1176_v17, %v1172_v19  ;;  %vm1186_vm12 = vmor %vm1184_vm11, %vm1185_vm10  ;;  %v1247_v11 = vrot.slane %v1239_v3, 1 }
 0x107   : > { %v1194_v23 = vmul.f32 1.0614054, %v1177_v20  ;;  %v1181_v24 = vsub.f32 1.0, %v1180_v22  ;;  %v1934_v63 = vpop.eup %1933  ;;  %v1246_v16 = vsel %vm1243_vm15, %v1244_v8, %v1245_v9 }
 0x108   : > { %v1248_v17 = vsel %vm1243_vm15, %v1245_v9, %v1247_v11 }
 0x109   : > { %v1196_v25 = vadd.f32 -1.4531521, %v1194_v23  ;;  %v1182_v28 = vmul.f32 %v1930_v18, %v1181_v24 }
 0x10b   : > { %v1198_v30 = vmul.f32 %v1196_v25, %v1177_v20  ;;  %v1183_v31 = vadd.f32 %v1930_v18, %v1182_v28 }
 0x10d   : > { %v1200_v32 = vadd.f32 1.4214138, %v1198_v30  ;;  %v1187_v35 = vsel %vm1186_vm12, %v1930_v18, %v1183_v31 }
 0x10e   : > { %v1192_v37 = vsel %vm1189_vm13, %v1191_v33, %v1187_v35 }
 0x10f   : > { %v1202_v36 = vmul.f32 %v1200_v32, %v1177_v20  ;;  %v1195_v39 = vmul.f32 1.0614054, %v1192_v37 }
 0x111   : > { %v1204_v40 = vadd.f32 -0.28449672, %v1202_v36  ;;  %v1197_v41 = vadd.f32 -1.4531521, %v1195_v39 }
 0x113   : > { %v1206_v43 = vmul.f32 %v1204_v40, %v1177_v20  ;;  %v1199_v45 = vmul.f32 %v1197_v41, %v1192_v37 }
 0x115   : > { %v1208_v46 = vadd.f32 0.2548296, %v1206_v43  ;;  %v1201_v47 = vadd.f32 1.4214138, %v1199_v45 }
 0x117   : > { %v1210_v48 = vmul.f32 %v1208_v46, %v1177_v20  ;;  %v1203_v51 = vmul.f32 %v1201_v47, %v1192_v37 }
 0x119   : > { %v1220_v52 = vmul.f32 %v1932_v50, %v1210_v48  ;;  %v1205_v53 = vadd.f32 -0.28449672, %v1203_v51 }
 0x11b   : > { %v1222_v54 = vsub.f32 1.0, %v1220_v52  ;;  %v1207_v55 = vmul.f32 %v1205_v53, %v1192_v37 }
 0x11d   : > { %v1226_v56 = vsub.f32 0.0, %v1222_v54  ;;  %v1209_v59 = vadd.f32 0.2548296, %v1207_v55 }
 0x11f   : > { %v1211_v62 = vmul.f32 %v1209_v59, %v1192_v37  ;;  %v1228_v0 = vsel %vm1224_vm14, %v1226_v56, %v1222_v54 }
 0x120   : > { %v1230_v7 = vadd.f32 1.0, %v1228_v0 }
 0x121   : > { %v1221_v2 = vmul.f32 %v1934_v63, %v1211_v62 }
 0x122   : > { %v1232_v14 = vmul.f32 %v1230_v7, %v1154_v12 }
 0x123   : > { %v1223_v4 = vsub.f32 1.0, %v1221_v2 }
 0x124   : > { %v1251_v19 = vadd.f32 %v1246_v16, %v1232_v14 }
 0x125   : > { %v1227_v10 = vsub.f32 0.0, %v1223_v4 }
 0x127   : > { %v1229_v13 = vsel %vm1225_vm0, %v1227_v10, %v1223_v4 }
 0x128   : > { %v1231_v15 = vadd.f32 1.0, %v1229_v13 }
 0x12a   : > { %v1233_v18 = vmul.f32 %v1231_v15, %v1155_v61 }
 0x12c   : > { %v1252_v20 = vadd.f32 %v1248_v17, %v1233_v18 }
 0x12e   : > { %v1899_v21 = vpack.c.bf16 %v1252_v20, %v1251_v19 }
 0x130   : > { %1900 = vst [vmem:[%s279_s29] sm:$0xff] %v1899_v21  }
 0x131 PF: > { %s14_s17 = sadd.s32 1, %s1957_s17   ;;  %s2319_s15 = smov %s1953_s16 }
 0x132   : > { %p11_p5 = scmp.ge.s32.totalorder %s14_s17, 6   ;;  %s2320_s16 = smov %s2322_s18 }
 0x134   :  { %13 = sbr.rel (!%p11_p5) target bundleno = 2 (0x2), region = 77 }

// kernel: conv_layer_forward.20
= control target key start
LH: loop header
LB: loop body
LE: loop exit
PB: predicated region body
PF: predicated region fallthrough
CT: control target
= control target key end

     0   :  { %s1372_s1 = inlined_call_operand.vmem [shape: bf16[1152,128], index: 1, kind: input, shape index: {}]   ;;  %s1373_s2 = inlined_call_operand.vmem [shape: f32[1,128], index: 2, kind: input, shape index: {}]   ;;  %s1374_s0 = inlined_call_operand.vmem [shape: bf16[8,1152], index: 0, kind: input, shape index: {}]   ;;  %s1375_s3 = inlined_call_operand.vmem [shape: bf16[8,128], index: 3, kind: output, shape index: {}]  }
   0x1   :  { %v1049_v0 = vld [vmem:[%s1372_s1 + $0x38] sm:$0xff]  ;;  %v1048_v4 = vld [vmem:[%s1372_s1 + $0x30] sm:$0xff]  ;;  %v1047_v8 = vld [vmem:[%s1372_s1 + $0x28] sm:$0xff] }
   0x2   :  { %v1065_v1 = vld [vmem:[%s1372_s1 + $0xb8] sm:$0xff]  ;;  %631 = vmatpush.bf16.msra.mxu0 %v1049_v0  ;;  %v1064_v5 = vld [vmem:[%s1372_s1 + $0xb0] sm:$0xff]  ;;  %v1063_v9 = vld [vmem:[%s1372_s1 + $0xa8] sm:$0xff] }
   0x3   :  { %v1073_v2 = vld [vmem:[%s1372_s1 + $0xf8] sm:$0xff]  ;;  %657 = vmatpush.bf16.msra.mxu2 %v1065_v1  ;;  %v1072_v6 = vld [vmem:[%s1372_s1 + $0xf0] sm:$0xff]  ;;  %v1071_v10 = vld [vmem:[%s1372_s1 + $0xe8] sm:$0xff] }
   0x4   :  { %v1057_v3 = vld [vmem:[%s1372_s1 + $0x78] sm:$0xff]  ;;  %670 = vmatpush.bf16.msra.mxu3 %v1073_v2  ;;  %v1056_v7 = vld [vmem:[%s1372_s1 + $0x70] sm:$0xff]  ;;  %v1055_v11 = vld [vmem:[%s1372_s1 + $0x68] sm:$0xff] }
   0x5   :  { %644 = vmatpush.bf16.msra.mxu1 %v1057_v3  ;;  %v1046_v12 = vld [vmem:[%s1372_s1 + $0x20] sm:$0xff]  ;;  %v1045_v16 = vld [vmem:[%s1372_s1 + $0x18] sm:$0xff]  ;;  %v1044_v20 = vld [vmem:[%s1372_s1 + $0x10] sm:$0xff] }
   0x6   :  { %632 = vmatpush.bf16.msra.mxu0 %v1048_v4  ;;  %v1062_v13 = vld [vmem:[%s1372_s1 + $0xa0] sm:$0xff]  ;;  %v1061_v17 = vld [vmem:[%s1372_s1 + $0x98] sm:$0xff]  ;;  %v1060_v21 = vld [vmem:[%s1372_s1 + $0x90] sm:$0xff] }
   0x7   :  { %658 = vmatpush.bf16.msra.mxu2 %v1064_v5  ;;  %v1070_v14 = vld [vmem:[%s1372_s1 + $0xe0] sm:$0xff]  ;;  %v1069_v18 = vld [vmem:[%s1372_s1 + $0xd8] sm:$0xff]  ;;  %v1068_v22 = vld [vmem:[%s1372_s1 + $0xd0] sm:$0xff] }
   0x8   :  { %671 = vmatpush.bf16.msra.mxu3 %v1072_v6  ;;  %v1054_v15 = vld [vmem:[%s1372_s1 + $0x60] sm:$0xff]  ;;  %v1053_v19 = vld [vmem:[%s1372_s1 + $0x58] sm:$0xff]  ;;  %v1052_v23 = vld [vmem:[%s1372_s1 + $0x50] sm:$0xff] }
   0x9   :  { %645 = vmatpush.bf16.msra.mxu1 %v1056_v7  ;;  %v1043_v24 = vld [vmem:[%s1372_s1 + $0x8] sm:$0xff]  ;;  %v14_v29 = vld [vmem:[%s1374_s0] sm:$0xff]  ;;  %v1081_v34 = vld [vmem:[%s1372_s1 + $0x138] sm:$0xff] }
   0xa   :  { %633 = vmatpush.bf16.msra.mxu0 %v1047_v8  ;;  %v1059_v25 = vld [vmem:[%s1372_s1 + $0x88] sm:$0xff]  ;;  %v1042_v30 = vld [vmem:[%s1372_s1] sm:$0xff]  ;;  %v172_v33 = vunpack.c.l.b16 %v14_v29  ;;  %v1097_v35 = vld [vmem:[%s1372_s1 + $0x1b8] sm:$0xff]  ;;  %v173_v39 = vunpack.c.h.b16 %v14_v29 }
   0xb   :  { %659 = vmatpush.bf16.msra.mxu2 %v1063_v9  ;;  %v1067_v26 = vld [vmem:[%s1372_s1 + $0xc8] sm:$0xff]  ;;  %v1058_v31 = vld [vmem:[%s1372_s1 + $0x80] sm:$0xff]  ;;  %v1105_v40 = vld [vmem:[%s1372_s1 + $0x1f8] sm:$0xff] }
   0xc   :  { %672 = vmatpush.bf16.msra.mxu3 %v1071_v10  ;;  %v1051_v27 = vld [vmem:[%s1372_s1 + $0x48] sm:$0xff]  ;;  %v1066_v36 = vld [vmem:[%s1372_s1 + $0xc0] sm:$0xff]  ;;  %v1089_v41 = vld [vmem:[%s1372_s1 + $0x178] sm:$0xff]  ;;  %v181_v43 = vpack.c.b16 %v172_v33, %v172_v33  ;;  %v182_v47 = vpack.c.b16 %v173_v39, %v173_v39 }
   0xd   :  { %646 = vmatpush.bf16.msra.mxu1 %v1055_v11  ;;  %v15_v28 = vld [vmem:[%s1374_s0 + $0x8] sm:$0xff]  ;;  %v1050_v37 = vld [vmem:[%s1372_s1 + $0x40] sm:$0xff]  ;;  %v1080_v44 = vld [vmem:[%s1372_s1 + $0x130] sm:$0xff] }
   0xe   :  { %634 = vmatpush.bf16.msra.mxu0 %v1046_v12  ;;  %v174_v32 = vunpack.c.l.b16 %v15_v28  ;;  %v175_v38 = vunpack.c.h.b16 %v15_v28  ;;  %v1096_v45 = vld [vmem:[%s1372_s1 + $0x1b0] sm:$0xff]  ;;  %v1079_v50 = vld [vmem:[%s1372_s1 + $0x128] sm:$0xff]  ;;  %v1078_v54 = vld [vmem:[%s1372_s1 + $0x120] sm:$0xff] }
   0xf   :  { %660 = vmatpush.bf16.msra.mxu2 %v1062_v13  ;;  %v1104_v48 = vld [vmem:[%s1372_s1 + $0x1f0] sm:$0xff]  ;;  %v1095_v51 = vld [vmem:[%s1372_s1 + $0x1a8] sm:$0xff]  ;;  %v1094_v55 = vld [vmem:[%s1372_s1 + $0x1a0] sm:$0xff] }
  0x10   :  { %673 = vmatpush.bf16.msra.mxu3 %v1070_v14  ;;  %v183_v42 = vpack.c.b16 %v174_v32, %v174_v32  ;;  %v184_v46 = vpack.c.b16 %v175_v38, %v175_v38  ;;  %v1088_v49 = vld [vmem:[%s1372_s1 + $0x170] sm:$0xff]  ;;  %v1103_v52 = vld [vmem:[%s1372_s1 + $0x1e8] sm:$0xff]  ;;  %v1102_v56 = vld [vmem:[%s1372_s1 + $0x1e0] sm:$0xff] }
  0x11   :  { %647 = vmatpush.bf16.msra.mxu1 %v1054_v15  ;;  %v1087_v53 = vld [vmem:[%s1372_s1 + $0x168] sm:$0xff]  ;;  %v1086_v57 = vld [vmem:[%s1372_s1 + $0x160] sm:$0xff]  ;;  %v1077_v58 = vld [vmem:[%s1372_s1 + $0x118] sm:$0xff] }
  0x12   :  { %635 = vmatpush.bf16.msra.mxu0 %v1045_v16  ;;  %v1093_v59 = vld [vmem:[%s1372_s1 + $0x198] sm:$0xff]  ;;  %v1076_v62 = vld [vmem:[%s1372_s1 + $0x110] sm:$0xff]  ;;  %v1075_v2 = vld [vmem:[%s1372_s1 + $0x108] sm:$0xff] }
  0x13   :  { %661 = vmatpush.bf16.msra.mxu2 %v1061_v17  ;;  %v1101_v60 = vld [vmem:[%s1372_s1 + $0x1d8] sm:$0xff]  ;;  %v1092_v63 = vld [vmem:[%s1372_s1 + $0x190] sm:$0xff]  ;;  %v1091_v3 = vld [vmem:[%s1372_s1 + $0x188] sm:$0xff] }
  0x14   :  { %674 = vmatpush.bf16.msra.mxu3 %v1069_v18  ;;  %v1085_v61 = vld [vmem:[%s1372_s1 + $0x158] sm:$0xff]  ;;  %v1100_v0 = vld [vmem:[%s1372_s1 + $0x1d0] sm:$0xff]  ;;  %v1099_v6 = vld [vmem:[%s1372_s1 + $0x1c8] sm:$0xff] }
  0x15   :  { %648 = vmatpush.bf16.msra.mxu1 %v1053_v19  ;;  %v1084_v1 = vld [vmem:[%s1372_s1 + $0x150] sm:$0xff]  ;;  %v17_v4 = vld [vmem:[%s1374_s0 + $0x18] sm:$0xff]  ;;  %v1083_v7 = vld [vmem:[%s1372_s1 + $0x148] sm:$0xff] }
  0x16   :  { %636 = vmatpush.bf16.msra.mxu0 %v1044_v20  ;;  %v16_v5 = vld [vmem:[%s1374_s0 + $0x10] sm:$0xff]  ;;  %v178_v8 = vunpack.c.l.b16 %v17_v4  ;;  %v1074_v10 = vld [vmem:[%s1372_s1 + $0x100] sm:$0xff]  ;;  %v1113_v12 = vld [vmem:[%s1372_s1 + $0x238] sm:$0xff]  ;;  %v179_v13 = vunpack.c.h.b16 %v17_v4 }
  0x17   :  { %662 = vmatpush.bf16.msra.mxu2 %v1060_v21  ;;  %v176_v9 = vunpack.c.l.b16 %v16_v5  ;;  %v1090_v11 = vld [vmem:[%s1372_s1 + $0x180] sm:$0xff]  ;;  %v177_v16 = vunpack.c.h.b16 %v16_v5  ;;  %v1112_v19 = vld [vmem:[%s1372_s1 + $0x230] sm:$0xff] }
  0x18   :  { %675 = vmatpush.bf16.msra.mxu3 %v1068_v22  ;;  %v1098_v14 = vld [vmem:[%s1372_s1 + $0x1c0] sm:$0xff]  ;;  %v187_v17 = vpack.c.b16 %v178_v8, %v178_v8  ;;  %v188_v20 = vpack.c.b16 %v179_v13, %v179_v13  ;;  %v1111_v22 = vld [vmem:[%s1372_s1 + $0x228] sm:$0xff] }
  0x19   :  { %649 = vmatpush.bf16.msra.mxu1 %v1052_v23  ;;  %v1082_v15 = vld [vmem:[%s1372_s1 + $0x140] sm:$0xff]  ;;  %v185_v18 = vpack.c.b16 %v176_v9, %v176_v9  ;;  %v186_v21 = vpack.c.b16 %v177_v16, %v177_v16 }
  0x1a   :  { %637 = vmatpush.bf16.msra.mxu0 %v1043_v24  ;;  %v1110_v23 = vld [vmem:[%s1372_s1 + $0x220] sm:$0xff]  ;;  %v1109_v24 = vld [vmem:[%s1372_s1 + $0x218] sm:$0xff] }
  0x1b   :  { %663 = vmatpush.bf16.msra.mxu2 %v1059_v25  ;;  %v1108_v25 = vld [vmem:[%s1372_s1 + $0x210] sm:$0xff]  ;;  %v1106_v29 = vld [vmem:[%s1372_s1 + $0x200] sm:$0xff] }
  0x1c   :  { %676 = vmatpush.bf16.msra.mxu3 %v1067_v26  ;;  %v1107_v26 = vld [vmem:[%s1372_s1 + $0x208] sm:$0xff]  ;;  %v1114_v39 = vld [vmem:[%s1373_s2] ss:$0 sm:$0xff] }
  0x1d   :  { %650 = vmatpush.bf16.msra.mxu1 %v1051_v27  ;;  %v18_v27 = vld [vmem:[%s1374_s0 + $0x20] sm:$0xf] }
  0x1e   :  { %638 = vmatpush.bf16.msra.mxu0 %v1042_v30  ;;  %v180_v28 = vunpack.c.l.b16 %v18_v27 }
  0x1f   :  { %664 = vmatpush.bf16.msra.mxu2 %v1058_v31 }
  0x20   :  { %677 = vmatpush.bf16.msra.mxu3 %v1066_v36  ;;  %v189_v30 = vpack.c.b16 %v180_v28, %v180_v28 }
  0x21   :  { %651 = vmatpush.bf16.msra.mxu1 %v1050_v37  ;;  %639 = vmatmul.bf16.vlgmr.msra.gmra.mxu0 %v181_v43 }
  0x22   :  { %683 = vmatpush.bf16.msrb.mxu0 %v1081_v34  ;;  %665 = vmatmul.bf16.vlgmr.msra.gmra.mxu2 %v183_v42 }
  0x23   :  { %709 = vmatpush.bf16.msrb.mxu2 %v1097_v35  ;;  %678 = vmatmul.bf16.vlgmr.msra.gmra.mxu3 %v184_v46 }
  0x24   :  { %722 = vmatpush.bf16.msrb.mxu3 %v1105_v40  ;;  %652 = vmatmul.bf16.vlgmr.msra.gmra.mxu1 %v182_v47 }
  0x25   :  { %696 = vmatpush.bf16.msrb.mxu1 %v1089_v41 }
  0x26   :  { %684 = vmatpush.bf16.msrb.mxu0 %v1080_v44 }
  0x27   :  { %710 = vmatpush.bf16.msrb.mxu2 %v1096_v45 }
  0x28   :  { %723 = vmatpush.bf16.msrb.mxu3 %v1104_v48 }
  0x29   :  { %697 = vmatpush.bf16.msrb.mxu1 %v1088_v49 }
  0x2a   :  { %685 = vmatpush.bf16.msrb.mxu0 %v1079_v50 }
  0x2b   :  { %711 = vmatpush.bf16.msrb.mxu2 %v1095_v51 }
  0x2c   :  { %724 = vmatpush.bf16.msrb.mxu3 %v1103_v52 }
  0x2d   :  { %698 = vmatpush.bf16.msrb.mxu1 %v1087_v53 }
  0x2e   :  { %686 = vmatpush.bf16.msrb.mxu0 %v1078_v54 }
  0x2f   :  { %712 = vmatpush.bf16.msrb.mxu2 %v1094_v55 }
  0x30   :  { %725 = vmatpush.bf16.msrb.mxu3 %v1102_v56 }
  0x31   :  { %699 = vmatpush.bf16.msrb.mxu1 %v1086_v57 }
  0x32   :  { %687 = vmatpush.bf16.msrb.mxu0 %v1077_v58 }
  0x33   :  { %713 = vmatpush.bf16.msrb.mxu2 %v1093_v59 }
  0x34   :  { %726 = vmatpush.bf16.msrb.mxu3 %v1101_v60 }
  0x35   :  { %700 = vmatpush.bf16.msrb.mxu1 %v1085_v61 }
  0x36   :  { %688 = vmatpush.bf16.msrb.mxu0 %v1076_v62 }
  0x37   :  { %714 = vmatpush.bf16.msrb.mxu2 %v1092_v63 }
  0x38   :  { %727 = vmatpush.bf16.msrb.mxu3 %v1100_v0 }
  0x39   :  { %701 = vmatpush.bf16.msrb.mxu1 %v1084_v1 }
  0x3a   :  { %689 = vmatpush.bf16.msrb.mxu0 %v1075_v2 }
  0x3b   :  { %715 = vmatpush.bf16.msrb.mxu2 %v1091_v3 }
  0x3c   :  { %728 = vmatpush.bf16.msrb.mxu3 %v1099_v6 }
  0x3d   :  { %702 = vmatpush.bf16.msrb.mxu1 %v1083_v7 }
  0x3e   :  { %690 = vmatpush.bf16.msrb.mxu0 %v1074_v10 }
  0x3f   :  { %716 = vmatpush.bf16.msrb.mxu2 %v1090_v11 }
  0x40   :  { %729 = vmatpush.bf16.msrb.mxu3 %v1098_v14 }
  0x41   :  { %703 = vmatpush.bf16.msrb.mxu1 %v1082_v15  ;;  %691 = vmatmul.bf16.vlgmr.msrb.gmra.mxu0 %v185_v18 }
  0x42   :  { %735 = vmatpush.bf16.msra.mxu0 %v1113_v12  ;;  %717 = vmatmul.bf16.vlgmr.msrb.gmra.mxu2 %v187_v17 }
  0x43   :  { %730 = vmatmul.bf16.vlgmr.msrb.gmra.mxu3 %v188_v20 }
  0x44   :  { %704 = vmatmul.bf16.vlgmr.msrb.gmra.mxu1 %v186_v21 }
  0x46   :  { %736 = vmatpush.bf16.msra.mxu0 %v1112_v19 }
  0x4a   :  { %737 = vmatpush.bf16.msra.mxu0 %v1111_v22 }
  0x4e   :  { %738 = vmatpush.bf16.msra.mxu0 %v1110_v23 }
  0x52   :  { %739 = vmatpush.bf16.msra.mxu0 %v1109_v24 }
  0x56   :  { %740 = vmatpush.bf16.msra.mxu0 %v1108_v25 }
  0x5a   :  { %741 = vmatpush.bf16.msra.mxu0 %v1107_v26 }
  0x5e   :  { %742 = vmatpush.bf16.msra.mxu0 %v1106_v29 }
  0x61   :  { %743 = vmatmul.bf16.vlgmr.msra.gmra.mxu0 %v189_v30 }
  0x9e   :  { %v640_v31 = vpop.f32.mrf.mxu0 }
  0x9f   :  { %v641_v40 = vadd.f32 %v1114_v39, %v640_v31 }
  0xa1   :  { %v653_v32 = vpop.f32.mrf.mxu1 }
  0xa2   :  { %v654_v43 = vadd.f32 %v653_v32, %v641_v40 }
  0xa5   :  { %v666_v33 = vpop.f32.mrf.mxu2 }
  0xa6   :  { %v679_v34 = vpop.f32.mrf.mxu3  ;;  %v642_v35 = vpop.f32.mrf.mxu0  ;;  %v667_v45 = vadd.f32 %v666_v33, %v654_v43 }
  0xa8   :  { %v680_v49 = vadd.f32 %v679_v34, %v667_v45 }
  0xa9   :  { %v655_v36 = vpop.f32.mrf.mxu1 }
  0xad   :  { %v668_v37 = vpop.f32.mrf.mxu2 }
  0xae   :  { %v681_v38 = vpop.f32.mrf.mxu3 }
  0xbe   :  { %v692_v41 = vpop.f32.mrf.mxu0 }
  0xbf   :  { %v693_v51 = vadd.f32 %v692_v41, %v680_v49 }
  0xc1   :  { %v705_v42 = vpop.f32.mrf.mxu1 }
  0xc2   :  { %v706_v53 = vadd.f32 %v705_v42, %v693_v51 }
  0xc5   :  { %v718_v44 = vpop.f32.mrf.mxu2 }
  0xc6   :  { %v731_v46 = vpop.f32.mrf.mxu3  ;;  %v694_v47 = vpop.f32.mrf.mxu0  ;;  %v719_v54 = vadd.f32 %v718_v44, %v706_v53 }
  0xc8   :  { %v732_v55 = vadd.f32 %v731_v46, %v719_v54 }
  0xc9   :  { %v707_v48 = vpop.f32.mrf.mxu1 }
  0xcd   :  { %v720_v50 = vpop.f32.mrf.mxu2 }
  0xce   :  { %v733_v52 = vpop.f32.mrf.mxu3 }
  0xde   :  { %v744_v56 = vpop.f32.mrf.mxu0 }
  0xdf   :  { %v745_v57 = vadd.f32 %v744_v56, %v732_v55 }
  0xe1   :  { %v748_v58 = vpack.c.bf16 %v745_v57, %v745_v57 }
  0xe3   :  { %749 = vst [vmem:[%s1375_s3] sm:$0xf] %v748_v58 }
  0xe6   :  { %v746_v59 = vpop.f32.mrf.mxu0 }

// kernel: conv_layer_forward.21
= control target key start
LH: loop header
LB: loop body
LE: loop exit
PB: predicated region body
PF: predicated region fallthrough
CT: control target
= control target key end

     0   :  { %s1724_s12 = smov 0   ;;  %s1726_s13 = smov 0   ;;  %s2020_s0 = inlined_call_operand.vmem [shape: bf16[4,32,128], index: 0, kind: input, shape index: {}]   ;;  %s2021_s1 = inlined_call_operand.vmem [shape: bf16[3,384,128], index: 1, kind: input, shape index: {}]   ;;  %s2022_s2 = inlined_call_operand.vmem [shape: f32[1,128], index: 2, kind: input, shape index: {}]   ;;  %s2023_s3 = inlined_call_operand.vmem [shape: bf16[4,8,128], index: 3, kind: output, shape index: {}]  }
   0x1   :  { %s1728_s14 = smov 0  }
   0x2 LB: > { %s25_s15 = sadd.s32 1, %s1698_s13  ;;  %p1187_p0 = scmp.ge.s32.totalorder %s1702_s14, 1  ;;  %s1702_s14 = sphi %s1728_s14, %s13_s14   ;;  %s1698_s13 = sphi %s1726_s13, %s2029_s13   ;;  %s1694_s12 = sphi %s1724_s12, %s2028_s12  }
   0x3   : > { %p27_p1 = scmp.ge.s32.totalorder %s25_s15, 4  ;;  %p168_p2 = scmp.lt.s32.totalorder %s1702_s14, 5 }
   0x5   : > { %s2031_s15 = smov (%p27_p1, %s25_s15), 0  ;;  %p169_p3 = pnand %p1187_p0, %p168_p2 }
   0x6   : > { %p201_p4 = scmp.lt.s32.totalorder (!%p169_p3), %s1694_s12, 3 }
   0x7   : > { %172 = sbr.rel (%p169_p3) target bundleno = 295 (0x127), region = 32 }
   0xc   : > { %v1586_v0 = vld [vmem:[%s2021_s1 + $0x38] sm:$0xff]  ;;  %v1585_v2 = vld [vmem:[%s2021_s1 + $0x30] sm:$0xff]  ;;  %s2033_s12 = smov (!%p201_p4, %s1694_s12), 3  ;;  %v1584_v8 = vld [vmem:[%s2021_s1 + $0x28] sm:$0xff]  ;;  %vm230_vm0 = vsmask.f32 3328 }
   0xd   : > { %v1594_v1 = vld [vmem:[%s2021_s1 + $0x78] sm:$0xff]  ;;  %509 = vmatpush.bf16.msra.mxu0 %v1586_v0  ;;  %v1593_v3 = vld [vmem:[%s2021_s1 + $0x70] sm:$0xff]  ;;  %v1592_v9 = vld [vmem:[%s2021_s1 + $0x68] sm:$0xff]  ;;  %s1578_s17 = sshll.u32 %s2033_s12, 4  ;;  %vm231_vm1 = vsmask.f32 7440 }
   0xe   : > { %522 = vmatpush.bf16.msra.mxu1 %v1594_v1  ;;  %v1602_v4 = vld [vmem:[%s2021_s1 + $0xb8] sm:$0xff]  ;;  %v1601_v6 = vld [vmem:[%s2021_s1 + $0xb0] sm:$0xff]  ;;  %v1600_v10 = vld [vmem:[%s2021_s1 + $0xa8] sm:$0xff]  ;;  %s1790_s24 = scalar_lea.vmem %s2020_s0, %s1578_s17  ;;  %vm281_vm2 = vcmask 1042432   ;;  %vm282_vm3 = vcmask 1046532   ;;  %s1190_s30 = sshll.u32 %s2033_s12, 2 }
   0xf   : > { %v1610_v5 = vld [vmem:[%s2021_s1 + $0xf8] sm:$0xff]  ;;  %535 = vmatpush.bf16.msra.mxu2 %v1602_v4  ;;  %v1609_v7 = vld [vmem:[%s2021_s1 + $0xf0] sm:$0xff]  ;;  %v1608_v11 = vld [vmem:[%s2021_s1 + $0xe8] sm:$0xff] }
  0x10   : > { %754 = vmatpush.bf16.msra.mxu3 %v1610_v5  ;;  %v1583_v12 = vld [vmem:[%s2021_s1 + $0x20] sm:$0xff]  ;;  %v1582_v16 = vld [vmem:[%s2021_s1 + $0x18] sm:$0xff]  ;;  %v1581_v27 = vld [vmem:[%s2021_s1 + $0x10] sm:$0xff] }
  0x11   : > { %510 = vmatpush.bf16.msra.mxu0 %v1585_v2  ;;  %v1591_v13 = vld [vmem:[%s2021_s1 + $0x60] sm:$0xff]  ;;  %v1590_v17 = vld [vmem:[%s2021_s1 + $0x58] sm:$0xff]  ;;  %v1589_v32 = vld [vmem:[%s2021_s1 + $0x50] sm:$0xff] }
  0x12   : > { %523 = vmatpush.bf16.msra.mxu1 %v1593_v3  ;;  %v1599_v14 = vld [vmem:[%s2021_s1 + $0xa0] sm:$0xff]  ;;  %v1598_v25 = vld [vmem:[%s2021_s1 + $0x98] sm:$0xff]  ;;  %v1597_v33 = vld [vmem:[%s2021_s1 + $0x90] sm:$0xff] }
  0x13   : > { %536 = vmatpush.bf16.msra.mxu2 %v1601_v6  ;;  %v1607_v15 = vld [vmem:[%s2021_s1 + $0xe0] sm:$0xff]  ;;  %v1606_v26 = vld [vmem:[%s2021_s1 + $0xd8] sm:$0xff]  ;;  %v1605_v35 = vld [vmem:[%s2021_s1 + $0xd0] sm:$0xff] }
  0x14   : > { %755 = vmatpush.bf16.msra.mxu3 %v1609_v7  ;;  %v220_v18 = vld [vmem:[%s1790_s24] sm:$0xf]  ;;  %v227_v20 = vld [vmem:[%s1790_s24 + $0x4] sm:$0xf]  ;;  %vm1827_vm4 = vmor %vm230_vm0, %vm231_vm1 }
  0x15   : > { %511 = vmatpush.bf16.msra.mxu0 %v1584_v8  ;;  %v226_v19 = vld [vmem:[%s1790_s24] sm:$0xf]  ;;  %223 = vst [vmem:[#allocation2] sm:$0xf] %v220_v18  ;;  %v243_v23 = vshll.u32 %v227_v20, 16  ;;  %v247_v24 = vshrl.u32 %v227_v20, 16  ;;  %vm1836_vm5 = vmor %vm281_vm2, %vm282_vm3 }
  0x16   : > { %524 = vmatpush.bf16.msra.mxu1 %v1592_v9  ;;  %v234_v21 = vshrl.u32 %v226_v19, 16  ;;  %v237_v22 = vshll.u32 %v226_v19, 16  ;;  %v221_v34 = vld [vmem:[%s1790_s24 + $0x4] sm:$0xf]  ;;  %v228_v38 = vld [vmem:[%s1790_s24 + $0x8] sm:$0xf] }
  0x17   : > { %537 = vmatpush.bf16.msra.mxu2 %v1600_v10  ;;  %v245_v30 = vrot.slane %v243_v23, 5  ;;  %v249_v31 = vrot.slane %v247_v24, 4  ;;  %224 = vst [vmem:[#allocation2 + $0xc] sm:$0xf] %v221_v34  ;;  %v253_v40 = vshll.u32 %v228_v38, 16  ;;  %v1580_v49 = vld [vmem:[%s2021_s1 + $0x8] sm:$0xff] }
  0x18   : > { %756 = vmatpush.bf16.msra.mxu3 %v1608_v11  ;;  %v236_v28 = vrot.slane %v234_v21, 4  ;;  %v239_v29 = vrot.slane %v237_v22, 5  ;;  %v273_v41 = vld [vmem:[%s1790_s24] sm:$0xe]  ;;  %v274_v42 = vld [vmem:[%s1790_s24 + $0x4] sm:$0xf] }
  0x19   : > { %512 = vmatpush.bf16.msra.mxu0 %v1583_v12  ;;  %v250_v39 = vor.u32 %v249_v31, %v245_v30  ;;  %v275_v46 = vld [vmem:[%s1790_s24 + $0x8] sm:$0xf]  ;;  %v1191_v47 = vrot.slane %v273_v41, 9  ;;  %v286_v48 = vrot.slane %v274_v42, 5  ;;  %v255_v51 = vrot.slane %v253_v40, 5  ;;  %v1579_v2 = vld [vmem:[%s2021_s1] sm:$0xff] }
  0x1a   : > { %525 = vmatpush.bf16.msra.mxu1 %v1591_v13  ;;  %v240_v37 = vor.u32 %v239_v29, %v236_v28  ;;  %v1588_v50 = vld [vmem:[%s2021_s1 + $0x48] sm:$0xff]  ;;  %v257_v52 = vshrl.u32 %v228_v38, 16  ;;  %v289_v53 = vrot.slane %v275_v46, 5  ;;  %v1587_v3 = vld [vmem:[%s2021_s1 + $0x40] sm:$0xff]  ;;  %v1618_v7 = vld [vmem:[%s2021_s1 + $0x138] sm:$0xff] }
  0x1b   : > { %538 = vmatpush.bf16.msra.mxu2 %v1599_v14  ;;  %v251_v45 = vrot.slane %v250_v39, 4  ;;  %v1596_v54 = vld [vmem:[%s2021_s1 + $0x88] sm:$0xff]  ;;  %v287_v57 = vsel %vm1836_vm5, %v1191_v47, %v286_v48  ;;  %v288_v58 = vrot.slane %v286_v48, 4  ;;  %v1626_v8 = vld [vmem:[%s2021_s1 + $0x178] sm:$0xff]  ;;  %v1595_v9 = vld [vmem:[%s2021_s1 + $0x80] sm:$0xff] }
  0x1c   : > { %757 = vmatpush.bf16.msra.mxu3 %v1607_v15  ;;  %v241_v44 = vrot.slane %v240_v37, 4  ;;  %v276_v56 = vld [vmem:[%s1790_s24 + $0xc] sm:$0x1]  ;;  %v259_v61 = vrot.slane %v257_v52, 4  ;;  %v291_v62 = vrot.slane %v289_v53, 4  ;;  %v1603_v10 = vld [vmem:[%s2021_s1 + $0xc0] sm:$0xff] }
  0x1d   : > { %513 = vmatpush.bf16.msra.mxu0 %v1582_v16  ;;  %v1604_v59 = vld [vmem:[%s2021_s1 + $0xc8] sm:$0xff]  ;;  %v256_v60 = vsel %vm1827_vm4, %v251_v45, %v255_v51  ;;  %v292_v63 = vrot.slane %v276_v56, 5  ;;  %v290_v0 = vsel %vm1836_vm5, %v288_v58, %v289_v53  ;;  %297 = vst [vmem:[#allocation2 + $0x8] sm:$0xf] %v287_v57  ;;  %v1634_v13 = vld [vmem:[%s2021_s1 + $0x1b8] sm:$0xff]  ;;  %v1617_v15 = vld [vmem:[%s2021_s1 + $0x130] sm:$0xff] }
  0x1e   : > { %526 = vmatpush.bf16.msra.mxu1 %v1590_v17  ;;  %v246_v55 = vsel %vm1827_vm4, %v241_v44, %v245_v30  ;;  %271 = vst [vmem:[#allocation2 + $0x10] sm:$0xf] %v256_v60  ;;  %v229_v1 = vld [vmem:[%s1790_s24 + $0xc] sm:$0x1]  ;;  %v260_v4 = vor.u32 %v259_v61, %v255_v51  ;;  %v1642_v14 = vld [vmem:[%s2021_s1 + $0x1f8] sm:$0xff]  ;;  %v1625_v17 = vld [vmem:[%s2021_s1 + $0x170] sm:$0xff] }
  0x1f   : > { %539 = vmatpush.bf16.msra.mxu2 %v1598_v25  ;;  %270 = vst [vmem:[#allocation2 + $0x4] sm:$0xf] %v246_v55  ;;  %v293_v5 = vsel %vm1836_vm5, %v291_v62, %v292_v63  ;;  %v263_v6 = vshll.u32 %v229_v1, 16  ;;  %v222_v19 = vld [vmem:[%s1790_s24 + $0x8] sm:$0xf]  ;;  %v1633_v23 = vld [vmem:[%s2021_s1 + $0x1b0] sm:$0xff]  ;;  %s219_s24 = scalar_lea.vmem %s2023_s3, %s1190_s30 }
  0x20   : > { %758 = vmatpush.bf16.msra.mxu3 %v1606_v26  ;;  %299 = vst [vmem:[#allocation2 + $0x20] sm:$0xf] %v293_v5  ;;  %v261_v11 = vrot.slane %v260_v4, 4  ;;  %v1641_v24 = vld [vmem:[%s2021_s1 + $0x1f0] sm:$0xff]  ;;  %v1616_v30 = vld [vmem:[%s2021_s1 + $0x128] sm:$0xff]  ;;  %v1615_v36 = vld [vmem:[%s2021_s1 + $0x120] sm:$0xff] }
  0x21   : > { %514 = vmatpush.bf16.msra.mxu0 %v1581_v27  ;;  %298 = vst [vmem:[#allocation2 + $0x14] sm:$0xf] %v290_v0  ;;  %v265_v12 = vrot.slane %v263_v6, 5  ;;  %v1624_v31 = vld [vmem:[%s2021_s1 + $0x168] sm:$0xff]  ;;  %v1623_v37 = vld [vmem:[%s2021_s1 + $0x160] sm:$0xff]  ;;  %v1614_v40 = vld [vmem:[%s2021_s1 + $0x118] sm:$0xff] }
  0x22   : > { %527 = vmatpush.bf16.msra.mxu1 %v1589_v32  ;;  %225 = vst [vmem:[#allocation2 + $0x18] sm:$0xf] %v222_v19  ;;  %v1632_v34 = vld [vmem:[%s2021_s1 + $0x1a8] sm:$0xff]  ;;  %v1631_v38 = vld [vmem:[%s2021_s1 + $0x1a0] sm:$0xff]  ;;  %v1622_v41 = vld [vmem:[%s2021_s1 + $0x158] sm:$0xff] }
  0x23   : > { %540 = vmatpush.bf16.msra.mxu2 %v1597_v33  ;;  %v266_v16 = vsel %vm1827_vm4, %v261_v11, %v265_v12  ;;  %v1639_v39 = vld [vmem:[%s2021_s1 + $0x1e0] sm:$0xff]  ;;  %v1630_v42 = vld [vmem:[%s2021_s1 + $0x198] sm:$0xff]  ;;  %v1613_v44 = vld [vmem:[%s2021_s1 + $0x110] sm:$0xff] }
  0x24   : > { %759 = vmatpush.bf16.msra.mxu3 %v1605_v35  ;;  %272 = vst [vmem:[#allocation2 + $0x1c] sm:$0xf] %v266_v16  ;;  %v301_v26 = vld [vmem:[#allocation2 + $0x8] sm:$0xf]  ;;  %v1638_v43 = vld [vmem:[%s2021_s1 + $0x1d8] sm:$0xff]  ;;  %v1621_v45 = vld [vmem:[%s2021_s1 + $0x150] sm:$0xff] }
  0x25   : > { %515 = vmatpush.bf16.msra.mxu0 %v1580_v49  ;;  %v1898_v22 = vld [vmem:[#allocation2 + $0xc] sm:$0xff]  ;;  %v358_v29 = vunpack.c.l.b16 %v301_v26  ;;  %v1611_v56 = vld [vmem:[%s2021_s1 + $0x100] sm:$0xff]  ;;  %v1650_v58 = vld [vmem:[%s2021_s1 + $0x238] sm:$0xff] }
  0x26   : > { %528 = vmatpush.bf16.msra.mxu1 %v1588_v50  ;;  %v300_v18 = vld [vmem:[#allocation2] sm:$0xff]  ;;  %v601_v25 = vunpack.c.l.b16 %v1898_v22  ;;  %v1640_v35 = vld [vmem:[%s2021_s1 + $0x1e8] sm:$0xff]  ;;  %v1629_v46 = vld [vmem:[%s2021_s1 + $0x190] sm:$0xff] }
  0x27   : > { %541 = vmatpush.bf16.msra.mxu2 %v1596_v54  ;;  %v356_v20 = vunpack.c.l.b16 %v300_v18  ;;  %v357_v21 = vunpack.c.h.b16 %v300_v18  ;;  %v361_v33 = vpack.c.b16 %v358_v29, %v358_v29  ;;  %v1637_v47 = vld [vmem:[%s2021_s1 + $0x1d0] sm:$0xff]  ;;  %v1612_v48 = vld [vmem:[%s2021_s1 + $0x108] sm:$0xff]  ;;  %v602_v54 = vunpack.c.h.b16 %v1898_v22  ;;  %v1619_v57 = vld [vmem:[%s2021_s1 + $0x140] sm:$0xff] }
  0x28   : > { %760 = vmatpush.bf16.msra.mxu3 %v1604_v59  ;;  %v604_v32 = vpack.c.b16 %v601_v25, %v601_v25  ;;  %v1620_v49 = vld [vmem:[%s2021_s1 + $0x148] sm:$0xff]  ;;  %v549_v50 = vld [vmem:[#allocation2 + $0x14] sm:$0xf]  ;;  %v1627_v60 = vld [vmem:[%s2021_s1 + $0x180] sm:$0xff] }
  0x29   : > { %516 = vmatpush.bf16.msra.mxu0 %v1579_v2  ;;  %v359_v27 = vpack.c.b16 %v356_v20, %v356_v20  ;;  %v360_v28 = vpack.c.b16 %v357_v21, %v357_v21  ;;  %v1628_v51 = vld [vmem:[%s2021_s1 + $0x188] sm:$0xff]  ;;  %v603_v55 = vunpack.c.l.b16 %v549_v50  ;;  %v1635_v61 = vld [vmem:[%s2021_s1 + $0x1c0] sm:$0xff]  ;;  %v605_v63 = vpack.c.b16 %v602_v54, %v602_v54  ;;  %v1649_v1 = vld [vmem:[%s2021_s1 + $0x230] sm:$0xff] }
  0x2a   : > { %529 = vmatpush.bf16.msra.mxu1 %v1587_v3  ;;  %v1636_v52 = vld [vmem:[%s2021_s1 + $0x1c8] sm:$0xff]  ;;  %v1647_v5 = vld [vmem:[%s2021_s1 + $0x220] sm:$0xff]  ;;  %v1646_v6 = vld [vmem:[%s2021_s1 + $0x218] sm:$0xff] }
  0x2b   : > { %542 = vmatpush.bf16.msra.mxu2 %v1595_v9  ;;  %v794_v53 = vld [vmem:[#allocation2 + $0x18] sm:$0xff]  ;;  %v606_v0 = vpack.c.b16 %v603_v55, %v603_v55  ;;  %v1648_v4 = vld [vmem:[%s2021_s1 + $0x228] sm:$0xff]  ;;  %v795_v9 = vld [vmem:[#allocation2 + $0x20] sm:$0xf] }
  0x2c   : > { %761 = vmatpush.bf16.msra.mxu3 %v1603_v10  ;;  %517 = vmatmul.bf16.vlgmr.msra.gmra.mxu0 %v359_v27  ;;  %v847_v59 = vunpack.c.l.b16 %v794_v53  ;;  %v848_v62 = vunpack.c.h.b16 %v794_v53  ;;  %v849_v10 = vunpack.c.l.b16 %v795_v9  ;;  %v1643_v11 = vld [vmem:[%s2021_s1 + $0x200] sm:$0xff] }
  0x2d   : > { %767 = vmatpush.bf16.msrb.mxu0 %v1618_v7  ;;  %530 = vmatmul.bf16.vlgmr.msra.gmra.mxu1 %v360_v28  ;;  %v1645_v7 = vld [vmem:[%s2021_s1 + $0x210] sm:$0xff]  ;;  %v1675_v27 = vld [vmem:[%s2022_s2] ss:$0 sm:$0xff] }
  0x2e   : > { %780 = vmatpush.bf16.msrb.mxu1 %v1626_v8  ;;  %543 = vmatmul.bf16.vlgmr.msra.gmra.mxu2 %v361_v33  ;;  %v850_v2 = vpack.c.b16 %v847_v59, %v847_v59  ;;  %v851_v3 = vpack.c.b16 %v848_v62, %v848_v62  ;;  %v1644_v8 = vld [vmem:[%s2021_s1 + $0x208] sm:$0xff]  ;;  %v852_v12 = vpack.c.b16 %v849_v10, %v849_v10 }
  0x2f   : > { %1000 = vmatpush.bf16.msrb.mxu2 %v1634_v13  ;;  %762 = vmatmul.bf16.vlgmr.msra.gmra.mxu3 %v604_v32 }
  0x30   : > { %1013 = vmatpush.bf16.msrb.mxu3 %v1642_v14 }
  0x31   : > { %768 = vmatpush.bf16.msrb.mxu0 %v1617_v15 }
  0x32   : > { %781 = vmatpush.bf16.msrb.mxu1 %v1625_v17 }
  0x33   : > { %1001 = vmatpush.bf16.msrb.mxu2 %v1633_v23 }
  0x34   : > { %1014 = vmatpush.bf16.msrb.mxu3 %v1641_v24 }
  0x35   : > { %769 = vmatpush.bf16.msrb.mxu0 %v1616_v30 }
  0x36   : > { %782 = vmatpush.bf16.msrb.mxu1 %v1624_v31 }
  0x37   : > { %1002 = vmatpush.bf16.msrb.mxu2 %v1632_v34 }
  0x38   : > { %1015 = vmatpush.bf16.msrb.mxu3 %v1640_v35 }
  0x39   : > { %770 = vmatpush.bf16.msrb.mxu0 %v1615_v36 }
  0x3a   : > { %783 = vmatpush.bf16.msrb.mxu1 %v1623_v37 }
  0x3b   : > { %1003 = vmatpush.bf16.msrb.mxu2 %v1631_v38 }
  0x3c   : > { %1016 = vmatpush.bf16.msrb.mxu3 %v1639_v39 }
  0x3d   : > { %771 = vmatpush.bf16.msrb.mxu0 %v1614_v40 }
  0x3e   : > { %784 = vmatpush.bf16.msrb.mxu1 %v1622_v41 }
  0x3f   : > { %1004 = vmatpush.bf16.msrb.mxu2 %v1630_v42 }
  0x40   : > { %1017 = vmatpush.bf16.msrb.mxu3 %v1638_v43 }
  0x41   : > { %772 = vmatpush.bf16.msrb.mxu0 %v1613_v44 }
  0x42   : > { %785 = vmatpush.bf16.msrb.mxu1 %v1621_v45 }
  0x43   : > { %1005 = vmatpush.bf16.msrb.mxu2 %v1629_v46 }
  0x44   : > { %1018 = vmatpush.bf16.msrb.mxu3 %v1637_v47 }
  0x45   : > { %773 = vmatpush.bf16.msrb.mxu0 %v1612_v48 }
  0x46   : > { %786 = vmatpush.bf16.msrb.mxu1 %v1620_v49 }
  0x47   : > { %1006 = vmatpush.bf16.msrb.mxu2 %v1628_v51 }
  0x48   : > { %1019 = vmatpush.bf16.msrb.mxu3 %v1636_v52 }
  0x49   : > { %774 = vmatpush.bf16.msrb.mxu0 %v1611_v56 }
  0x4a   : > { %787 = vmatpush.bf16.msrb.mxu1 %v1619_v57 }
  0x4b   : > { %1007 = vmatpush.bf16.msrb.mxu2 %v1627_v60 }
  0x4c   : > { %1020 = vmatpush.bf16.msrb.mxu3 %v1635_v61  ;;  %775 = vmatmul.bf16.vlgmr.msrb.gmra.mxu0 %v605_v63 }
  0x4d   : > { %1026 = vmatpush.bf16.msra.mxu0 %v1650_v58  ;;  %788 = vmatmul.bf16.vlgmr.msrb.gmra.mxu1 %v606_v0 }
  0x4e   : > { %1008 = vmatmul.bf16.vlgmr.msrb.gmra.mxu2 %v850_v2 }
  0x4f   : > { %1021 = vmatmul.bf16.vlgmr.msrb.gmra.mxu3 %v851_v3 }
  0x51   : > { %1027 = vmatpush.bf16.msra.mxu0 %v1649_v1 }
  0x55   : > { %1028 = vmatpush.bf16.msra.mxu0 %v1648_v4 }
  0x59   : > { %1029 = vmatpush.bf16.msra.mxu0 %v1647_v5 }
  0x5d   : > { %1030 = vmatpush.bf16.msra.mxu0 %v1646_v6 }
  0x61   : > { %1031 = vmatpush.bf16.msra.mxu0 %v1645_v7 }
  0x65   : > { %1032 = vmatpush.bf16.msra.mxu0 %v1644_v8 }
  0x69   : > { %1033 = vmatpush.bf16.msra.mxu0 %v1643_v11 }
  0x6c   : > { %1034 = vmatmul.bf16.vlgmr.msra.gmra.mxu0 %v852_v12 }
  0xa9   : > { %v518_v13 = vpop.f32.mrf.mxu0 }
  0xaa   : > { %v531_v14 = vpop.f32.mrf.mxu1  ;;  %v519_v30 = vadd.f32 %v1675_v27, %v518_v13 }
  0xac   : > { %v532_v31 = vadd.f32 %v531_v14, %v519_v30 }
  0xb1   : > { %v520_v15 = vpop.f32.mrf.mxu0  ;;  %v544_v18 = vpop.f32.mrf.mxu2 }
  0xb2   : > { %v533_v16 = vpop.f32.mrf.mxu1  ;;  %v763_v17 = vpop.f32.mrf.mxu3  ;;  %v545_v33 = vadd.f32 %v544_v18, %v532_v31 }
  0xb9   : > { %v546_v19 = vpop.f32.mrf.mxu2 }
  0xba   : > { %v765_v20 = vpop.f32.mrf.mxu3 }
  0xc9   : > { %v776_v21 = vpop.f32.mrf.mxu0 }
  0xca   : > { %v789_v22 = vpop.f32.mrf.mxu1  ;;  %v777_v32 = vadd.f32 %v776_v21, %v763_v17 }
  0xcc   : > { %v790_v34 = vadd.f32 %v789_v22, %v777_v32 }
  0xce   : > { %v793_v37 = vadd.f32 %v790_v34, %v545_v33 }
  0xd1   : > { %v778_v23 = vpop.f32.mrf.mxu0  ;;  %v1009_v24 = vpop.f32.mrf.mxu2 }
  0xd2   : > { %v1022_v25 = vpop.f32.mrf.mxu3  ;;  %v791_v26 = vpop.f32.mrf.mxu1 }
  0xd3   : > { %v1023_v35 = vadd.f32 %v1022_v25, %v1009_v24 }
  0xd9   : > { %v1011_v28 = vpop.f32.mrf.mxu2 }
  0xda   : > { %v1024_v29 = vpop.f32.mrf.mxu3 }
  0xe9   : > { %v1035_v36 = vpop.f32.mrf.mxu0 }
  0xea   : > { %v1036_v38 = vadd.f32 %v1035_v36, %v1023_v35 }
  0xec   : > { %v1039_v39 = vadd.f32 %v1036_v38, %v793_v37 }
  0xee   : > { %v1041_v40 = vmul.f32 0.70710677, %v1039_v39  ;;  %v1040_v8 = vmul.f32 0.5, %v1039_v39 }
  0xf0   : > { %v1042_v41 = vand.u32 2147483647, %v1041_v40  ;;  %vm1075_vm10 = vcmp.lt.f32.partialorder %v1041_v40, 0.0 }
  0xf1   : > { %v1037_v42 = vpop.f32.mrf.mxu0 }
  0xf2   : > { %v1043_v43 = vmul.f32 0.3275911, %v1042_v41  ;;  %v1069_v55 = vsub.f32 0.0, %v1042_v41 }
  0xf4   : > { %v1044_v44 = vadd.f32 1.0, %v1043_v43  ;;  %v1070_v58 = vmul.f32 %v1069_v55, %v1042_v41 }
  0xf6   : > { %1676 = vrcp.f32 %v1044_v44  ;;  %v1056_v48 = vand.u32 2147483648, %v1044_v44  ;;  %v1054_v50 = vand.u32 2147483647, %v1044_v44  ;;  %vm1050_vm7 = vweird.f32 %v1044_v44 }
  0xf7   : > { %v1071_v61 = vmul.f32 1.442695, %v1070_v58 }
  0xf8   : > { %v1057_v52 = vor.u32 1.1754944e-38, %v1056_v48  ;;  %vm1055_vm9 = vcmp.eq.f32.partialorder %v1054_v50, 8.507059e+37 }
  0xf9   : > { %1678 = vpow2.f32 %v1071_v61 }
  0xfc   : > { %v1677_v45 = vpop.eup %1676 }
  0xfd   : > { %v1046_v46 = vmul.f32 %v1677_v45, %v1044_v44  ;;  %vm1051_vm6 = vweird.f32 %v1677_v45 }
  0xfe   : > { %vm1052_vm8 = vmor %vm1050_vm7, %vm1051_vm6 }
  0xff   : > { %v1047_v47 = vsub.f32 1.0, %v1046_v46  ;;  %v1679_v3 = vpop.eup %1678 }
 0x101   : > { %v1048_v49 = vmul.f32 %v1677_v45, %v1047_v47 }
 0x103   : > { %v1049_v51 = vadd.f32 %v1677_v45, %v1048_v49 }
 0x105   : > { %v1053_v53 = vsel %vm1052_vm8, %v1677_v45, %v1049_v51 }
 0x106   : > { %v1058_v54 = vsel %vm1055_vm9, %v1057_v52, %v1053_v53 }
 0x107   : > { %v1060_v56 = vmul.f32 1.0614054, %v1058_v54 }
 0x109   : > { %v1061_v57 = vadd.f32 -1.4531521, %v1060_v56 }
 0x10b   : > { %v1062_v59 = vmul.f32 %v1061_v57, %v1058_v54 }
 0x10d   : > { %v1063_v60 = vadd.f32 1.4214138, %v1062_v59 }
 0x10f   : > { %v1064_v62 = vmul.f32 %v1063_v60, %v1058_v54 }
 0x111   : > { %v1065_v63 = vadd.f32 -0.28449672, %v1064_v62 }
 0x113   : > { %v1066_v0 = vmul.f32 %v1065_v63, %v1058_v54 }
 0x115   : > { %v1067_v1 = vadd.f32 0.2548296, %v1066_v0 }
 0x117   : > { %v1068_v2 = vmul.f32 %v1067_v1, %v1058_v54 }
 0x119   : > { %v1073_v4 = vmul.f32 %v1679_v3, %v1068_v2 }
 0x11b   : > { %v1074_v5 = vsub.f32 1.0, %v1073_v4 }
 0x11d   : > { %v1076_v6 = vsub.f32 0.0, %v1074_v5 }
 0x11f   : > { %v1077_v7 = vsel %vm1075_vm10, %v1076_v6, %v1074_v5 }
 0x120   : > { %v1078_v9 = vadd.f32 1.0, %v1077_v7 }
 0x122   : > { %v1079_v10 = vmul.f32 %v1078_v9, %v1040_v8 }
 0x124   : > { %v1080_v11 = vpack.c.bf16 %v1079_v10, %v1079_v10 }
 0x126   : > { %1081 = vst [vmem:[%s219_s24] sm:$0xf] %v1080_v11 }
 0x127 PF: > { %s13_s14 = sadd.s32 1, %s1702_s14   ;;  %s2028_s12 = smov %s1698_s13 }
 0x128   : > { %p10_p5 = scmp.ge.s32.totalorder %s13_s14, 6   ;;  %s2029_s13 = smov %s2031_s15 }
 0x12a   :  { %12 = sbr.rel (!%p10_p5) target bundleno = 2 (0x2), region = 70 }

// kernel: conv_layer_forward.24
= control target key start
LH: loop header
LB: loop body
LE: loop exit
PB: predicated region body
PF: predicated region fallthrough
CT: control target
= control target key end

     0   :  { %s1350_s1 = inlined_call_operand.vmem [shape: bf16[1152,128], index: 1, kind: input, shape index: {}]   ;;  %s1351_s0 = inlined_call_operand.vmem [shape: bf16[2,1152], index: 0, kind: input, shape index: {}]   ;;  %s1352_s2 = inlined_call_operand.vmem [shape: f32[1,128], index: 2, kind: input, shape index: {}]   ;;  %s1353_s3 = inlined_call_operand.vmem [shape: bf16[2,128], index: 3, kind: output, shape index: {}]  }
   0x1   :  { %v1036_v0 = vld [vmem:[%s1350_s1 + $0x38] sm:$0xff]  ;;  %v1035_v4 = vld [vmem:[%s1350_s1 + $0x30] sm:$0xff]  ;;  %v1034_v8 = vld [vmem:[%s1350_s1 + $0x28] sm:$0xff] }
   0x2   :  { %v1052_v1 = vld [vmem:[%s1350_s1 + $0xb8] sm:$0xff]  ;;  %618 = vmatpush.bf16.msra.mxu0 %v1036_v0  ;;  %v1051_v5 = vld [vmem:[%s1350_s1 + $0xb0] sm:$0xff]  ;;  %v1050_v9 = vld [vmem:[%s1350_s1 + $0xa8] sm:$0xff] }
   0x3   :  { %v1060_v2 = vld [vmem:[%s1350_s1 + $0xf8] sm:$0xff]  ;;  %644 = vmatpush.bf16.msra.mxu2 %v1052_v1  ;;  %v1059_v6 = vld [vmem:[%s1350_s1 + $0xf0] sm:$0xff]  ;;  %v1058_v10 = vld [vmem:[%s1350_s1 + $0xe8] sm:$0xff] }
   0x4   :  { %v1044_v3 = vld [vmem:[%s1350_s1 + $0x78] sm:$0xff]  ;;  %657 = vmatpush.bf16.msra.mxu3 %v1060_v2  ;;  %v1043_v7 = vld [vmem:[%s1350_s1 + $0x70] sm:$0xff]  ;;  %v1042_v11 = vld [vmem:[%s1350_s1 + $0x68] sm:$0xff] }
   0x5   :  { %631 = vmatpush.bf16.msra.mxu1 %v1044_v3  ;;  %v1033_v12 = vld [vmem:[%s1350_s1 + $0x20] sm:$0xff]  ;;  %v1032_v16 = vld [vmem:[%s1350_s1 + $0x18] sm:$0xff]  ;;  %v1031_v21 = vld [vmem:[%s1350_s1 + $0x10] sm:$0xff] }
   0x6   :  { %619 = vmatpush.bf16.msra.mxu0 %v1035_v4  ;;  %v1049_v13 = vld [vmem:[%s1350_s1 + $0xa0] sm:$0xff]  ;;  %v1048_v17 = vld [vmem:[%s1350_s1 + $0x98] sm:$0xff]  ;;  %v1047_v22 = vld [vmem:[%s1350_s1 + $0x90] sm:$0xff] }
   0x7   :  { %645 = vmatpush.bf16.msra.mxu2 %v1051_v5  ;;  %v1057_v14 = vld [vmem:[%s1350_s1 + $0xe0] sm:$0xff]  ;;  %v1056_v18 = vld [vmem:[%s1350_s1 + $0xd8] sm:$0xff]  ;;  %v1055_v23 = vld [vmem:[%s1350_s1 + $0xd0] sm:$0xff] }
   0x8   :  { %658 = vmatpush.bf16.msra.mxu3 %v1059_v6  ;;  %v1041_v15 = vld [vmem:[%s1350_s1 + $0x60] sm:$0xff]  ;;  %v1040_v19 = vld [vmem:[%s1350_s1 + $0x58] sm:$0xff]  ;;  %v1039_v24 = vld [vmem:[%s1350_s1 + $0x50] sm:$0xff] }
   0x9   :  { %632 = vmatpush.bf16.msra.mxu1 %v1043_v7  ;;  %v14_v20 = vld [vmem:[%s1351_s0] sm:$0xff]  ;;  %v1030_v25 = vld [vmem:[%s1350_s1 + $0x8] sm:$0xff]  ;;  %v1068_v31 = vld [vmem:[%s1350_s1 + $0x138] sm:$0xff] }
   0xa   :  { %620 = vmatpush.bf16.msra.mxu0 %v1034_v8  ;;  %165 = vst [vmem:[#allocation1] ss:$9 sm:$0xff] %v14_v20  ;;  %v1046_v26 = vld [vmem:[%s1350_s1 + $0x88] sm:$0xff]  ;;  %v1029_v29 = vld [vmem:[%s1350_s1] sm:$0xff]  ;;  %v1084_v32 = vld [vmem:[%s1350_s1 + $0x1b8] sm:$0xff] }
   0xb   :  { %646 = vmatpush.bf16.msra.mxu2 %v1050_v9  ;;  %v1054_v27 = vld [vmem:[%s1350_s1 + $0xc8] sm:$0xff]  ;;  %v1045_v30 = vld [vmem:[%s1350_s1 + $0x80] sm:$0xff]  ;;  %v1092_v35 = vld [vmem:[%s1350_s1 + $0x1f8] sm:$0xff] }
   0xc   :  { %659 = vmatpush.bf16.msra.mxu3 %v1058_v10  ;;  %v1038_v28 = vld [vmem:[%s1350_s1 + $0x48] sm:$0xff]  ;;  %v1053_v33 = vld [vmem:[%s1350_s1 + $0xc0] sm:$0xff]  ;;  %v1076_v36 = vld [vmem:[%s1350_s1 + $0x178] sm:$0xff] }
   0xd   :  { %633 = vmatpush.bf16.msra.mxu1 %v1042_v11  ;;  %v1037_v34 = vld [vmem:[%s1350_s1 + $0x40] sm:$0xff]  ;;  %v1067_v37 = vld [vmem:[%s1350_s1 + $0x130] sm:$0xff]  ;;  %v15_v45 = vld [vmem:[%s1351_s0 + $0x8] sm:$0x1] }
   0xe   :  { %621 = vmatpush.bf16.msra.mxu0 %v1033_v12  ;;  %v1083_v38 = vld [vmem:[%s1350_s1 + $0x1b0] sm:$0xff]  ;;  %v1066_v46 = vld [vmem:[%s1350_s1 + $0x128] sm:$0xff]  ;;  %v1065_v54 = vld [vmem:[%s1350_s1 + $0x120] sm:$0xff] }
   0xf   :  { %647 = vmatpush.bf16.msra.mxu2 %v1049_v13  ;;  %v1091_v41 = vld [vmem:[%s1350_s1 + $0x1f0] sm:$0xff]  ;;  %v1082_v47 = vld [vmem:[%s1350_s1 + $0x1a8] sm:$0xff]  ;;  %v1081_v55 = vld [vmem:[%s1350_s1 + $0x1a0] sm:$0xff] }
  0x10   :  { %660 = vmatpush.bf16.msra.mxu3 %v1057_v14  ;;  %v1075_v42 = vld [vmem:[%s1350_s1 + $0x170] sm:$0xff]  ;;  %v1090_v52 = vld [vmem:[%s1350_s1 + $0x1e8] sm:$0xff]  ;;  %v1089_v56 = vld [vmem:[%s1350_s1 + $0x1e0] sm:$0xff] }
  0x11   :  { %634 = vmatpush.bf16.msra.mxu1 %v1041_v15  ;;  %v168_v39 = vld [vmem:[#allocation1 + $0x12] sm:$0xff]  ;;  %v166_v40 = vld [vmem:[#allocation1] sm:$0xff]  ;;  %v167_v44 = vld [vmem:[#allocation1 + $0x9] sm:$0xff] }
  0x12   :  { %622 = vmatpush.bf16.msra.mxu0 %v1032_v16  ;;  %v169_v43 = vld [vmem:[#allocation1 + $0x1b] sm:$0xff]  ;;  %v170_v49 = vld [vmem:[#allocation1 + $0x24] sm:$0xff]  ;;  %v171_v51 = vld [vmem:[#allocation1 + $0x2d] sm:$0xff] }
  0x13   :  { %648 = vmatpush.bf16.msra.mxu2 %v1048_v17  ;;  %v172_v48 = vld [vmem:[#allocation1 + $0x36] sm:$0xff]  ;;  %v173_v50 = vld [vmem:[#allocation1 + $0x3f] sm:$0xff]  ;;  %v1074_v53 = vld [vmem:[%s1350_s1 + $0x168] sm:$0xff] }
  0x14   :  { %661 = vmatpush.bf16.msra.mxu3 %v1056_v18  ;;  %175 = vst [vmem:[#allocation1] ss:$9 sm:$0xff] %v15_v45  ;;  %v1073_v57 = vld [vmem:[%s1350_s1 + $0x160] sm:$0xff]  ;;  %v1064_v58 = vld [vmem:[%s1350_s1 + $0x118] sm:$0xff]  ;;  %v1063_v62 = vld [vmem:[%s1350_s1 + $0x110] sm:$0xff] }
  0x15   :  { %635 = vmatpush.bf16.msra.mxu1 %v1040_v19  ;;  %v1080_v59 = vld [vmem:[%s1350_s1 + $0x198] sm:$0xff]  ;;  %v1079_v63 = vld [vmem:[%s1350_s1 + $0x190] sm:$0xff]  ;;  %v1062_v2 = vld [vmem:[%s1350_s1 + $0x108] sm:$0xff] }
  0x16   :  { %623 = vmatpush.bf16.msra.mxu0 %v1031_v21  ;;  %v1088_v60 = vld [vmem:[%s1350_s1 + $0x1d8] sm:$0xff]  ;;  %v1087_v0 = vld [vmem:[%s1350_s1 + $0x1d0] sm:$0xff]  ;;  %v1078_v3 = vld [vmem:[%s1350_s1 + $0x188] sm:$0xff] }
  0x17   :  { %649 = vmatpush.bf16.msra.mxu2 %v1047_v22  ;;  %v1072_v61 = vld [vmem:[%s1350_s1 + $0x158] sm:$0xff]  ;;  %v1071_v1 = vld [vmem:[%s1350_s1 + $0x150] sm:$0xff]  ;;  %v1086_v4 = vld [vmem:[%s1350_s1 + $0x1c8] sm:$0xff] }
  0x18   :  { %662 = vmatpush.bf16.msra.mxu3 %v1055_v23  ;;  %v1070_v5 = vld [vmem:[%s1350_s1 + $0x148] sm:$0xff]  ;;  %v1061_v6 = vld [vmem:[%s1350_s1 + $0x100] sm:$0xff]  ;;  %v1100_v8 = vld [vmem:[%s1350_s1 + $0x238] sm:$0xff] }
  0x19   :  { %636 = vmatpush.bf16.msra.mxu1 %v1039_v24  ;;  %v1077_v7 = vld [vmem:[%s1350_s1 + $0x180] sm:$0xff]  ;;  %v1099_v11 = vld [vmem:[%s1350_s1 + $0x230] sm:$0xff]  ;;  %v1098_v12 = vld [vmem:[%s1350_s1 + $0x228] sm:$0xff] }
  0x1a   :  { %624 = vmatpush.bf16.msra.mxu0 %v1030_v25  ;;  %v1085_v9 = vld [vmem:[%s1350_s1 + $0x1c0] sm:$0xff]  ;;  %v1096_v14 = vld [vmem:[%s1350_s1 + $0x218] sm:$0xff]  ;;  %v1095_v15 = vld [vmem:[%s1350_s1 + $0x210] sm:$0xff] }
  0x1b   :  { %650 = vmatpush.bf16.msra.mxu2 %v1046_v26  ;;  %v1069_v10 = vld [vmem:[%s1350_s1 + $0x140] sm:$0xff]  ;;  %v1094_v16 = vld [vmem:[%s1350_s1 + $0x208] sm:$0xff] }
  0x1c   :  { %663 = vmatpush.bf16.msra.mxu3 %v1054_v27  ;;  %v1097_v13 = vld [vmem:[%s1350_s1 + $0x220] sm:$0xff] }
  0x1d   :  { %637 = vmatpush.bf16.msra.mxu1 %v1038_v28  ;;  %v1093_v17 = vld [vmem:[%s1350_s1 + $0x200] sm:$0xff] }
  0x1e   :  { %625 = vmatpush.bf16.msra.mxu0 %v1029_v29  ;;  %v176_v18 = vld [vmem:[#allocation1] sm:$0xff] }
  0x1f   :  { %651 = vmatpush.bf16.msra.mxu2 %v1045_v30  ;;  %v1101_v27 = vld [vmem:[%s1352_s2] ss:$0 sm:$0xff] }
  0x20   :  { %664 = vmatpush.bf16.msra.mxu3 %v1053_v33 }
  0x21   :  { %638 = vmatpush.bf16.msra.mxu1 %v1037_v34  ;;  %626 = vmatmul.bf16.vlgmr.msra.gmra.mxu0 %v166_v40 }
  0x22   :  { %670 = vmatpush.bf16.msrb.mxu0 %v1068_v31  ;;  %652 = vmatmul.bf16.vlgmr.msra.gmra.mxu2 %v168_v39 }
  0x23   :  { %696 = vmatpush.bf16.msrb.mxu2 %v1084_v32  ;;  %665 = vmatmul.bf16.vlgmr.msra.gmra.mxu3 %v169_v43 }
  0x24   :  { %709 = vmatpush.bf16.msrb.mxu3 %v1092_v35  ;;  %639 = vmatmul.bf16.vlgmr.msra.gmra.mxu1 %v167_v44 }
  0x25   :  { %683 = vmatpush.bf16.msrb.mxu1 %v1076_v36 }
  0x26   :  { %671 = vmatpush.bf16.msrb.mxu0 %v1067_v37 }
  0x27   :  { %697 = vmatpush.bf16.msrb.mxu2 %v1083_v38 }
  0x28   :  { %710 = vmatpush.bf16.msrb.mxu3 %v1091_v41 }
  0x29   :  { %684 = vmatpush.bf16.msrb.mxu1 %v1075_v42 }
  0x2a   :  { %672 = vmatpush.bf16.msrb.mxu0 %v1066_v46 }
  0x2b   :  { %698 = vmatpush.bf16.msrb.mxu2 %v1082_v47 }
  0x2c   :  { %711 = vmatpush.bf16.msrb.mxu3 %v1090_v52 }
  0x2d   :  { %685 = vmatpush.bf16.msrb.mxu1 %v1074_v53 }
  0x2e   :  { %673 = vmatpush.bf16.msrb.mxu0 %v1065_v54 }
  0x2f   :  { %699 = vmatpush.bf16.msrb.mxu2 %v1081_v55 }
  0x30   :  { %712 = vmatpush.bf16.msrb.mxu3 %v1089_v56 }
  0x31   :  { %686 = vmatpush.bf16.msrb.mxu1 %v1073_v57 }
  0x32   :  { %674 = vmatpush.bf16.msrb.mxu0 %v1064_v58 }
  0x33   :  { %700 = vmatpush.bf16.msrb.mxu2 %v1080_v59 }
  0x34   :  { %713 = vmatpush.bf16.msrb.mxu3 %v1088_v60 }
  0x35   :  { %687 = vmatpush.bf16.msrb.mxu1 %v1072_v61 }
  0x36   :  { %675 = vmatpush.bf16.msrb.mxu0 %v1063_v62 }
  0x37   :  { %701 = vmatpush.bf16.msrb.mxu2 %v1079_v63 }
  0x38   :  { %714 = vmatpush.bf16.msrb.mxu3 %v1087_v0 }
  0x39   :  { %688 = vmatpush.bf16.msrb.mxu1 %v1071_v1 }
  0x3a   :  { %676 = vmatpush.bf16.msrb.mxu0 %v1062_v2 }
  0x3b   :  { %702 = vmatpush.bf16.msrb.mxu2 %v1078_v3 }
  0x3c   :  { %715 = vmatpush.bf16.msrb.mxu3 %v1086_v4 }
  0x3d   :  { %689 = vmatpush.bf16.msrb.mxu1 %v1070_v5 }
  0x3e   :  { %677 = vmatpush.bf16.msrb.mxu0 %v1061_v6 }
  0x3f   :  { %703 = vmatpush.bf16.msrb.mxu2 %v1077_v7 }
  0x40   :  { %716 = vmatpush.bf16.msrb.mxu3 %v1085_v9 }
  0x41   :  { %690 = vmatpush.bf16.msrb.mxu1 %v1069_v10  ;;  %678 = vmatmul.bf16.vlgmr.msrb.gmra.mxu0 %v170_v49 }
  0x42   :  { %722 = vmatpush.bf16.msra.mxu0 %v1100_v8  ;;  %704 = vmatmul.bf16.vlgmr.msrb.gmra.mxu2 %v172_v48 }
  0x43   :  { %717 = vmatmul.bf16.vlgmr.msrb.gmra.mxu3 %v173_v50 }
  0x44   :  { %691 = vmatmul.bf16.vlgmr.msrb.gmra.mxu1 %v171_v51 }
  0x46   :  { %723 = vmatpush.bf16.msra.mxu0 %v1099_v11 }
  0x4a   :  { %724 = vmatpush.bf16.msra.mxu0 %v1098_v12 }
  0x4e   :  { %725 = vmatpush.bf16.msra.mxu0 %v1097_v13 }
  0x52   :  { %726 = vmatpush.bf16.msra.mxu0 %v1096_v14 }
  0x56   :  { %727 = vmatpush.bf16.msra.mxu0 %v1095_v15 }
  0x5a   :  { %728 = vmatpush.bf16.msra.mxu0 %v1094_v16 }
  0x5e   :  { %729 = vmatpush.bf16.msra.mxu0 %v1093_v17 }
  0x61   :  { %730 = vmatmul.bf16.vlgmr.msra.gmra.mxu0 %v176_v18 }
  0x9e   :  { %v627_v19 = vpop.f32.mrf.mxu0 }
  0x9f   :  { %v628_v28 = vadd.f32 %v1101_v27, %v627_v19 }
  0xa1   :  { %v640_v20 = vpop.f32.mrf.mxu1 }
  0xa2   :  { %v641_v31 = vadd.f32 %v640_v20, %v628_v28 }
  0xa5   :  { %v653_v21 = vpop.f32.mrf.mxu2 }
  0xa6   :  { %v666_v22 = vpop.f32.mrf.mxu3  ;;  %v629_v23 = vpop.f32.mrf.mxu0  ;;  %v654_v33 = vadd.f32 %v653_v21, %v641_v31 }
  0xa8   :  { %v667_v37 = vadd.f32 %v666_v22, %v654_v33 }
  0xa9   :  { %v642_v24 = vpop.f32.mrf.mxu1 }
  0xad   :  { %v655_v25 = vpop.f32.mrf.mxu2 }
  0xae   :  { %v668_v26 = vpop.f32.mrf.mxu3 }
  0xbe   :  { %v679_v29 = vpop.f32.mrf.mxu0 }
  0xbf   :  { %v680_v39 = vadd.f32 %v679_v29, %v667_v37 }
  0xc1   :  { %v692_v30 = vpop.f32.mrf.mxu1 }
  0xc2   :  { %v693_v41 = vadd.f32 %v692_v30, %v680_v39 }
  0xc5   :  { %v705_v32 = vpop.f32.mrf.mxu2 }
  0xc6   :  { %v718_v34 = vpop.f32.mrf.mxu3  ;;  %v681_v35 = vpop.f32.mrf.mxu0  ;;  %v706_v42 = vadd.f32 %v705_v32, %v693_v41 }
  0xc8   :  { %v719_v43 = vadd.f32 %v718_v34, %v706_v42 }
  0xc9   :  { %v694_v36 = vpop.f32.mrf.mxu1 }
  0xcd   :  { %v707_v38 = vpop.f32.mrf.mxu2 }
  0xce   :  { %v720_v40 = vpop.f32.mrf.mxu3 }
  0xde   :  { %v731_v44 = vpop.f32.mrf.mxu0 }
  0xdf   :  { %v732_v45 = vadd.f32 %v731_v44, %v719_v43 }
  0xe1   :  { %v735_v46 = vpack.c.bf16 %v732_v45, %v732_v45 }
  0xe3   :  { %736 = vst [vmem:[%s1353_s3] sm:$0x1] %v735_v46 }
  0xe6   :  { %v733_v47 = vpop.f32.mrf.mxu0 }

// kernel: conv_layer_forward.23
= control target key start
LH: loop header
LB: loop body
LE: loop exit
PB: predicated region body
PF: predicated region fallthrough
CT: control target
= control target key end

     0   :  { %s1820_s15 = smov 0   ;;  %s1822_s16 = smov 0   ;;  %s2123_s0 = inlined_call_operand.vmem [shape: bf16[4,32,128], index: 0, kind: input, shape index: {}]   ;;  %s2124_s1 = inlined_call_operand.vmem [shape: bf16[3,384,128], index: 1, kind: input, shape index: {}]   ;;  %s2125_s2 = inlined_call_operand.vmem [shape: f32[1,128], index: 2, kind: input, shape index: {}]   ;;  %s2126_s3 = inlined_call_operand.vmem [shape: bf16[4,32,128], index: 3, kind: input, shape index: {}]   ;;  %s2127_s4 = inlined_call_operand.vmem [shape: bf16[4,8,128], index: 4, kind: output, shape index: {}]  }
   0x1   :  { %s1824_s17 = smov 0  }
   0x2 LB: > { %s26_s18 = sadd.s32 1, %s1789_s16  ;;  %p1275_p0 = scmp.ge.s32.totalorder %s1793_s17, 1  ;;  %s1793_s17 = sphi %s1824_s17, %s14_s17   ;;  %s1789_s16 = sphi %s1822_s16, %s2133_s16   ;;  %s1785_s15 = sphi %s1820_s15, %s2132_s15  }
   0x3   : > { %p28_p1 = scmp.ge.s32.totalorder %s26_s18, 4  ;;  %p208_p2 = scmp.lt.s32.totalorder %s1793_s17, 5 }
   0x5   : > { %s2135_s18 = smov (%p28_p1, %s26_s18), 0  ;;  %p209_p3 = pnand %p1275_p0, %p208_p2 }
   0x6   : > { %p251_p4 = scmp.lt.s32.totalorder (!%p209_p3), %s1785_s15, 3 }
   0x7   : > { %212 = sbr.rel (%p209_p3) target bundleno = 297 (0x129), region = 36 }
   0xc   : > { %v1677_v0 = vld [vmem:[%s2124_s1 + $0x38] sm:$0xff]  ;;  %v1676_v2 = vld [vmem:[%s2124_s1 + $0x30] sm:$0xff]  ;;  %s2137_s15 = smov (!%p251_p4, %s1785_s15), 3  ;;  %v1675_v8 = vld [vmem:[%s2124_s1 + $0x28] sm:$0xff]  ;;  %vm288_vm0 = vsmask.f32 3328 }
   0xd   : > { %v1685_v1 = vld [vmem:[%s2124_s1 + $0x78] sm:$0xff]  ;;  %567 = vmatpush.bf16.msra.mxu0 %v1677_v0  ;;  %v1684_v3 = vld [vmem:[%s2124_s1 + $0x70] sm:$0xff]  ;;  %v1683_v9 = vld [vmem:[%s2124_s1 + $0x68] sm:$0xff]  ;;  %s1668_s21 = sshll.u32 %s2137_s15, 4  ;;  %vm289_vm1 = vsmask.f32 7440 }
   0xe   : > { %580 = vmatpush.bf16.msra.mxu1 %v1685_v1  ;;  %v1693_v4 = vld [vmem:[%s2124_s1 + $0xb8] sm:$0xff]  ;;  %v1692_v6 = vld [vmem:[%s2124_s1 + $0xb0] sm:$0xff]  ;;  %v1691_v10 = vld [vmem:[%s2124_s1 + $0xa8] sm:$0xff]  ;;  %s1888_s28 = scalar_lea.vmem %s2123_s0, %s1668_s21  ;;  %vm339_vm2 = vcmask 1042432   ;;  %vm340_vm3 = vcmask 1046532   ;;  %s270_s24 = scalar_lea.vmem %s2126_s3, %s1668_s21  ;;  %vm1144_vm11 = vcmask 1046528  }
   0xf   : > { %v1701_v5 = vld [vmem:[%s2124_s1 + $0xf8] sm:$0xff]  ;;  %593 = vmatpush.bf16.msra.mxu2 %v1693_v4  ;;  %v1700_v7 = vld [vmem:[%s2124_s1 + $0xf0] sm:$0xff]  ;;  %v1699_v11 = vld [vmem:[%s2124_s1 + $0xe8] sm:$0xff]  ;;  %s1280_s21 = sshll.u32 %s2137_s15, 2 }
  0x10   : > { %812 = vmatpush.bf16.msra.mxu3 %v1701_v5  ;;  %v1674_v12 = vld [vmem:[%s2124_s1 + $0x20] sm:$0xff]  ;;  %v1673_v16 = vld [vmem:[%s2124_s1 + $0x18] sm:$0xff]  ;;  %v1672_v27 = vld [vmem:[%s2124_s1 + $0x10] sm:$0xff]  ;;  %s277_s27 = scalar_lea.vmem %s2127_s4, %s1280_s21 }
  0x11   : > { %568 = vmatpush.bf16.msra.mxu0 %v1676_v2  ;;  %v1682_v13 = vld [vmem:[%s2124_s1 + $0x60] sm:$0xff]  ;;  %v1681_v17 = vld [vmem:[%s2124_s1 + $0x58] sm:$0xff]  ;;  %v1680_v32 = vld [vmem:[%s2124_s1 + $0x50] sm:$0xff] }
  0x12   : > { %581 = vmatpush.bf16.msra.mxu1 %v1684_v3  ;;  %v1690_v14 = vld [vmem:[%s2124_s1 + $0xa0] sm:$0xff]  ;;  %v1689_v25 = vld [vmem:[%s2124_s1 + $0x98] sm:$0xff]  ;;  %v1688_v33 = vld [vmem:[%s2124_s1 + $0x90] sm:$0xff] }
  0x13   : > { %594 = vmatpush.bf16.msra.mxu2 %v1692_v6  ;;  %v1698_v15 = vld [vmem:[%s2124_s1 + $0xe0] sm:$0xff]  ;;  %v1697_v26 = vld [vmem:[%s2124_s1 + $0xd8] sm:$0xff]  ;;  %v1696_v35 = vld [vmem:[%s2124_s1 + $0xd0] sm:$0xff] }
  0x14   : > { %813 = vmatpush.bf16.msra.mxu3 %v1700_v7  ;;  %v278_v18 = vld [vmem:[%s1888_s28] sm:$0xf]  ;;  %v285_v20 = vld [vmem:[%s1888_s28 + $0x4] sm:$0xf]  ;;  %vm1925_vm4 = vmor %vm288_vm0, %vm289_vm1 }
  0x15   : > { %569 = vmatpush.bf16.msra.mxu0 %v1675_v8  ;;  %v284_v19 = vld [vmem:[%s1888_s28] sm:$0xf]  ;;  %281 = vst [vmem:[#allocation2] sm:$0xf] %v278_v18  ;;  %v301_v23 = vshll.u32 %v285_v20, 16  ;;  %v305_v24 = vshrl.u32 %v285_v20, 16  ;;  %vm1934_vm5 = vmor %vm339_vm2, %vm340_vm3 }
  0x16   : > { %582 = vmatpush.bf16.msra.mxu1 %v1683_v9  ;;  %v292_v21 = vshrl.u32 %v284_v19, 16  ;;  %v295_v22 = vshll.u32 %v284_v19, 16  ;;  %v279_v34 = vld [vmem:[%s1888_s28 + $0x4] sm:$0xf]  ;;  %v286_v38 = vld [vmem:[%s1888_s28 + $0x8] sm:$0xf] }
  0x17   : > { %595 = vmatpush.bf16.msra.mxu2 %v1691_v10  ;;  %v303_v30 = vrot.slane %v301_v23, 5  ;;  %v307_v31 = vrot.slane %v305_v24, 4  ;;  %282 = vst [vmem:[#allocation2 + $0xc] sm:$0xf] %v279_v34  ;;  %v311_v40 = vshll.u32 %v286_v38, 16  ;;  %v1671_v49 = vld [vmem:[%s2124_s1 + $0x8] sm:$0xff] }
  0x18   : > { %814 = vmatpush.bf16.msra.mxu3 %v1699_v11  ;;  %v294_v28 = vrot.slane %v292_v21, 4  ;;  %v297_v29 = vrot.slane %v295_v22, 5  ;;  %v331_v41 = vld [vmem:[%s1888_s28] sm:$0xe]  ;;  %v332_v42 = vld [vmem:[%s1888_s28 + $0x4] sm:$0xf] }
  0x19   : > { %570 = vmatpush.bf16.msra.mxu0 %v1674_v12  ;;  %v308_v39 = vor.u32 %v307_v31, %v303_v30  ;;  %v333_v46 = vld [vmem:[%s1888_s28 + $0x8] sm:$0xf]  ;;  %v1281_v47 = vrot.slane %v331_v41, 9  ;;  %v344_v48 = vrot.slane %v332_v42, 5  ;;  %v313_v51 = vrot.slane %v311_v40, 5  ;;  %v1670_v2 = vld [vmem:[%s2124_s1] sm:$0xff] }
  0x1a   : > { %583 = vmatpush.bf16.msra.mxu1 %v1682_v13  ;;  %v298_v37 = vor.u32 %v297_v29, %v294_v28  ;;  %v1679_v50 = vld [vmem:[%s2124_s1 + $0x48] sm:$0xff]  ;;  %v315_v52 = vshrl.u32 %v286_v38, 16  ;;  %v347_v53 = vrot.slane %v333_v46, 5  ;;  %v1678_v3 = vld [vmem:[%s2124_s1 + $0x40] sm:$0xff]  ;;  %v1709_v7 = vld [vmem:[%s2124_s1 + $0x138] sm:$0xff] }
  0x1b   : > { %596 = vmatpush.bf16.msra.mxu2 %v1690_v14  ;;  %v309_v45 = vrot.slane %v308_v39, 4  ;;  %v1687_v54 = vld [vmem:[%s2124_s1 + $0x88] sm:$0xff]  ;;  %v345_v57 = vsel %vm1934_vm5, %v1281_v47, %v344_v48  ;;  %v346_v58 = vrot.slane %v344_v48, 4  ;;  %v1717_v8 = vld [vmem:[%s2124_s1 + $0x178] sm:$0xff]  ;;  %v1686_v9 = vld [vmem:[%s2124_s1 + $0x80] sm:$0xff] }
  0x1c   : > { %815 = vmatpush.bf16.msra.mxu3 %v1698_v15  ;;  %v299_v44 = vrot.slane %v298_v37, 4  ;;  %v334_v56 = vld [vmem:[%s1888_s28 + $0xc] sm:$0x1]  ;;  %v317_v61 = vrot.slane %v315_v52, 4  ;;  %v349_v62 = vrot.slane %v347_v53, 4  ;;  %v1694_v10 = vld [vmem:[%s2124_s1 + $0xc0] sm:$0xff] }
  0x1d   : > { %571 = vmatpush.bf16.msra.mxu0 %v1673_v16  ;;  %v1695_v59 = vld [vmem:[%s2124_s1 + $0xc8] sm:$0xff]  ;;  %v314_v60 = vsel %vm1925_vm4, %v309_v45, %v313_v51  ;;  %v350_v63 = vrot.slane %v334_v56, 5  ;;  %v348_v0 = vsel %vm1934_vm5, %v346_v58, %v347_v53  ;;  %355 = vst [vmem:[#allocation2 + $0x8] sm:$0xf] %v345_v57  ;;  %v1725_v13 = vld [vmem:[%s2124_s1 + $0x1b8] sm:$0xff]  ;;  %v1708_v15 = vld [vmem:[%s2124_s1 + $0x130] sm:$0xff] }
  0x1e   : > { %584 = vmatpush.bf16.msra.mxu1 %v1681_v17  ;;  %v304_v55 = vsel %vm1925_vm4, %v299_v44, %v303_v30  ;;  %329 = vst [vmem:[#allocation2 + $0x10] sm:$0xf] %v314_v60  ;;  %v287_v1 = vld [vmem:[%s1888_s28 + $0xc] sm:$0x1]  ;;  %v318_v4 = vor.u32 %v317_v61, %v313_v51  ;;  %v1733_v14 = vld [vmem:[%s2124_s1 + $0x1f8] sm:$0xff]  ;;  %v1716_v17 = vld [vmem:[%s2124_s1 + $0x170] sm:$0xff] }
  0x1f   : > { %597 = vmatpush.bf16.msra.mxu2 %v1689_v25  ;;  %328 = vst [vmem:[#allocation2 + $0x4] sm:$0xf] %v304_v55  ;;  %v351_v5 = vsel %vm1934_vm5, %v349_v62, %v350_v63  ;;  %v321_v6 = vshll.u32 %v287_v1, 16  ;;  %v280_v19 = vld [vmem:[%s1888_s28 + $0x8] sm:$0xf]  ;;  %v1724_v23 = vld [vmem:[%s2124_s1 + $0x1b0] sm:$0xff] }
  0x20   : > { %816 = vmatpush.bf16.msra.mxu3 %v1697_v26  ;;  %357 = vst [vmem:[#allocation2 + $0x20] sm:$0xf] %v351_v5  ;;  %v319_v11 = vrot.slane %v318_v4, 4  ;;  %v1732_v24 = vld [vmem:[%s2124_s1 + $0x1f0] sm:$0xff]  ;;  %v1707_v30 = vld [vmem:[%s2124_s1 + $0x128] sm:$0xff]  ;;  %v1706_v36 = vld [vmem:[%s2124_s1 + $0x120] sm:$0xff] }
  0x21   : > { %572 = vmatpush.bf16.msra.mxu0 %v1672_v27  ;;  %356 = vst [vmem:[#allocation2 + $0x14] sm:$0xf] %v348_v0  ;;  %v323_v12 = vrot.slane %v321_v6, 5  ;;  %v1715_v31 = vld [vmem:[%s2124_s1 + $0x168] sm:$0xff]  ;;  %v1714_v37 = vld [vmem:[%s2124_s1 + $0x160] sm:$0xff]  ;;  %v1705_v40 = vld [vmem:[%s2124_s1 + $0x118] sm:$0xff] }
  0x22   : > { %585 = vmatpush.bf16.msra.mxu1 %v1680_v32  ;;  %283 = vst [vmem:[#allocation2 + $0x18] sm:$0xf] %v280_v19  ;;  %v1723_v34 = vld [vmem:[%s2124_s1 + $0x1a8] sm:$0xff]  ;;  %v1722_v38 = vld [vmem:[%s2124_s1 + $0x1a0] sm:$0xff]  ;;  %v1713_v41 = vld [vmem:[%s2124_s1 + $0x158] sm:$0xff] }
  0x23   : > { %598 = vmatpush.bf16.msra.mxu2 %v1688_v33  ;;  %v324_v16 = vsel %vm1925_vm4, %v319_v11, %v323_v12  ;;  %v1730_v39 = vld [vmem:[%s2124_s1 + $0x1e0] sm:$0xff]  ;;  %v1721_v42 = vld [vmem:[%s2124_s1 + $0x198] sm:$0xff]  ;;  %v1704_v44 = vld [vmem:[%s2124_s1 + $0x110] sm:$0xff] }
  0x24   : > { %817 = vmatpush.bf16.msra.mxu3 %v1696_v35  ;;  %330 = vst [vmem:[#allocation2 + $0x1c] sm:$0xf] %v324_v16  ;;  %v359_v26 = vld [vmem:[#allocation2 + $0x8] sm:$0xf]  ;;  %v1729_v43 = vld [vmem:[%s2124_s1 + $0x1d8] sm:$0xff]  ;;  %v1712_v45 = vld [vmem:[%s2124_s1 + $0x150] sm:$0xff] }
  0x25   : > { %573 = vmatpush.bf16.msra.mxu0 %v1671_v49  ;;  %v1996_v22 = vld [vmem:[#allocation2 + $0xc] sm:$0xff]  ;;  %v416_v29 = vunpack.c.l.b16 %v359_v26  ;;  %v1702_v56 = vld [vmem:[%s2124_s1 + $0x100] sm:$0xff]  ;;  %v1741_v58 = vld [vmem:[%s2124_s1 + $0x238] sm:$0xff] }
  0x26   : > { %586 = vmatpush.bf16.msra.mxu1 %v1679_v50  ;;  %v358_v18 = vld [vmem:[#allocation2] sm:$0xff]  ;;  %v659_v25 = vunpack.c.l.b16 %v1996_v22  ;;  %v1731_v35 = vld [vmem:[%s2124_s1 + $0x1e8] sm:$0xff]  ;;  %v1720_v46 = vld [vmem:[%s2124_s1 + $0x190] sm:$0xff] }
  0x27   : > { %599 = vmatpush.bf16.msra.mxu2 %v1687_v54  ;;  %v414_v20 = vunpack.c.l.b16 %v358_v18  ;;  %v415_v21 = vunpack.c.h.b16 %v358_v18  ;;  %v419_v33 = vpack.c.b16 %v416_v29, %v416_v29  ;;  %v1728_v47 = vld [vmem:[%s2124_s1 + $0x1d0] sm:$0xff]  ;;  %v1703_v48 = vld [vmem:[%s2124_s1 + $0x108] sm:$0xff]  ;;  %v660_v54 = vunpack.c.h.b16 %v1996_v22  ;;  %v1710_v57 = vld [vmem:[%s2124_s1 + $0x140] sm:$0xff] }
  0x28   : > { %818 = vmatpush.bf16.msra.mxu3 %v1695_v59  ;;  %v662_v32 = vpack.c.b16 %v659_v25, %v659_v25  ;;  %v1711_v49 = vld [vmem:[%s2124_s1 + $0x148] sm:$0xff]  ;;  %v607_v50 = vld [vmem:[#allocation2 + $0x14] sm:$0xf]  ;;  %v1718_v60 = vld [vmem:[%s2124_s1 + $0x180] sm:$0xff] }
  0x29   : > { %574 = vmatpush.bf16.msra.mxu0 %v1670_v2  ;;  %v417_v27 = vpack.c.b16 %v414_v20, %v414_v20  ;;  %v418_v28 = vpack.c.b16 %v415_v21, %v415_v21  ;;  %v1719_v51 = vld [vmem:[%s2124_s1 + $0x188] sm:$0xff]  ;;  %v661_v55 = vunpack.c.l.b16 %v607_v50  ;;  %v1726_v61 = vld [vmem:[%s2124_s1 + $0x1c0] sm:$0xff]  ;;  %v663_v63 = vpack.c.b16 %v660_v54, %v660_v54  ;;  %v1740_v1 = vld [vmem:[%s2124_s1 + $0x230] sm:$0xff] }
  0x2a   : > { %587 = vmatpush.bf16.msra.mxu1 %v1678_v3  ;;  %v1727_v52 = vld [vmem:[%s2124_s1 + $0x1c8] sm:$0xff]  ;;  %v1738_v5 = vld [vmem:[%s2124_s1 + $0x220] sm:$0xff]  ;;  %v1737_v6 = vld [vmem:[%s2124_s1 + $0x218] sm:$0xff] }
  0x2b   : > { %600 = vmatpush.bf16.msra.mxu2 %v1686_v9  ;;  %v852_v53 = vld [vmem:[#allocation2 + $0x18] sm:$0xff]  ;;  %v664_v0 = vpack.c.b16 %v661_v55, %v661_v55  ;;  %v1739_v4 = vld [vmem:[%s2124_s1 + $0x228] sm:$0xff]  ;;  %v853_v9 = vld [vmem:[#allocation2 + $0x20] sm:$0xf] }
  0x2c   : > { %819 = vmatpush.bf16.msra.mxu3 %v1694_v10  ;;  %575 = vmatmul.bf16.vlgmr.msra.gmra.mxu0 %v417_v27  ;;  %v905_v59 = vunpack.c.l.b16 %v852_v53  ;;  %v906_v62 = vunpack.c.h.b16 %v852_v53  ;;  %v907_v10 = vunpack.c.l.b16 %v853_v9  ;;  %v1734_v11 = vld [vmem:[%s2124_s1 + $0x200] sm:$0xff] }
  0x2d   : > { %825 = vmatpush.bf16.msrb.mxu0 %v1709_v7  ;;  %588 = vmatmul.bf16.vlgmr.msra.gmra.mxu1 %v418_v28  ;;  %v1736_v7 = vld [vmem:[%s2124_s1 + $0x210] sm:$0xff]  ;;  %v1766_v27 = vld [vmem:[%s2125_s2] ss:$0 sm:$0xff] }
  0x2e   : > { %838 = vmatpush.bf16.msrb.mxu1 %v1717_v8  ;;  %601 = vmatmul.bf16.vlgmr.msra.gmra.mxu2 %v419_v33  ;;  %v908_v2 = vpack.c.b16 %v905_v59, %v905_v59  ;;  %v909_v3 = vpack.c.b16 %v906_v62, %v906_v62  ;;  %v1735_v8 = vld [vmem:[%s2124_s1 + $0x208] sm:$0xff]  ;;  %v910_v12 = vpack.c.b16 %v907_v10, %v907_v10 }
  0x2f   : > { %1058 = vmatpush.bf16.msrb.mxu2 %v1725_v13  ;;  %820 = vmatmul.bf16.vlgmr.msra.gmra.mxu3 %v662_v32 }
  0x30   : > { %1071 = vmatpush.bf16.msrb.mxu3 %v1733_v14 }
  0x31   : > { %826 = vmatpush.bf16.msrb.mxu0 %v1708_v15 }
  0x32   : > { %839 = vmatpush.bf16.msrb.mxu1 %v1716_v17 }
  0x33   : > { %1059 = vmatpush.bf16.msrb.mxu2 %v1724_v23 }
  0x34   : > { %1072 = vmatpush.bf16.msrb.mxu3 %v1732_v24 }
  0x35   : > { %827 = vmatpush.bf16.msrb.mxu0 %v1707_v30 }
  0x36   : > { %840 = vmatpush.bf16.msrb.mxu1 %v1715_v31 }
  0x37   : > { %1060 = vmatpush.bf16.msrb.mxu2 %v1723_v34 }
  0x38   : > { %1073 = vmatpush.bf16.msrb.mxu3 %v1731_v35 }
  0x39   : > { %828 = vmatpush.bf16.msrb.mxu0 %v1706_v36 }
  0x3a   : > { %841 = vmatpush.bf16.msrb.mxu1 %v1714_v37 }
  0x3b   : > { %1061 = vmatpush.bf16.msrb.mxu2 %v1722_v38 }
  0x3c   : > { %1074 = vmatpush.bf16.msrb.mxu3 %v1730_v39 }
  0x3d   : > { %829 = vmatpush.bf16.msrb.mxu0 %v1705_v40 }
  0x3e   : > { %842 = vmatpush.bf16.msrb.mxu1 %v1713_v41 }
  0x3f   : > { %1062 = vmatpush.bf16.msrb.mxu2 %v1721_v42 }
  0x40   : > { %1075 = vmatpush.bf16.msrb.mxu3 %v1729_v43 }
  0x41   : > { %830 = vmatpush.bf16.msrb.mxu0 %v1704_v44 }
  0x42   : > { %843 = vmatpush.bf16.msrb.mxu1 %v1712_v45 }
  0x43   : > { %1063 = vmatpush.bf16.msrb.mxu2 %v1720_v46 }
  0x44   : > { %1076 = vmatpush.bf16.msrb.mxu3 %v1728_v47 }
  0x45   : > { %831 = vmatpush.bf16.msrb.mxu0 %v1703_v48 }
  0x46   : > { %844 = vmatpush.bf16.msrb.mxu1 %v1711_v49 }
  0x47   : > { %1064 = vmatpush.bf16.msrb.mxu2 %v1719_v51 }
  0x48   : > { %1077 = vmatpush.bf16.msrb.mxu3 %v1727_v52 }
  0x49   : > { %832 = vmatpush.bf16.msrb.mxu0 %v1702_v56 }
  0x4a   : > { %845 = vmatpush.bf16.msrb.mxu1 %v1710_v57 }
  0x4b   : > { %1065 = vmatpush.bf16.msrb.mxu2 %v1718_v60 }
  0x4c   : > { %1078 = vmatpush.bf16.msrb.mxu3 %v1726_v61  ;;  %833 = vmatmul.bf16.vlgmr.msrb.gmra.mxu0 %v663_v63 }
  0x4d   : > { %1084 = vmatpush.bf16.msra.mxu0 %v1741_v58  ;;  %846 = vmatmul.bf16.vlgmr.msrb.gmra.mxu1 %v664_v0 }
  0x4e   : > { %1066 = vmatmul.bf16.vlgmr.msrb.gmra.mxu2 %v908_v2  ;;  %v1138_v2 = vld [vmem:[%s270_s24 + $0x4] sm:$0xf] }
  0x4f   : > { %1079 = vmatmul.bf16.vlgmr.msrb.gmra.mxu3 %v909_v3  ;;  %v1139_v3 = vld [vmem:[%s270_s24 + $0x8] sm:$0x1] }
  0x51   : > { %1085 = vmatpush.bf16.msra.mxu0 %v1740_v1 }
  0x55   : > { %1086 = vmatpush.bf16.msra.mxu0 %v1739_v4 }
  0x59   : > { %1087 = vmatpush.bf16.msra.mxu0 %v1738_v5 }
  0x5d   : > { %1088 = vmatpush.bf16.msra.mxu0 %v1737_v6 }
  0x61   : > { %1089 = vmatpush.bf16.msra.mxu0 %v1736_v7  ;;  %v1140_v7 = vunpack.c.l.bf16 %v1138_v2 }
  0x65   : > { %1090 = vmatpush.bf16.msra.mxu0 %v1735_v8  ;;  %v1141_v8 = vunpack.c.l.bf16 %v1139_v3 }
  0x69   : > { %1091 = vmatpush.bf16.msra.mxu0 %v1734_v11  ;;  %v1145_v11 = vrot.slane %v1140_v7, 1 }
  0x6c   : > { %1092 = vmatmul.bf16.vlgmr.msra.gmra.mxu0 %v910_v12  ;;  %v1146_v12 = vrot.slane %v1141_v8, 1 }
  0xa9   : > { %v576_v13 = vpop.f32.mrf.mxu0 }
  0xaa   : > { %v589_v14 = vpop.f32.mrf.mxu1  ;;  %v577_v30 = vadd.f32 %v1766_v27, %v576_v13 }
  0xac   : > { %v590_v31 = vadd.f32 %v589_v14, %v577_v30 }
  0xb1   : > { %v578_v15 = vpop.f32.mrf.mxu0  ;;  %v602_v18 = vpop.f32.mrf.mxu2 }
  0xb2   : > { %v591_v16 = vpop.f32.mrf.mxu1  ;;  %v821_v17 = vpop.f32.mrf.mxu3  ;;  %v603_v33 = vadd.f32 %v602_v18, %v590_v31 }
  0xb3   : > { %v1147_v16 = vsel %vm1144_vm11, %v1145_v11, %v1146_v12 }
  0xb9   : > { %v604_v19 = vpop.f32.mrf.mxu2 }
  0xba   : > { %v823_v20 = vpop.f32.mrf.mxu3 }
  0xc9   : > { %v834_v21 = vpop.f32.mrf.mxu0 }
  0xca   : > { %v847_v22 = vpop.f32.mrf.mxu1  ;;  %v835_v32 = vadd.f32 %v834_v21, %v821_v17 }
  0xcc   : > { %v848_v34 = vadd.f32 %v847_v22, %v835_v32 }
  0xce   : > { %v851_v37 = vadd.f32 %v848_v34, %v603_v33 }
  0xd1   : > { %v836_v23 = vpop.f32.mrf.mxu0  ;;  %v1067_v24 = vpop.f32.mrf.mxu2 }
  0xd2   : > { %v1080_v25 = vpop.f32.mrf.mxu3  ;;  %v849_v26 = vpop.f32.mrf.mxu1 }
  0xd3   : > { %v1081_v35 = vadd.f32 %v1080_v25, %v1067_v24 }
  0xd9   : > { %v1069_v28 = vpop.f32.mrf.mxu2 }
  0xda   : > { %v1082_v29 = vpop.f32.mrf.mxu3 }
  0xe9   : > { %v1093_v36 = vpop.f32.mrf.mxu0 }
  0xea   : > { %v1094_v38 = vadd.f32 %v1093_v36, %v1081_v35 }
  0xec   : > { %v1097_v39 = vadd.f32 %v1094_v38, %v851_v37 }
  0xee   : > { %v1099_v40 = vmul.f32 0.70710677, %v1097_v39  ;;  %v1098_v14 = vmul.f32 0.5, %v1097_v39 }
  0xf0   : > { %v1100_v41 = vand.u32 2147483647, %v1099_v40  ;;  %vm1133_vm10 = vcmp.lt.f32.partialorder %v1099_v40, 0.0 }
  0xf1   : > { %v1095_v42 = vpop.f32.mrf.mxu0 }
  0xf2   : > { %v1101_v43 = vmul.f32 0.3275911, %v1100_v41  ;;  %v1127_v55 = vsub.f32 0.0, %v1100_v41 }
  0xf4   : > { %v1102_v44 = vadd.f32 1.0, %v1101_v43  ;;  %v1128_v58 = vmul.f32 %v1127_v55, %v1100_v41 }
  0xf6   : > { %1767 = vrcp.f32 %v1102_v44  ;;  %v1114_v48 = vand.u32 2147483648, %v1102_v44  ;;  %v1112_v50 = vand.u32 2147483647, %v1102_v44  ;;  %vm1108_vm7 = vweird.f32 %v1102_v44 }
  0xf7   : > { %v1129_v61 = vmul.f32 1.442695, %v1128_v58 }
  0xf8   : > { %v1115_v52 = vor.u32 1.1754944e-38, %v1114_v48  ;;  %vm1113_vm9 = vcmp.eq.f32.partialorder %v1112_v50, 8.507059e+37 }
  0xf9   : > { %1769 = vpow2.f32 %v1129_v61 }
  0xfc   : > { %v1768_v45 = vpop.eup %1767 }
  0xfd   : > { %v1104_v46 = vmul.f32 %v1768_v45, %v1102_v44  ;;  %vm1109_vm6 = vweird.f32 %v1768_v45 }
  0xfe   : > { %vm1110_vm8 = vmor %vm1108_vm7, %vm1109_vm6 }
  0xff   : > { %v1105_v47 = vsub.f32 1.0, %v1104_v46  ;;  %v1770_v5 = vpop.eup %1769 }
 0x101   : > { %v1106_v49 = vmul.f32 %v1768_v45, %v1105_v47 }
 0x103   : > { %v1107_v51 = vadd.f32 %v1768_v45, %v1106_v49 }
 0x105   : > { %v1111_v53 = vsel %vm1110_vm8, %v1768_v45, %v1107_v51 }
 0x106   : > { %v1116_v54 = vsel %vm1113_vm9, %v1115_v52, %v1111_v53 }
 0x107   : > { %v1118_v56 = vmul.f32 1.0614054, %v1116_v54 }
 0x109   : > { %v1119_v57 = vadd.f32 -1.4531521, %v1118_v56 }
 0x10b   : > { %v1120_v59 = vmul.f32 %v1119_v57, %v1116_v54 }
 0x10d   : > { %v1121_v60 = vadd.f32 1.4214138, %v1120_v59 }
 0x10f   : > { %v1122_v62 = vmul.f32 %v1121_v60, %v1116_v54 }
 0x111   : > { %v1123_v63 = vadd.f32 -0.28449672, %v1122_v62 }
 0x113   : > { %v1124_v0 = vmul.f32 %v1123_v63, %v1116_v54 }
 0x115   : > { %v1125_v1 = vadd.f32 0.2548296, %v1124_v0 }
 0x117   : > { %v1126_v4 = vmul.f32 %v1125_v1, %v1116_v54 }
 0x119   : > { %v1131_v6 = vmul.f32 %v1770_v5, %v1126_v4 }
 0x11b   : > { %v1132_v9 = vsub.f32 1.0, %v1131_v6 }
 0x11d   : > { %v1134_v10 = vsub.f32 0.0, %v1132_v9 }
 0x11f   : > { %v1135_v13 = vsel %vm1133_vm10, %v1134_v10, %v1132_v9 }
 0x120   : > { %v1136_v15 = vadd.f32 1.0, %v1135_v13 }
 0x122   : > { %v1137_v17 = vmul.f32 %v1136_v15, %v1098_v14 }
 0x124   : > { %v1149_v18 = vadd.f32 %v1147_v16, %v1137_v17 }
 0x126   : > { %v1150_v19 = vpack.c.bf16 %v1149_v18, %v1149_v18 }
 0x128   : > { %1151 = vst [vmem:[%s277_s27] sm:$0xf] %v1150_v19 }
 0x129 PF: > { %s14_s17 = sadd.s32 1, %s1793_s17   ;;  %s2132_s15 = smov %s1789_s16 }
 0x12a   : > { %p11_p5 = scmp.ge.s32.totalorder %s14_s17, 6   ;;  %s2133_s16 = smov %s2135_s18 }
 0x12c   :  { %13 = sbr.rel (!%p11_p5) target bundleno = 2 (0x2), region = 77 }

// kernel: conv_layer_forward.25
= control target key start
LH: loop header
LB: loop body
LE: loop exit
PB: predicated region body
PF: predicated region fallthrough
CT: control target
= control target key end

     0   :  { %s1724_s12 = smov 0   ;;  %s1726_s13 = smov 0   ;;  %s2020_s0 = inlined_call_operand.vmem [shape: bf16[2,32,128], index: 0, kind: input, shape index: {}]   ;;  %s2021_s1 = inlined_call_operand.vmem [shape: bf16[3,384,128], index: 1, kind: input, shape index: {}]   ;;  %s2022_s2 = inlined_call_operand.vmem [shape: f32[1,128], index: 2, kind: input, shape index: {}]   ;;  %s2023_s3 = inlined_call_operand.vmem [shape: bf16[2,8,128], index: 3, kind: output, shape index: {}]  }
   0x1   :  { %s1728_s14 = smov 0  }
   0x2 LB: > { %s25_s15 = sadd.s32 1, %s1698_s13  ;;  %p1187_p0 = scmp.ge.s32.totalorder %s1702_s14, 1  ;;  %s1702_s14 = sphi %s1728_s14, %s13_s14   ;;  %s1698_s13 = sphi %s1726_s13, %s2029_s13   ;;  %s1694_s12 = sphi %s1724_s12, %s2028_s12  }
   0x3   : > { %p27_p1 = scmp.ge.s32.totalorder %s25_s15, 2  ;;  %p168_p2 = scmp.lt.s32.totalorder %s1702_s14, 3 }
   0x5   : > { %s2031_s15 = smov (%p27_p1, %s25_s15), 0  ;;  %p169_p3 = pnand %p1187_p0, %p168_p2 }
   0x6   : > { %p201_p4 = scmp.lt.s32.totalorder (!%p169_p3), %s1694_s12, 1 }
   0x7   : > { %172 = sbr.rel (%p169_p3) target bundleno = 295 (0x127), region = 32 }
   0xc   : > { %v1586_v0 = vld [vmem:[%s2021_s1 + $0x38] sm:$0xff]  ;;  %v1585_v2 = vld [vmem:[%s2021_s1 + $0x30] sm:$0xff]  ;;  %s2033_s12 = smov (!%p201_p4, %s1694_s12), 1  ;;  %v1584_v8 = vld [vmem:[%s2021_s1 + $0x28] sm:$0xff]  ;;  %vm230_vm0 = vsmask.f32 3328 }
   0xd   : > { %v1594_v1 = vld [vmem:[%s2021_s1 + $0x78] sm:$0xff]  ;;  %509 = vmatpush.bf16.msra.mxu0 %v1586_v0  ;;  %v1593_v3 = vld [vmem:[%s2021_s1 + $0x70] sm:$0xff]  ;;  %v1592_v9 = vld [vmem:[%s2021_s1 + $0x68] sm:$0xff]  ;;  %s1578_s17 = sshll.u32 %s2033_s12, 4  ;;  %vm231_vm1 = vsmask.f32 7440 }
   0xe   : > { %522 = vmatpush.bf16.msra.mxu1 %v1594_v1  ;;  %v1602_v4 = vld [vmem:[%s2021_s1 + $0xb8] sm:$0xff]  ;;  %v1601_v6 = vld [vmem:[%s2021_s1 + $0xb0] sm:$0xff]  ;;  %v1600_v10 = vld [vmem:[%s2021_s1 + $0xa8] sm:$0xff]  ;;  %s1790_s24 = scalar_lea.vmem %s2020_s0, %s1578_s17  ;;  %vm281_vm2 = vcmask 1042432   ;;  %vm282_vm3 = vcmask 1046532   ;;  %s1190_s30 = sshll.u32 %s2033_s12, 2 }
   0xf   : > { %v1610_v5 = vld [vmem:[%s2021_s1 + $0xf8] sm:$0xff]  ;;  %535 = vmatpush.bf16.msra.mxu2 %v1602_v4  ;;  %v1609_v7 = vld [vmem:[%s2021_s1 + $0xf0] sm:$0xff]  ;;  %v1608_v11 = vld [vmem:[%s2021_s1 + $0xe8] sm:$0xff] }
  0x10   : > { %754 = vmatpush.bf16.msra.mxu3 %v1610_v5  ;;  %v1583_v12 = vld [vmem:[%s2021_s1 + $0x20] sm:$0xff]  ;;  %v1582_v16 = vld [vmem:[%s2021_s1 + $0x18] sm:$0xff]  ;;  %v1581_v27 = vld [vmem:[%s2021_s1 + $0x10] sm:$0xff] }
  0x11   : > { %510 = vmatpush.bf16.msra.mxu0 %v1585_v2  ;;  %v1591_v13 = vld [vmem:[%s2021_s1 + $0x60] sm:$0xff]  ;;  %v1590_v17 = vld [vmem:[%s2021_s1 + $0x58] sm:$0xff]  ;;  %v1589_v32 = vld [vmem:[%s2021_s1 + $0x50] sm:$0xff] }
  0x12   : > { %523 = vmatpush.bf16.msra.mxu1 %v1593_v3  ;;  %v1599_v14 = vld [vmem:[%s2021_s1 + $0xa0] sm:$0xff]  ;;  %v1598_v25 = vld [vmem:[%s2021_s1 + $0x98] sm:$0xff]  ;;  %v1597_v33 = vld [vmem:[%s2021_s1 + $0x90] sm:$0xff] }
  0x13   : > { %536 = vmatpush.bf16.msra.mxu2 %v1601_v6  ;;  %v1607_v15 = vld [vmem:[%s2021_s1 + $0xe0] sm:$0xff]  ;;  %v1606_v26 = vld [vmem:[%s2021_s1 + $0xd8] sm:$0xff]  ;;  %v1605_v35 = vld [vmem:[%s2021_s1 + $0xd0] sm:$0xff] }
  0x14   : > { %755 = vmatpush.bf16.msra.mxu3 %v1609_v7  ;;  %v220_v18 = vld [vmem:[%s1790_s24] sm:$0xf]  ;;  %v227_v20 = vld [vmem:[%s1790_s24 + $0x4] sm:$0xf]  ;;  %vm1827_vm4 = vmor %vm230_vm0, %vm231_vm1 }
  0x15   : > { %511 = vmatpush.bf16.msra.mxu0 %v1584_v8  ;;  %v226_v19 = vld [vmem:[%s1790_s24] sm:$0xf]  ;;  %223 = vst [vmem:[#allocation2] sm:$0xf] %v220_v18  ;;  %v243_v23 = vshll.u32 %v227_v20, 16  ;;  %v247_v24 = vshrl.u32 %v227_v20, 16  ;;  %vm1836_vm5 = vmor %vm281_vm2, %vm282_vm3 }
  0x16   : > { %524 = vmatpush.bf16.msra.mxu1 %v1592_v9  ;;  %v234_v21 = vshrl.u32 %v226_v19, 16  ;;  %v237_v22 = vshll.u32 %v226_v19, 16  ;;  %v221_v34 = vld [vmem:[%s1790_s24 + $0x4] sm:$0xf]  ;;  %v228_v38 = vld [vmem:[%s1790_s24 + $0x8] sm:$0xf] }
  0x17   : > { %537 = vmatpush.bf16.msra.mxu2 %v1600_v10  ;;  %v245_v30 = vrot.slane %v243_v23, 5  ;;  %v249_v31 = vrot.slane %v247_v24, 4  ;;  %224 = vst [vmem:[#allocation2 + $0xc] sm:$0xf] %v221_v34  ;;  %v253_v40 = vshll.u32 %v228_v38, 16  ;;  %v1580_v49 = vld [vmem:[%s2021_s1 + $0x8] sm:$0xff] }
  0x18   : > { %756 = vmatpush.bf16.msra.mxu3 %v1608_v11  ;;  %v236_v28 = vrot.slane %v234_v21, 4  ;;  %v239_v29 = vrot.slane %v237_v22, 5  ;;  %v273_v41 = vld [vmem:[%s1790_s24] sm:$0xe]  ;;  %v274_v42 = vld [vmem:[%s1790_s24 + $0x4] sm:$0xf] }
  0x19   : > { %512 = vmatpush.bf16.msra.mxu0 %v1583_v12  ;;  %v250_v39 = vor.u32 %v249_v31, %v245_v30  ;;  %v275_v46 = vld [vmem:[%s1790_s24 + $0x8] sm:$0xf]  ;;  %v1191_v47 = vrot.slane %v273_v41, 9  ;;  %v286_v48 = vrot.slane %v274_v42, 5  ;;  %v255_v51 = vrot.slane %v253_v40, 5  ;;  %v1579_v2 = vld [vmem:[%s2021_s1] sm:$0xff] }
  0x1a   : > { %525 = vmatpush.bf16.msra.mxu1 %v1591_v13  ;;  %v240_v37 = vor.u32 %v239_v29, %v236_v28  ;;  %v1588_v50 = vld [vmem:[%s2021_s1 + $0x48] sm:$0xff]  ;;  %v257_v52 = vshrl.u32 %v228_v38, 16  ;;  %v289_v53 = vrot.slane %v275_v46, 5  ;;  %v1587_v3 = vld [vmem:[%s2021_s1 + $0x40] sm:$0xff]  ;;  %v1618_v7 = vld [vmem:[%s2021_s1 + $0x138] sm:$0xff] }
  0x1b   : > { %538 = vmatpush.bf16.msra.mxu2 %v1599_v14  ;;  %v251_v45 = vrot.slane %v250_v39, 4  ;;  %v1596_v54 = vld [vmem:[%s2021_s1 + $0x88] sm:$0xff]  ;;  %v287_v57 = vsel %vm1836_vm5, %v1191_v47, %v286_v48  ;;  %v288_v58 = vrot.slane %v286_v48, 4  ;;  %v1626_v8 = vld [vmem:[%s2021_s1 + $0x178] sm:$0xff]  ;;  %v1595_v9 = vld [vmem:[%s2021_s1 + $0x80] sm:$0xff] }
  0x1c   : > { %757 = vmatpush.bf16.msra.mxu3 %v1607_v15  ;;  %v241_v44 = vrot.slane %v240_v37, 4  ;;  %v276_v56 = vld [vmem:[%s1790_s24 + $0xc] sm:$0x1]  ;;  %v259_v61 = vrot.slane %v257_v52, 4  ;;  %v291_v62 = vrot.slane %v289_v53, 4  ;;  %v1603_v10 = vld [vmem:[%s2021_s1 + $0xc0] sm:$0xff] }
  0x1d   : > { %513 = vmatpush.bf16.msra.mxu0 %v1582_v16  ;;  %v1604_v59 = vld [vmem:[%s2021_s1 + $0xc8] sm:$0xff]  ;;  %v256_v60 = vsel %vm1827_vm4, %v251_v45, %v255_v51  ;;  %v292_v63 = vrot.slane %v276_v56, 5  ;;  %v290_v0 = vsel %vm1836_vm5, %v288_v58, %v289_v53  ;;  %297 = vst [vmem:[#allocation2 + $0x8] sm:$0xf] %v287_v57  ;;  %v1634_v13 = vld [vmem:[%s2021_s1 + $0x1b8] sm:$0xff]  ;;  %v1617_v15 = vld [vmem:[%s2021_s1 + $0x130] sm:$0xff] }
  0x1e   : > { %526 = vmatpush.bf16.msra.mxu1 %v1590_v17  ;;  %v246_v55 = vsel %vm1827_vm4, %v241_v44, %v245_v30  ;;  %271 = vst [vmem:[#allocation2 + $0x10] sm:$0xf] %v256_v60  ;;  %v229_v1 = vld [vmem:[%s1790_s24 + $0xc] sm:$0x1]  ;;  %v260_v4 = vor.u32 %v259_v61, %v255_v51  ;;  %v1642_v14 = vld [vmem:[%s2021_s1 + $0x1f8] sm:$0xff]  ;;  %v1625_v17 = vld [vmem:[%s2021_s1 + $0x170] sm:$0xff] }
  0x1f   : > { %539 = vmatpush.bf16.msra.mxu2 %v1598_v25  ;;  %270 = vst [vmem:[#allocation2 + $0x4] sm:$0xf] %v246_v55  ;;  %v293_v5 = vsel %vm1836_vm5, %v291_v62, %v292_v63  ;;  %v263_v6 = vshll.u32 %v229_v1, 16  ;;  %v222_v19 = vld [vmem:[%s1790_s24 + $0x8] sm:$0xf]  ;;  %v1633_v23 = vld [vmem:[%s2021_s1 + $0x1b0] sm:$0xff]  ;;  %s219_s24 = scalar_lea.vmem %s2023_s3, %s1190_s30 }
  0x20   : > { %758 = vmatpush.bf16.msra.mxu3 %v1606_v26  ;;  %299 = vst [vmem:[#allocation2 + $0x20] sm:$0xf] %v293_v5  ;;  %v261_v11 = vrot.slane %v260_v4, 4  ;;  %v1641_v24 = vld [vmem:[%s2021_s1 + $0x1f0] sm:$0xff]  ;;  %v1616_v30 = vld [vmem:[%s2021_s1 + $0x128] sm:$0xff]  ;;  %v1615_v36 = vld [vmem:[%s2021_s1 + $0x120] sm:$0xff] }
  0x21   : > { %514 = vmatpush.bf16.msra.mxu0 %v1581_v27  ;;  %298 = vst [vmem:[#allocation2 + $0x14] sm:$0xf] %v290_v0  ;;  %v265_v12 = vrot.slane %v263_v6, 5  ;;  %v1624_v31 = vld [vmem:[%s2021_s1 + $0x168] sm:$0xff]  ;;  %v1623_v37 = vld [vmem:[%s2021_s1 + $0x160] sm:$0xff]  ;;  %v1614_v40 = vld [vmem:[%s2021_s1 + $0x118] sm:$0xff] }
  0x22   : > { %527 = vmatpush.bf16.msra.mxu1 %v1589_v32  ;;  %225 = vst [vmem:[#allocation2 + $0x18] sm:$0xf] %v222_v19  ;;  %v1632_v34 = vld [vmem:[%s2021_s1 + $0x1a8] sm:$0xff]  ;;  %v1631_v38 = vld [vmem:[%s2021_s1 + $0x1a0] sm:$0xff]  ;;  %v1622_v41 = vld [vmem:[%s2021_s1 + $0x158] sm:$0xff] }
  0x23   : > { %540 = vmatpush.bf16.msra.mxu2 %v1597_v33  ;;  %v266_v16 = vsel %vm1827_vm4, %v261_v11, %v265_v12  ;;  %v1639_v39 = vld [vmem:[%s2021_s1 + $0x1e0] sm:$0xff]  ;;  %v1630_v42 = vld [vmem:[%s2021_s1 + $0x198] sm:$0xff]  ;;  %v1613_v44 = vld [vmem:[%s2021_s1 + $0x110] sm:$0xff] }
  0x24   : > { %759 = vmatpush.bf16.msra.mxu3 %v1605_v35  ;;  %272 = vst [vmem:[#allocation2 + $0x1c] sm:$0xf] %v266_v16  ;;  %v301_v26 = vld [vmem:[#allocation2 + $0x8] sm:$0xf]  ;;  %v1638_v43 = vld [vmem:[%s2021_s1 + $0x1d8] sm:$0xff]  ;;  %v1621_v45 = vld [vmem:[%s2021_s1 + $0x150] sm:$0xff] }
  0x25   : > { %515 = vmatpush.bf16.msra.mxu0 %v1580_v49  ;;  %v1898_v22 = vld [vmem:[#allocation2 + $0xc] sm:$0xff]  ;;  %v358_v29 = vunpack.c.l.b16 %v301_v26  ;;  %v1611_v56 = vld [vmem:[%s2021_s1 + $0x100] sm:$0xff]  ;;  %v1650_v58 = vld [vmem:[%s2021_s1 + $0x238] sm:$0xff] }
  0x26   : > { %528 = vmatpush.bf16.msra.mxu1 %v1588_v50  ;;  %v300_v18 = vld [vmem:[#allocation2] sm:$0xff]  ;;  %v601_v25 = vunpack.c.l.b16 %v1898_v22  ;;  %v1640_v35 = vld [vmem:[%s2021_s1 + $0x1e8] sm:$0xff]  ;;  %v1629_v46 = vld [vmem:[%s2021_s1 + $0x190] sm:$0xff] }
  0x27   : > { %541 = vmatpush.bf16.msra.mxu2 %v1596_v54  ;;  %v356_v20 = vunpack.c.l.b16 %v300_v18  ;;  %v357_v21 = vunpack.c.h.b16 %v300_v18  ;;  %v361_v33 = vpack.c.b16 %v358_v29, %v358_v29  ;;  %v1637_v47 = vld [vmem:[%s2021_s1 + $0x1d0] sm:$0xff]  ;;  %v1612_v48 = vld [vmem:[%s2021_s1 + $0x108] sm:$0xff]  ;;  %v602_v54 = vunpack.c.h.b16 %v1898_v22  ;;  %v1619_v57 = vld [vmem:[%s2021_s1 + $0x140] sm:$0xff] }
  0x28   : > { %760 = vmatpush.bf16.msra.mxu3 %v1604_v59  ;;  %v604_v32 = vpack.c.b16 %v601_v25, %v601_v25  ;;  %v1620_v49 = vld [vmem:[%s2021_s1 + $0x148] sm:$0xff]  ;;  %v549_v50 = vld [vmem:[#allocation2 + $0x14] sm:$0xf]  ;;  %v1627_v60 = vld [vmem:[%s2021_s1 + $0x180] sm:$0xff] }
  0x29   : > { %516 = vmatpush.bf16.msra.mxu0 %v1579_v2  ;;  %v359_v27 = vpack.c.b16 %v356_v20, %v356_v20  ;;  %v360_v28 = vpack.c.b16 %v357_v21, %v357_v21  ;;  %v1628_v51 = vld [vmem:[%s2021_s1 + $0x188] sm:$0xff]  ;;  %v603_v55 = vunpack.c.l.b16 %v549_v50  ;;  %v1635_v61 = vld [vmem:[%s2021_s1 + $0x1c0] sm:$0xff]  ;;  %v605_v63 = vpack.c.b16 %v602_v54, %v602_v54  ;;  %v1649_v1 = vld [vmem:[%s2021_s1 + $0x230] sm:$0xff] }
  0x2a   : > { %529 = vmatpush.bf16.msra.mxu1 %v1587_v3  ;;  %v1636_v52 = vld [vmem:[%s2021_s1 + $0x1c8] sm:$0xff]  ;;  %v1647_v5 = vld [vmem:[%s2021_s1 + $0x220] sm:$0xff]  ;;  %v1646_v6 = vld [vmem:[%s2021_s1 + $0x218] sm:$0xff] }
  0x2b   : > { %542 = vmatpush.bf16.msra.mxu2 %v1595_v9  ;;  %v794_v53 = vld [vmem:[#allocation2 + $0x18] sm:$0xff]  ;;  %v606_v0 = vpack.c.b16 %v603_v55, %v603_v55  ;;  %v1648_v4 = vld [vmem:[%s2021_s1 + $0x228] sm:$0xff]  ;;  %v795_v9 = vld [vmem:[#allocation2 + $0x20] sm:$0xf] }
  0x2c   : > { %761 = vmatpush.bf16.msra.mxu3 %v1603_v10  ;;  %517 = vmatmul.bf16.vlgmr.msra.gmra.mxu0 %v359_v27  ;;  %v847_v59 = vunpack.c.l.b16 %v794_v53  ;;  %v848_v62 = vunpack.c.h.b16 %v794_v53  ;;  %v849_v10 = vunpack.c.l.b16 %v795_v9  ;;  %v1643_v11 = vld [vmem:[%s2021_s1 + $0x200] sm:$0xff] }
  0x2d   : > { %767 = vmatpush.bf16.msrb.mxu0 %v1618_v7  ;;  %530 = vmatmul.bf16.vlgmr.msra.gmra.mxu1 %v360_v28  ;;  %v1645_v7 = vld [vmem:[%s2021_s1 + $0x210] sm:$0xff]  ;;  %v1675_v27 = vld [vmem:[%s2022_s2] ss:$0 sm:$0xff] }
  0x2e   : > { %780 = vmatpush.bf16.msrb.mxu1 %v1626_v8  ;;  %543 = vmatmul.bf16.vlgmr.msra.gmra.mxu2 %v361_v33  ;;  %v850_v2 = vpack.c.b16 %v847_v59, %v847_v59  ;;  %v851_v3 = vpack.c.b16 %v848_v62, %v848_v62  ;;  %v1644_v8 = vld [vmem:[%s2021_s1 + $0x208] sm:$0xff]  ;;  %v852_v12 = vpack.c.b16 %v849_v10, %v849_v10 }
  0x2f   : > { %1000 = vmatpush.bf16.msrb.mxu2 %v1634_v13  ;;  %762 = vmatmul.bf16.vlgmr.msra.gmra.mxu3 %v604_v32 }
  0x30   : > { %1013 = vmatpush.bf16.msrb.mxu3 %v1642_v14 }
  0x31   : > { %768 = vmatpush.bf16.msrb.mxu0 %v1617_v15 }
  0x32   : > { %781 = vmatpush.bf16.msrb.mxu1 %v1625_v17 }
  0x33   : > { %1001 = vmatpush.bf16.msrb.mxu2 %v1633_v23 }
  0x34   : > { %1014 = vmatpush.bf16.msrb.mxu3 %v1641_v24 }
  0x35   : > { %769 = vmatpush.bf16.msrb.mxu0 %v1616_v30 }
  0x36   : > { %782 = vmatpush.bf16.msrb.mxu1 %v1624_v31 }
  0x37   : > { %1002 = vmatpush.bf16.msrb.mxu2 %v1632_v34 }
  0x38   : > { %1015 = vmatpush.bf16.msrb.mxu3 %v1640_v35 }
  0x39   : > { %770 = vmatpush.bf16.msrb.mxu0 %v1615_v36 }
  0x3a   : > { %783 = vmatpush.bf16.msrb.mxu1 %v1623_v37 }
  0x3b   : > { %1003 = vmatpush.bf16.msrb.mxu2 %v1631_v38 }
  0x3c   : > { %1016 = vmatpush.bf16.msrb.mxu3 %v1639_v39 }
  0x3d   : > { %771 = vmatpush.bf16.msrb.mxu0 %v1614_v40 }
  0x3e   : > { %784 = vmatpush.bf16.msrb.mxu1 %v1622_v41 }
  0x3f   : > { %1004 = vmatpush.bf16.msrb.mxu2 %v1630_v42 }
  0x40   : > { %1017 = vmatpush.bf16.msrb.mxu3 %v1638_v43 }
  0x41   : > { %772 = vmatpush.bf16.msrb.mxu0 %v1613_v44 }
  0x42   : > { %785 = vmatpush.bf16.msrb.mxu1 %v1621_v45 }
  0x43   : > { %1005 = vmatpush.bf16.msrb.mxu2 %v1629_v46 }
  0x44   : > { %1018 = vmatpush.bf16.msrb.mxu3 %v1637_v47 }
  0x45   : > { %773 = vmatpush.bf16.msrb.mxu0 %v1612_v48 }
  0x46   : > { %786 = vmatpush.bf16.msrb.mxu1 %v1620_v49 }
  0x47   : > { %1006 = vmatpush.bf16.msrb.mxu2 %v1628_v51 }
  0x48   : > { %1019 = vmatpush.bf16.msrb.mxu3 %v1636_v52 }
  0x49   : > { %774 = vmatpush.bf16.msrb.mxu0 %v1611_v56 }
  0x4a   : > { %787 = vmatpush.bf16.msrb.mxu1 %v1619_v57 }
  0x4b   : > { %1007 = vmatpush.bf16.msrb.mxu2 %v1627_v60 }
  0x4c   : > { %1020 = vmatpush.bf16.msrb.mxu3 %v1635_v61  ;;  %775 = vmatmul.bf16.vlgmr.msrb.gmra.mxu0 %v605_v63 }
  0x4d   : > { %1026 = vmatpush.bf16.msra.mxu0 %v1650_v58  ;;  %788 = vmatmul.bf16.vlgmr.msrb.gmra.mxu1 %v606_v0 }
  0x4e   : > { %1008 = vmatmul.bf16.vlgmr.msrb.gmra.mxu2 %v850_v2 }
  0x4f   : > { %1021 = vmatmul.bf16.vlgmr.msrb.gmra.mxu3 %v851_v3 }
  0x51   : > { %1027 = vmatpush.bf16.msra.mxu0 %v1649_v1 }
  0x55   : > { %1028 = vmatpush.bf16.msra.mxu0 %v1648_v4 }
  0x59   : > { %1029 = vmatpush.bf16.msra.mxu0 %v1647_v5 }
  0x5d   : > { %1030 = vmatpush.bf16.msra.mxu0 %v1646_v6 }
  0x61   : > { %1031 = vmatpush.bf16.msra.mxu0 %v1645_v7 }
  0x65   : > { %1032 = vmatpush.bf16.msra.mxu0 %v1644_v8 }
  0x69   : > { %1033 = vmatpush.bf16.msra.mxu0 %v1643_v11 }
  0x6c   : > { %1034 = vmatmul.bf16.vlgmr.msra.gmra.mxu0 %v852_v12 }
  0xa9   : > { %v518_v13 = vpop.f32.mrf.mxu0 }
  0xaa   : > { %v531_v14 = vpop.f32.mrf.mxu1  ;;  %v519_v30 = vadd.f32 %v1675_v27, %v518_v13 }
  0xac   : > { %v532_v31 = vadd.f32 %v531_v14, %v519_v30 }
  0xb1   : > { %v520_v15 = vpop.f32.mrf.mxu0  ;;  %v544_v18 = vpop.f32.mrf.mxu2 }
  0xb2   : > { %v533_v16 = vpop.f32.mrf.mxu1  ;;  %v763_v17 = vpop.f32.mrf.mxu3  ;;  %v545_v33 = vadd.f32 %v544_v18, %v532_v31 }
  0xb9   : > { %v546_v19 = vpop.f32.mrf.mxu2 }
  0xba   : > { %v765_v20 = vpop.f32.mrf.mxu3 }
  0xc9   : > { %v776_v21 = vpop.f32.mrf.mxu0 }
  0xca   : > { %v789_v22 = vpop.f32.mrf.mxu1  ;;  %v777_v32 = vadd.f32 %v776_v21, %v763_v17 }
  0xcc   : > { %v790_v34 = vadd.f32 %v789_v22, %v777_v32 }
  0xce   : > { %v793_v37 = vadd.f32 %v790_v34, %v545_v33 }
  0xd1   : > { %v778_v23 = vpop.f32.mrf.mxu0  ;;  %v1009_v24 = vpop.f32.mrf.mxu2 }
  0xd2   : > { %v1022_v25 = vpop.f32.mrf.mxu3  ;;  %v791_v26 = vpop.f32.mrf.mxu1 }
  0xd3   : > { %v1023_v35 = vadd.f32 %v1022_v25, %v1009_v24 }
  0xd9   : > { %v1011_v28 = vpop.f32.mrf.mxu2 }
  0xda   : > { %v1024_v29 = vpop.f32.mrf.mxu3 }
  0xe9   : > { %v1035_v36 = vpop.f32.mrf.mxu0 }
  0xea   : > { %v1036_v38 = vadd.f32 %v1035_v36, %v1023_v35 }
  0xec   : > { %v1039_v39 = vadd.f32 %v1036_v38, %v793_v37 }
  0xee   : > { %v1041_v40 = vmul.f32 0.70710677, %v1039_v39  ;;  %v1040_v8 = vmul.f32 0.5, %v1039_v39 }
  0xf0   : > { %v1042_v41 = vand.u32 2147483647, %v1041_v40  ;;  %vm1075_vm10 = vcmp.lt.f32.partialorder %v1041_v40, 0.0 }
  0xf1   : > { %v1037_v42 = vpop.f32.mrf.mxu0 }
  0xf2   : > { %v1043_v43 = vmul.f32 0.3275911, %v1042_v41  ;;  %v1069_v55 = vsub.f32 0.0, %v1042_v41 }
  0xf4   : > { %v1044_v44 = vadd.f32 1.0, %v1043_v43  ;;  %v1070_v58 = vmul.f32 %v1069_v55, %v1042_v41 }
  0xf6   : > { %1676 = vrcp.f32 %v1044_v44  ;;  %v1056_v48 = vand.u32 2147483648, %v1044_v44  ;;  %v1054_v50 = vand.u32 2147483647, %v1044_v44  ;;  %vm1050_vm7 = vweird.f32 %v1044_v44 }
  0xf7   : > { %v1071_v61 = vmul.f32 1.442695, %v1070_v58 }
  0xf8   : > { %v1057_v52 = vor.u32 1.1754944e-38, %v1056_v48  ;;  %vm1055_vm9 = vcmp.eq.f32.partialorder %v1054_v50, 8.507059e+37 }
  0xf9   : > { %1678 = vpow2.f32 %v1071_v61 }
  0xfc   : > { %v1677_v45 = vpop.eup %1676 }
  0xfd   : > { %v1046_v46 = vmul.f32 %v1677_v45, %v1044_v44  ;;  %vm1051_vm6 = vweird.f32 %v1677_v45 }
  0xfe   : > { %vm1052_vm8 = vmor %vm1050_vm7, %vm1051_vm6 }
  0xff   : > { %v1047_v47 = vsub.f32 1.0, %v1046_v46  ;;  %v1679_v3 = vpop.eup %1678 }
 0x101   : > { %v1048_v49 = vmul.f32 %v1677_v45, %v1047_v47 }
 0x103   : > { %v1049_v51 = vadd.f32 %v1677_v45, %v1048_v49 }
 0x105   : > { %v1053_v53 = vsel %vm1052_vm8, %v1677_v45, %v1049_v51 }
 0x106   : > { %v1058_v54 = vsel %vm1055_vm9, %v1057_v52, %v1053_v53 }
 0x107   : > { %v1060_v56 = vmul.f32 1.0614054, %v1058_v54 }
 0x109   : > { %v1061_v57 = vadd.f32 -1.4531521, %v1060_v56 }
 0x10b   : > { %v1062_v59 = vmul.f32 %v1061_v57, %v1058_v54 }
 0x10d   : > { %v1063_v60 = vadd.f32 1.4214138, %v1062_v59 }
 0x10f   : > { %v1064_v62 = vmul.f32 %v1063_v60, %v1058_v54 }
 0x111   : > { %v1065_v63 = vadd.f32 -0.28449672, %v1064_v62 }
 0x113   : > { %v1066_v0 = vmul.f32 %v1065_v63, %v1058_v54 }
 0x115   : > { %v1067_v1 = vadd.f32 0.2548296, %v1066_v0 }
 0x117   : > { %v1068_v2 = vmul.f32 %v1067_v1, %v1058_v54 }
 0x119   : > { %v1073_v4 = vmul.f32 %v1679_v3, %v1068_v2 }
 0x11b   : > { %v1074_v5 = vsub.f32 1.0, %v1073_v4 }
 0x11d   : > { %v1076_v6 = vsub.f32 0.0, %v1074_v5 }
 0x11f   : > { %v1077_v7 = vsel %vm1075_vm10, %v1076_v6, %v1074_v5 }
 0x120   : > { %v1078_v9 = vadd.f32 1.0, %v1077_v7 }
 0x122   : > { %v1079_v10 = vmul.f32 %v1078_v9, %v1040_v8 }
 0x124   : > { %v1080_v11 = vpack.c.bf16 %v1079_v10, %v1079_v10 }
 0x126   : > { %1081 = vst [vmem:[%s219_s24] sm:$0xf] %v1080_v11 }
 0x127 PF: > { %s13_s14 = sadd.s32 1, %s1702_s14   ;;  %s2028_s12 = smov %s1698_s13 }
 0x128   : > { %p10_p5 = scmp.ge.s32.totalorder %s13_s14, 4   ;;  %s2029_s13 = smov %s2031_s15 }
 0x12a   :  { %12 = sbr.rel (!%p10_p5) target bundleno = 2 (0x2), region = 70 }

// kernel: conv_layer_forward.26
= control target key start
LH: loop header
LB: loop body
LE: loop exit
PB: predicated region body
PF: predicated region fallthrough
CT: control target
= control target key end

     0   :  { %8 = vsyncpa [#allocation4], 0  ;;  %s1685_s12 = smov 0   ;;  %s1687_s13 = smov 0   ;;  %s1773_s0 = inlined_call_operand.vmem [shape: bf16[2,32,128], index: 0, kind: input, shape index: {}]   ;;  %s1774_s1 = inlined_call_operand.hbm [shape: bf16[3,384,128], index: 1, kind: input, shape index: {}]   ;;  %s1775_s2 = inlined_call_operand.vmem [shape: f32[1,128], index: 2, kind: input, shape index: {}]   ;;  %s1776_s3 = inlined_call_operand.vmem [shape: bf16[2,8,128], index: 3, kind: output, shape index: {}]  }
   0x1   :  { %s1689_s14 = smov 0  }
   0x2 LB: > { %s1187_s15 = sadd.s32 4294967295, %s1660_s14   ;;  %s26_s16 = sadd.s32 1, %s1656_s13  ;;  %s1660_s14 = sphi %s1689_s14, %s14_s14   ;;  %s1656_s13 = sphi %s1687_s13, %s1782_s13   ;;  %s1652_s12 = sphi %s1685_s12, %s1781_s12  }
   0x3   : > { %p28_p0 = scmp.ge.s32.totalorder %s26_s16, 2  ;;  %p1189_p1 = scmp.ge.s32.totalorder %s1660_s14, 1 }
   0x4   : > { %p137_p2 = scmp.lt.s32.totalorder %s1660_s14, 3  ;;  %p1570_p4 = scmp.eq.s32.totalorder %s1187_s15, 0 }
   0x5   : > { %s1784_s16 = smov (%p28_p0, %s26_s16), 0  ;;  %s150_s19 = sshll.u32 %s1774_s1, 4  ;;  %s151_s19 = int_to_ptr.hbm [resolvable:$true] %s150_s19 }
   0x6   : > { %p138_p3 = pnand %p1189_p1, %p137_p2  ;;  %s1662_s20 = smov [#allocation3]  }
   0x7   : > { %s152_s21 = sshll.u32 %s1662_s20, 4  ;;  %s1663_s22 = smov 64   ;;  %s153_s21 = int_to_ptr.vmem [resolvable:$true] %s152_s21 }
   0x8   : > { %p1566_p5 = pneg %p138_p3  ;;  %s1664_s23 = smov 4  }
   0x9   : > { %182 = sbr.rel (%p138_p3) target bundleno = 298 (0x12a), region = 32 }
   0xa   : > { %p1567_p6 = pnand %p1570_p4, %p1566_p5 }
   0xc   : > { %1569 = dma.hbm_to_vmem [thread:$0]  (!%p1567_p6), %s151_s19, 9216, %s153_s21, [#allocation4], %s1663_s22, %s1663_s22, %s1664_s23  }
   0xe   : > { %1647 = dma.done.wait (%p1570_p4), [#allocation4], 9216  }
   0xf   : > { %1649 = vsyncadd (%p1570_p4), [#allocation4], 4294958080  ;;  %v1497_v0 = vld [vmem:[#allocation3 + $0x38] sm:$0xff]  ;;  %p212_p7 = scmp.lt.s32.totalorder %s1652_s12, 1  ;;  %v1496_v2 = vld [vmem:[#allocation3 + $0x30] sm:$0xff]  ;;  %vm288_vm2 = vcmask 1042432  }
  0x10   : > { %v1505_v1 = vld [vmem:[#allocation3 + $0x78] sm:$0xff]  ;;  %516 = vmatpush.bf16.msra.mxu0 %v1497_v0  ;;  %v1504_v3 = vld [vmem:[#allocation3 + $0x70] sm:$0xff]  ;;  %v1495_v8 = vld [vmem:[#allocation3 + $0x28] sm:$0xff]  ;;  %vm237_vm0 = vsmask.f32 3328  ;;  %vm289_vm3 = vcmask 1046532  }
  0x11   : > { %529 = vmatpush.bf16.msra.mxu1 %v1505_v1  ;;  %v1513_v4 = vld [vmem:[#allocation3 + $0xb8] sm:$0xff]  ;;  %v1512_v6 = vld [vmem:[#allocation3 + $0xb0] sm:$0xff]  ;;  %s1786_s12 = smov (!%p212_p7, %s1652_s12), 1  ;;  %v1503_v9 = vld [vmem:[#allocation3 + $0x68] sm:$0xff]  ;;  %vm238_vm1 = vsmask.f32 7440 }
  0x12   : > { %v1521_v5 = vld [vmem:[#allocation3 + $0xf8] sm:$0xff]  ;;  %542 = vmatpush.bf16.msra.mxu2 %v1513_v4  ;;  %v1520_v7 = vld [vmem:[#allocation3 + $0xf0] sm:$0xff]  ;;  %v1511_v10 = vld [vmem:[#allocation3 + $0xa8] sm:$0xff]  ;;  %s1489_s24 = sshll.u32 %s1786_s12, 4  ;;  %s1197_s30 = sshll.u32 %s1786_s12, 2 }
  0x13   : > { %761 = vmatpush.bf16.msra.mxu3 %v1521_v5  ;;  %v1519_v11 = vld [vmem:[#allocation3 + $0xe8] sm:$0xff]  ;;  %v1494_v12 = vld [vmem:[#allocation3 + $0x20] sm:$0xff]  ;;  %s1717_s27 = scalar_lea.vmem %s1773_s0, %s1489_s24  ;;  %v1493_v16 = vld [vmem:[#allocation3 + $0x18] sm:$0xff]  ;;  %s226_s6 = scalar_lea.vmem %s1776_s3, %s1197_s30 }
  0x14   : > { %517 = vmatpush.bf16.msra.mxu0 %v1496_v2  ;;  %v1502_v13 = vld [vmem:[#allocation3 + $0x60] sm:$0xff]  ;;  %v1501_v17 = vld [vmem:[#allocation3 + $0x58] sm:$0xff]  ;;  %v1492_v27 = vld [vmem:[#allocation3 + $0x10] sm:$0xff] }
  0x15   : > { %530 = vmatpush.bf16.msra.mxu1 %v1504_v3  ;;  %v1510_v14 = vld [vmem:[#allocation3 + $0xa0] sm:$0xff]  ;;  %v227_v18 = vld [vmem:[%s1717_s27] sm:$0xf]  ;;  %v1500_v32 = vld [vmem:[#allocation3 + $0x50] sm:$0xff] }
  0x16   : > { %543 = vmatpush.bf16.msra.mxu2 %v1512_v6  ;;  %v1518_v15 = vld [vmem:[#allocation3 + $0xe0] sm:$0xff]  ;;  %v233_v19 = vld [vmem:[%s1717_s27] sm:$0xf]  ;;  %230 = vst [vmem:[#allocation2] sm:$0xf] %v227_v18  ;;  %v1508_v33 = vld [vmem:[#allocation3 + $0x90] sm:$0xff] }
  0x17   : > { %762 = vmatpush.bf16.msra.mxu3 %v1520_v7  ;;  %v234_v20 = vld [vmem:[%s1717_s27 + $0x4] sm:$0xf]  ;;  %v241_v21 = vshrl.u32 %v233_v19, 16  ;;  %v244_v22 = vshll.u32 %v233_v19, 16  ;;  %v1509_v25 = vld [vmem:[#allocation3 + $0x98] sm:$0xff]  ;;  %v1516_v35 = vld [vmem:[#allocation3 + $0xd0] sm:$0xff] }
  0x18   : > { %518 = vmatpush.bf16.msra.mxu0 %v1495_v8  ;;  %v250_v23 = vshll.u32 %v234_v20, 16  ;;  %v254_v24 = vshrl.u32 %v234_v20, 16  ;;  %v1517_v26 = vld [vmem:[#allocation3 + $0xd8] sm:$0xff]  ;;  %v228_v34 = vld [vmem:[%s1717_s27 + $0x4] sm:$0xf]  ;;  %vm1724_vm4 = vmor %vm237_vm0, %vm238_vm1 }
  0x19   : > { %531 = vmatpush.bf16.msra.mxu1 %v1503_v9  ;;  %v243_v28 = vrot.slane %v241_v21, 4  ;;  %v246_v29 = vrot.slane %v244_v22, 5  ;;  %231 = vst [vmem:[#allocation2 + $0xc] sm:$0xf] %v228_v34  ;;  %v235_v38 = vld [vmem:[%s1717_s27 + $0x8] sm:$0xf]  ;;  %vm1733_vm5 = vmor %vm288_vm2, %vm289_vm3 }
  0x1a   : > { %544 = vmatpush.bf16.msra.mxu2 %v1511_v10  ;;  %v252_v30 = vrot.slane %v250_v23, 5  ;;  %v256_v31 = vrot.slane %v254_v24, 4  ;;  %v260_v40 = vshll.u32 %v235_v38, 16  ;;  %v280_v41 = vld [vmem:[%s1717_s27] sm:$0xe]  ;;  %v1491_v49 = vld [vmem:[#allocation3 + $0x8] sm:$0xff] }
  0x1b   : > { %763 = vmatpush.bf16.msra.mxu3 %v1519_v11  ;;  %v247_v37 = vor.u32 %v246_v29, %v243_v28  ;;  %v281_v42 = vld [vmem:[%s1717_s27 + $0x4] sm:$0xf]  ;;  %v282_v46 = vld [vmem:[%s1717_s27 + $0x8] sm:$0xf]  ;;  %v1198_v47 = vrot.slane %v280_v41, 9  ;;  %v1499_v50 = vld [vmem:[#allocation3 + $0x48] sm:$0xff] }
  0x1c   : > { %519 = vmatpush.bf16.msra.mxu0 %v1494_v12  ;;  %v257_v39 = vor.u32 %v256_v31, %v252_v30  ;;  %v293_v48 = vrot.slane %v281_v42, 5  ;;  %v262_v51 = vrot.slane %v260_v40, 5  ;;  %v264_v52 = vshrl.u32 %v235_v38, 16  ;;  %v1507_v54 = vld [vmem:[#allocation3 + $0x88] sm:$0xff]  ;;  %v1490_v2 = vld [vmem:[#allocation3] sm:$0xff]  ;;  %v1529_v7 = vld [vmem:[#allocation3 + $0x138] sm:$0xff] }
  0x1d   : > { %532 = vmatpush.bf16.msra.mxu1 %v1502_v13  ;;  %v248_v44 = vrot.slane %v247_v37, 4  ;;  %v296_v53 = vrot.slane %v282_v46, 5  ;;  %v283_v56 = vld [vmem:[%s1717_s27 + $0xc] sm:$0x1]  ;;  %v1498_v3 = vld [vmem:[#allocation3 + $0x40] sm:$0xff]  ;;  %v1537_v8 = vld [vmem:[#allocation3 + $0x178] sm:$0xff] }
  0x1e   : > { %545 = vmatpush.bf16.msra.mxu2 %v1510_v14  ;;  %v258_v45 = vrot.slane %v257_v39, 4  ;;  %v294_v57 = vsel %vm1733_vm5, %v1198_v47, %v293_v48  ;;  %v295_v58 = vrot.slane %v293_v48, 4  ;;  %v1515_v59 = vld [vmem:[#allocation3 + $0xc8] sm:$0xff]  ;;  %v266_v61 = vrot.slane %v264_v52, 4  ;;  %v1506_v9 = vld [vmem:[#allocation3 + $0x80] sm:$0xff]  ;;  %v1545_v13 = vld [vmem:[#allocation3 + $0x1b8] sm:$0xff] }
  0x1f   : > { %764 = vmatpush.bf16.msra.mxu3 %v1518_v15  ;;  %v253_v55 = vsel %vm1724_vm4, %v248_v44, %v252_v30  ;;  %v298_v62 = vrot.slane %v296_v53, 4  ;;  %v299_v63 = vrot.slane %v283_v56, 5  ;;  %v236_v1 = vld [vmem:[%s1717_s27 + $0xc] sm:$0x1]  ;;  %304 = vst [vmem:[#allocation2 + $0x8] sm:$0xf] %v294_v57 }
  0x20   : > { %520 = vmatpush.bf16.msra.mxu0 %v1493_v16  ;;  %277 = vst [vmem:[#allocation2 + $0x4] sm:$0xf] %v253_v55  ;;  %v263_v60 = vsel %vm1724_vm4, %v258_v45, %v262_v51  ;;  %v297_v0 = vsel %vm1733_vm5, %v295_v58, %v296_v53  ;;  %v267_v4 = vor.u32 %v266_v61, %v262_v51  ;;  %v270_v6 = vshll.u32 %v236_v1, 16  ;;  %v1514_v10 = vld [vmem:[#allocation3 + $0xc0] sm:$0xff]  ;;  %v1553_v14 = vld [vmem:[#allocation3 + $0x1f8] sm:$0xff]  ;;  %v1528_v15 = vld [vmem:[#allocation3 + $0x130] sm:$0xff] }
  0x21   : > { %533 = vmatpush.bf16.msra.mxu1 %v1501_v17  ;;  %278 = vst [vmem:[#allocation2 + $0x10] sm:$0xf] %v263_v60  ;;  %v300_v5 = vsel %vm1733_vm5, %v298_v62, %v299_v63  ;;  %v1536_v17 = vld [vmem:[#allocation3 + $0x170] sm:$0xff]  ;;  %v229_v19 = vld [vmem:[%s1717_s27 + $0x8] sm:$0xf]  ;;  %v1527_v30 = vld [vmem:[#allocation3 + $0x128] sm:$0xff] }
  0x22   : > { %546 = vmatpush.bf16.msra.mxu2 %v1509_v25  ;;  %306 = vst [vmem:[#allocation2 + $0x20] sm:$0xf] %v300_v5  ;;  %v268_v11 = vrot.slane %v267_v4, 4  ;;  %v272_v12 = vrot.slane %v270_v6, 5  ;;  %v1544_v23 = vld [vmem:[#allocation3 + $0x1b0] sm:$0xff]  ;;  %v1535_v31 = vld [vmem:[#allocation3 + $0x168] sm:$0xff] }
  0x23   : > { %765 = vmatpush.bf16.msra.mxu3 %v1517_v26  ;;  %305 = vst [vmem:[#allocation2 + $0x14] sm:$0xf] %v297_v0  ;;  %v1552_v24 = vld [vmem:[#allocation3 + $0x1f0] sm:$0xff]  ;;  %v1543_v34 = vld [vmem:[#allocation3 + $0x1a8] sm:$0xff]  ;;  %v1526_v36 = vld [vmem:[#allocation3 + $0x120] sm:$0xff] }
  0x24   : > { %521 = vmatpush.bf16.msra.mxu0 %v1492_v27  ;;  %v273_v16 = vsel %vm1724_vm4, %v268_v11, %v272_v12  ;;  %232 = vst [vmem:[#allocation2 + $0x18] sm:$0xf] %v229_v19  ;;  %v1534_v37 = vld [vmem:[#allocation3 + $0x160] sm:$0xff]  ;;  %v1525_v40 = vld [vmem:[#allocation3 + $0x118] sm:$0xff]  ;;  %v1524_v44 = vld [vmem:[#allocation3 + $0x110] sm:$0xff] }
  0x25   : > { %534 = vmatpush.bf16.msra.mxu1 %v1500_v32  ;;  %279 = vst [vmem:[#allocation2 + $0x1c] sm:$0xf] %v273_v16  ;;  %v1542_v38 = vld [vmem:[#allocation3 + $0x1a0] sm:$0xff]  ;;  %v1533_v41 = vld [vmem:[#allocation3 + $0x158] sm:$0xff]  ;;  %v1532_v45 = vld [vmem:[#allocation3 + $0x150] sm:$0xff] }
  0x26   : > { %547 = vmatpush.bf16.msra.mxu2 %v1508_v33  ;;  %v308_v26 = vld [vmem:[#allocation2 + $0x8] sm:$0xf]  ;;  %v1541_v42 = vld [vmem:[#allocation3 + $0x198] sm:$0xff]  ;;  %v1540_v46 = vld [vmem:[#allocation3 + $0x190] sm:$0xff] }
  0x27   : > { %766 = vmatpush.bf16.msra.mxu3 %v1516_v35  ;;  %v307_v18 = vld [vmem:[#allocation2] sm:$0xff]  ;;  %v365_v29 = vunpack.c.l.b16 %v308_v26  ;;  %v1551_v35 = vld [vmem:[#allocation3 + $0x1e8] sm:$0xff]  ;;  %v1548_v47 = vld [vmem:[#allocation3 + $0x1d0] sm:$0xff] }
  0x28   : > { %522 = vmatpush.bf16.msra.mxu0 %v1491_v49  ;;  %v363_v20 = vunpack.c.l.b16 %v307_v18  ;;  %v364_v21 = vunpack.c.h.b16 %v307_v18  ;;  %v1753_v22 = vld [vmem:[#allocation2 + $0xc] sm:$0xff]  ;;  %v1550_v39 = vld [vmem:[#allocation3 + $0x1e0] sm:$0xff]  ;;  %v1549_v43 = vld [vmem:[#allocation3 + $0x1d8] sm:$0xff] }
  0x29   : > { %535 = vmatpush.bf16.msra.mxu1 %v1499_v50  ;;  %v608_v25 = vunpack.c.l.b16 %v1753_v22  ;;  %v368_v33 = vpack.c.b16 %v365_v29, %v365_v29  ;;  %v1523_v48 = vld [vmem:[#allocation3 + $0x108] sm:$0xff]  ;;  %v1522_v56 = vld [vmem:[#allocation3 + $0x100] sm:$0xff]  ;;  %v1561_v58 = vld [vmem:[#allocation3 + $0x238] sm:$0xff] }
  0x2a   : > { %548 = vmatpush.bf16.msra.mxu2 %v1507_v54  ;;  %v366_v27 = vpack.c.b16 %v363_v20, %v363_v20  ;;  %v367_v28 = vpack.c.b16 %v364_v21, %v364_v21  ;;  %v1531_v49 = vld [vmem:[#allocation3 + $0x148] sm:$0xff]  ;;  %v556_v50 = vld [vmem:[#allocation2 + $0x14] sm:$0xf]  ;;  %v609_v54 = vunpack.c.h.b16 %v1753_v22  ;;  %v1530_v57 = vld [vmem:[#allocation3 + $0x140] sm:$0xff] }
  0x2b   : > { %767 = vmatpush.bf16.msra.mxu3 %v1515_v59  ;;  %v611_v32 = vpack.c.b16 %v608_v25, %v608_v25  ;;  %v1539_v51 = vld [vmem:[#allocation3 + $0x188] sm:$0xff]  ;;  %v610_v55 = vunpack.c.l.b16 %v556_v50  ;;  %v1538_v60 = vld [vmem:[#allocation3 + $0x180] sm:$0xff]  ;;  %v1560_v1 = vld [vmem:[#allocation3 + $0x230] sm:$0xff] }
  0x2c   : > { %523 = vmatpush.bf16.msra.mxu0 %v1490_v2  ;;  %v1547_v52 = vld [vmem:[#allocation3 + $0x1c8] sm:$0xff]  ;;  %v801_v53 = vld [vmem:[#allocation2 + $0x18] sm:$0xff]  ;;  %v1546_v61 = vld [vmem:[#allocation3 + $0x1c0] sm:$0xff]  ;;  %v612_v63 = vpack.c.b16 %v609_v54, %v609_v54 }
  0x2d   : > { %536 = vmatpush.bf16.msra.mxu1 %v1498_v3  ;;  %v854_v59 = vunpack.c.l.b16 %v801_v53  ;;  %v855_v62 = vunpack.c.h.b16 %v801_v53  ;;  %v613_v0 = vpack.c.b16 %v610_v55, %v610_v55  ;;  %v1559_v4 = vld [vmem:[#allocation3 + $0x228] sm:$0xff]  ;;  %v1558_v5 = vld [vmem:[#allocation3 + $0x220] sm:$0xff]  ;;  %v1557_v6 = vld [vmem:[#allocation3 + $0x218] sm:$0xff] }
  0x2e   : > { %549 = vmatpush.bf16.msra.mxu2 %v1506_v9  ;;  %v802_v9 = vld [vmem:[#allocation2 + $0x20] sm:$0xf]  ;;  %v1554_v11 = vld [vmem:[#allocation3 + $0x200] sm:$0xff] }
  0x2f   : > { %768 = vmatpush.bf16.msra.mxu3 %v1514_v10  ;;  %524 = vmatmul.bf16.vlgmr.msra.gmra.mxu0 %v366_v27  ;;  %v857_v2 = vpack.c.b16 %v854_v59, %v854_v59  ;;  %v858_v3 = vpack.c.b16 %v855_v62, %v855_v62  ;;  %v856_v10 = vunpack.c.l.b16 %v802_v9  ;;  %v1599_v27 = vld [vmem:[%s1775_s2] ss:$0 sm:$0xff] }
  0x30   : > { %774 = vmatpush.bf16.msrb.mxu0 %v1529_v7  ;;  %537 = vmatmul.bf16.vlgmr.msra.gmra.mxu1 %v367_v28  ;;  %v1556_v7 = vld [vmem:[#allocation3 + $0x210] sm:$0xff] }
  0x31   : > { %787 = vmatpush.bf16.msrb.mxu1 %v1537_v8  ;;  %550 = vmatmul.bf16.vlgmr.msra.gmra.mxu2 %v368_v33  ;;  %v1555_v8 = vld [vmem:[#allocation3 + $0x208] sm:$0xff]  ;;  %v859_v12 = vpack.c.b16 %v856_v10, %v856_v10 }
  0x32   : > { %1007 = vmatpush.bf16.msrb.mxu2 %v1545_v13  ;;  %769 = vmatmul.bf16.vlgmr.msra.gmra.mxu3 %v611_v32 }
  0x33   : > { %1020 = vmatpush.bf16.msrb.mxu3 %v1553_v14 }
  0x34   : > { %775 = vmatpush.bf16.msrb.mxu0 %v1528_v15 }
  0x35   : > { %788 = vmatpush.bf16.msrb.mxu1 %v1536_v17 }
  0x36   : > { %1008 = vmatpush.bf16.msrb.mxu2 %v1544_v23 }
  0x37   : > { %1021 = vmatpush.bf16.msrb.mxu3 %v1552_v24 }
  0x38   : > { %776 = vmatpush.bf16.msrb.mxu0 %v1527_v30 }
  0x39   : > { %789 = vmatpush.bf16.msrb.mxu1 %v1535_v31 }
  0x3a   : > { %1009 = vmatpush.bf16.msrb.mxu2 %v1543_v34 }
  0x3b   : > { %1022 = vmatpush.bf16.msrb.mxu3 %v1551_v35 }
  0x3c   : > { %777 = vmatpush.bf16.msrb.mxu0 %v1526_v36 }
  0x3d   : > { %790 = vmatpush.bf16.msrb.mxu1 %v1534_v37 }
  0x3e   : > { %1010 = vmatpush.bf16.msrb.mxu2 %v1542_v38 }
  0x3f   : > { %1023 = vmatpush.bf16.msrb.mxu3 %v1550_v39 }
  0x40   : > { %778 = vmatpush.bf16.msrb.mxu0 %v1525_v40 }
  0x41   : > { %791 = vmatpush.bf16.msrb.mxu1 %v1533_v41 }
  0x42   : > { %1011 = vmatpush.bf16.msrb.mxu2 %v1541_v42 }
  0x43   : > { %1024 = vmatpush.bf16.msrb.mxu3 %v1549_v43 }
  0x44   : > { %779 = vmatpush.bf16.msrb.mxu0 %v1524_v44 }
  0x45   : > { %792 = vmatpush.bf16.msrb.mxu1 %v1532_v45 }
  0x46   : > { %1012 = vmatpush.bf16.msrb.mxu2 %v1540_v46 }
  0x47   : > { %1025 = vmatpush.bf16.msrb.mxu3 %v1548_v47 }
  0x48   : > { %780 = vmatpush.bf16.msrb.mxu0 %v1523_v48 }
  0x49   : > { %793 = vmatpush.bf16.msrb.mxu1 %v1531_v49 }
  0x4a   : > { %1013 = vmatpush.bf16.msrb.mxu2 %v1539_v51 }
  0x4b   : > { %1026 = vmatpush.bf16.msrb.mxu3 %v1547_v52 }
  0x4c   : > { %781 = vmatpush.bf16.msrb.mxu0 %v1522_v56 }
  0x4d   : > { %794 = vmatpush.bf16.msrb.mxu1 %v1530_v57 }
  0x4e   : > { %1014 = vmatpush.bf16.msrb.mxu2 %v1538_v60 }
  0x4f   : > { %1027 = vmatpush.bf16.msrb.mxu3 %v1546_v61  ;;  %782 = vmatmul.bf16.vlgmr.msrb.gmra.mxu0 %v612_v63 }
  0x50   : > { %1033 = vmatpush.bf16.msra.mxu0 %v1561_v58  ;;  %795 = vmatmul.bf16.vlgmr.msrb.gmra.mxu1 %v613_v0 }
  0x51   : > { %1015 = vmatmul.bf16.vlgmr.msrb.gmra.mxu2 %v857_v2 }
  0x52   : > { %1028 = vmatmul.bf16.vlgmr.msrb.gmra.mxu3 %v858_v3 }
  0x54   : > { %1034 = vmatpush.bf16.msra.mxu0 %v1560_v1 }
  0x58   : > { %1035 = vmatpush.bf16.msra.mxu0 %v1559_v4 }
  0x5c   : > { %1036 = vmatpush.bf16.msra.mxu0 %v1558_v5 }
  0x60   : > { %1037 = vmatpush.bf16.msra.mxu0 %v1557_v6 }
  0x64   : > { %1038 = vmatpush.bf16.msra.mxu0 %v1556_v7 }
  0x68   : > { %1039 = vmatpush.bf16.msra.mxu0 %v1555_v8 }
  0x6c   : > { %1040 = vmatpush.bf16.msra.mxu0 %v1554_v11 }
  0x6f   : > { %1041 = vmatmul.bf16.vlgmr.msra.gmra.mxu0 %v859_v12 }
  0xac   : > { %v525_v13 = vpop.f32.mrf.mxu0 }
  0xad   : > { %v538_v14 = vpop.f32.mrf.mxu1  ;;  %v526_v30 = vadd.f32 %v1599_v27, %v525_v13 }
  0xaf   : > { %v539_v31 = vadd.f32 %v538_v14, %v526_v30 }
  0xb4   : > { %v527_v15 = vpop.f32.mrf.mxu0  ;;  %v551_v18 = vpop.f32.mrf.mxu2 }
  0xb5   : > { %v540_v16 = vpop.f32.mrf.mxu1  ;;  %v770_v17 = vpop.f32.mrf.mxu3  ;;  %v552_v33 = vadd.f32 %v551_v18, %v539_v31 }
  0xbc   : > { %v553_v19 = vpop.f32.mrf.mxu2 }
  0xbd   : > { %v772_v20 = vpop.f32.mrf.mxu3 }
  0xcc   : > { %v783_v21 = vpop.f32.mrf.mxu0 }
  0xcd   : > { %v796_v22 = vpop.f32.mrf.mxu1  ;;  %v784_v32 = vadd.f32 %v783_v21, %v770_v17 }
  0xcf   : > { %v797_v34 = vadd.f32 %v796_v22, %v784_v32 }
  0xd1   : > { %v800_v37 = vadd.f32 %v797_v34, %v552_v33 }
  0xd4   : > { %v785_v23 = vpop.f32.mrf.mxu0  ;;  %v1016_v24 = vpop.f32.mrf.mxu2 }
  0xd5   : > { %v1029_v25 = vpop.f32.mrf.mxu3  ;;  %v798_v26 = vpop.f32.mrf.mxu1 }
  0xd6   : > { %v1030_v35 = vadd.f32 %v1029_v25, %v1016_v24 }
  0xdc   : > { %v1018_v28 = vpop.f32.mrf.mxu2 }
  0xdd   : > { %v1031_v29 = vpop.f32.mrf.mxu3 }
  0xec   : > { %v1042_v36 = vpop.f32.mrf.mxu0 }
  0xed   : > { %v1043_v38 = vadd.f32 %v1042_v36, %v1030_v35 }
  0xef   : > { %v1046_v39 = vadd.f32 %v1043_v38, %v800_v37 }
  0xf1   : > { %v1048_v40 = vmul.f32 0.70710677, %v1046_v39  ;;  %v1047_v8 = vmul.f32 0.5, %v1046_v39 }
  0xf3   : > { %v1049_v41 = vand.u32 2147483647, %v1048_v40  ;;  %vm1082_vm10 = vcmp.lt.f32.partialorder %v1048_v40, 0.0 }
  0xf4   : > { %v1044_v42 = vpop.f32.mrf.mxu0 }
  0xf5   : > { %v1050_v43 = vmul.f32 0.3275911, %v1049_v41  ;;  %v1076_v55 = vsub.f32 0.0, %v1049_v41 }
  0xf7   : > { %v1051_v44 = vadd.f32 1.0, %v1050_v43  ;;  %v1077_v58 = vmul.f32 %v1076_v55, %v1049_v41 }
  0xf9   : > { %1600 = vrcp.f32 %v1051_v44  ;;  %v1063_v48 = vand.u32 2147483648, %v1051_v44  ;;  %v1061_v50 = vand.u32 2147483647, %v1051_v44  ;;  %vm1057_vm7 = vweird.f32 %v1051_v44 }
  0xfa   : > { %v1078_v61 = vmul.f32 1.442695, %v1077_v58 }
  0xfb   : > { %v1064_v52 = vor.u32 1.1754944e-38, %v1063_v48  ;;  %vm1062_vm9 = vcmp.eq.f32.partialorder %v1061_v50, 8.507059e+37 }
  0xfc   : > { %1602 = vpow2.f32 %v1078_v61 }
  0xff   : > { %v1601_v45 = vpop.eup %1600 }
 0x100   : > { %v1053_v46 = vmul.f32 %v1601_v45, %v1051_v44  ;;  %vm1058_vm6 = vweird.f32 %v1601_v45 }
 0x101   : > { %vm1059_vm8 = vmor %vm1057_vm7, %vm1058_vm6 }
 0x102   : > { %v1054_v47 = vsub.f32 1.0, %v1053_v46  ;;  %v1603_v3 = vpop.eup %1602 }
 0x104   : > { %v1055_v49 = vmul.f32 %v1601_v45, %v1054_v47 }
 0x106   : > { %v1056_v51 = vadd.f32 %v1601_v45, %v1055_v49 }
 0x108   : > { %v1060_v53 = vsel %vm1059_vm8, %v1601_v45, %v1056_v51 }
 0x109   : > { %v1065_v54 = vsel %vm1062_vm9, %v1064_v52, %v1060_v53 }
 0x10a   : > { %v1067_v56 = vmul.f32 1.0614054, %v1065_v54 }
 0x10c   : > { %v1068_v57 = vadd.f32 -1.4531521, %v1067_v56 }
 0x10e   : > { %v1069_v59 = vmul.f32 %v1068_v57, %v1065_v54 }
 0x110   : > { %v1070_v60 = vadd.f32 1.4214138, %v1069_v59 }
 0x112   : > { %v1071_v62 = vmul.f32 %v1070_v60, %v1065_v54 }
 0x114   : > { %v1072_v63 = vadd.f32 -0.28449672, %v1071_v62 }
 0x116   : > { %v1073_v0 = vmul.f32 %v1072_v63, %v1065_v54 }
 0x118   : > { %v1074_v1 = vadd.f32 0.2548296, %v1073_v0 }
 0x11a   : > { %v1075_v2 = vmul.f32 %v1074_v1, %v1065_v54 }
 0x11c   : > { %v1080_v4 = vmul.f32 %v1603_v3, %v1075_v2 }
 0x11e   : > { %v1081_v5 = vsub.f32 1.0, %v1080_v4 }
 0x120   : > { %v1083_v6 = vsub.f32 0.0, %v1081_v5 }
 0x122   : > { %v1084_v7 = vsel %vm1082_vm10, %v1083_v6, %v1081_v5 }
 0x123   : > { %v1085_v9 = vadd.f32 1.0, %v1084_v7 }
 0x125   : > { %v1086_v10 = vmul.f32 %v1085_v9, %v1047_v8 }
 0x127   : > { %v1087_v11 = vpack.c.bf16 %v1086_v10, %v1086_v10 }
 0x129   : > { %1088 = vst [vmem:[%s226_s6] sm:$0xf] %v1087_v11 }
 0x12a PF: > { %s14_s14 = sadd.s32 1, %s1660_s14   ;;  %s1781_s12 = smov %s1656_s13 }
 0x12b   : > { %p11_p8 = scmp.ge.s32.totalorder %s14_s14, 4   ;;  %s1782_s13 = smov %s1784_s16 }
 0x12d   :  { %13 = sbr.rel (!%p11_p8) target bundleno = 2 (0x2), region = 73 }
 0x132   :  { %1114 = vsyncpa [#allocation4], 1 }
 0x133   :  { %1116 = vsyncpa [#allocation4 + $0x1], 1 }

// kernel: conv_layer_forward.27
= control target key start
LH: loop header
LB: loop body
LE: loop exit
PB: predicated region body
PF: predicated region fallthrough
CT: control target
= control target key end

     0   :  { %s1820_s15 = smov 0   ;;  %s1822_s16 = smov 0   ;;  %s2123_s0 = inlined_call_operand.vmem [shape: bf16[2,32,128], index: 0, kind: input, shape index: {}]   ;;  %s2124_s1 = inlined_call_operand.vmem [shape: bf16[3,384,128], index: 1, kind: input, shape index: {}]   ;;  %s2125_s2 = inlined_call_operand.vmem [shape: f32[1,128], index: 2, kind: input, shape index: {}]   ;;  %s2126_s3 = inlined_call_operand.vmem [shape: bf16[2,32,128], index: 3, kind: input, shape index: {}]   ;;  %s2127_s4 = inlined_call_operand.vmem [shape: bf16[2,8,128], index: 4, kind: output, shape index: {}]  }
   0x1   :  { %s1824_s17 = smov 0  }
   0x2 LB: > { %s26_s18 = sadd.s32 1, %s1789_s16  ;;  %p1275_p0 = scmp.ge.s32.totalorder %s1793_s17, 1  ;;  %s1793_s17 = sphi %s1824_s17, %s14_s17   ;;  %s1789_s16 = sphi %s1822_s16, %s2133_s16   ;;  %s1785_s15 = sphi %s1820_s15, %s2132_s15  }
   0x3   : > { %p28_p1 = scmp.ge.s32.totalorder %s26_s18, 2  ;;  %p208_p2 = scmp.lt.s32.totalorder %s1793_s17, 3 }
   0x5   : > { %s2135_s18 = smov (%p28_p1, %s26_s18), 0  ;;  %p209_p3 = pnand %p1275_p0, %p208_p2 }
   0x6   : > { %p251_p4 = scmp.lt.s32.totalorder (!%p209_p3), %s1785_s15, 1 }
   0x7   : > { %212 = sbr.rel (%p209_p3) target bundleno = 297 (0x129), region = 36 }
   0xc   : > { %v1677_v0 = vld [vmem:[%s2124_s1 + $0x38] sm:$0xff]  ;;  %v1676_v2 = vld [vmem:[%s2124_s1 + $0x30] sm:$0xff]  ;;  %s2137_s15 = smov (!%p251_p4, %s1785_s15), 1  ;;  %v1675_v8 = vld [vmem:[%s2124_s1 + $0x28] sm:$0xff]  ;;  %vm288_vm0 = vsmask.f32 3328 }
   0xd   : > { %v1685_v1 = vld [vmem:[%s2124_s1 + $0x78] sm:$0xff]  ;;  %567 = vmatpush.bf16.msra.mxu0 %v1677_v0  ;;  %v1684_v3 = vld [vmem:[%s2124_s1 + $0x70] sm:$0xff]  ;;  %v1683_v9 = vld [vmem:[%s2124_s1 + $0x68] sm:$0xff]  ;;  %s1668_s21 = sshll.u32 %s2137_s15, 4  ;;  %vm289_vm1 = vsmask.f32 7440 }
   0xe   : > { %580 = vmatpush.bf16.msra.mxu1 %v1685_v1  ;;  %v1693_v4 = vld [vmem:[%s2124_s1 + $0xb8] sm:$0xff]  ;;  %v1692_v6 = vld [vmem:[%s2124_s1 + $0xb0] sm:$0xff]  ;;  %v1691_v10 = vld [vmem:[%s2124_s1 + $0xa8] sm:$0xff]  ;;  %s1888_s28 = scalar_lea.vmem %s2123_s0, %s1668_s21  ;;  %vm339_vm2 = vcmask 1042432   ;;  %vm340_vm3 = vcmask 1046532   ;;  %s270_s24 = scalar_lea.vmem %s2126_s3, %s1668_s21  ;;  %vm1144_vm11 = vcmask 1046528  }
   0xf   : > { %v1701_v5 = vld [vmem:[%s2124_s1 + $0xf8] sm:$0xff]  ;;  %593 = vmatpush.bf16.msra.mxu2 %v1693_v4  ;;  %v1700_v7 = vld [vmem:[%s2124_s1 + $0xf0] sm:$0xff]  ;;  %v1699_v11 = vld [vmem:[%s2124_s1 + $0xe8] sm:$0xff]  ;;  %s1280_s21 = sshll.u32 %s2137_s15, 2 }
  0x10   : > { %812 = vmatpush.bf16.msra.mxu3 %v1701_v5  ;;  %v1674_v12 = vld [vmem:[%s2124_s1 + $0x20] sm:$0xff]  ;;  %v1673_v16 = vld [vmem:[%s2124_s1 + $0x18] sm:$0xff]  ;;  %v1672_v27 = vld [vmem:[%s2124_s1 + $0x10] sm:$0xff]  ;;  %s277_s27 = scalar_lea.vmem %s2127_s4, %s1280_s21 }
  0x11   : > { %568 = vmatpush.bf16.msra.mxu0 %v1676_v2  ;;  %v1682_v13 = vld [vmem:[%s2124_s1 + $0x60] sm:$0xff]  ;;  %v1681_v17 = vld [vmem:[%s2124_s1 + $0x58] sm:$0xff]  ;;  %v1680_v32 = vld [vmem:[%s2124_s1 + $0x50] sm:$0xff] }
  0x12   : > { %581 = vmatpush.bf16.msra.mxu1 %v1684_v3  ;;  %v1690_v14 = vld [vmem:[%s2124_s1 + $0xa0] sm:$0xff]  ;;  %v1689_v25 = vld [vmem:[%s2124_s1 + $0x98] sm:$0xff]  ;;  %v1688_v33 = vld [vmem:[%s2124_s1 + $0x90] sm:$0xff] }
  0x13   : > { %594 = vmatpush.bf16.msra.mxu2 %v1692_v6  ;;  %v1698_v15 = vld [vmem:[%s2124_s1 + $0xe0] sm:$0xff]  ;;  %v1697_v26 = vld [vmem:[%s2124_s1 + $0xd8] sm:$0xff]  ;;  %v1696_v35 = vld [vmem:[%s2124_s1 + $0xd0] sm:$0xff] }
  0x14   : > { %813 = vmatpush.bf16.msra.mxu3 %v1700_v7  ;;  %v278_v18 = vld [vmem:[%s1888_s28] sm:$0xf]  ;;  %v285_v20 = vld [vmem:[%s1888_s28 + $0x4] sm:$0xf]  ;;  %vm1925_vm4 = vmor %vm288_vm0, %vm289_vm1 }
  0x15   : > { %569 = vmatpush.bf16.msra.mxu0 %v1675_v8  ;;  %v284_v19 = vld [vmem:[%s1888_s28] sm:$0xf]  ;;  %281 = vst [vmem:[#allocation2] sm:$0xf] %v278_v18  ;;  %v301_v23 = vshll.u32 %v285_v20, 16  ;;  %v305_v24 = vshrl.u32 %v285_v20, 16  ;;  %vm1934_vm5 = vmor %vm339_vm2, %vm340_vm3 }
  0x16   : > { %582 = vmatpush.bf16.msra.mxu1 %v1683_v9  ;;  %v292_v21 = vshrl.u32 %v284_v19, 16  ;;  %v295_v22 = vshll.u32 %v284_v19, 16  ;;  %v279_v34 = vld [vmem:[%s1888_s28 + $0x4] sm:$0xf]  ;;  %v286_v38 = vld [vmem:[%s1888_s28 + $0x8] sm:$0xf] }
  0x17   : > { %595 = vmatpush.bf16.msra.mxu2 %v1691_v10  ;;  %v303_v30 = vrot.slane %v301_v23, 5  ;;  %v307_v31 = vrot.slane %v305_v24, 4  ;;  %282 = vst [vmem:[#allocation2 + $0xc] sm:$0xf] %v279_v34  ;;  %v311_v40 = vshll.u32 %v286_v38, 16  ;;  %v1671_v49 = vld [vmem:[%s2124_s1 + $0x8] sm:$0xff] }
  0x18   : > { %814 = vmatpush.bf16.msra.mxu3 %v1699_v11  ;;  %v294_v28 = vrot.slane %v292_v21, 4  ;;  %v297_v29 = vrot.slane %v295_v22, 5  ;;  %v331_v41 = vld [vmem:[%s1888_s28] sm:$0xe]  ;;  %v332_v42 = vld [vmem:[%s1888_s28 + $0x4] sm:$0xf] }
  0x19   : > { %570 = vmatpush.bf16.msra.mxu0 %v1674_v12  ;;  %v308_v39 = vor.u32 %v307_v31, %v303_v30  ;;  %v333_v46 = vld [vmem:[%s1888_s28 + $0x8] sm:$0xf]  ;;  %v1281_v47 = vrot.slane %v331_v41, 9  ;;  %v344_v48 = vrot.slane %v332_v42, 5  ;;  %v313_v51 = vrot.slane %v311_v40, 5  ;;  %v1670_v2 = vld [vmem:[%s2124_s1] sm:$0xff] }
  0x1a   : > { %583 = vmatpush.bf16.msra.mxu1 %v1682_v13  ;;  %v298_v37 = vor.u32 %v297_v29, %v294_v28  ;;  %v1679_v50 = vld [vmem:[%s2124_s1 + $0x48] sm:$0xff]  ;;  %v315_v52 = vshrl.u32 %v286_v38, 16  ;;  %v347_v53 = vrot.slane %v333_v46, 5  ;;  %v1678_v3 = vld [vmem:[%s2124_s1 + $0x40] sm:$0xff]  ;;  %v1709_v7 = vld [vmem:[%s2124_s1 + $0x138] sm:$0xff] }
  0x1b   : > { %596 = vmatpush.bf16.msra.mxu2 %v1690_v14  ;;  %v309_v45 = vrot.slane %v308_v39, 4  ;;  %v1687_v54 = vld [vmem:[%s2124_s1 + $0x88] sm:$0xff]  ;;  %v345_v57 = vsel %vm1934_vm5, %v1281_v47, %v344_v48  ;;  %v346_v58 = vrot.slane %v344_v48, 4  ;;  %v1717_v8 = vld [vmem:[%s2124_s1 + $0x178] sm:$0xff]  ;;  %v1686_v9 = vld [vmem:[%s2124_s1 + $0x80] sm:$0xff] }
  0x1c   : > { %815 = vmatpush.bf16.msra.mxu3 %v1698_v15  ;;  %v299_v44 = vrot.slane %v298_v37, 4  ;;  %v334_v56 = vld [vmem:[%s1888_s28 + $0xc] sm:$0x1]  ;;  %v317_v61 = vrot.slane %v315_v52, 4  ;;  %v349_v62 = vrot.slane %v347_v53, 4  ;;  %v1694_v10 = vld [vmem:[%s2124_s1 + $0xc0] sm:$0xff] }
  0x1d   : > { %571 = vmatpush.bf16.msra.mxu0 %v1673_v16  ;;  %v1695_v59 = vld [vmem:[%s2124_s1 + $0xc8] sm:$0xff]  ;;  %v314_v60 = vsel %vm1925_vm4, %v309_v45, %v313_v51  ;;  %v350_v63 = vrot.slane %v334_v56, 5  ;;  %v348_v0 = vsel %vm1934_vm5, %v346_v58, %v347_v53  ;;  %355 = vst [vmem:[#allocation2 + $0x8] sm:$0xf] %v345_v57  ;;  %v1725_v13 = vld [vmem:[%s2124_s1 + $0x1b8] sm:$0xff]  ;;  %v1708_v15 = vld [vmem:[%s2124_s1 + $0x130] sm:$0xff] }
  0x1e   : > { %584 = vmatpush.bf16.msra.mxu1 %v1681_v17  ;;  %v304_v55 = vsel %vm1925_vm4, %v299_v44, %v303_v30  ;;  %329 = vst [vmem:[#allocation2 + $0x10] sm:$0xf] %v314_v60  ;;  %v287_v1 = vld [vmem:[%s1888_s28 + $0xc] sm:$0x1]  ;;  %v318_v4 = vor.u32 %v317_v61, %v313_v51  ;;  %v1733_v14 = vld [vmem:[%s2124_s1 + $0x1f8] sm:$0xff]  ;;  %v1716_v17 = vld [vmem:[%s2124_s1 + $0x170] sm:$0xff] }
  0x1f   : > { %597 = vmatpush.bf16.msra.mxu2 %v1689_v25  ;;  %328 = vst [vmem:[#allocation2 + $0x4] sm:$0xf] %v304_v55  ;;  %v351_v5 = vsel %vm1934_vm5, %v349_v62, %v350_v63  ;;  %v321_v6 = vshll.u32 %v287_v1, 16  ;;  %v280_v19 = vld [vmem:[%s1888_s28 + $0x8] sm:$0xf]  ;;  %v1724_v23 = vld [vmem:[%s2124_s1 + $0x1b0] sm:$0xff] }
  0x20   : > { %816 = vmatpush.bf16.msra.mxu3 %v1697_v26  ;;  %357 = vst [vmem:[#allocation2 + $0x20] sm:$0xf] %v351_v5  ;;  %v319_v11 = vrot.slane %v318_v4, 4  ;;  %v1732_v24 = vld [vmem:[%s2124_s1 + $0x1f0] sm:$0xff]  ;;  %v1707_v30 = vld [vmem:[%s2124_s1 + $0x128] sm:$0xff]  ;;  %v1706_v36 = vld [vmem:[%s2124_s1 + $0x120] sm:$0xff] }
  0x21   : > { %572 = vmatpush.bf16.msra.mxu0 %v1672_v27  ;;  %356 = vst [vmem:[#allocation2 + $0x14] sm:$0xf] %v348_v0  ;;  %v323_v12 = vrot.slane %v321_v6, 5  ;;  %v1715_v31 = vld [vmem:[%s2124_s1 + $0x168] sm:$0xff]  ;;  %v1714_v37 = vld [vmem:[%s2124_s1 + $0x160] sm:$0xff]  ;;  %v1705_v40 = vld [vmem:[%s2124_s1 + $0x118] sm:$0xff] }
  0x22   : > { %585 = vmatpush.bf16.msra.mxu1 %v1680_v32  ;;  %283 = vst [vmem:[#allocation2 + $0x18] sm:$0xf] %v280_v19  ;;  %v1723_v34 = vld [vmem:[%s2124_s1 + $0x1a8] sm:$0xff]  ;;  %v1722_v38 = vld [vmem:[%s2124_s1 + $0x1a0] sm:$0xff]  ;;  %v1713_v41 = vld [vmem:[%s2124_s1 + $0x158] sm:$0xff] }
  0x23   : > { %598 = vmatpush.bf16.msra.mxu2 %v1688_v33  ;;  %v324_v16 = vsel %vm1925_vm4, %v319_v11, %v323_v12  ;;  %v1730_v39 = vld [vmem:[%s2124_s1 + $0x1e0] sm:$0xff]  ;;  %v1721_v42 = vld [vmem:[%s2124_s1 + $0x198] sm:$0xff]  ;;  %v1704_v44 = vld [vmem:[%s2124_s1 + $0x110] sm:$0xff] }
  0x24   : > { %817 = vmatpush.bf16.msra.mxu3 %v1696_v35  ;;  %330 = vst [vmem:[#allocation2 + $0x1c] sm:$0xf] %v324_v16  ;;  %v359_v26 = vld [vmem:[#allocation2 + $0x8] sm:$0xf]  ;;  %v1729_v43 = vld [vmem:[%s2124_s1 + $0x1d8] sm:$0xff]  ;;  %v1712_v45 = vld [vmem:[%s2124_s1 + $0x150] sm:$0xff] }
  0x25   : > { %573 = vmatpush.bf16.msra.mxu0 %v1671_v49  ;;  %v1996_v22 = vld [vmem:[#allocation2 + $0xc] sm:$0xff]  ;;  %v416_v29 = vunpack.c.l.b16 %v359_v26  ;;  %v1702_v56 = vld [vmem:[%s2124_s1 + $0x100] sm:$0xff]  ;;  %v1741_v58 = vld [vmem:[%s2124_s1 + $0x238] sm:$0xff] }
  0x26   : > { %586 = vmatpush.bf16.msra.mxu1 %v1679_v50  ;;  %v358_v18 = vld [vmem:[#allocation2] sm:$0xff]  ;;  %v659_v25 = vunpack.c.l.b16 %v1996_v22  ;;  %v1731_v35 = vld [vmem:[%s2124_s1 + $0x1e8] sm:$0xff]  ;;  %v1720_v46 = vld [vmem:[%s2124_s1 + $0x190] sm:$0xff] }
  0x27   : > { %599 = vmatpush.bf16.msra.mxu2 %v1687_v54  ;;  %v414_v20 = vunpack.c.l.b16 %v358_v18  ;;  %v415_v21 = vunpack.c.h.b16 %v358_v18  ;;  %v419_v33 = vpack.c.b16 %v416_v29, %v416_v29  ;;  %v1728_v47 = vld [vmem:[%s2124_s1 + $0x1d0] sm:$0xff]  ;;  %v1703_v48 = vld [vmem:[%s2124_s1 + $0x108] sm:$0xff]  ;;  %v660_v54 = vunpack.c.h.b16 %v1996_v22  ;;  %v1710_v57 = vld [vmem:[%s2124_s1 + $0x140] sm:$0xff] }
  0x28   : > { %818 = vmatpush.bf16.msra.mxu3 %v1695_v59  ;;  %v662_v32 = vpack.c.b16 %v659_v25, %v659_v25  ;;  %v1711_v49 = vld [vmem:[%s2124_s1 + $0x148] sm:$0xff]  ;;  %v607_v50 = vld [vmem:[#allocation2 + $0x14] sm:$0xf]  ;;  %v1718_v60 = vld [vmem:[%s2124_s1 + $0x180] sm:$0xff] }
  0x29   : > { %574 = vmatpush.bf16.msra.mxu0 %v1670_v2  ;;  %v417_v27 = vpack.c.b16 %v414_v20, %v414_v20  ;;  %v418_v28 = vpack.c.b16 %v415_v21, %v415_v21  ;;  %v1719_v51 = vld [vmem:[%s2124_s1 + $0x188] sm:$0xff]  ;;  %v661_v55 = vunpack.c.l.b16 %v607_v50  ;;  %v1726_v61 = vld [vmem:[%s2124_s1 + $0x1c0] sm:$0xff]  ;;  %v663_v63 = vpack.c.b16 %v660_v54, %v660_v54  ;;  %v1740_v1 = vld [vmem:[%s2124_s1 + $0x230] sm:$0xff] }
  0x2a   : > { %587 = vmatpush.bf16.msra.mxu1 %v1678_v3  ;;  %v1727_v52 = vld [vmem:[%s2124_s1 + $0x1c8] sm:$0xff]  ;;  %v1738_v5 = vld [vmem:[%s2124_s1 + $0x220] sm:$0xff]  ;;  %v1737_v6 = vld [vmem:[%s2124_s1 + $0x218] sm:$0xff] }
  0x2b   : > { %600 = vmatpush.bf16.msra.mxu2 %v1686_v9  ;;  %v852_v53 = vld [vmem:[#allocation2 + $0x18] sm:$0xff]  ;;  %v664_v0 = vpack.c.b16 %v661_v55, %v661_v55  ;;  %v1739_v4 = vld [vmem:[%s2124_s1 + $0x228] sm:$0xff]  ;;  %v853_v9 = vld [vmem:[#allocation2 + $0x20] sm:$0xf] }
  0x2c   : > { %819 = vmatpush.bf16.msra.mxu3 %v1694_v10  ;;  %575 = vmatmul.bf16.vlgmr.msra.gmra.mxu0 %v417_v27  ;;  %v905_v59 = vunpack.c.l.b16 %v852_v53  ;;  %v906_v62 = vunpack.c.h.b16 %v852_v53  ;;  %v907_v10 = vunpack.c.l.b16 %v853_v9  ;;  %v1734_v11 = vld [vmem:[%s2124_s1 + $0x200] sm:$0xff] }
  0x2d   : > { %825 = vmatpush.bf16.msrb.mxu0 %v1709_v7  ;;  %588 = vmatmul.bf16.vlgmr.msra.gmra.mxu1 %v418_v28  ;;  %v1736_v7 = vld [vmem:[%s2124_s1 + $0x210] sm:$0xff]  ;;  %v1766_v27 = vld [vmem:[%s2125_s2] ss:$0 sm:$0xff] }
  0x2e   : > { %838 = vmatpush.bf16.msrb.mxu1 %v1717_v8  ;;  %601 = vmatmul.bf16.vlgmr.msra.gmra.mxu2 %v419_v33  ;;  %v908_v2 = vpack.c.b16 %v905_v59, %v905_v59  ;;  %v909_v3 = vpack.c.b16 %v906_v62, %v906_v62  ;;  %v1735_v8 = vld [vmem:[%s2124_s1 + $0x208] sm:$0xff]  ;;  %v910_v12 = vpack.c.b16 %v907_v10, %v907_v10 }
  0x2f   : > { %1058 = vmatpush.bf16.msrb.mxu2 %v1725_v13  ;;  %820 = vmatmul.bf16.vlgmr.msra.gmra.mxu3 %v662_v32 }
  0x30   : > { %1071 = vmatpush.bf16.msrb.mxu3 %v1733_v14 }
  0x31   : > { %826 = vmatpush.bf16.msrb.mxu0 %v1708_v15 }
  0x32   : > { %839 = vmatpush.bf16.msrb.mxu1 %v1716_v17 }
  0x33   : > { %1059 = vmatpush.bf16.msrb.mxu2 %v1724_v23 }
  0x34   : > { %1072 = vmatpush.bf16.msrb.mxu3 %v1732_v24 }
  0x35   : > { %827 = vmatpush.bf16.msrb.mxu0 %v1707_v30 }
  0x36   : > { %840 = vmatpush.bf16.msrb.mxu1 %v1715_v31 }
  0x37   : > { %1060 = vmatpush.bf16.msrb.mxu2 %v1723_v34 }
  0x38   : > { %1073 = vmatpush.bf16.msrb.mxu3 %v1731_v35 }
  0x39   : > { %828 = vmatpush.bf16.msrb.mxu0 %v1706_v36 }
  0x3a   : > { %841 = vmatpush.bf16.msrb.mxu1 %v1714_v37 }
  0x3b   : > { %1061 = vmatpush.bf16.msrb.mxu2 %v1722_v38 }
  0x3c   : > { %1074 = vmatpush.bf16.msrb.mxu3 %v1730_v39 }
  0x3d   : > { %829 = vmatpush.bf16.msrb.mxu0 %v1705_v40 }
  0x3e   : > { %842 = vmatpush.bf16.msrb.mxu1 %v1713_v41 }
  0x3f   : > { %1062 = vmatpush.bf16.msrb.mxu2 %v1721_v42 }
  0x40   : > { %1075 = vmatpush.bf16.msrb.mxu3 %v1729_v43 }
  0x41   : > { %830 = vmatpush.bf16.msrb.mxu0 %v1704_v44 }
  0x42   : > { %843 = vmatpush.bf16.msrb.mxu1 %v1712_v45 }
  0x43   : > { %1063 = vmatpush.bf16.msrb.mxu2 %v1720_v46 }
  0x44   : > { %1076 = vmatpush.bf16.msrb.mxu3 %v1728_v47 }
  0x45   : > { %831 = vmatpush.bf16.msrb.mxu0 %v1703_v48 }
  0x46   : > { %844 = vmatpush.bf16.msrb.mxu1 %v1711_v49 }
  0x47   : > { %1064 = vmatpush.bf16.msrb.mxu2 %v1719_v51 }
  0x48   : > { %1077 = vmatpush.bf16.msrb.mxu3 %v1727_v52 }
  0x49   : > { %832 = vmatpush.bf16.msrb.mxu0 %v1702_v56 }
  0x4a   : > { %845 = vmatpush.bf16.msrb.mxu1 %v1710_v57 }
  0x4b   : > { %1065 = vmatpush.bf16.msrb.mxu2 %v1718_v60 }
  0x4c   : > { %1078 = vmatpush.bf16.msrb.mxu3 %v1726_v61  ;;  %833 = vmatmul.bf16.vlgmr.msrb.gmra.mxu0 %v663_v63 }
  0x4d   : > { %1084 = vmatpush.bf16.msra.mxu0 %v1741_v58  ;;  %846 = vmatmul.bf16.vlgmr.msrb.gmra.mxu1 %v664_v0 }
  0x4e   : > { %1066 = vmatmul.bf16.vlgmr.msrb.gmra.mxu2 %v908_v2  ;;  %v1138_v2 = vld [vmem:[%s270_s24 + $0x4] sm:$0xf] }
  0x4f   : > { %1079 = vmatmul.bf16.vlgmr.msrb.gmra.mxu3 %v909_v3  ;;  %v1139_v3 = vld [vmem:[%s270_s24 + $0x8] sm:$0x1] }
  0x51   : > { %1085 = vmatpush.bf16.msra.mxu0 %v1740_v1 }
  0x55   : > { %1086 = vmatpush.bf16.msra.mxu0 %v1739_v4 }
  0x59   : > { %1087 = vmatpush.bf16.msra.mxu0 %v1738_v5 }
  0x5d   : > { %1088 = vmatpush.bf16.msra.mxu0 %v1737_v6 }
  0x61   : > { %1089 = vmatpush.bf16.msra.mxu0 %v1736_v7  ;;  %v1140_v7 = vunpack.c.l.bf16 %v1138_v2 }
  0x65   : > { %1090 = vmatpush.bf16.msra.mxu0 %v1735_v8  ;;  %v1141_v8 = vunpack.c.l.bf16 %v1139_v3 }
  0x69   : > { %1091 = vmatpush.bf16.msra.mxu0 %v1734_v11  ;;  %v1145_v11 = vrot.slane %v1140_v7, 1 }
  0x6c   : > { %1092 = vmatmul.bf16.vlgmr.msra.gmra.mxu0 %v910_v12  ;;  %v1146_v12 = vrot.slane %v1141_v8, 1 }
  0xa9   : > { %v576_v13 = vpop.f32.mrf.mxu0 }
  0xaa   : > { %v589_v14 = vpop.f32.mrf.mxu1  ;;  %v577_v30 = vadd.f32 %v1766_v27, %v576_v13 }
  0xac   : > { %v590_v31 = vadd.f32 %v589_v14, %v577_v30 }
  0xb1   : > { %v578_v15 = vpop.f32.mrf.mxu0  ;;  %v602_v18 = vpop.f32.mrf.mxu2 }
  0xb2   : > { %v591_v16 = vpop.f32.mrf.mxu1  ;;  %v821_v17 = vpop.f32.mrf.mxu3  ;;  %v603_v33 = vadd.f32 %v602_v18, %v590_v31 }
  0xb3   : > { %v1147_v16 = vsel %vm1144_vm11, %v1145_v11, %v1146_v12 }
  0xb9   : > { %v604_v19 = vpop.f32.mrf.mxu2 }
  0xba   : > { %v823_v20 = vpop.f32.mrf.mxu3 }
  0xc9   : > { %v834_v21 = vpop.f32.mrf.mxu0 }
  0xca   : > { %v847_v22 = vpop.f32.mrf.mxu1  ;;  %v835_v32 = vadd.f32 %v834_v21, %v821_v17 }
  0xcc   : > { %v848_v34 = vadd.f32 %v847_v22, %v835_v32 }
  0xce   : > { %v851_v37 = vadd.f32 %v848_v34, %v603_v33 }
  0xd1   : > { %v836_v23 = vpop.f32.mrf.mxu0  ;;  %v1067_v24 = vpop.f32.mrf.mxu2 }
  0xd2   : > { %v1080_v25 = vpop.f32.mrf.mxu3  ;;  %v849_v26 = vpop.f32.mrf.mxu1 }
  0xd3   : > { %v1081_v35 = vadd.f32 %v1080_v25, %v1067_v24 }
  0xd9   : > { %v1069_v28 = vpop.f32.mrf.mxu2 }
  0xda   : > { %v1082_v29 = vpop.f32.mrf.mxu3 }
  0xe9   : > { %v1093_v36 = vpop.f32.mrf.mxu0 }
  0xea   : > { %v1094_v38 = vadd.f32 %v1093_v36, %v1081_v35 }
  0xec   : > { %v1097_v39 = vadd.f32 %v1094_v38, %v851_v37 }
  0xee   : > { %v1099_v40 = vmul.f32 0.70710677, %v1097_v39  ;;  %v1098_v14 = vmul.f32 0.5, %v1097_v39 }
  0xf0   : > { %v1100_v41 = vand.u32 2147483647, %v1099_v40  ;;  %vm1133_vm10 = vcmp.lt.f32.partialorder %v1099_v40, 0.0 }
  0xf1   : > { %v1095_v42 = vpop.f32.mrf.mxu0 }
  0xf2   : > { %v1101_v43 = vmul.f32 0.3275911, %v1100_v41  ;;  %v1127_v55 = vsub.f32 0.0, %v1100_v41 }
  0xf4   : > { %v1102_v44 = vadd.f32 1.0, %v1101_v43  ;;  %v1128_v58 = vmul.f32 %v1127_v55, %v1100_v41 }
  0xf6   : > { %1767 = vrcp.f32 %v1102_v44  ;;  %v1114_v48 = vand.u32 2147483648, %v1102_v44  ;;  %v1112_v50 = vand.u32 2147483647, %v1102_v44  ;;  %vm1108_vm7 = vweird.f32 %v1102_v44 }
  0xf7   : > { %v1129_v61 = vmul.f32 1.442695, %v1128_v58 }
  0xf8   : > { %v1115_v52 = vor.u32 1.1754944e-38, %v1114_v48  ;;  %vm1113_vm9 = vcmp.eq.f32.partialorder %v1112_v50, 8.507059e+37 }
  0xf9   : > { %1769 = vpow2.f32 %v1129_v61 }
  0xfc   : > { %v1768_v45 = vpop.eup %1767 }
  0xfd   : > { %v1104_v46 = vmul.f32 %v1768_v45, %v1102_v44  ;;  %vm1109_vm6 = vweird.f32 %v1768_v45 }
  0xfe   : > { %vm1110_vm8 = vmor %vm1108_vm7, %vm1109_vm6 }
  0xff   : > { %v1105_v47 = vsub.f32 1.0, %v1104_v46  ;;  %v1770_v5 = vpop.eup %1769 }
 0x101   : > { %v1106_v49 = vmul.f32 %v1768_v45, %v1105_v47 }
 0x103   : > { %v1107_v51 = vadd.f32 %v1768_v45, %v1106_v49 }
 0x105   : > { %v1111_v53 = vsel %vm1110_vm8, %v1768_v45, %v1107_v51 }
 0x106   : > { %v1116_v54 = vsel %vm1113_vm9, %v1115_v52, %v1111_v53 }
 0x107   : > { %v1118_v56 = vmul.f32 1.0614054, %v1116_v54 }
 0x109   : > { %v1119_v57 = vadd.f32 -1.4531521, %v1118_v56 }
 0x10b   : > { %v1120_v59 = vmul.f32 %v1119_v57, %v1116_v54 }
 0x10d   : > { %v1121_v60 = vadd.f32 1.4214138, %v1120_v59 }
 0x10f   : > { %v1122_v62 = vmul.f32 %v1121_v60, %v1116_v54 }
 0x111   : > { %v1123_v63 = vadd.f32 -0.28449672, %v1122_v62 }
 0x113   : > { %v1124_v0 = vmul.f32 %v1123_v63, %v1116_v54 }
 0x115   : > { %v1125_v1 = vadd.f32 0.2548296, %v1124_v0 }
 0x117   : > { %v1126_v4 = vmul.f32 %v1125_v1, %v1116_v54 }
 0x119   : > { %v1131_v6 = vmul.f32 %v1770_v5, %v1126_v4 }
 0x11b   : > { %v1132_v9 = vsub.f32 1.0, %v1131_v6 }
 0x11d   : > { %v1134_v10 = vsub.f32 0.0, %v1132_v9 }
 0x11f   : > { %v1135_v13 = vsel %vm1133_vm10, %v1134_v10, %v1132_v9 }
 0x120   : > { %v1136_v15 = vadd.f32 1.0, %v1135_v13 }
 0x122   : > { %v1137_v17 = vmul.f32 %v1136_v15, %v1098_v14 }
 0x124   : > { %v1149_v18 = vadd.f32 %v1147_v16, %v1137_v17 }
 0x126   : > { %v1150_v19 = vpack.c.bf16 %v1149_v18, %v1149_v18 }
 0x128   : > { %1151 = vst [vmem:[%s277_s27] sm:$0xf] %v1150_v19 }
 0x129 PF: > { %s14_s17 = sadd.s32 1, %s1793_s17   ;;  %s2132_s15 = smov %s1789_s16 }
 0x12a   : > { %p11_p5 = scmp.ge.s32.totalorder %s14_s17, 4   ;;  %s2133_s16 = smov %s2135_s18 }
 0x12c   :  { %13 = sbr.rel (!%p11_p5) target bundleno = 2 (0x2), region = 77 }

// kernel: conv_layer_forward.29
= control target key start
LH: loop header
LB: loop body
LE: loop exit
PB: predicated region body
PF: predicated region fallthrough
CT: control target
= control target key end

     0   :  { %6 = vsyncpa [#allocation3], 0  ;;  %s375_s0 = inlined_call_operand.vmem [shape: bf16[2,1,128], index: 0, kind: input, shape index: {}]   ;;  %s376_s1 = inlined_call_operand.hbm [shape: f32[2,1,128], index: 1, kind: output, shape index: {}]  }
   0x1   :  { %8 = vsyncpa [#allocation3 + $0x1], 0  ;;  %s296_s6 = smov 0   ;;  %s298_s7 = smov 0  }
   0x2   :  { %s300_s8 = smov 0   ;;  %s302_s9 = smov 0  }
   0x3 LB: > { %s176_s10 = sadd.s32 4294967295, %s284_s9   ;;  %s177_s11 = sadd.s32 4294967294, %s284_s9   ;;  %s284_s9 = sphi %s302_s9, %s382_s9   ;;  %s280_s8 = sphi %s300_s8, %s381_s8   ;;  %s276_s7 = sphi %s298_s7, %s380_s7   ;;  %s272_s6 = sphi %s296_s6, %s379_s6  }
   0x4   : > { %s319_s12 = sadd.s32 1, %s284_s9   ;;  %s47_s13 = sadd.s32 1, %s280_s8 }
   0x5   : > { %s44_s14 = ssub.s32 %s284_s9, %s319_s12  ;;  %p57_p0 = scmp.ne.s32.totalorder %s280_s8, %s276_s7 }
   0x6   : > { %p45_p1 = scmp.eq.s32.totalorder %s44_s14, 0  ;;  %p58_p2 = scmp.eq.s32.totalorder %s176_s10, 1 }
   0x7   : > { %p63_p3 = scmp.ne.s32.totalorder %s276_s7, %s272_s6  ;;  %p64_p4 = scmp.eq.s32.totalorder %s177_s11, 1 }
   0x8   : > { %s329_s15 = scalar_select %p45_p1, %s280_s8, %s47_s13  }
   0x9   : > { %p331_p5 = por %p58_p2, %p57_p0  ;;  %p335_p6 = por %p64_p4, %p63_p3 }
   0xa   : > { %p180_p7 = scmp.ge.s32.totalorder %s284_s9, 1  ;;  %p88_p8 = scmp.lt.s32.totalorder %s284_s9, 3 }
   0xc   : > { %p89_p9 = pnand %p180_p7, %p88_p8 }
   0xd   : > { %s103_s18 = sand.u32 (!%p89_p9), 1, %s276_s7   ;;  %p105_p10 = scmp.lt.s32.totalorder (!%p89_p9), %s176_s10, 1 }
   0xe   : > { %92 = sbr.rel (%p89_p9) target bundleno = 30 (0x1e), region = 24  ;;  %s104_s20 = scalar_lea.vmem (!%p89_p9), [#allocation2], %s103_s18 }
   0xf   : > { %s123_s21 = sshll.u32 (!%p89_p9), %s104_s20, 4  ;;  %s121_s24 = scalar_lea.hbm (!%p89_p9), %s376_s1, %s176_s10  ;;  %s124_s21 = int_to_ptr.vmem [resolvable:$true] %s123_s21 }
  0x10   : > { %s125_s28 = sshll.u32 (!%p89_p9), %s121_s24, 4  ;;  %s113_s29 = scalar_lea.sflag (!%p89_p9), [#allocation3], %s103_s18  ;;  %s126_s28 = int_to_ptr.hbm [resolvable:$true] %s125_s28 }
  0x11   : > { %s236_s30 = sshra.s32 (!%p89_p9), %s126_s28, 4  ;;  %s242_s5 = scalar_lea.hbm (!%p89_p9), %s376_s1, 2  ;;  %s237_s30 = int_to_ptr.hbm [resolvable:$true] %s236_s30 }
  0x12   : > { %s238_s2 = scalar_lea.hbm (!%p89_p9), %s237_s30, 1  ;;  %p243_p0 = scmp.lt.s32.totalorder (!%p89_p9), %s237_s30, %s376_s1 }
  0x13   : > { %s106_s19 = scalar_select %p105_p10, %s176_s10, 1 }
  0x14   : > { %p239_p11 = scmp.ne.s32.totalorder %s237_s30, %s238_s2  ;;  %p244_p1 = scmp.lt.s32.totalorder %s242_s5, %s238_s2 }
  0x15   : > { %s107_s27 = scalar_lea.vmem %s375_s0, %s106_s19 }
  0x16   : > { %v108_v0 = vld [vmem:[%s107_s27] sm:$0x1]  ;;  %p240_p12 = pnand %p239_p11, %p331_p5  ;;  %p245_p2 = por %p244_p1, %p243_p0 }
  0x17   : > { %v109_v1 = vunpack.c.l.bf16 %v108_v0 }
  0x18   : > { %p241_p13 = pneg %p240_p12 }
  0x19   : > { %111 = vst [vmem:[%s104_s20] sm:$0x1] %v109_v1 }
  0x1a   : > { %p246_p3 = pnand %p245_p2, %p241_p13 }
  0x1c   : > { %249 = shalt.err (!%p246_p3)
}
  0x1d   : > { %183 = dma.vmem_to_hbm [thread:$0]  (%p331_p5), %s124_s21, 16, %s126_s28, %s113_s29  }
  0x1e PF: > { %p189_p4 = scmp.ge.s32.totalorder %s284_s9, 2  ;;  %s137_s13 = sand.u32 1, %s272_s6  }
  0x1f   : > { %s138_s14 = scalar_lea.sflag [#allocation3], %s137_s13 }
  0x20   : > { %p186_p7 = pnand %p189_p4, %p335_p6 }
  0x22   : > { %p187_p8 = pneg %p186_p7 }
  0x24   : > { %267 = dma.done.wait (%p187_p8), %s138_s14, 16  }
  0x25   : > { %269 = vsyncadd (%p187_p8), %s138_s14, 4294967280  ;;  %p11_p9 = scmp.ge.s32.totalorder %s319_s12, 4   ;;  %s379_s6 = smov %s276_s7 }
  0x26   : > { %s380_s7 = smov %s280_s8  ;;  %s381_s8 = smov %s329_s15 }
  0x27   : > { %s382_s9 = smov %s319_s12  ;;  %13 = sbr.rel (!%p11_p9) target bundleno = 3 (0x3), region = 59 }
  0x2c   :  { %143 = vsyncpa [#allocation3], 1 }
  0x2d   :  { %145 = vsyncpa [#allocation3 + $0x1], 1 }

// kernel: conv_layer_forward.28
= control target key start
LH: loop header
LB: loop body
LE: loop exit
PB: predicated region body
PF: predicated region fallthrough
CT: control target
= control target key end

     0   :  { %8 = vsyncpa [#allocation3], 0  ;;  %s1148_s15 = smov [#allocation2]   ;;  %s1149_s17 = smov 64   ;;  %s1186_s0 = inlined_call_operand.vmem [shape: bf16[2,1152], index: 0, kind: input, shape index: {}]   ;;  %s1187_s1 = inlined_call_operand.hbm [shape: bf16[1152,128], index: 1, kind: input, shape index: {}]   ;;  %s1188_s2 = inlined_call_operand.vmem [shape: f32[1,128], index: 2, kind: input, shape index: {}]   ;;  %s1189_s3 = inlined_call_operand.vmem [shape: bf16[2,128], index: 3, kind: output, shape index: {}]  }
   0x1   :  { %s15_s14 = sshll.u32 %s1187_s1, 4  ;;  %s17_s16 = sshll.u32 %s1148_s15, 4  ;;  %s16_s14 = int_to_ptr.hbm [resolvable:$true] %s15_s14  ;;  %s18_s16 = int_to_ptr.vmem [resolvable:$true] %s17_s16 }
   0x2   :  { %s1150_s18 = smov 4  }
   0x3   :  { %23 = dma.hbm_to_vmem [thread:$0]  %s16_s14, 9216, %s18_s16, [#allocation3], %s1149_s17, %s1149_s17, %s1150_s18  }
   0x4   :  { %1146 = dma.done.wait [#allocation3], 9216  }
   0x5   :  { %1147 = vsyncadd [#allocation3], 4294958080  ;;  %v1053_v0 = vld [vmem:[#allocation2 + $0x38] sm:$0xff]  ;;  %v1052_v4 = vld [vmem:[#allocation2 + $0x30] sm:$0xff] }
   0x6   :  { %v1069_v1 = vld [vmem:[#allocation2 + $0xb8] sm:$0xff]  ;;  %634 = vmatpush.bf16.msra.mxu0 %v1053_v0  ;;  %v1068_v5 = vld [vmem:[#allocation2 + $0xb0] sm:$0xff]  ;;  %v1051_v8 = vld [vmem:[#allocation2 + $0x28] sm:$0xff] }
   0x7   :  { %v1077_v2 = vld [vmem:[#allocation2 + $0xf8] sm:$0xff]  ;;  %660 = vmatpush.bf16.msra.mxu2 %v1069_v1  ;;  %v1076_v6 = vld [vmem:[#allocation2 + $0xf0] sm:$0xff]  ;;  %v1067_v9 = vld [vmem:[#allocation2 + $0xa8] sm:$0xff] }
   0x8   :  { %v1061_v3 = vld [vmem:[#allocation2 + $0x78] sm:$0xff]  ;;  %673 = vmatpush.bf16.msra.mxu3 %v1077_v2  ;;  %v1060_v7 = vld [vmem:[#allocation2 + $0x70] sm:$0xff]  ;;  %v1075_v10 = vld [vmem:[#allocation2 + $0xe8] sm:$0xff] }
   0x9   :  { %647 = vmatpush.bf16.msra.mxu1 %v1061_v3  ;;  %v1059_v11 = vld [vmem:[#allocation2 + $0x68] sm:$0xff]  ;;  %v1050_v12 = vld [vmem:[#allocation2 + $0x20] sm:$0xff]  ;;  %v1049_v16 = vld [vmem:[#allocation2 + $0x18] sm:$0xff] }
   0xa   :  { %635 = vmatpush.bf16.msra.mxu0 %v1052_v4  ;;  %v1066_v13 = vld [vmem:[#allocation2 + $0xa0] sm:$0xff]  ;;  %v1065_v17 = vld [vmem:[#allocation2 + $0x98] sm:$0xff]  ;;  %v1048_v21 = vld [vmem:[#allocation2 + $0x10] sm:$0xff] }
   0xb   :  { %661 = vmatpush.bf16.msra.mxu2 %v1068_v5  ;;  %v1074_v14 = vld [vmem:[#allocation2 + $0xe0] sm:$0xff]  ;;  %v1073_v18 = vld [vmem:[#allocation2 + $0xd8] sm:$0xff]  ;;  %v1064_v22 = vld [vmem:[#allocation2 + $0x90] sm:$0xff] }
   0xc   :  { %674 = vmatpush.bf16.msra.mxu3 %v1076_v6  ;;  %v1058_v15 = vld [vmem:[#allocation2 + $0x60] sm:$0xff]  ;;  %v1057_v19 = vld [vmem:[#allocation2 + $0x58] sm:$0xff]  ;;  %v1072_v23 = vld [vmem:[#allocation2 + $0xd0] sm:$0xff] }
   0xd   :  { %648 = vmatpush.bf16.msra.mxu1 %v1060_v7  ;;  %v30_v20 = vld [vmem:[%s1186_s0] sm:$0xff]  ;;  %v1056_v24 = vld [vmem:[#allocation2 + $0x50] sm:$0xff]  ;;  %v1047_v25 = vld [vmem:[#allocation2 + $0x8] sm:$0xff] }
   0xe   :  { %636 = vmatpush.bf16.msra.mxu0 %v1051_v8  ;;  %181 = vst [vmem:[#allocation1] ss:$9 sm:$0xff] %v30_v20  ;;  %v1063_v26 = vld [vmem:[#allocation2 + $0x88] sm:$0xff]  ;;  %v1046_v29 = vld [vmem:[#allocation2] sm:$0xff]  ;;  %v1085_v31 = vld [vmem:[#allocation2 + $0x138] sm:$0xff] }
   0xf   :  { %662 = vmatpush.bf16.msra.mxu2 %v1067_v9  ;;  %v1071_v27 = vld [vmem:[#allocation2 + $0xc8] sm:$0xff]  ;;  %v1062_v30 = vld [vmem:[#allocation2 + $0x80] sm:$0xff]  ;;  %v1101_v32 = vld [vmem:[#allocation2 + $0x1b8] sm:$0xff] }
  0x10   :  { %675 = vmatpush.bf16.msra.mxu3 %v1075_v10  ;;  %v1055_v28 = vld [vmem:[#allocation2 + $0x48] sm:$0xff]  ;;  %v1070_v33 = vld [vmem:[#allocation2 + $0xc0] sm:$0xff]  ;;  %v1109_v35 = vld [vmem:[#allocation2 + $0x1f8] sm:$0xff] }
  0x11   :  { %649 = vmatpush.bf16.msra.mxu1 %v1059_v11  ;;  %v1054_v34 = vld [vmem:[#allocation2 + $0x40] sm:$0xff]  ;;  %v1093_v36 = vld [vmem:[#allocation2 + $0x178] sm:$0xff]  ;;  %v1084_v37 = vld [vmem:[#allocation2 + $0x130] sm:$0xff] }
  0x12   :  { %637 = vmatpush.bf16.msra.mxu0 %v1050_v12  ;;  %v1100_v38 = vld [vmem:[#allocation2 + $0x1b0] sm:$0xff]  ;;  %v1083_v45 = vld [vmem:[#allocation2 + $0x128] sm:$0xff]  ;;  %v31_v50 = vld [vmem:[%s1186_s0 + $0x8] sm:$0x1] }
  0x13   :  { %663 = vmatpush.bf16.msra.mxu2 %v1066_v13  ;;  %v1108_v41 = vld [vmem:[#allocation2 + $0x1f0] sm:$0xff]  ;;  %v1099_v46 = vld [vmem:[#allocation2 + $0x1a8] sm:$0xff]  ;;  %v1082_v54 = vld [vmem:[#allocation2 + $0x120] sm:$0xff] }
  0x14   :  { %676 = vmatpush.bf16.msra.mxu3 %v1074_v14  ;;  %v1092_v42 = vld [vmem:[#allocation2 + $0x170] sm:$0xff]  ;;  %v1107_v52 = vld [vmem:[#allocation2 + $0x1e8] sm:$0xff]  ;;  %v1098_v55 = vld [vmem:[#allocation2 + $0x1a0] sm:$0xff] }
  0x15   :  { %650 = vmatpush.bf16.msra.mxu1 %v1058_v15  ;;  %v184_v39 = vld [vmem:[#allocation1 + $0x12] sm:$0xff]  ;;  %v182_v40 = vld [vmem:[#allocation1] sm:$0xff]  ;;  %v183_v44 = vld [vmem:[#allocation1 + $0x9] sm:$0xff] }
  0x16   :  { %638 = vmatpush.bf16.msra.mxu0 %v1049_v16  ;;  %v185_v43 = vld [vmem:[#allocation1 + $0x1b] sm:$0xff]  ;;  %v186_v48 = vld [vmem:[#allocation1 + $0x24] sm:$0xff]  ;;  %v187_v51 = vld [vmem:[#allocation1 + $0x2d] sm:$0xff] }
  0x17   :  { %664 = vmatpush.bf16.msra.mxu2 %v1065_v17  ;;  %v188_v47 = vld [vmem:[#allocation1 + $0x36] sm:$0xff]  ;;  %v189_v49 = vld [vmem:[#allocation1 + $0x3f] sm:$0xff]  ;;  %v1106_v56 = vld [vmem:[#allocation2 + $0x1e0] sm:$0xff] }
  0x18   :  { %677 = vmatpush.bf16.msra.mxu3 %v1073_v18  ;;  %v1091_v53 = vld [vmem:[#allocation2 + $0x168] sm:$0xff]  ;;  %191 = vst [vmem:[#allocation1] ss:$9 sm:$0xff] %v31_v50  ;;  %v1090_v57 = vld [vmem:[#allocation2 + $0x160] sm:$0xff]  ;;  %v1081_v58 = vld [vmem:[#allocation2 + $0x118] sm:$0xff] }
  0x19   :  { %651 = vmatpush.bf16.msra.mxu1 %v1057_v19  ;;  %v1097_v59 = vld [vmem:[#allocation2 + $0x198] sm:$0xff]  ;;  %v1080_v62 = vld [vmem:[#allocation2 + $0x110] sm:$0xff]  ;;  %v1079_v2 = vld [vmem:[#allocation2 + $0x108] sm:$0xff] }
  0x1a   :  { %639 = vmatpush.bf16.msra.mxu0 %v1048_v21  ;;  %v1105_v60 = vld [vmem:[#allocation2 + $0x1d8] sm:$0xff]  ;;  %v1096_v63 = vld [vmem:[#allocation2 + $0x190] sm:$0xff]  ;;  %v1095_v3 = vld [vmem:[#allocation2 + $0x188] sm:$0xff] }
  0x1b   :  { %665 = vmatpush.bf16.msra.mxu2 %v1064_v22  ;;  %v1089_v61 = vld [vmem:[#allocation2 + $0x158] sm:$0xff]  ;;  %v1104_v0 = vld [vmem:[#allocation2 + $0x1d0] sm:$0xff]  ;;  %v1103_v4 = vld [vmem:[#allocation2 + $0x1c8] sm:$0xff] }
  0x1c   :  { %678 = vmatpush.bf16.msra.mxu3 %v1072_v23  ;;  %v1088_v1 = vld [vmem:[#allocation2 + $0x150] sm:$0xff]  ;;  %v1087_v5 = vld [vmem:[#allocation2 + $0x148] sm:$0xff]  ;;  %v1078_v6 = vld [vmem:[#allocation2 + $0x100] sm:$0xff] }
  0x1d   :  { %652 = vmatpush.bf16.msra.mxu1 %v1056_v24  ;;  %v1094_v7 = vld [vmem:[#allocation2 + $0x180] sm:$0xff]  ;;  %v1117_v8 = vld [vmem:[#allocation2 + $0x238] sm:$0xff]  ;;  %v1116_v11 = vld [vmem:[#allocation2 + $0x230] sm:$0xff] }
  0x1e   :  { %640 = vmatpush.bf16.msra.mxu0 %v1047_v25  ;;  %v1102_v9 = vld [vmem:[#allocation2 + $0x1c0] sm:$0xff]  ;;  %v1115_v12 = vld [vmem:[#allocation2 + $0x228] sm:$0xff]  ;;  %v1113_v14 = vld [vmem:[#allocation2 + $0x218] sm:$0xff] }
  0x1f   :  { %666 = vmatpush.bf16.msra.mxu2 %v1063_v26  ;;  %v1086_v10 = vld [vmem:[#allocation2 + $0x140] sm:$0xff]  ;;  %v1112_v15 = vld [vmem:[#allocation2 + $0x210] sm:$0xff]  ;;  %v1111_v16 = vld [vmem:[#allocation2 + $0x208] sm:$0xff] }
  0x20   :  { %679 = vmatpush.bf16.msra.mxu3 %v1071_v27  ;;  %v1114_v13 = vld [vmem:[#allocation2 + $0x220] sm:$0xff]  ;;  %v192_v18 = vld [vmem:[#allocation1] sm:$0xff] }
  0x21   :  { %653 = vmatpush.bf16.msra.mxu1 %v1055_v28  ;;  %v1110_v17 = vld [vmem:[#allocation2 + $0x200] sm:$0xff]  ;;  %v1121_v27 = vld [vmem:[%s1188_s2] ss:$0 sm:$0xff] }
  0x22   :  { %641 = vmatpush.bf16.msra.mxu0 %v1046_v29 }
  0x23   :  { %667 = vmatpush.bf16.msra.mxu2 %v1062_v30 }
  0x24   :  { %680 = vmatpush.bf16.msra.mxu3 %v1070_v33 }
  0x25   :  { %654 = vmatpush.bf16.msra.mxu1 %v1054_v34  ;;  %642 = vmatmul.bf16.vlgmr.msra.gmra.mxu0 %v182_v40 }
  0x26   :  { %686 = vmatpush.bf16.msrb.mxu0 %v1085_v31  ;;  %668 = vmatmul.bf16.vlgmr.msra.gmra.mxu2 %v184_v39 }
  0x27   :  { %712 = vmatpush.bf16.msrb.mxu2 %v1101_v32  ;;  %681 = vmatmul.bf16.vlgmr.msra.gmra.mxu3 %v185_v43 }
  0x28   :  { %725 = vmatpush.bf16.msrb.mxu3 %v1109_v35  ;;  %655 = vmatmul.bf16.vlgmr.msra.gmra.mxu1 %v183_v44 }
  0x29   :  { %699 = vmatpush.bf16.msrb.mxu1 %v1093_v36 }
  0x2a   :  { %687 = vmatpush.bf16.msrb.mxu0 %v1084_v37 }
  0x2b   :  { %713 = vmatpush.bf16.msrb.mxu2 %v1100_v38 }
  0x2c   :  { %726 = vmatpush.bf16.msrb.mxu3 %v1108_v41 }
  0x2d   :  { %700 = vmatpush.bf16.msrb.mxu1 %v1092_v42 }
  0x2e   :  { %688 = vmatpush.bf16.msrb.mxu0 %v1083_v45 }
  0x2f   :  { %714 = vmatpush.bf16.msrb.mxu2 %v1099_v46 }
  0x30   :  { %727 = vmatpush.bf16.msrb.mxu3 %v1107_v52 }
  0x31   :  { %701 = vmatpush.bf16.msrb.mxu1 %v1091_v53 }
  0x32   :  { %689 = vmatpush.bf16.msrb.mxu0 %v1082_v54 }
  0x33   :  { %715 = vmatpush.bf16.msrb.mxu2 %v1098_v55 }
  0x34   :  { %728 = vmatpush.bf16.msrb.mxu3 %v1106_v56 }
  0x35   :  { %702 = vmatpush.bf16.msrb.mxu1 %v1090_v57 }
  0x36   :  { %690 = vmatpush.bf16.msrb.mxu0 %v1081_v58 }
  0x37   :  { %716 = vmatpush.bf16.msrb.mxu2 %v1097_v59 }
  0x38   :  { %729 = vmatpush.bf16.msrb.mxu3 %v1105_v60 }
  0x39   :  { %703 = vmatpush.bf16.msrb.mxu1 %v1089_v61 }
  0x3a   :  { %691 = vmatpush.bf16.msrb.mxu0 %v1080_v62 }
  0x3b   :  { %717 = vmatpush.bf16.msrb.mxu2 %v1096_v63 }
  0x3c   :  { %730 = vmatpush.bf16.msrb.mxu3 %v1104_v0 }
  0x3d   :  { %704 = vmatpush.bf16.msrb.mxu1 %v1088_v1 }
  0x3e   :  { %692 = vmatpush.bf16.msrb.mxu0 %v1079_v2 }
  0x3f   :  { %718 = vmatpush.bf16.msrb.mxu2 %v1095_v3 }
  0x40   :  { %731 = vmatpush.bf16.msrb.mxu3 %v1103_v4 }
  0x41   :  { %705 = vmatpush.bf16.msrb.mxu1 %v1087_v5 }
  0x42   :  { %693 = vmatpush.bf16.msrb.mxu0 %v1078_v6 }
  0x43   :  { %719 = vmatpush.bf16.msrb.mxu2 %v1094_v7 }
  0x44   :  { %732 = vmatpush.bf16.msrb.mxu3 %v1102_v9 }
  0x45   :  { %706 = vmatpush.bf16.msrb.mxu1 %v1086_v10  ;;  %694 = vmatmul.bf16.vlgmr.msrb.gmra.mxu0 %v186_v48 }
  0x46   :  { %738 = vmatpush.bf16.msra.mxu0 %v1117_v8  ;;  %720 = vmatmul.bf16.vlgmr.msrb.gmra.mxu2 %v188_v47 }
  0x47   :  { %733 = vmatmul.bf16.vlgmr.msrb.gmra.mxu3 %v189_v49 }
  0x48   :  { %707 = vmatmul.bf16.vlgmr.msrb.gmra.mxu1 %v187_v51 }
  0x4a   :  { %739 = vmatpush.bf16.msra.mxu0 %v1116_v11 }
  0x4e   :  { %740 = vmatpush.bf16.msra.mxu0 %v1115_v12 }
  0x52   :  { %741 = vmatpush.bf16.msra.mxu0 %v1114_v13 }
  0x56   :  { %742 = vmatpush.bf16.msra.mxu0 %v1113_v14 }
  0x5a   :  { %743 = vmatpush.bf16.msra.mxu0 %v1112_v15 }
  0x5e   :  { %744 = vmatpush.bf16.msra.mxu0 %v1111_v16 }
  0x62   :  { %745 = vmatpush.bf16.msra.mxu0 %v1110_v17 }
  0x65   :  { %746 = vmatmul.bf16.vlgmr.msra.gmra.mxu0 %v192_v18 }
  0xa2   :  { %v643_v19 = vpop.f32.mrf.mxu0 }
  0xa3   :  { %v644_v28 = vadd.f32 %v1121_v27, %v643_v19 }
  0xa5   :  { %v656_v20 = vpop.f32.mrf.mxu1 }
  0xa6   :  { %v657_v31 = vadd.f32 %v656_v20, %v644_v28 }
  0xa9   :  { %v669_v21 = vpop.f32.mrf.mxu2 }
  0xaa   :  { %v682_v22 = vpop.f32.mrf.mxu3  ;;  %v645_v23 = vpop.f32.mrf.mxu0  ;;  %v670_v33 = vadd.f32 %v669_v21, %v657_v31 }
  0xac   :  { %v683_v37 = vadd.f32 %v682_v22, %v670_v33 }
  0xad   :  { %v658_v24 = vpop.f32.mrf.mxu1 }
  0xb1   :  { %v671_v25 = vpop.f32.mrf.mxu2 }
  0xb2   :  { %v684_v26 = vpop.f32.mrf.mxu3 }
  0xc2   :  { %v695_v29 = vpop.f32.mrf.mxu0 }
  0xc3   :  { %v696_v39 = vadd.f32 %v695_v29, %v683_v37 }
  0xc5   :  { %v708_v30 = vpop.f32.mrf.mxu1 }
  0xc6   :  { %v709_v41 = vadd.f32 %v708_v30, %v696_v39 }
  0xc9   :  { %v721_v32 = vpop.f32.mrf.mxu2 }
  0xca   :  { %v734_v34 = vpop.f32.mrf.mxu3  ;;  %v697_v35 = vpop.f32.mrf.mxu0  ;;  %v722_v42 = vadd.f32 %v721_v32, %v709_v41 }
  0xcc   :  { %v735_v43 = vadd.f32 %v734_v34, %v722_v42 }
  0xcd   :  { %v710_v36 = vpop.f32.mrf.mxu1 }
  0xd1   :  { %v723_v38 = vpop.f32.mrf.mxu2 }
  0xd2   :  { %v736_v40 = vpop.f32.mrf.mxu3 }
  0xe2   :  { %v747_v44 = vpop.f32.mrf.mxu0 }
  0xe3   :  { %v748_v45 = vadd.f32 %v747_v44, %v735_v43 }
  0xe5   :  { %v751_v46 = vpack.c.bf16 %v748_v45, %v748_v45 }
  0xe7   :  { %752 = vst [vmem:[%s1189_s3] sm:$0x1] %v751_v46 }
  0xea   :  { %v749_v47 = vpop.f32.mrf.mxu0 }
  0xeb   :  { %757 = vsyncpa [#allocation3], 1 }

</bundles_post_ra>
